<compile_context>
chip_gen: v7x
topology: tpu7x:2x2x1
jax: 0.10.0
libtpu: 0.0.40
codegen_flags: <defaults>
</compile_context>

<pallas_src>
import jax
import jax.numpy as jnp
from jax.experimental import pallas as pl
from jax.experimental.pallas import tpu as pltpu


def _round_up(x, m):
    return (x + m - 1) // m * m


def default_tile_config():
    """Per-generation layer-1 tiling: (tk, tn, vmem_limit_bytes)."""
    try:
        kind = jax.devices()[0].device_kind.lower()
    except Exception:  # defensive: unknown backend string
        kind = ""
    if "v7" in kind:
        # 2 TensorCores / 64 MiB VMEM per TC: two "parallel" N tiles split the
        # weight stream across both cores; 8 MiB weight tiles double-buffered.
        return 4096, 1024, 48 * 1024 * 1024
    # v5e / v6e (1 TC, 128 MiB physical VMEM): full-N 16 MiB contiguous tiles.
    return 4096, 2048, 64 * 1024 * 1024


# ------------- layer-1 kernel: tiled (B,K)@(K,N)+b, bf16 in / f32 acc --------
def _linear1_kernel(x_ref, w_ref, b_ref, o_ref, acc_ref):
    # grid = (N_tiles, K_tiles); K (reduction) is the trailing "arbitrary" axis.
    # x_ref is the full, VMEM-resident activation (Kt, B, tk); w_ref is one
    # contiguous (tk, tn) weight slab.
    k = pl.program_id(1)

    @pl.when(k == 0)
    def _():
        acc_ref[...] = jnp.zeros_like(acc_ref)

    acc_ref[...] += jnp.dot(
        x_ref[k], w_ref[...], preferred_element_type=jnp.float32
    )

    @pl.when(k == pl.num_programs(1) - 1)
    def _():
        # Bias added once, in the finalize branch; output stored as bf16.
        o_ref[...] = (acc_ref[...] + b_ref[...]).astype(o_ref.dtype)


def linear1_pallas(x_t, w_t, b_pad, *, vmem_limit_bytes):
    """y = x @ w + b with x pre-reshaped to (Kt, B, tk) and w tile-repacked.

    x_t   : (Kt, B, tk)  bf16  (VMEM-resident for the whole call)
    w_t   : (Nt, Kp, tn) bf16  (tile-contiguous repack; Kp == Kt * tk? no --
                                any tk dividing Kp is valid)
    b_pad : (1, Nt*tn)   f32   (padded entries exactly 0)
    returns (B, Nt*tn) bf16 (padded columns exactly 0).
    """
    Kt, B, tk = x_t.shape
    Nt, Kp, tn = w_t.shape
    assert Kt * tk == Kp, (Kt, tk, Kp)
    Np = Nt * tn
    assert b_pad.shape == (1, Np), (b_pad.shape, Np)

    grid = (Nt, Kt)

    return pl.pallas_call(
        _linear1_kernel,
        out_shape=jax.ShapeDtypeStruct((B, Np), jnp.bfloat16),
        grid_spec=pltpu.PrefetchScalarGridSpec(
            num_scalar_prefetch=0,
            grid=grid,
            in_specs=[
                # Whole activation resident in VMEM (constant index -> one DMA).
                pl.BlockSpec((Kt, B, tk), lambda n, k: (0, 0, 0)),
                # One contiguous (tk, tn) weight slab per step (leading dim
                # squeezed); double-buffered by default.
                pl.BlockSpec((None, tk, tn), lambda n, k: (n, k, 0)),
                # Bias tile, only read in the finalize branch.
                pl.BlockSpec((1, tn), lambda n, k: (0, n)),
            ],
            out_specs=pl.BlockSpec((B, tn), lambda n, k: (0, n)),
            scratch_shapes=[pltpu.VMEM((B, tn), jnp.float32)],
        ),
        compiler_params=pltpu.CompilerParams(
            dimension_semantics=("parallel", "arbitrary"),
            vmem_limit_bytes=vmem_limit_bytes,
        ),
    )(x_t, w_t, b_pad)


# ------ fused tail: Linear(2000->1400) -> Linear(1400->800) -> CoralLayer ----
def _tail_kernel(y_ref, w2_ref, b2_ref, w3_ref, b3_ref, wc_ref, bc_ref, o_ref):
    # All tail weights (~8 MiB bf16, lane-padded dims) are VMEM-resident for
    # the whole call; activations never leave the chip between layers.
    h = jnp.dot(y_ref[...], w2_ref[...],
                preferred_element_type=jnp.float32) + b2_ref[...]
    h = jnp.dot(h.astype(jnp.bfloat16), w3_ref[...],
                preferred_element_type=jnp.float32) + b3_ref[...]
    # CoralLayer: single output unit + per-class bias (no weight replication).
    z = jnp.sum(h * wc_ref[...].astype(jnp.float32), axis=-1, keepdims=True)
    o_ref[...] = z + bc_ref[...]


def tail_pallas(y, w2, b2, w3, b3, wc, bc):
    B = y.shape[0]
    nc1 = bc.shape[1]
    vmem = pl.BlockSpec(memory_space=pltpu.MemorySpace.VMEM)
    return pl.pallas_call(
        _tail_kernel,
        out_shape=jax.ShapeDtypeStruct((B, nc1), jnp.float32),
        in_specs=[vmem] * 7,
        out_specs=vmem,
        compiler_params=pltpu.CompilerParams(
            vmem_limit_bytes=32 * 1024 * 1024,
        ),
    )(y, w2, b2, w3, b3, wc, bc)


# ------------------------------- parameters ----------------------------------
def init_densenet_params(key, resolution=16, num_classes=101):
    """Raw f32 parameters (PyTorch nn.Linear-style init)."""
    in_dim = 3 * resolution * resolution
    dims = [(in_dim, 2000), (2000, 1400), (1400, 800)]
    keys = jax.random.split(key, 2 * len(dims) + 1)

    ws, bs = [], []
    for i, (fan_in, fan_out) in enumerate(dims):
        bound = 1.0 / (fan_in ** 0.5)
        ws.append(jax.random.uniform(keys[2 * i], (fan_in, fan_out),
                                     jnp.float32, -bound, bound))
        bs.append(jax.random.uniform(keys[2 * i + 1], (fan_out,),
                                     jnp.float32, -bound, bound))

    # CoralLayer: Linear(800 -> 1, bias=False) + coral_bias of shape (C-1,)
    bound = 1.0 / (800 ** 0.5)
    coral_w = jax.random.uniform(keys[-1], (800, 1), jnp.float32, -bound, bound)
    coral_bias = (jnp.arange(num_classes - 1, 0, -1, dtype=jnp.float32)
                  / (num_classes - 1))
    return ws, bs, coral_w, coral_bias


def _assert_zero(a, what):
    """Checks a padding-invariant slab is exactly zero (skipped under trace)."""
    try:
        ok = bool(jnp.all(a == 0))
    except Exception:   # tracing: cannot concretize; invariant is by-construction
        return
    assert ok, f"zero-padding invariant broken: {what}"


def pack_params(ws, bs, coral_w, coral_bias, *, tk, tn):
    """One-time device-side packing: bf16 weights, tile-contiguous w1, padded tail."""
    w1, b1 = ws[0], bs[0]
    K1, N1 = w1.shape
    Kp, Np = _round_up(K1, tk), _round_up(N1, tn)
    Nt = Np // tn

    w1p = jnp.pad(w1.astype(jnp.bfloat16), ((0, Kp - K1), (0, Np - N1)))
    # Tile-contiguous repack: every (tk, tn) tile is one contiguous HBM slab.
    w1t = w1p.reshape(Kp, Nt, tn).transpose(1, 0, 2)          # (Nt, Kp, tn)
    b1p = jnp.pad(b1, (0, Np - N1)).reshape(1, Np)

    # Tail dims padded to 128-lane multiples: 1400 -> 1408, 800 -> 896.
    H2, H3 = ws[1].shape[1], ws[2].shape[1]
    H2p, H3p = _round_up(H2, 128), _round_up(H3, 128)

    w2p = jnp.pad(ws[1].astype(jnp.bfloat16), ((0, Np - N1), (0, H2p - H2)))
    b2p = jnp.pad(bs[1], (0, H2p - H2)).reshape(1, H2p)
    w3p = jnp.pad(ws[2].astype(jnp.bfloat16), ((0, H2p - H2), (0, H3p - H3)))
    b3p = jnp.pad(bs[2], (0, H3p - H3)).reshape(1, H3p)
    wcp = jnp.pad(coral_w.reshape(1, -1).astype(jnp.bfloat16),
                  ((0, 0), (0, H3p - H3)))                    # (1, H3p)
    bc = coral_bias.reshape(1, -1)                            # (1, C-1)

    # Invariants the fused tail relies on: padded layer-1 columns are exactly 0
    # (zero weight cols + zero bias entries) and w2p has matching zero rows;
    # same scheme for the 1408 / 896 paddings.
    _assert_zero(w1p[:, N1:], "w1 padded cols")
    _assert_zero(b1p[:, N1:], "b1 padded entries")
    _assert_zero(w2p[N1:, :], "w2 padded rows")
    _assert_zero(w2p[:, H2:], "w2 padded cols")
    _assert_zero(b2p[:, H2:], "b2 padded entries")
    _assert_zero(w3p[H2:, :], "w3 padded rows")
    _assert_zero(w3p[:, H3:], "w3 padded cols")
    _assert_zero(b3p[:, H3:], "b3 padded entries")
    _assert_zero(wcp[:, H3:], "coral_w padded entries")

    return dict(w1t=w1t, b1p=b1p, w2p=w2p, b2p=b2p, w3p=w3p, b3p=b3p,
                wc=wcp, bc=bc)


# --------------------------------- forward ------------------------------------
def densenet_forward(x, params, *, tk, vmem_limit_bytes):
    w1t, b1p = params["w1t"], params["b1p"]
    _, Kp, _ = w1t.shape
    B = x.shape[0]

    y = x.reshape(B, -1)                              # torch.nn.Flatten (row-major)
    K = y.shape[1]
    assert Kp % tk == 0 and Kp >= K, (Kp, tk, K)
    # Per-call work only touches the tiny (B, K) activation, never weights.
    yp = jnp.pad(y, ((0, 0), (0, Kp - K))).astype(jnp.bfloat16)
    xt = yp.reshape(B, Kp // tk, tk).transpose(1, 0, 2)      # (Kt, B, tk)

    y1 = linear1_pallas(xt, w1t, b1p, vmem_limit_bytes=vmem_limit_bytes)
    return tail_pallas(y1, params["w2p"], params["b2p"], params["w3p"],
                       params["b3p"], params["wc"], params["bc"])


# -------------------------------- reference ------------------------------------
def densenet_reference(x, ws, bs, coral_w, coral_bias):
    """Mirrors the kernel's mixed precision exactly: bf16 weights and
    activation hand-offs, f32 accumulation and biases."""
    f32 = jnp.float32

    def bf(a):
        return a.astype(jnp.bfloat16).astype(f32)

    B = x.shape[0]
    y = bf(x.reshape(B, -1))
    y = y @ bf(ws[0]) + bs[0]
    y = bf(y)                            # layer-1 output stored as bf16
    y = y @ bf(ws[1]) + bs[1]
    y = bf(y)                            # cast before the 1400->800 matmul
    y = y @ bf(ws[2]) + bs[2]            # stays f32 into the coral head
    z = y @ bf(coral_w)
    return z + coral_bias[None, :]


if __name__ == "__main__":
    resolution = 32          # small test shape (module default is 256); K = 3*32*32
    num_classes = 101
    batch = 2

    key = jax.random.PRNGKey(0)
    k_param, k_x = jax.random.split(key)

    ws, bs, coral_w, coral_bias = init_densenet_params(
        k_param, resolution=resolution, num_classes=num_classes)
    x = jax.random.normal(k_x, (batch, 3, resolution, resolution), jnp.float32)

    ref = densenet_reference(x, ws, bs, coral_w, coral_bias)

    prod_tk, prod_tn, prod_vmem = default_tile_config()
    # Config 1 (small tiles) exercises the multi-step accumulate / multi-N /
    # padded-N path (grid (4, 6) at this shape); config 2 is the production
    # big-tile path (including K-padding of x up to tk).
    configs = [
        (512, 512, 32 * 1024 * 1024),
        (prod_tk, prod_tn, prod_vmem),
    ]

    fwd = jax.jit(densenet_forward, static_argnames=("tk", "vmem_limit_bytes"))

    for tk, tn, vmem in configs:
        params = pack_params(ws, bs, coral_w, coral_bias, tk=tk, tn=tn)
        logits = jax.block_until_ready(
            fwd(x, params, tk=tk, vmem_limit_bytes=vmem))
        assert logits.shape == (batch, num_classes - 1), logits.shape
        max_err = float(jnp.max(jnp.abs(logits - ref)))
        assert jnp.allclose(logits, ref, atol=2e-2, rtol=2e-2), (tk, tn, max_err)

    print("KERNEL_OK")
</pallas_src>

<mosaic_0001>
module attributes {stable_mosaic.version = 11 : i64} {
  func.func @_linear1_kernel(%arg0: i32, %arg1: i32, %arg2: memref<6x2x512xbf16, #tpu.memory_space<vmem>>, %arg3: memref<1x512x512xbf16, #tpu.memory_space<vmem>>, %arg4: memref<1x512xf32, #tpu.memory_space<vmem>>, %arg5: memref<2x512xbf16, #tpu.memory_space<vmem>>, %arg6: memref<2x512xf32, #tpu.memory_space<vmem>>) attributes {dimension_semantics = [#tpu.dimension_semantics<parallel>, #tpu.dimension_semantics<arbitrary>], iteration_bounds = array<i64: 4, 6>, scalar_prefetch = 0 : i64, scratch_operands = 1 : i64, tpu.core_type = #tpu.core_type<tc>, window_params = [{pipeline_mode = #tpu.pipeline_mode<synchronous>, transform_indices = @transform_0, window_bounds = array<i64: 6, 2, 512>}, {transform_indices = @transform_1, window_bounds = array<i64: 1, 512, 512>}, {transform_indices = @transform_2, window_bounds = array<i64: 1, 512>}, {transform_indices = @transform_3, window_bounds = array<i64: 2, 512>}]} {
    %c0_i32 = arith.constant 0 : i32
    %0 = arith.cmpi eq, %arg1, %c0_i32 : i32
    %1 = arith.extui %0 : i1 to i32
    %c0_i32_0 = arith.constant 0 : i32
    %2 = arith.cmpi ne, %1, %c0_i32_0 : i32
    scf.if %2 {
      %cst_10 = arith.constant 0.000000e+00 : f32
      %15 = vector.broadcast %cst_10 : f32 to vector<2x512xf32>
      %c0_11 = arith.constant 0 : index
      %c0_12 = arith.constant 0 : index
      %16 = vector.load %arg6[%c0_11, %c0_12] : memref<2x512xf32, #tpu.memory_space<vmem>>, vector<2x512xf32>
      tpu.vector_store %arg6[%c0_11, %c0_12], %15 {strides = array<i32>} : memref<2x512xf32, #tpu.memory_space<vmem>>, vector<2x512xf32>,
    } else {
    }
    %c0 = arith.constant 0 : index
    %c0_1 = arith.constant 0 : index
    %3 = vector.load %arg6[%c0, %c0_1] : memref<2x512xf32, #tpu.memory_space<vmem>>, vector<2x512xf32>
    %4 = arith.index_cast %arg1 : i32 to index
    %c0_2 = arith.constant 0 : index
    %c0_3 = arith.constant 0 : index
    %5 = vector.load %arg2[%4, %c0_2, %c0_3] : memref<6x2x512xbf16, #tpu.memory_space<vmem>>, vector<1x2x512xbf16>
    %6 = vector.shape_cast %5 : vector<1x2x512xbf16> to vector<2x512xbf16>
    %c0_4 = arith.constant 0 : index
    %c0_5 = arith.constant 0 : index
    %c0_6 = arith.constant 0 : index
    %7 = vector.load %arg3[%c0_4, %c0_5, %c0_6] : memref<1x512x512xbf16, #tpu.memory_space<vmem>>, vector<1x512x512xbf16>
    %8 = vector.shape_cast %7 : vector<1x512x512xbf16> to vector<512x512xbf16>
    %cst = arith.constant dense<0.000000e+00> : vector<2x512xf32>
    %9 = tpu.matmul %6, %8, %cst {dimension_numbers = #tpu.dot_dimension_numbers<[1], [0], [0], [1], [0, 0, 1, 1], [], []>} : vector<2x512xbf16>, vector<512x512xbf16>, vector<2x512xf32> -> vector<2x512xf32>
    %10 = arith.addf %3, %9 : vector<2x512xf32>
    %c0_7 = arith.constant 0 : index
    %c0_8 = arith.constant 0 : index
    %11 = vector.load %arg6[%c0_7, %c0_8] : memref<2x512xf32, #tpu.memory_space<vmem>>, vector<2x512xf32>
    tpu.vector_store %arg6[%c0_7, %c0_8], %10 {strides = array<i32>} : memref<2x512xf32, #tpu.memory_space<vmem>>, vector<2x512xf32>,
    %c5_i32 = arith.constant 5 : i32
    %12 = arith.cmpi eq, %arg1, %c5_i32 : i32
    %13 = arith.extui %12 : i1 to i32
    %c0_i32_9 = arith.constant 0 : i32
    %14 = arith.cmpi ne, %13, %c0_i32_9 : i32
    scf.if %14 {
      %c0_10 = arith.constant 0 : index
      %c0_11 = arith.constant 0 : index
      %15 = vector.load %arg6[%c0_10, %c0_11] : memref<2x512xf32, #tpu.memory_space<vmem>>, vector<2x512xf32>
      %c0_12 = arith.constant 0 : index
      %c0_13 = arith.constant 0 : index
      %16 = vector.load %arg4[%c0_12, %c0_13] : memref<1x512xf32, #tpu.memory_space<vmem>>, vector<1x512xf32>
      %17 = vector.broadcast %16 : vector<1x512xf32> to vector<2x512xf32>
      %18 = arith.addf %15, %17 : vector<2x512xf32>
      %19 = arith.truncf %18 : vector<2x512xf32> to vector<2x512xbf16>
      %c0_14 = arith.constant 0 : index
      %c0_15 = arith.constant 0 : index
      %20 = vector.load %arg5[%c0_14, %c0_15] : memref<2x512xbf16, #tpu.memory_space<vmem>>, vector<2x512xbf16>
      tpu.vector_store %arg5[%c0_14, %c0_15], %19 {strides = array<i32>} : memref<2x512xbf16, #tpu.memory_space<vmem>>, vector<2x512xbf16>,
    } else {
    }
    return
  }
  func.func @transform_0(%arg0: i32, %arg1: i32) -> (i32, i32, i32) {
    %c0_i32 = arith.constant 0 : i32
    %c0_i32_0 = arith.constant 0 : i32
    %c0_i32_1 = arith.constant 0 : i32
    %c0_i32_2 = arith.constant 0 : i32
    return %c0_i32, %c0_i32_0, %c0_i32_1 : i32, i32, i32
  }
  func.func @transform_1(%arg0: i32, %arg1: i32) -> (i32, i32, i32) {
    %c0_i32 = arith.constant 0 : i32
    %c0_i32_0 = arith.constant 0 : i32
    return %arg0, %arg1, %c0_i32 : i32, i32, i32
  }
  func.func @transform_2(%arg0: i32, %arg1: i32) -> (i32, i32) {
    %c0_i32 = arith.constant 0 : i32
    %c0_i32_0 = arith.constant 0 : i32
    return %c0_i32, %arg0 : i32, i32
  }
  func.func @transform_3(%arg0: i32, %arg1: i32) -> (i32, i32) {
    %c0_i32 = arith.constant 0 : i32
    %c0_i32_0 = arith.constant 0 : i32
    return %c0_i32, %arg0 : i32, i32
  }
}

module attributes {stable_mosaic.version = 11 : i64} {
  func.func @_tail_kernel(%arg0: memref<2x2048xbf16, #tpu.memory_space<vmem>>, %arg1: memref<2048x1408xbf16, #tpu.memory_space<vmem>>, %arg2: memref<1x1408xf32, #tpu.memory_space<vmem>>, %arg3: memref<1408x896xbf16, #tpu.memory_space<vmem>>, %arg4: memref<1x896xf32, #tpu.memory_space<vmem>>, %arg5: memref<1x896xbf16, #tpu.memory_space<vmem>>, %arg6: memref<1x100xf32, #tpu.memory_space<vmem>>, %arg7: memref<2x100xf32, #tpu.memory_space<vmem>>) attributes {dimension_semantics = [], scalar_prefetch = 0 : i64, scratch_operands = 0 : i64, tpu.core_type = #tpu.core_type<tc>} {
    %c0 = arith.constant 0 : index
    %c0_0 = arith.constant 0 : index
    %0 = vector.load %arg0[%c0, %c0_0] : memref<2x2048xbf16, #tpu.memory_space<vmem>>, vector<2x2048xbf16>
    %c0_1 = arith.constant 0 : index
    %c0_2 = arith.constant 0 : index
    %1 = vector.load %arg1[%c0_1, %c0_2] : memref<2048x1408xbf16, #tpu.memory_space<vmem>>, vector<2048x1408xbf16>
    %cst = arith.constant dense<0.000000e+00> : vector<2x1408xf32>
    %2 = tpu.matmul %0, %1, %cst {dimension_numbers = #tpu.dot_dimension_numbers<[1], [0], [0], [1], [0, 0, 1, 1], [], []>} : vector<2x2048xbf16>, vector<2048x1408xbf16>, vector<2x1408xf32> -> vector<2x1408xf32>
    %c0_3 = arith.constant 0 : index
    %c0_4 = arith.constant 0 : index
    %3 = vector.load %arg2[%c0_3, %c0_4] : memref<1x1408xf32, #tpu.memory_space<vmem>>, vector<1x1408xf32>
    %4 = vector.broadcast %3 : vector<1x1408xf32> to vector<2x1408xf32>
    %5 = arith.addf %2, %4 : vector<2x1408xf32>
    %6 = arith.truncf %5 : vector<2x1408xf32> to vector<2x1408xbf16>
    %c0_5 = arith.constant 0 : index
    %c0_6 = arith.constant 0 : index
    %7 = vector.load %arg3[%c0_5, %c0_6] : memref<1408x896xbf16, #tpu.memory_space<vmem>>, vector<1408x896xbf16>
    %cst_7 = arith.constant dense<0.000000e+00> : vector<2x896xf32>
    %8 = tpu.matmul %6, %7, %cst_7 {dimension_numbers = #tpu.dot_dimension_numbers<[1], [0], [0], [1], [0, 0, 1, 1], [], []>} : vector<2x1408xbf16>, vector<1408x896xbf16>, vector<2x896xf32> -> vector<2x896xf32>
    %c0_8 = arith.constant 0 : index
    %c0_9 = arith.constant 0 : index
    %9 = vector.load %arg4[%c0_8, %c0_9] : memref<1x896xf32, #tpu.memory_space<vmem>>, vector<1x896xf32>
    %10 = vector.broadcast %9 : vector<1x896xf32> to vector<2x896xf32>
    %11 = arith.addf %8, %10 : vector<2x896xf32>
    %c0_10 = arith.constant 0 : index
    %c0_11 = arith.constant 0 : index
    %12 = vector.load %arg5[%c0_10, %c0_11] : memref<1x896xbf16, #tpu.memory_space<vmem>>, vector<1x896xbf16>
    %13 = arith.extf %12 : vector<1x896xbf16> to vector<1x896xf32>
    %14 = vector.broadcast %13 : vector<1x896xf32> to vector<2x896xf32>
    %15 = arith.mulf %11, %14 : vector<2x896xf32>
    %cst_12 = arith.constant dense<0.000000e+00> : vector<2xf32>
    %16 = vector.multi_reduction <add>, %15, %cst_12 [1] : vector<2x896xf32> to vector<2xf32>
    %17 = vector.shape_cast %16 : vector<2xf32> to vector<2x1xf32>
    %c0_13 = arith.constant 0 : index
    %c0_14 = arith.constant 0 : index
    %18 = vector.load %arg6[%c0_13, %c0_14] : memref<1x100xf32, #tpu.memory_space<vmem>>, vector<1x100xf32>
    %19 = vector.broadcast %17 : vector<2x1xf32> to vector<2x100xf32>
    %20 = vector.broadcast %18 : vector<1x100xf32> to vector<2x100xf32>
    %21 = arith.addf %19, %20 : vector<2x100xf32>
    %c0_15 = arith.constant 0 : index
    %c0_16 = arith.constant 0 : index
    %22 = vector.load %arg7[%c0_15, %c0_16] : memref<2x100xf32, #tpu.memory_space<vmem>>, vector<2x100xf32>
    tpu.vector_store %arg7[%c0_15, %c0_16], %21 {strides = array<i32>} : memref<2x100xf32, #tpu.memory_space<vmem>>, vector<2x100xf32>,
    return
  }
}

</mosaic_0001>

<bundles_post_ra>
// kernel: densenet_forward.2
= control target key start
LH: loop header
LB: loop body
LE: loop exit
PB: predicated region body
PF: predicated region fallthrough
CT: control target
= control target key end

     0   :  { %8 = vsyncpa [#allocation4], 0  ;;  %s2501_s0 = inlined_call_operand.vmem [shape: bf16[6,2,512], index: 0, kind: input, shape index: {}]   ;;  %s2502_s1 = inlined_call_operand.hbm [shape: bf16[4,3072,512], index: 1, kind: input, shape index: {}]   ;;  %s2503_s2 = inlined_call_operand.hbm [shape: f32[1,2048], index: 2, kind: input, shape index: {}]   ;;  %s2504_s3 = inlined_call_operand.vmem [shape: bf16[2,2048], index: 3, kind: output, shape index: {}]  }
   0x1   :  { %10 = vsyncpa [#allocation4 + $0x1], 0 }
   0x2   :  { %11 = vsyncpa [#allocation6], 0 }
   0x3   :  { %13 = vsyncpa [#allocation6 + $0x1], 0  ;;  %s2083_s12 = smov 0   ;;  %s2085_s13 = smov 0  }
   0x4   :  { %s2087_s14 = smov 0   ;;  %s2089_s15 = smov 0  }
   0x5   :  { %s2091_s16 = smov 0   ;;  %s2093_s17 = smov 0  }
   0x6   :  { %s2095_s18 = smov 0   ;;  %s2097_s19 = smov 0  }
   0x7   :  { %s2099_s20 = smov 0   ;;  %s2101_s21 = smov 0  }
   0x8   :  { %s2103_s22 = smov 0  }
   0x9 LB: > { %2512 = sst [smem:[#allocation9_spill]] %s2046_s20  ;;  %s28_s23 = sadd.s32 1, %s2046_s20  ;;  %s2054_s22 = sphi %s2103_s22, %s19_s22   ;;  %s2050_s21 = sphi %s2101_s21, %s2535_s21   ;;  %s2046_s20 = sphi %s2099_s20, %s2526_s20   ;;  %s2042_s19 = sphi %s2097_s19, %s2534_s19   ;;  %s2038_s18 = sphi %s2095_s18, %s2525_s18   ;;  %s2034_s17 = sphi %s2093_s17, %s2533_s17   ;;  %s2030_s16 = sphi %s2091_s16, %s2532_s16   ;;  %s2026_s15 = sphi %s2089_s15, %s2531_s15   ;;  %s2022_s14 = sphi %s2087_s14, %s2530_s14   ;;  %s2018_s13 = sphi %s2085_s13, %s2529_s13   ;;  %s2014_s12 = sphi %s2083_s12, %s2528_s12  }
   0xa   : > { %s31_s24 = sadd.s32 1, %s2050_s21  ;;  %p29_p0 = scmp.ge.s32.totalorder %s28_s23, 6 }
   0xb   : > { %s61_s25 = sadd.s32 1, %s2034_s17  ;;  %p68_p1 = scmp.ne.s32.totalorder %s2034_s17, %s2030_s16 }
   0xc   : > { %p2509_p2 = scmp.eq.s32.totalorder %s2054_s22, 0  ;;  %s2537_s23 = smov (%p29_p0, %s28_s23), 0 }
   0xd   : > { %2513 = sst [smem:[#allocation10_spill]] %s2537_s23  ;;  %s2539_s24 = smov (!%p29_p0, %s31_s24), %s2050_s21 }
   0xe   : > { %s57_s26 = ssub.s32 %s2046_s20, %s2537_s23  ;;  %p2151_p3 = por %p2509_p2, %p68_p1 }
   0xf   : > { %p33_p4 = scmp.ge.s32.totalorder %s2539_s24, 4  ;;  %p74_p5 = scmp.ne.s32.totalorder %s2030_s16, %s2026_s15 }
  0x10   : > { %p2508_p6 = scmp.lt.s32.totalorder %s2054_s22, 24  ;;  %s153_s28 = sand.u32 1, %s2034_s17  }
  0x11   : > { %s2541_s24 = smov (%p33_p4, %s2539_s24), 0  ;;  %s1592_s29 = sshll.u32 %s2046_s20, 8 }
  0x12   : > { %2515 = sst [smem:[#allocation11_spill]] %s2541_s24  ;;  %s2164_s30 = ssub.s32 %s2050_s21, %s2541_s24 }
  0x13   : > { %s58_s4 = sor.u32 %s57_s26, %s2164_s30  ;;  %s1444_s5 = sshll.u32 %s153_s28, 10 }
  0x14   : > { %p59_p7 = scmp.eq.s32.totalorder %s58_s4, 0  ;;  %s1602_s6 = smul.u32 1536, %s2050_s21 }
  0x15   : > { %s157_s7 = scalar_lea.vmem [#allocation3], %s1444_s5  ;;  %p2177_p8 = pnand %p2508_p6, %p2151_p3 }
  0x16   : > { %s167_s8 = sshll.u32 %s157_s7, 4  ;;  %s164_s10 = sadd.s32 %s1602_s6, %s1592_s29  ;;  %s2171_s8 = int_to_ptr.vmem [resolvable:$true] %s167_s8 }
  0x17   : > { %s2169_s9 = scalar_select %p59_p7, %s2034_s17, %s61_s25  }
  0x18   : > { %s1447_s11 = sshll.u32 %s164_s10, 6  ;;  %s2186_s25 = scalar_lea.sflag [#allocation4], %s153_s28 }
  0x19   : > { %s2184_s26 = scalar_lea.hbm %s2502_s1, %s1447_s11  ;;  %p1902_p10 = pneg %p2177_p8 }
  0x1a   : > { %s1900_s29 = scalar_lea.hbm %s2184_s26, 16384  ;;  %s1905_s24 = scalar_lea.hbm %s2502_s1, 393216 }
  0x1b   : > { %p1901_p9 = scmp.ne.s32.totalorder %s2184_s26, %s1900_s29  ;;  %p1906_p13 = scmp.lt.u32.totalorder %s2184_s26, %s2502_s1 }
  0x1c   : > { %p1907_p0 = scmp.lt.u32.totalorder %s1905_s24, %s1900_s29  ;;  %p1909_p3 = scmp.lt.u32.totalorder %s1900_s29, %s2184_s26 }
  0x1d   : > { %p1903_p11 = pnand %p1902_p10, %p1901_p9 }
  0x1e   : > { %p1908_p1 = por %p1907_p0, %p1906_p13 }
  0x1f   : > { %p1904_p12 = pneg %p1903_p11 }
  0x20   : > { %p1910_p4 = por %p1909_p3, %p1908_p1 }
  0x22   : > { %p1911_p7 = pnand %p1910_p4, %p1904_p12 }
  0x24   : > { %1914 = shalt.err (!%p1911_p7)
}
  0x25   : > { %s1915_s28 = scalar_lea.vmem %s2171_s8, 16384  ;;  %s2056_s6 = smov [#allocation3]  }
  0x26   : > { %p1916_p9 = scmp.ne.s32.totalorder %s2171_s8, %s1915_s28  ;;  %s1920_s7 = sshll.u32 %s2056_s6, 4  ;;  %s1921_s7 = int_to_ptr.vmem [resolvable:$false] %s1920_s7 }
  0x27   : > { %s1922_s10 = scalar_lea.vmem %s1921_s7, 32768  ;;  %p1923_p2 = scmp.lt.s32.totalorder %s2171_s8, %s1921_s7 }
  0x28   : > { %p1918_p11 = pnand %p1916_p9, %p1902_p10  ;;  %p1924_p13 = scmp.lt.s32.totalorder %s1922_s10, %s1915_s28 }
  0x2a   : > { %p1919_p6 = pneg %p1918_p11  ;;  %p1925_p0 = por %p1924_p13, %p1923_p2 }
  0x2c   : > { %p1926_p1 = pnand %p1925_p0, %p1919_p6 }
  0x2e   : > { %1929 = shalt.err (!%p1926_p1)
}
  0x2f   : > { %s2057_s11 = smov 256   ;;  %s2058_s29 = smov 16  }
  0x30   : > { %1610 = dma.hbm_to_vmem [thread:$0]  (!%p2177_p8), %s2184_s26, 16384, %s2171_s8, %s2186_s25, %s2057_s11, %s2057_s11, %s2058_s29  }
  0x31   : > { %p1451_p2 = scmp.ge.s32.totalorder %s2054_s22, 1  ;;  %p194_p6 = scmp.lt.s32.totalorder %s2054_s22, 25 }
  0x32   : > { %s1440_s20 = sadd.s32 4294967295, %s2054_s22   ;;  %p85_p3 = scmp.eq.s32.totalorder %s2164_s30, 0 }
  0x33   : > { %p2216_p10 = pnand %p1451_p2, %p194_p6  ;;  %p75_p12 = scmp.eq.s32.totalorder %s1440_s20, 0 }
  0x34   : > { %s87_s24 = sadd.s32 1, %s2022_s14  ;;  %p94_p4 = scmp.ne.s32.totalorder %s2022_s14, %s2018_s13 }
  0x35   : > { %p2228_p7 = por %p75_p12, %p74_p5  ;;  %p100_p9 = scmp.ne.s32.totalorder %s2018_s13, %s2014_s12 }
  0x36   : > { %s2235_s23 = scalar_select %p85_p3, %s2022_s14, %s87_s24  }
  0x37   : > { %s2518_s4 = scalar_select %p2228_p7, 1, 0 }
  0x38   : > { %p2519_p8 = scmp.eq.s32.totalorder %s2054_s22, 0  ;;  %p2239_p13 = por %p100_p9, %p75_p12 }
  0x39   : > { %s177_s26 = sand.u32 1, %s2022_s14   ;;  %s1593_s25 = sshll.u32 %s2050_s21, 6 }
  0x3a   : > { %p96_p11 = por %p94_p4, %p2519_p8  ;;  %s1448_s5 = sshll.u32 %s177_s26, 2 }
  0x3b   : > { %s2520_s8 = scalar_select %p2239_p13, 1, 0 }
  0x3c   : > { %s2248_s15 = scalar_lea.hbm %s2503_s2, %s1593_s25  ;;  %s181_s12 = scalar_lea.vmem [#allocation5], %s1448_s5 }
  0x3d   : > { %s189_s6 = sshll.u32 %s181_s12, 4  ;;  %p2521_p5 = scmp.lt.s32.totalorder %s2054_s22, 24  ;;  %s2256_s6 = int_to_ptr.vmem [resolvable:$true] %s189_s6 }
  0x3e   : > { %s178_s10 = scalar_lea.sflag [#allocation6], %s177_s26  ;;  %s1930_s11 = scalar_lea.hbm %s2248_s15, 64 }
  0x3f   : > { %p2252_p0 = pnand %p2521_p5, %p96_p11  ;;  %p1931_p1 = scmp.ne.s32.totalorder %s2248_s15, %s1930_s11 }
  0x40   : > { %s1935_s24 = scalar_lea.hbm %s2503_s2, 256  ;;  %p1936_p3 = scmp.lt.u32.totalorder %s2248_s15, %s2503_s2 }
  0x41   : > { %p1932_p2 = pneg %p2252_p0  ;;  %p1937_p4 = scmp.lt.u32.totalorder %s1935_s24, %s1930_s11 }
  0x42   : > { %p1939_p8 = scmp.lt.u32.totalorder %s1930_s11, %s2248_s15 }
  0x43   : > { %p1933_p6 = pnand %p1932_p2, %p1931_p1  ;;  %p1938_p9 = por %p1937_p4, %p1936_p3 }
  0x45   : > { %p1934_p12 = pneg %p1933_p6  ;;  %p1940_p11 = por %p1939_p8, %p1938_p9 }
  0x47   : > { %p1941_p5 = pnand %p1940_p11, %p1934_p12 }
  0x49   : > { %1944 = shalt.err (!%p1941_p5)
}
  0x4a   : > { %s1945_s26 = scalar_lea.vmem %s2256_s6, 64  ;;  %s2059_s30 = smov [#allocation5]  }
  0x4b   : > { %p1946_p1 = scmp.ne.s32.totalorder %s2256_s6, %s1945_s26  ;;  %s1950_s28 = sshll.u32 %s2059_s30, 4  ;;  %s1951_s28 = int_to_ptr.vmem [resolvable:$false] %s1950_s28 }
  0x4c   : > { %s1952_s12 = scalar_lea.vmem %s1951_s28, 128  ;;  %p1953_p7 = scmp.lt.s32.totalorder %s2256_s6, %s1951_s28 }
  0x4d   : > { %p1948_p6 = pnand %p1946_p1, %p1932_p2  ;;  %p1954_p3 = scmp.lt.s32.totalorder %s1952_s12, %s1945_s26 }
  0x4f   : > { %p1949_p13 = pneg %p1948_p6  ;;  %p1955_p4 = por %p1954_p3, %p1953_p7 }
  0x51   : > { %p1956_p9 = pnand %p1955_p4, %p1949_p13 }
  0x53   : > { %1959 = shalt.err (!%p1956_p9)
}
  0x54   : > { %1613 = dma.hbm_to_vmem [thread:$0]  (!%p2252_p0), %s2248_s15, 64, %s2256_s6, %s178_s10  }
  0x55   : > { %198 = sbr.rel (%p2216_p10) target bundleno = 479 (0x1df), region = 32  ;;  %s200_s11 = sand.u32 (!%p2216_p10), 1, %s2030_s16  }
  0x56   : > { %s1452_s29 = sshll.u32 (!%p2216_p10), %s200_s11, 10  ;;  %s201_s20 = scalar_lea.sflag (!%p2216_p10), [#allocation4], %s200_s11 }
  0x57   : > { %s2286_s24 = scalar_lea.vmem (!%p2216_p10), [#allocation3], %s1452_s29  ;;  %p2523_p2 = scmp.ne.s32.totalorder (!%p2216_p10), %s2518_s4, 0 }
  0x5c   : > { %2005 = dma.done.wait (%p2523_p2), %s201_s20, 16384  }
  0x5d   : > { %2007 = vsyncadd (%p2523_p2), %s201_s20, 4294950912  ;;  %s209_s7 = sand.u32 1, %s2018_s13   ;;  %p2524_p10 = scmp.ne.s32.totalorder %s2520_s8, 0 }
  0x5e   : > { %s2293_s25 = sshll.u32 %s209_s7, 2  ;;  %s210_s27 = scalar_lea.sflag [#allocation6], %s209_s7 }
  0x5f   : > { %s213_s15 = scalar_lea.vmem [#allocation5], %s2293_s25 }
  0x60   : > { %2009 = dma.done.wait (%p2524_p10), %s210_s27, 64  }
  0x61   : > { %2011 = vsyncadd (%p2524_p10), %s210_s27, 4294967232  ;;  %s1454_s6 = sshll.u32 %s2042_s19, 2  ;;  %p1455_p13 = scmp.ne.s32.totalorder %s2038_s18, 0 }
  0x62   : > { %p243_p7 = scmp.lt.s32.totalorder %s1454_s6, 15  ;;  %v2060_v0 = vmov (!%p1455_p13), 0.0  }
  0x63   : > { %250 = sbr.rel (%p1455_p13) target bundleno = 106 (0x6a), region = 44  ;;  %251 = vst [vmem:[#allocation2] sm:$0xff] (!%p1455_p13), %v2060_v0 }
  0x64   : > { %s2543_s6 = smov (!%p243_p7, %s1454_s6), 15 }
  0x65   : > { %s245_s5 = scalar_lea.vmem %s2504_s3, %s2543_s6 }
  0x6a PF: > { %v1708_v1 = vld [vmem:[%s2286_s24 + $0x4] ss:$16 sps:$4 sm:$0xff]   ;;  %v1710_v2 = vld [vmem:[%s2286_s24 + $0xc] ss:$16 sps:$4 sm:$0xff]   ;;  %v1712_v3 = vld [vmem:[%s2286_s24] ss:$16 sps:$4 sm:$0xff]   ;;  %v396_v41 = vlaneseq }
  0x6b   : > { %1053 = vmatprep.subr.bf16.mxu0 %v1708_v1  ;;  %v1713_v4 = vld [vmem:[%s2286_s24 + $0x8] ss:$16 sps:$4 sm:$0xff]   ;;  %1135 = vmatprep.subr.bf16.mxu1 %v1710_v2  ;;  %v1714_v5 = vld [vmem:[%s2286_s24 + $0x24] ss:$16 sps:$4 sm:$0xff]   ;;  %v1716_v6 = vld [vmem:[%s2286_s24 + $0x2c] ss:$16 sps:$4 sm:$0xff]  }
  0x6c   : > { %1054 = vmatpush1.bf16.msra.mxu0 %v1712_v3  ;;  %1136 = vmatpush1.bf16.msra.mxu1 %v1713_v4  ;;  %v1718_v7 = vld [vmem:[%s2286_s24 + $0x20] ss:$16 sps:$4 sm:$0xff]   ;;  %v1719_v8 = vld [vmem:[%s2286_s24 + $0x28] ss:$16 sps:$4 sm:$0xff]   ;;  %v1720_v9 = vld [vmem:[%s2286_s24 + $0x44] ss:$16 sps:$4 sm:$0xff]  }
  0x6d   : > { %1055 = vmatprep.subr.bf16.mxu0 %v1714_v5  ;;  %1137 = vmatprep.subr.bf16.mxu1 %v1716_v6  ;;  %v1722_v10 = vld [vmem:[%s2286_s24 + $0x4c] ss:$16 sps:$4 sm:$0xff]   ;;  %v1724_v11 = vld [vmem:[%s2286_s24 + $0x40] ss:$16 sps:$4 sm:$0xff]   ;;  %v1725_v12 = vld [vmem:[%s2286_s24 + $0x48] ss:$16 sps:$4 sm:$0xff]  }
  0x6e   : > { %v1726_v13 = vld [vmem:[%s2286_s24 + $0x64] ss:$16 sps:$4 sm:$0xff]   ;;  %v1728_v14 = vld [vmem:[%s2286_s24 + $0x6c] ss:$16 sps:$4 sm:$0xff]   ;;  %v1730_v15 = vld [vmem:[%s2286_s24 + $0x60] ss:$16 sps:$4 sm:$0xff]  }
  0x6f   : > { %v1731_v16 = vld [vmem:[%s2286_s24 + $0x68] ss:$16 sps:$4 sm:$0xff]   ;;  %v1732_v17 = vld [vmem:[%s2286_s24 + $0x84] ss:$16 sps:$4 sm:$0xff]   ;;  %v1734_v18 = vld [vmem:[%s2286_s24 + $0x8c] ss:$16 sps:$4 sm:$0xff]  }
  0x70   : > { %1056 = vmatpush1.bf16.msra.mxu0 %v1718_v7  ;;  %1138 = vmatpush1.bf16.msra.mxu1 %v1719_v8  ;;  %v1736_v19 = vld [vmem:[%s2286_s24 + $0x80] ss:$16 sps:$4 sm:$0xff]   ;;  %v1737_v20 = vld [vmem:[%s2286_s24 + $0x88] ss:$16 sps:$4 sm:$0xff]   ;;  %v1738_v21 = vld [vmem:[%s2286_s24 + $0xa4] ss:$16 sps:$4 sm:$0xff]  }
  0x71   : > { %1057 = vmatprep.subr.bf16.mxu0 %v1720_v9  ;;  %1139 = vmatprep.subr.bf16.mxu1 %v1722_v10  ;;  %v1740_v22 = vld [vmem:[%s2286_s24 + $0xac] ss:$16 sps:$4 sm:$0xff]   ;;  %v1742_v23 = vld [vmem:[%s2286_s24 + $0xa0] ss:$16 sps:$4 sm:$0xff]   ;;  %v1743_v24 = vld [vmem:[%s2286_s24 + $0xa8] ss:$16 sps:$4 sm:$0xff]  }
  0x72   : > { %v1744_v25 = vld [vmem:[%s2286_s24 + $0xc4] ss:$16 sps:$4 sm:$0xff]   ;;  %v1746_v26 = vld [vmem:[%s2286_s24 + $0xcc] ss:$16 sps:$4 sm:$0xff]   ;;  %v1748_v27 = vld [vmem:[%s2286_s24 + $0xc0] ss:$16 sps:$4 sm:$0xff]  }
  0x73   : > { %v1749_v28 = vld [vmem:[%s2286_s24 + $0xc8] ss:$16 sps:$4 sm:$0xff]   ;;  %v1750_v29 = vld [vmem:[%s2286_s24 + $0xe4] ss:$16 sps:$4 sm:$0xff]   ;;  %v1752_v30 = vld [vmem:[%s2286_s24 + $0xec] ss:$16 sps:$4 sm:$0xff]  }
  0x74   : > { %1058 = vmatpush1.bf16.msra.mxu0 %v1724_v11  ;;  %1140 = vmatpush1.bf16.msra.mxu1 %v1725_v12  ;;  %v1754_v31 = vld [vmem:[%s2286_s24 + $0xe0] ss:$16 sps:$4 sm:$0xff]   ;;  %v1755_v32 = vld [vmem:[%s2286_s24 + $0xe8] ss:$16 sps:$4 sm:$0xff]   ;;  %v1756_v33 = vld [vmem:[%s2286_s24 + $0x104] ss:$16 sps:$4 sm:$0xff]  }
  0x75   : > { %1059 = vmatprep.subr.bf16.mxu0 %v1726_v13  ;;  %1141 = vmatprep.subr.bf16.mxu1 %v1728_v14  ;;  %v1758_v34 = vld [vmem:[%s2286_s24 + $0x10c] ss:$16 sps:$4 sm:$0xff]   ;;  %v1760_v35 = vld [vmem:[%s2286_s24 + $0x100] ss:$16 sps:$4 sm:$0xff]   ;;  %v1761_v36 = vld [vmem:[%s2286_s24 + $0x108] ss:$16 sps:$4 sm:$0xff]  }
  0x76   : > { %v1762_v37 = vld [vmem:[%s2286_s24 + $0x124] ss:$16 sps:$4 sm:$0xff]   ;;  %v1764_v38 = vld [vmem:[%s2286_s24 + $0x12c] ss:$16 sps:$4 sm:$0xff]   ;;  %v2061_v39 = vmov 1966171168  }
  0x77   : > { %v394_v40 = vunpack.c.l.s4 %v2061_v39  ;;  %v1766_v42 = vld [vmem:[%s2286_s24 + $0x120] ss:$16 sps:$4 sm:$0xff]   ;;  %v1767_v43 = vld [vmem:[%s2286_s24 + $0x128] ss:$16 sps:$4 sm:$0xff]   ;;  %v1768_v44 = vld [vmem:[%s2286_s24 + $0x144] ss:$16 sps:$4 sm:$0xff]  }
  0x78   : > { %1060 = vmatpush1.bf16.msra.mxu0 %v1730_v15  ;;  %1142 = vmatpush1.bf16.msra.mxu1 %v1731_v16  ;;  %v1770_v45 = vld [vmem:[%s2286_s24 + $0x14c] ss:$16 sps:$4 sm:$0xff]   ;;  %s1456_s19 = sshll.u32 %s2038_s18, 2  ;;  %v2351_v47 = vshrl.u32 %v396_v41, 7  ;;  %v1772_v48 = vld [vmem:[%s2286_s24 + $0x140] ss:$16 sps:$4 sm:$0xff]  }
  0x79   : > { %1061 = vmatprep.subr.bf16.mxu0 %v1732_v17  ;;  %1143 = vmatprep.subr.bf16.mxu1 %v1734_v18  ;;  %v395_v46 = vunpack.c.0.s8 %v394_v40  ;;  %v1773_v49 = vld [vmem:[%s2286_s24 + $0x148] ss:$16 sps:$4 sm:$0xff]   ;;  %v1774_v50 = vld [vmem:[%s2286_s24 + $0x164] ss:$16 sps:$4 sm:$0xff]   ;;  %s254_s30 = scalar_lea.vmem %s2501_s0, %s1456_s19  ;;  %v1776_v51 = vld [vmem:[%s2286_s24 + $0x16c] ss:$16 sps:$4 sm:$0xff]  }
  0x7a   : > { %v1457_v53 = vld.sshfl [vmem:[%s254_s30] sm:$0x33 pattern:$0x75316420]  ;;  %v1778_v54 = vld [vmem:[%s2286_s24 + $0x160] ss:$16 sps:$4 sm:$0xff]  }
  0x7b   : > { %v2361_v52 = vsub.s32 %v395_v46, %v2351_v47  ;;  %v1779_v55 = vld [vmem:[%s2286_s24 + $0x168] ss:$16 sps:$4 sm:$0xff]   ;;  %v392_v56 = vcombine.high %v1457_v53, %v1457_v53  ;;  %v1780_v57 = vld [vmem:[%s2286_s24 + $0x184] ss:$16 sps:$4 sm:$0xff]   ;;  %v1782_v58 = vld [vmem:[%s2286_s24 + $0x18c] ss:$16 sps:$4 sm:$0xff]  }
  0x7c   : > { %1062 = vmatpush1.bf16.msra.mxu0 %v1736_v19  ;;  %1144 = vmatpush1.bf16.msra.mxu1 %v1737_v20  ;;  %v1784_v60 = vld [vmem:[%s2286_s24 + $0x180] ss:$16 sps:$4 sm:$0xff]   ;;  %v1785_v61 = vld [vmem:[%s2286_s24 + $0x188] ss:$16 sps:$4 sm:$0xff]   ;;  %v1786_v62 = vld [vmem:[%s2286_s24 + $0x1a4] ss:$16 sps:$4 sm:$0xff]  }
  0x7d   : > { %1063 = vmatprep.subr.bf16.mxu0 %v1738_v21  ;;  %1145 = vmatprep.subr.bf16.mxu1 %v1740_v22  ;;  %v406_v59 = vrot.slane %v392_v56, %v2361_v52  ;;  %v1788_v63 = vld [vmem:[%s2286_s24 + $0x1ac] ss:$16 sps:$4 sm:$0xff]   ;;  %v1790_v0 = vld [vmem:[%s2286_s24 + $0x1a0] ss:$16 sps:$4 sm:$0xff]   ;;  %v1791_v1 = vld [vmem:[%s2286_s24 + $0x1a8] ss:$16 sps:$4 sm:$0xff]   ;;  %v2386_v13 = vrot.slane %v1457_v53, %v2361_v52 }
  0x7e   : > { %v1792_v2 = vld [vmem:[%s2286_s24 + $0x1c4] ss:$16 sps:$4 sm:$0xff]   ;;  %v1794_v3 = vld [vmem:[%s2286_s24 + $0x1cc] ss:$16 sps:$4 sm:$0xff]   ;;  %v1796_v4 = vld [vmem:[%s2286_s24 + $0x1c0] ss:$16 sps:$4 sm:$0xff]  }
  0x7f   : > { %1085 = vmatprep.mubr.bf16.mxu0 %v406_v59  ;;  %1167 = vmatprep.mubr.bf16.mxu1 %v406_v59  ;;  %v1797_v5 = vld [vmem:[%s2286_s24 + $0x1c8] ss:$16 sps:$4 sm:$0xff]   ;;  %v1798_v6 = vld [vmem:[%s2286_s24 + $0x1e4] ss:$16 sps:$4 sm:$0xff]   ;;  %v1800_v7 = vld [vmem:[%s2286_s24 + $0x1ec] ss:$16 sps:$4 sm:$0xff]   ;;  %v408_v17 = vcombine.high %v406_v59, %v406_v59 }
  0x80   : > { %1064 = vmatpush1.bf16.msra.mxu0 %v1742_v23  ;;  %1146 = vmatpush1.bf16.msra.mxu1 %v1743_v24  ;;  %v1802_v8 = vld [vmem:[%s2286_s24 + $0x1e0] ss:$16 sps:$4 sm:$0xff]   ;;  %v1803_v9 = vld [vmem:[%s2286_s24 + $0x1e8] ss:$16 sps:$4 sm:$0xff]   ;;  %v1806_v10 = vld [vmem:[%s2286_s24 + $0x204] ss:$16 sps:$4 sm:$0xff]  }
  0x81   : > { %1065 = vmatprep.subr.bf16.mxu0 %v1744_v25  ;;  %1147 = vmatprep.subr.bf16.mxu1 %v1746_v26  ;;  %v1809_v11 = vld [vmem:[%s2286_s24 + $0x20c] ss:$16 sps:$4 sm:$0xff]   ;;  %v1804_v12 = vld [vmem:[%s2286_s24 + $0x200] ss:$16 sps:$4 sm:$0xff]   ;;  %v1807_v14 = vld [vmem:[%s2286_s24 + $0x208] ss:$16 sps:$4 sm:$0xff]  }
  0x82   : > { %v1812_v15 = vld [vmem:[%s2286_s24 + $0x224] ss:$16 sps:$4 sm:$0xff]   ;;  %v1815_v16 = vld [vmem:[%s2286_s24 + $0x22c] ss:$16 sps:$4 sm:$0xff]   ;;  %v1810_v18 = vld [vmem:[%s2286_s24 + $0x220] ss:$16 sps:$4 sm:$0xff]  }
  0x83   : > { %v1813_v19 = vld [vmem:[%s2286_s24 + $0x228] ss:$16 sps:$4 sm:$0xff]   ;;  %v1818_v20 = vld [vmem:[%s2286_s24 + $0x244] ss:$16 sps:$4 sm:$0xff]   ;;  %v1821_v21 = vld [vmem:[%s2286_s24 + $0x24c] ss:$16 sps:$4 sm:$0xff]  }
  0x84   : > { %1066 = vmatpush1.bf16.msra.mxu0 %v1748_v27  ;;  %1148 = vmatpush1.bf16.msra.mxu1 %v1749_v28  ;;  %v1816_v22 = vld [vmem:[%s2286_s24 + $0x240] ss:$16 sps:$4 sm:$0xff]   ;;  %v1819_v23 = vld [vmem:[%s2286_s24 + $0x248] ss:$16 sps:$4 sm:$0xff]   ;;  %v1824_v24 = vld [vmem:[%s2286_s24 + $0x264] ss:$16 sps:$4 sm:$0xff]  }
  0x85   : > { %1067 = vmatprep.subr.bf16.mxu0 %v1750_v29  ;;  %1149 = vmatprep.subr.bf16.mxu1 %v1752_v30  ;;  %v1827_v25 = vld [vmem:[%s2286_s24 + $0x26c] ss:$16 sps:$4 sm:$0xff]   ;;  %v1822_v26 = vld [vmem:[%s2286_s24 + $0x260] ss:$16 sps:$4 sm:$0xff]   ;;  %v1825_v27 = vld [vmem:[%s2286_s24 + $0x268] ss:$16 sps:$4 sm:$0xff]  }
  0x86   : > { %v1830_v28 = vld [vmem:[%s2286_s24 + $0x284] ss:$16 sps:$4 sm:$0xff]   ;;  %v1833_v29 = vld [vmem:[%s2286_s24 + $0x28c] ss:$16 sps:$4 sm:$0xff]   ;;  %v1828_v30 = vld [vmem:[%s2286_s24 + $0x280] ss:$16 sps:$4 sm:$0xff]  }
  0x87   : > { %v1843_v39 = vld [vmem:[%s2286_s24 + $0x2c8] ss:$16 sps:$4 sm:$0xff]   ;;  %v1848_v40 = vld [vmem:[%s2286_s24 + $0x2e4] ss:$16 sps:$4 sm:$0xff]   ;;  %v1851_v41 = vld [vmem:[%s2286_s24 + $0x2ec] ss:$16 sps:$4 sm:$0xff]  }
  0x88   : > { %1068 = vmatpush1.bf16.msra.mxu0 %v1754_v31  ;;  %1150 = vmatpush1.bf16.msra.mxu1 %v1755_v32  ;;  %v1831_v31 = vld [vmem:[%s2286_s24 + $0x288] ss:$16 sps:$4 sm:$0xff]   ;;  %v1836_v32 = vld [vmem:[%s2286_s24 + $0x2a4] ss:$16 sps:$4 sm:$0xff]   ;;  %v1852_v46 = vld [vmem:[%s2286_s24 + $0x300] ss:$16 sps:$4 sm:$0xff]  }
  0x89   : > { %1069 = vmatprep.subr.bf16.mxu0 %v1756_v33  ;;  %1151 = vmatprep.subr.bf16.mxu1 %v1758_v34  ;;  %v1839_v33 = vld [vmem:[%s2286_s24 + $0x2ac] ss:$16 sps:$4 sm:$0xff]   ;;  %v1834_v34 = vld [vmem:[%s2286_s24 + $0x2a0] ss:$16 sps:$4 sm:$0xff]   ;;  %v1861_v53 = vld [vmem:[%s2286_s24 + $0x328] ss:$16 sps:$4 sm:$0xff]  }
  0x8a   : > { %v1864_v56 = vld [vmem:[%s2286_s24 + $0x340] ss:$16 sps:$4 sm:$0xff]   ;;  %v1875_v59 = vld [vmem:[%s2286_s24 + $0x36c] ss:$16 sps:$4 sm:$0xff]   ;;  %p1586_p0 = scmp.ne.s32.totalorder %s2038_s18, 5 }
  0x8c   : > { %1070 = vmatpush1.bf16.msra.mxu0 %v1760_v35  ;;  %1152 = vmatpush1.bf16.msra.mxu1 %v1761_v36  ;;  %v1837_v35 = vld [vmem:[%s2286_s24 + $0x2a8] ss:$16 sps:$4 sm:$0xff]   ;;  %v1842_v36 = vld [vmem:[%s2286_s24 + $0x2c4] ss:$16 sps:$4 sm:$0xff]  }
  0x8d   : > { %1071 = vmatprep.subr.bf16.mxu0 %v1762_v37  ;;  %1153 = vmatprep.subr.bf16.mxu1 %v1764_v38  ;;  %v1845_v37 = vld [vmem:[%s2286_s24 + $0x2cc] ss:$16 sps:$4 sm:$0xff]   ;;  %v1840_v38 = vld [vmem:[%s2286_s24 + $0x2c0] ss:$16 sps:$4 sm:$0xff]  }
  0x90   : > { %1072 = vmatpush1.bf16.msra.mxu0 %v1766_v42  ;;  %1154 = vmatpush1.bf16.msra.mxu1 %v1767_v43  ;;  %v1846_v42 = vld [vmem:[%s2286_s24 + $0x2e0] ss:$16 sps:$4 sm:$0xff]   ;;  %v1849_v43 = vld [vmem:[%s2286_s24 + $0x2e8] ss:$16 sps:$4 sm:$0xff]  }
  0x91   : > { %1073 = vmatprep.subr.bf16.mxu0 %v1768_v44  ;;  %1155 = vmatprep.subr.bf16.mxu1 %v1770_v45  ;;  %v1854_v44 = vld [vmem:[%s2286_s24 + $0x304] ss:$16 sps:$4 sm:$0xff]   ;;  %v1857_v45 = vld [vmem:[%s2286_s24 + $0x30c] ss:$16 sps:$4 sm:$0xff]  }
  0x94   : > { %1074 = vmatpush1.bf16.msra.mxu0 %v1772_v48  ;;  %1156 = vmatpush1.bf16.msra.mxu1 %v1773_v49  ;;  %v1855_v48 = vld [vmem:[%s2286_s24 + $0x308] ss:$16 sps:$4 sm:$0xff]   ;;  %v1860_v49 = vld [vmem:[%s2286_s24 + $0x324] ss:$16 sps:$4 sm:$0xff]  }
  0x95   : > { %1075 = vmatprep.subr.bf16.mxu0 %v1774_v50  ;;  %1157 = vmatprep.subr.bf16.mxu1 %v1776_v51  ;;  %v1863_v50 = vld [vmem:[%s2286_s24 + $0x32c] ss:$16 sps:$4 sm:$0xff]   ;;  %v1858_v51 = vld [vmem:[%s2286_s24 + $0x320] ss:$16 sps:$4 sm:$0xff]  }
  0x98   : > { %1076 = vmatpush1.bf16.msra.mxu0 %v1778_v54  ;;  %1158 = vmatpush1.bf16.msra.mxu1 %v1779_v55  ;;  %v1866_v54 = vld [vmem:[%s2286_s24 + $0x344] ss:$16 sps:$4 sm:$0xff]   ;;  %v1869_v55 = vld [vmem:[%s2286_s24 + $0x34c] ss:$16 sps:$4 sm:$0xff]  }
  0x99   : > { %1077 = vmatprep.subr.bf16.mxu0 %v1780_v57  ;;  %1159 = vmatprep.subr.bf16.mxu1 %v1782_v58  ;;  %v1867_v57 = vld [vmem:[%s2286_s24 + $0x348] ss:$16 sps:$4 sm:$0xff]   ;;  %v1872_v58 = vld [vmem:[%s2286_s24 + $0x364] ss:$16 sps:$4 sm:$0xff]  }
  0x9c   : > { %1078 = vmatpush1.bf16.msra.mxu0 %v1784_v60  ;;  %1160 = vmatpush1.bf16.msra.mxu1 %v1785_v61  ;;  %v1870_v60 = vld [vmem:[%s2286_s24 + $0x360] ss:$16 sps:$4 sm:$0xff]   ;;  %v1873_v61 = vld [vmem:[%s2286_s24 + $0x368] ss:$16 sps:$4 sm:$0xff]  }
  0x9d   : > { %1079 = vmatprep.subr.bf16.mxu0 %v1786_v62  ;;  %1161 = vmatprep.subr.bf16.mxu1 %v1788_v63  ;;  %v1878_v62 = vld [vmem:[%s2286_s24 + $0x384] ss:$16 sps:$4 sm:$0xff]   ;;  %v1881_v63 = vld [vmem:[%s2286_s24 + $0x38c] ss:$16 sps:$4 sm:$0xff]  }
  0xa0   : > { %1080 = vmatpush1.bf16.msra.mxu0 %v1790_v0  ;;  %1162 = vmatpush1.bf16.msra.mxu1 %v1791_v1  ;;  %v1876_v0 = vld [vmem:[%s2286_s24 + $0x380] ss:$16 sps:$4 sm:$0xff]   ;;  %v1879_v1 = vld [vmem:[%s2286_s24 + $0x388] ss:$16 sps:$4 sm:$0xff]  }
  0xa1   : > { %1081 = vmatprep.subr.bf16.mxu0 %v1792_v2  ;;  %1163 = vmatprep.subr.bf16.mxu1 %v1794_v3  ;;  %v1884_v2 = vld [vmem:[%s2286_s24 + $0x3a4] ss:$16 sps:$4 sm:$0xff]   ;;  %v1887_v3 = vld [vmem:[%s2286_s24 + $0x3ac] ss:$16 sps:$4 sm:$0xff]  }
  0xa4   : > { %1082 = vmatpush1.bf16.msra.mxu0 %v1796_v4  ;;  %1164 = vmatpush1.bf16.msra.mxu1 %v1797_v5  ;;  %v1882_v4 = vld [vmem:[%s2286_s24 + $0x3a0] ss:$16 sps:$4 sm:$0xff]   ;;  %v1885_v5 = vld [vmem:[%s2286_s24 + $0x3a8] ss:$16 sps:$4 sm:$0xff]  }
  0xa5   : > { %1083 = vmatprep.subr.bf16.mxu0 %v1798_v6  ;;  %1165 = vmatprep.subr.bf16.mxu1 %v1800_v7  ;;  %v1890_v6 = vld [vmem:[%s2286_s24 + $0x3c4] ss:$16 sps:$4 sm:$0xff]   ;;  %v1893_v7 = vld [vmem:[%s2286_s24 + $0x3cc] ss:$16 sps:$4 sm:$0xff]  }
  0xa8   : > { %1084 = vmatpush1.bf16.msra.mxu0 %v1802_v8  ;;  %1166 = vmatpush1.bf16.msra.mxu1 %v1803_v9  ;;  %v1888_v8 = vld [vmem:[%s2286_s24 + $0x3c0] ss:$16 sps:$4 sm:$0xff]   ;;  %v1891_v9 = vld [vmem:[%s2286_s24 + $0x3c8] ss:$16 sps:$4 sm:$0xff]  }
  0xa9   : > { %1094 = vmatprep.subr.bf16.mxu0 %v1806_v10  ;;  %1176 = vmatprep.subr.bf16.mxu1 %v1809_v11  ;;  %v1896_v10 = vld [vmem:[%s2286_s24 + $0x3e4] ss:$16 sps:$4 sm:$0xff]   ;;  %v1899_v11 = vld [vmem:[%s2286_s24 + $0x3ec] ss:$16 sps:$4 sm:$0xff]  }
  0xab   : > { %1086 = vmatmul.mubr.bf16.vlgmr.msra.gmra.mrb[0].mxu0 %v2386_v13  ;;  %1168 = vmatmul.mubr.bf16.vlgmr.msra.gmra.mrb[0].mxu1 %v2386_v13 }
  0xac   : > { %1095 = vmatpush1.bf16.msra.mxu0 %v1804_v12  ;;  %1177 = vmatpush1.bf16.msra.mxu1 %v1807_v14  ;;  %v1894_v12 = vld [vmem:[%s2286_s24 + $0x3e0] ss:$16 sps:$4 sm:$0xff]   ;;  %v1897_v14 = vld [vmem:[%s2286_s24 + $0x3e8] ss:$16 sps:$4 sm:$0xff]  }
  0xad   : > { %1096 = vmatprep.subr.bf16.mxu0 %v1812_v15  ;;  %1178 = vmatprep.subr.bf16.mxu1 %v1815_v16  ;;  %v407_v15 = vcombine.high %v2386_v13, %v2386_v13  ;;  %v2062_v16 = vmov 1983009808  }
  0xae   : > { %1126 = vmatprep.mubr.bf16.mxu0 %v408_v17  ;;  %1208 = vmatprep.mubr.bf16.mxu1 %v408_v17  ;;  %v1224_v17 = vunpack.c.l.s4 %v2062_v16 }
  0xb0   : > { %1097 = vmatpush1.bf16.msra.mxu0 %v1810_v18  ;;  %1179 = vmatpush1.bf16.msra.mxu1 %v1813_v19  ;;  %v1225_v18 = vunpack.c.0.s8 %v1224_v17 }
  0xb1   : > { %1098 = vmatprep.subr.bf16.mxu0 %v1818_v20  ;;  %1180 = vmatprep.subr.bf16.mxu1 %v1821_v21 }
  0xb2   : > { %v1228_v21 = vsub.s32 %v1225_v18, %v2351_v47 }
  0xb4   : > { %1099 = vmatpush1.bf16.msra.mxu0 %v1816_v22  ;;  %1181 = vmatpush1.bf16.msra.mxu1 %v1819_v23 }
  0xb5   : > { %1100 = vmatprep.subr.bf16.mxu0 %v1824_v24  ;;  %1182 = vmatprep.subr.bf16.mxu1 %v1827_v25 }
  0xb8   : > { %1101 = vmatpush1.bf16.msra.mxu0 %v1822_v26  ;;  %1183 = vmatpush1.bf16.msra.mxu1 %v1825_v27 }
  0xb9   : > { %1102 = vmatprep.subr.bf16.mxu0 %v1830_v28  ;;  %1184 = vmatprep.subr.bf16.mxu1 %v1833_v29 }
  0xbc   : > { %1103 = vmatpush1.bf16.msra.mxu0 %v1828_v30  ;;  %1185 = vmatpush1.bf16.msra.mxu1 %v1831_v31  ;;  %v252_v31 = vld [vmem:[#allocation2] sm:$0xff] }
  0xbd   : > { %1104 = vmatprep.subr.bf16.mxu0 %v1836_v32  ;;  %1186 = vmatprep.subr.bf16.mxu1 %v1839_v33 }
  0xc0   : > { %1105 = vmatpush1.bf16.msra.mxu0 %v1834_v34  ;;  %1187 = vmatpush1.bf16.msra.mxu1 %v1837_v35  ;;  %v1246_v34 = vld [vmem:[%s213_s15] sm:$0xf] (!%p1586_p0)  ;;  %v1250_v35 = vsub.s32 (!%p1586_p0), 0, %v2351_v47 }
  0xc1   : > { %1106 = vmatprep.subr.bf16.mxu0 %v1842_v36  ;;  %1188 = vmatprep.subr.bf16.mxu1 %v1845_v37  ;;  %v1254_v36 = vsub.s32 (!%p1586_p0), 1, %v2351_v47  ;;  %v1258_v37 = vsub.s32 (!%p1586_p0), 2, %v2351_v47 }
  0xc4   : > { %1107 = vmatpush1.bf16.msra.mxu0 %v1840_v38  ;;  %1189 = vmatpush1.bf16.msra.mxu1 %v1843_v39  ;;  %v1262_v38 = vsub.s32 (!%p1586_p0), 3, %v2351_v47  ;;  %v1251_v39 = vrot.slane (!%p1586_p0), %v1246_v34, %v1250_v35 }
  0xc5   : > { %1108 = vmatprep.subr.bf16.mxu0 %v1848_v40  ;;  %1190 = vmatprep.subr.bf16.mxu1 %v1851_v41  ;;  %v1255_v40 = vrot.slane (!%p1586_p0), %v1246_v34, %v1254_v36  ;;  %v1259_v41 = vrot.slane (!%p1586_p0), %v1246_v34, %v1258_v37 }
  0xc8   : > { %1109 = vmatpush1.bf16.msra.mxu0 %v1846_v42  ;;  %1191 = vmatpush1.bf16.msra.mxu1 %v1849_v43  ;;  %v1263_v42 = vrot.slane (!%p1586_p0), %v1246_v34, %v1262_v38  ;;  %v1264_v43 = vcombine.low (!%p1586_p0), %v1251_v39, %v1255_v40 }
  0xc9   : > { %1110 = vmatprep.subr.bf16.mxu0 %v1854_v44  ;;  %1192 = vmatprep.subr.bf16.mxu1 %v1857_v45 }
  0xca   : > { %v1265_v44 = vcombine.low (!%p1586_p0), %v1259_v41, %v1263_v42  ;;  %v1272_v45 = vrot.slane (!%p1586_p0), %v1264_v43, %v1228_v21 }
  0xcc   : > { %1111 = vmatpush1.bf16.msra.mxu0 %v1852_v46  ;;  %1193 = vmatpush1.bf16.msra.mxu1 %v1855_v48  ;;  %v1279_v46 = vrot.slane (!%p1586_p0), %v1265_v44, %v1228_v21 }
  0xcd   : > { %1112 = vmatprep.subr.bf16.mxu0 %v1860_v49  ;;  %1194 = vmatprep.subr.bf16.mxu1 %v1863_v50 }
  0xce   : > { %v1280_v49 = vcombine.low (!%p1586_p0), %v1272_v45, %v1279_v46 }
  0xd0   : > { %1113 = vmatpush1.bf16.msra.mxu0 %v1858_v51  ;;  %1195 = vmatpush1.bf16.msra.mxu1 %v1861_v53 }
  0xd1   : > { %1114 = vmatprep.subr.bf16.mxu0 %v1866_v54  ;;  %1196 = vmatprep.subr.bf16.mxu1 %v1869_v55 }
  0xd4   : > { %1115 = vmatpush1.bf16.msra.mxu0 %v1864_v56  ;;  %1197 = vmatpush1.bf16.msra.mxu1 %v1867_v57 }
  0xd5   : > { %1116 = vmatprep.subr.bf16.mxu0 %v1872_v58  ;;  %1198 = vmatprep.subr.bf16.mxu1 %v1875_v59 }
  0xd8   : > { %1117 = vmatpush1.bf16.msra.mxu0 %v1870_v60  ;;  %1199 = vmatpush1.bf16.msra.mxu1 %v1873_v61 }
  0xd9   : > { %1118 = vmatprep.subr.bf16.mxu0 %v1878_v62  ;;  %1200 = vmatprep.subr.bf16.mxu1 %v1881_v63 }
  0xdc   : > { %1119 = vmatpush1.bf16.msra.mxu0 %v1876_v0  ;;  %1201 = vmatpush1.bf16.msra.mxu1 %v1879_v1 }
  0xdd   : > { %1120 = vmatprep.subr.bf16.mxu0 %v1884_v2  ;;  %1202 = vmatprep.subr.bf16.mxu1 %v1887_v3 }
  0xe0   : > { %1121 = vmatpush1.bf16.msra.mxu0 %v1882_v4  ;;  %1203 = vmatpush1.bf16.msra.mxu1 %v1885_v5 }
  0xe1   : > { %1122 = vmatprep.subr.bf16.mxu0 %v1890_v6  ;;  %1204 = vmatprep.subr.bf16.mxu1 %v1893_v7 }
  0xe4   : > { %1123 = vmatpush1.bf16.msra.mxu0 %v1888_v8  ;;  %1205 = vmatpush1.bf16.msra.mxu1 %v1891_v9 }
  0xe5   : > { %1124 = vmatprep.subr.bf16.mxu0 %v1896_v10  ;;  %1206 = vmatprep.subr.bf16.mxu1 %v1899_v11 }
  0xe8   : > { %1125 = vmatpush1.bf16.msra.mxu0 %v1894_v12  ;;  %1207 = vmatpush1.bf16.msra.mxu1 %v1897_v14 }
  0xeb   : > { %1127 = vmatmul.mubr.bf16.vlgmr.msra.gmra.mrb[0].mxu0 %v407_v15  ;;  %1209 = vmatmul.mubr.bf16.vlgmr.msra.gmra.mrb[0].mxu1 %v407_v15 }
 0x1be   : > { %v1128_v19 = vpop.f32.mrb[0].mxu0  ;;  %v1210_v20 = vpop.f32.mrb[0].mxu1 }
 0x1bf   : > { %v1130_v22 = vpop.f32.mrb[1].mxu0  ;;  %v1212_v23 = vpop.f32.mrb[1].mxu1 }
 0x1c0   : > { %v1221_v24 = vcombine.low %v1128_v19, %v1130_v22  ;;  %v1222_v25 = vcombine.low %v1210_v20, %v1212_v23  ;;  %v1132_v26 = vpop.f32.mrb[2].mxu0  ;;  %v1214_v27 = vpop.f32.mrb[2].mxu1 }
 0x1c1   : > { %v1133_v28 = vpop.f32.mrb[3].mxu0  ;;  %v1215_v29 = vpop.f32.mrb[3].mxu1 }
 0x1c2   : > { %v1229_v13 = vrot.slane %v1221_v24, %v1228_v21  ;;  %v1236_v30 = vrot.slane %v1222_v25, %v1228_v21  ;;  %1244 = sbr.rel (%p1586_p0) target bundleno = 479 (0x1df), region = 48 }
 0x1c4   : > { %v1237_v32 = vcombine.low %v1229_v13, %v1236_v30 }
 0x1c6   : > { %v1239_v33 = vadd.f32 %v1237_v32, %v252_v31 }
 0x1c8   : > { %1240 = vst [vmem:[#allocation2] sm:$0xff] %v1239_v33 }
 0x1cf   : > { %v1245_v48 = vld [vmem:[#allocation2] sm:$0xff] }
 0x1d0   : > { %v1282_v50 = vadd.f32 %v1280_v49, %v1245_v48 }
 0x1d2   : > { %v1284_v51 = vcombine.high %v1282_v50, %v1282_v50  ;;  %v1291_v53 = vrot.slane %v1282_v50, %v1228_v21 }
 0x1d4   : > { %v1298_v54 = vrot.slane %v1284_v51, %v1228_v21  ;;  %v1299_v55 = vcombine.high %v1291_v53, %v1291_v53 }
 0x1d6   : > { %v1300_v56 = vcombine.high %v1298_v54, %v1298_v54  ;;  %v1587_v57 = vpack.c.bf16 %v1299_v55, %v1291_v53 }
 0x1d8   : > { %v1588_v58 = vpack.c.bf16 %v1300_v56, %v1298_v54  ;;  %v1321_v47 = vrot.slane %v1587_v57, %v2361_v52 }
 0x1da   : > { %v1328_v59 = vrot.slane %v1588_v58, %v2361_v52 }
 0x1dc   : > { %v1329_v60 = vcombine.low %v1321_v47, %v1328_v59 }
 0x1de   : > { %1589 = vst.sshfl [vmem:[%s245_s5] sm:$0x55 pattern:$0x73625140] %v1329_v60 }
 0x1df PF: > { %s19_s22 = sadd.s32 1, %s2054_s22   ;;  %s2525_s18 = sld [smem:[#allocation9_spill]] }
 0x1e0   : > { %p16_p12 = scmp.ge.s32.totalorder %s19_s22, 26   ;;  %s2526_s20 = sld [smem:[#allocation10_spill]] }
 0x1e1   : > { %s2527_s11 = sld [smem:[#allocation11_spill]]  ;;  %s2528_s12 = smov %s2018_s13 }
 0x1e2   : > { %s2529_s13 = smov %s2022_s14  ;;  %s2530_s14 = smov %s2235_s23 }
 0x1e3   : > { %s2531_s15 = smov %s2030_s16  ;;  %s2532_s16 = smov %s2034_s17 }
 0x1e4   : > { %s2533_s17 = smov %s2169_s9  ;;  %s2534_s19 = smov %s2050_s21 }
 0x1e5   :  { %18 = sbr.rel (!%p16_p12) target bundleno = 9 (0x9), region = 94 }
 0x1e7   : > { %s2535_s21 = smov %s2527_s11 }
 0x1ec   :  { %1359 = vsyncpa [#allocation4], 1 }
 0x1ed   :  { %1361 = vsyncpa [#allocation4 + $0x1], 1 }
 0x1ee   :  { %1362 = vsyncpa [#allocation6], 1 }
 0x1ef   :  { %1364 = vsyncpa [#allocation6 + $0x1], 1 }

// kernel: densenet_forward.3
= control target key start
LH: loop header
LB: loop body
LE: loop exit
PB: predicated region body
PF: predicated region fallthrough
CT: control target
= control target key end

     0   :  { %v1570_v36 = vlaneseq  ;;  %v21401_v37 = vmov 1966171168   ;;  %s27949_s0 = inlined_call_operand.vmem [shape: bf16[2,2048], index: 0, kind: input, shape index: {}]   ;;  %s27950_s1 = inlined_call_operand.vmem [shape: bf16[2048,1408], index: 1, kind: input, shape index: {}]   ;;  %s27951_s2 = inlined_call_operand.vmem [shape: f32[1,1408], index: 2, kind: input, shape index: {}]   ;;  %s27952_s3 = inlined_call_operand.vmem [shape: bf16[1408,896], index: 3, kind: input, shape index: {}]   ;;  %s27953_s4 = inlined_call_operand.vmem [shape: f32[1,896], index: 4, kind: input, shape index: {}]   ;;  %s27954_s5 = inlined_call_operand.vmem [shape: bf16[1,896], index: 5, kind: input, shape index: {}]   ;;  %s27955_s6 = inlined_call_operand.vmem [shape: f32[1,100], index: 6, kind: input, shape index: {}]   ;;  %s27956_s7 = inlined_call_operand.hbm [shape: f32[2,100], index: 7, kind: output, shape index: {}]  }
   0x1   :  { %v18443_v0 = vld [vmem:[%s27950_s1 + $0x4] ss:$44 sps:$4 sm:$0xff]   ;;  %v18445_v1 = vld [vmem:[%s27950_s1 + $0xc] ss:$44 sps:$4 sm:$0xff]   ;;  %v18448_v3 = vld [vmem:[%s27950_s1 + $0x8] ss:$44 sps:$4 sm:$0xff]   ;;  %v1629_v38 = vunpack.c.l.s4 %v21401_v37 }
   0x2   :  { %8909 = vmatprep.subr.bf16.mxu0 %v18443_v0  ;;  %v18447_v2 = vld [vmem:[%s27950_s1] ss:$44 sps:$4 sm:$0xff]   ;;  %9237 = vmatprep.subr.bf16.mxu1 %v18445_v1  ;;  %v18449_v4 = vld [vmem:[%s27950_s1 + $0x5c] ss:$44 sps:$4 sm:$0xff]   ;;  %v18451_v5 = vld [vmem:[%s27950_s1 + $0x64] ss:$44 sps:$4 sm:$0xff]  }
   0x3   :  { %8910 = vmatpush1.bf16.msra.mxu0 %v18447_v2  ;;  %9238 = vmatpush1.bf16.msra.mxu1 %v18448_v3  ;;  %v18453_v6 = vld [vmem:[%s27950_s1 + $0x58] ss:$44 sps:$4 sm:$0xff]   ;;  %v18454_v7 = vld [vmem:[%s27950_s1 + $0x60] ss:$44 sps:$4 sm:$0xff]   ;;  %v18457_v9 = vld [vmem:[%s27950_s1 + $0xbc] ss:$44 sps:$4 sm:$0xff]   ;;  %v1630_v43 = vunpack.c.0.s8 %v1629_v38 }
   0x4   :  { %8911 = vmatprep.subr.bf16.mxu0 %v18449_v4  ;;  %9239 = vmatprep.subr.bf16.mxu1 %v18451_v5  ;;  %v18455_v8 = vld [vmem:[%s27950_s1 + $0xb4] ss:$44 sps:$4 sm:$0xff]   ;;  %v18459_v10 = vld [vmem:[%s27950_s1 + $0xb0] ss:$44 sps:$4 sm:$0xff]   ;;  %v18460_v11 = vld [vmem:[%s27950_s1 + $0xb8] ss:$44 sps:$4 sm:$0xff]  }
   0x5   :  { %v18461_v12 = vld [vmem:[%s27950_s1 + $0x10c] ss:$44 sps:$4 sm:$0xff]   ;;  %v18463_v13 = vld [vmem:[%s27950_s1 + $0x114] ss:$44 sps:$4 sm:$0xff]   ;;  %v18466_v15 = vld [vmem:[%s27950_s1 + $0x110] ss:$44 sps:$4 sm:$0xff]  }
   0x6   :  { %v18465_v14 = vld [vmem:[%s27950_s1 + $0x108] ss:$44 sps:$4 sm:$0xff]   ;;  %v18467_v16 = vld [vmem:[%s27950_s1 + $0x164] ss:$44 sps:$4 sm:$0xff]   ;;  %v18469_v17 = vld [vmem:[%s27950_s1 + $0x16c] ss:$44 sps:$4 sm:$0xff]  }
   0x7   :  { %8912 = vmatpush1.bf16.msra.mxu0 %v18453_v6  ;;  %9240 = vmatpush1.bf16.msra.mxu1 %v18454_v7  ;;  %v18471_v18 = vld [vmem:[%s27950_s1 + $0x160] ss:$44 sps:$4 sm:$0xff]   ;;  %v18472_v19 = vld [vmem:[%s27950_s1 + $0x168] ss:$44 sps:$4 sm:$0xff]   ;;  %v18475_v21 = vld [vmem:[%s27950_s1 + $0x1c4] ss:$44 sps:$4 sm:$0xff]  }
   0x8   :  { %8913 = vmatprep.subr.bf16.mxu0 %v18455_v8  ;;  %9241 = vmatprep.subr.bf16.mxu1 %v18457_v9  ;;  %v18473_v20 = vld [vmem:[%s27950_s1 + $0x1bc] ss:$44 sps:$4 sm:$0xff]   ;;  %v18477_v22 = vld [vmem:[%s27950_s1 + $0x1b8] ss:$44 sps:$4 sm:$0xff]   ;;  %v18478_v23 = vld [vmem:[%s27950_s1 + $0x1c0] ss:$44 sps:$4 sm:$0xff]  }
   0x9   :  { %v18479_v24 = vld [vmem:[%s27950_s1 + $0x214] ss:$44 sps:$4 sm:$0xff]   ;;  %v18481_v25 = vld [vmem:[%s27950_s1 + $0x21c] ss:$44 sps:$4 sm:$0xff]   ;;  %v18484_v27 = vld [vmem:[%s27950_s1 + $0x218] ss:$44 sps:$4 sm:$0xff]  }
   0xa   :  { %v18483_v26 = vld [vmem:[%s27950_s1 + $0x210] ss:$44 sps:$4 sm:$0xff]   ;;  %v18485_v28 = vld [vmem:[%s27950_s1 + $0x26c] ss:$44 sps:$4 sm:$0xff]   ;;  %v18487_v29 = vld [vmem:[%s27950_s1 + $0x274] ss:$44 sps:$4 sm:$0xff]  }
   0xb   :  { %8914 = vmatpush1.bf16.msra.mxu0 %v18459_v10  ;;  %9242 = vmatpush1.bf16.msra.mxu1 %v18460_v11  ;;  %v18489_v30 = vld [vmem:[%s27950_s1 + $0x268] ss:$44 sps:$4 sm:$0xff]   ;;  %v18490_v31 = vld [vmem:[%s27950_s1 + $0x270] ss:$44 sps:$4 sm:$0xff]   ;;  %v18493_v33 = vld [vmem:[%s27950_s1 + $0x2cc] ss:$44 sps:$4 sm:$0xff]  }
   0xc   :  { %8915 = vmatprep.subr.bf16.mxu0 %v18461_v12  ;;  %9243 = vmatprep.subr.bf16.mxu1 %v18463_v13  ;;  %v18491_v32 = vld [vmem:[%s27950_s1 + $0x2c4] ss:$44 sps:$4 sm:$0xff]   ;;  %v18495_v34 = vld [vmem:[%s27950_s1 + $0x2c0] ss:$44 sps:$4 sm:$0xff]   ;;  %v18496_v35 = vld [vmem:[%s27950_s1 + $0x2c8] ss:$44 sps:$4 sm:$0xff]  }
   0xd   :  { %v18497_v39 = vld [vmem:[%s27950_s1 + $0x31c] ss:$44 sps:$4 sm:$0xff]   ;;  %v18499_v40 = vld [vmem:[%s27950_s1 + $0x324] ss:$44 sps:$4 sm:$0xff]   ;;  %v21563_v42 = vshrl.u32 %v1570_v36, 7 }
   0xe   :  { %v18501_v41 = vld [vmem:[%s27950_s1 + $0x318] ss:$44 sps:$4 sm:$0xff]   ;;  %v18502_v44 = vld [vmem:[%s27950_s1 + $0x320] ss:$44 sps:$4 sm:$0xff]   ;;  %v18505_v46 = vld [vmem:[%s27950_s1 + $0x37c] ss:$44 sps:$4 sm:$0xff]  }
   0xf   :  { %8916 = vmatpush1.bf16.msra.mxu0 %v18465_v14  ;;  %9244 = vmatpush1.bf16.msra.mxu1 %v18466_v15  ;;  %v18503_v45 = vld [vmem:[%s27950_s1 + $0x374] ss:$44 sps:$4 sm:$0xff]   ;;  %v18507_v47 = vld [vmem:[%s27950_s1 + $0x370] ss:$44 sps:$4 sm:$0xff]   ;;  %v18508_v48 = vld [vmem:[%s27950_s1 + $0x378] ss:$44 sps:$4 sm:$0xff]   ;;  %v21581_v49 = vsub.s32 %v1630_v43, %v21563_v42 }
  0x10   :  { %8917 = vmatprep.subr.bf16.mxu0 %v18467_v16  ;;  %9245 = vmatprep.subr.bf16.mxu1 %v18469_v17  ;;  %v18509_v50 = vld [vmem:[%s27950_s1 + $0x3cc] ss:$44 sps:$4 sm:$0xff]   ;;  %v18511_v51 = vld [vmem:[%s27950_s1 + $0x3d4] ss:$44 sps:$4 sm:$0xff]   ;;  %v18514_v55 = vld [vmem:[%s27950_s1 + $0x3d0] ss:$44 sps:$4 sm:$0xff]  }
  0x11   :  { %v21592_v52 = vld [vmem:[%s27949_s0] sm:$0xff]  ;;  %v18513_v53 = vld [vmem:[%s27950_s1 + $0x3c8] ss:$44 sps:$4 sm:$0xff]   ;;  %v18517_v57 = vld [vmem:[%s27950_s1 + $0x42c] ss:$44 sps:$4 sm:$0xff]  }
  0x12   :  { %v1634_v54 = vrot.slane %v21592_v52, %v21581_v49  ;;  %v18515_v56 = vld [vmem:[%s27950_s1 + $0x424] ss:$44 sps:$4 sm:$0xff]   ;;  %v18519_v59 = vld [vmem:[%s27950_s1 + $0x420] ss:$44 sps:$4 sm:$0xff]   ;;  %v18520_v61 = vld [vmem:[%s27950_s1 + $0x428] ss:$44 sps:$4 sm:$0xff]  }
  0x13   :  { %8918 = vmatpush1.bf16.msra.mxu0 %v18471_v18  ;;  %9246 = vmatpush1.bf16.msra.mxu1 %v18472_v19  ;;  %v18521_v62 = vld [vmem:[%s27950_s1 + $0x47c] ss:$44 sps:$4 sm:$0xff]   ;;  %v18523_v63 = vld [vmem:[%s27950_s1 + $0x484] ss:$44 sps:$4 sm:$0xff]   ;;  %v18526_v1 = vld [vmem:[%s27950_s1 + $0x480] ss:$44 sps:$4 sm:$0xff]  }
  0x14   :  { %8919 = vmatprep.subr.bf16.mxu0 %v18473_v20  ;;  %9247 = vmatprep.subr.bf16.mxu1 %v18475_v21  ;;  %v1642_v58 = vcombine.high %v1634_v54, %v1634_v54  ;;  %v18525_v0 = vld [vmem:[%s27950_s1 + $0x478] ss:$44 sps:$4 sm:$0xff]   ;;  %v18527_v2 = vld [vmem:[%s27950_s1 + $0x4d4] ss:$44 sps:$4 sm:$0xff]   ;;  %v18529_v3 = vld [vmem:[%s27950_s1 + $0x4dc] ss:$44 sps:$4 sm:$0xff]   ;;  %v21665_v13 = vrot.slane %v1634_v54, %v21581_v49 }
  0x15   :  { %v18531_v4 = vld [vmem:[%s27950_s1 + $0x4d0] ss:$44 sps:$4 sm:$0xff]   ;;  %v18532_v5 = vld [vmem:[%s27950_s1 + $0x4d8] ss:$44 sps:$4 sm:$0xff]   ;;  %v18535_v7 = vld [vmem:[%s27950_s1 + $0x534] ss:$44 sps:$4 sm:$0xff]  }
  0x16   :  { %v21612_v60 = vrot.slane %v1642_v58, %v21581_v49  ;;  %v18533_v6 = vld [vmem:[%s27950_s1 + $0x52c] ss:$44 sps:$4 sm:$0xff]   ;;  %v18537_v8 = vld [vmem:[%s27950_s1 + $0x528] ss:$44 sps:$4 sm:$0xff]   ;;  %v18538_v9 = vld [vmem:[%s27950_s1 + $0x530] ss:$44 sps:$4 sm:$0xff]  }
  0x17   :  { %8920 = vmatpush1.bf16.msra.mxu0 %v18477_v22  ;;  %9248 = vmatpush1.bf16.msra.mxu1 %v18478_v23  ;;  %v18541_v10 = vld [vmem:[%s27950_s1 + $0x584] ss:$44 sps:$4 sm:$0xff]   ;;  %v18544_v11 = vld [vmem:[%s27950_s1 + $0x58c] ss:$44 sps:$4 sm:$0xff]   ;;  %v18542_v14 = vld [vmem:[%s27950_s1 + $0x588] ss:$44 sps:$4 sm:$0xff]  }
  0x18   :  { %8921 = vmatprep.subr.bf16.mxu0 %v18479_v24  ;;  %9249 = vmatprep.subr.bf16.mxu1 %v18481_v25  ;;  %v18539_v12 = vld [vmem:[%s27950_s1 + $0x580] ss:$44 sps:$4 sm:$0xff]   ;;  %v18547_v15 = vld [vmem:[%s27950_s1 + $0x5dc] ss:$44 sps:$4 sm:$0xff]   ;;  %v18550_v16 = vld [vmem:[%s27950_s1 + $0x5e4] ss:$44 sps:$4 sm:$0xff]   ;;  %v21678_v17 = vcombine.high %v21612_v60, %v21612_v60 }
  0x19   :  { %8941 = vmatprep.mubr.bf16.mxu0 %v21612_v60  ;;  %9269 = vmatprep.mubr.bf16.mxu1 %v21612_v60  ;;  %v18545_v18 = vld [vmem:[%s27950_s1 + $0x5d8] ss:$44 sps:$4 sm:$0xff]   ;;  %v18548_v19 = vld [vmem:[%s27950_s1 + $0x5e0] ss:$44 sps:$4 sm:$0xff]   ;;  %v18556_v21 = vld [vmem:[%s27950_s1 + $0x63c] ss:$44 sps:$4 sm:$0xff]  }
  0x1a   :  { %v18553_v20 = vld [vmem:[%s27950_s1 + $0x634] ss:$44 sps:$4 sm:$0xff]   ;;  %v18551_v22 = vld [vmem:[%s27950_s1 + $0x630] ss:$44 sps:$4 sm:$0xff]   ;;  %v18554_v23 = vld [vmem:[%s27950_s1 + $0x638] ss:$44 sps:$4 sm:$0xff]  }
  0x1b   :  { %8922 = vmatpush1.bf16.msra.mxu0 %v18483_v26  ;;  %9250 = vmatpush1.bf16.msra.mxu1 %v18484_v27  ;;  %v18559_v24 = vld [vmem:[%s27950_s1 + $0x68c] ss:$44 sps:$4 sm:$0xff]   ;;  %v18562_v25 = vld [vmem:[%s27950_s1 + $0x694] ss:$44 sps:$4 sm:$0xff]   ;;  %v18560_v27 = vld [vmem:[%s27950_s1 + $0x690] ss:$44 sps:$4 sm:$0xff]  }
  0x1c   :  { %8923 = vmatprep.subr.bf16.mxu0 %v18485_v28  ;;  %9251 = vmatprep.subr.bf16.mxu1 %v18487_v29  ;;  %v18557_v26 = vld [vmem:[%s27950_s1 + $0x688] ss:$44 sps:$4 sm:$0xff]   ;;  %v18565_v28 = vld [vmem:[%s27950_s1 + $0x6e4] ss:$44 sps:$4 sm:$0xff]   ;;  %v18568_v29 = vld [vmem:[%s27950_s1 + $0x6ec] ss:$44 sps:$4 sm:$0xff]  }
  0x1d   :  { %v18577_v36 = vld [vmem:[%s27950_s1 + $0x794] ss:$44 sps:$4 sm:$0xff]   ;;  %v18580_v37 = vld [vmem:[%s27950_s1 + $0x79c] ss:$44 sps:$4 sm:$0xff]   ;;  %v18602_v58 = vld [vmem:[%s27950_s1 + $0x8f8] ss:$44 sps:$4 sm:$0xff]  }
  0x1e   :  { %v18575_v38 = vld [vmem:[%s27950_s1 + $0x790] ss:$44 sps:$4 sm:$0xff]   ;;  %v18581_v43 = vld [vmem:[%s27950_s1 + $0x7e8] ss:$44 sps:$4 sm:$0xff]   ;;  %v18596_v54 = vld [vmem:[%s27950_s1 + $0x8a0] ss:$44 sps:$4 sm:$0xff]  }
  0x1f   :  { %8924 = vmatpush1.bf16.msra.mxu0 %v18489_v30  ;;  %9252 = vmatpush1.bf16.msra.mxu1 %v18490_v31  ;;  %v18563_v30 = vld [vmem:[%s27950_s1 + $0x6e0] ss:$44 sps:$4 sm:$0xff]   ;;  %v18566_v31 = vld [vmem:[%s27950_s1 + $0x6e8] ss:$44 sps:$4 sm:$0xff]  }
  0x20   :  { %8925 = vmatprep.subr.bf16.mxu0 %v18491_v32  ;;  %9253 = vmatprep.subr.bf16.mxu1 %v18493_v33  ;;  %v18571_v32 = vld [vmem:[%s27950_s1 + $0x73c] ss:$44 sps:$4 sm:$0xff]   ;;  %v18574_v33 = vld [vmem:[%s27950_s1 + $0x744] ss:$44 sps:$4 sm:$0xff]  }
  0x23   :  { %8926 = vmatpush1.bf16.msra.mxu0 %v18495_v34  ;;  %9254 = vmatpush1.bf16.msra.mxu1 %v18496_v35  ;;  %v18569_v34 = vld [vmem:[%s27950_s1 + $0x738] ss:$44 sps:$4 sm:$0xff]   ;;  %v18572_v35 = vld [vmem:[%s27950_s1 + $0x740] ss:$44 sps:$4 sm:$0xff]  }
  0x24   :  { %8927 = vmatprep.subr.bf16.mxu0 %v18497_v39  ;;  %9255 = vmatprep.subr.bf16.mxu1 %v18499_v40  ;;  %v18578_v39 = vld [vmem:[%s27950_s1 + $0x798] ss:$44 sps:$4 sm:$0xff]  }
  0x25   :  { %v18583_v40 = vld [vmem:[%s27950_s1 + $0x7ec] ss:$44 sps:$4 sm:$0xff]  }
  0x27   :  { %8928 = vmatpush1.bf16.msra.mxu0 %v18501_v41  ;;  %9256 = vmatpush1.bf16.msra.mxu1 %v18502_v44  ;;  %v18586_v41 = vld [vmem:[%s27950_s1 + $0x7f4] ss:$44 sps:$4 sm:$0xff]   ;;  %v18584_v44 = vld [vmem:[%s27950_s1 + $0x7f0] ss:$44 sps:$4 sm:$0xff]  }
  0x28   :  { %8929 = vmatprep.subr.bf16.mxu0 %v18503_v45  ;;  %9257 = vmatprep.subr.bf16.mxu1 %v18505_v46  ;;  %v18589_v45 = vld [vmem:[%s27950_s1 + $0x844] ss:$44 sps:$4 sm:$0xff]   ;;  %v18592_v46 = vld [vmem:[%s27950_s1 + $0x84c] ss:$44 sps:$4 sm:$0xff]  }
  0x2b   :  { %8930 = vmatpush1.bf16.msra.mxu0 %v18507_v47  ;;  %9258 = vmatpush1.bf16.msra.mxu1 %v18508_v48  ;;  %v18587_v47 = vld [vmem:[%s27950_s1 + $0x840] ss:$44 sps:$4 sm:$0xff]   ;;  %v18590_v48 = vld [vmem:[%s27950_s1 + $0x848] ss:$44 sps:$4 sm:$0xff]  }
  0x2c   :  { %8931 = vmatprep.subr.bf16.mxu0 %v18509_v50  ;;  %9259 = vmatprep.subr.bf16.mxu1 %v18511_v51  ;;  %v18595_v50 = vld [vmem:[%s27950_s1 + $0x89c] ss:$44 sps:$4 sm:$0xff]   ;;  %v18598_v51 = vld [vmem:[%s27950_s1 + $0x8a4] ss:$44 sps:$4 sm:$0xff]  }
  0x2f   :  { %8932 = vmatpush1.bf16.msra.mxu0 %v18513_v53  ;;  %9260 = vmatpush1.bf16.msra.mxu1 %v18514_v55  ;;  %v18593_v53 = vld [vmem:[%s27950_s1 + $0x898] ss:$44 sps:$4 sm:$0xff]   ;;  %v18601_v55 = vld [vmem:[%s27950_s1 + $0x8f4] ss:$44 sps:$4 sm:$0xff]  }
  0x30   :  { %8933 = vmatprep.subr.bf16.mxu0 %v18515_v56  ;;  %9261 = vmatprep.subr.bf16.mxu1 %v18517_v57  ;;  %v18604_v56 = vld [vmem:[%s27950_s1 + $0x8fc] ss:$44 sps:$4 sm:$0xff]  }
  0x31   :  { %v18599_v57 = vld [vmem:[%s27950_s1 + $0x8f0] ss:$44 sps:$4 sm:$0xff]  }
  0x33   :  { %8934 = vmatpush1.bf16.msra.mxu0 %v18519_v59  ;;  %9262 = vmatpush1.bf16.msra.mxu1 %v18520_v61  ;;  %v18607_v59 = vld [vmem:[%s27950_s1 + $0x94c] ss:$44 sps:$4 sm:$0xff]   ;;  %v18610_v61 = vld [vmem:[%s27950_s1 + $0x954] ss:$44 sps:$4 sm:$0xff]  }
  0x34   :  { %8935 = vmatprep.subr.bf16.mxu0 %v18521_v62  ;;  %9263 = vmatprep.subr.bf16.mxu1 %v18523_v63  ;;  %v18605_v62 = vld [vmem:[%s27950_s1 + $0x948] ss:$44 sps:$4 sm:$0xff]   ;;  %v18608_v63 = vld [vmem:[%s27950_s1 + $0x950] ss:$44 sps:$4 sm:$0xff]  }
  0x37   :  { %8936 = vmatpush1.bf16.msra.mxu0 %v18525_v0  ;;  %9264 = vmatpush1.bf16.msra.mxu1 %v18526_v1  ;;  %v18613_v0 = vld [vmem:[%s27950_s1 + $0x9a4] ss:$44 sps:$4 sm:$0xff]   ;;  %v18616_v1 = vld [vmem:[%s27950_s1 + $0x9ac] ss:$44 sps:$4 sm:$0xff]  }
  0x38   :  { %8937 = vmatprep.subr.bf16.mxu0 %v18527_v2  ;;  %9265 = vmatprep.subr.bf16.mxu1 %v18529_v3  ;;  %v18611_v2 = vld [vmem:[%s27950_s1 + $0x9a0] ss:$44 sps:$4 sm:$0xff]   ;;  %v18614_v3 = vld [vmem:[%s27950_s1 + $0x9a8] ss:$44 sps:$4 sm:$0xff]  }
  0x3b   :  { %8938 = vmatpush1.bf16.msra.mxu0 %v18531_v4  ;;  %9266 = vmatpush1.bf16.msra.mxu1 %v18532_v5  ;;  %v18619_v4 = vld [vmem:[%s27950_s1 + $0x9fc] ss:$44 sps:$4 sm:$0xff]   ;;  %v18622_v5 = vld [vmem:[%s27950_s1 + $0xa04] ss:$44 sps:$4 sm:$0xff]  }
  0x3c   :  { %8939 = vmatprep.subr.bf16.mxu0 %v18533_v6  ;;  %9267 = vmatprep.subr.bf16.mxu1 %v18535_v7  ;;  %v18617_v6 = vld [vmem:[%s27950_s1 + $0x9f8] ss:$44 sps:$4 sm:$0xff]   ;;  %v18620_v7 = vld [vmem:[%s27950_s1 + $0xa00] ss:$44 sps:$4 sm:$0xff]  }
  0x3f   :  { %8940 = vmatpush1.bf16.msra.mxu0 %v18537_v8  ;;  %9268 = vmatpush1.bf16.msra.mxu1 %v18538_v9  ;;  %v18625_v8 = vld [vmem:[%s27950_s1 + $0xa54] ss:$44 sps:$4 sm:$0xff]   ;;  %v18628_v9 = vld [vmem:[%s27950_s1 + $0xa5c] ss:$44 sps:$4 sm:$0xff]  }
  0x40   :  { %8950 = vmatprep.subr.bf16.mxu0 %v18541_v10  ;;  %9278 = vmatprep.subr.bf16.mxu1 %v18544_v11  ;;  %v1627_v10 = vcombine.high %v21592_v52, %v21592_v52  ;;  %v18623_v11 = vld [vmem:[%s27950_s1 + $0xa50] ss:$44 sps:$4 sm:$0xff]   ;;  %v18634_v52 = vld [vmem:[%s27950_s1 + $0xab4] ss:$44 sps:$4 sm:$0xff]  }
  0x42   :  { %8942 = vmatmul.mubr.bf16.vlgmr.msra.gmra.mrb[0].mxu0 %v21665_v13  ;;  %9270 = vmatmul.mubr.bf16.vlgmr.msra.gmra.mrb[0].mxu1 %v21665_v13 }
  0x43   :  { %8951 = vmatpush1.bf16.msra.mxu0 %v18539_v12  ;;  %9279 = vmatpush1.bf16.msra.mxu1 %v18542_v14  ;;  %v18626_v12 = vld [vmem:[%s27950_s1 + $0xa58] ss:$44 sps:$4 sm:$0xff]  }
  0x44   :  { %8952 = vmatprep.subr.bf16.mxu0 %v18547_v15  ;;  %9280 = vmatprep.subr.bf16.mxu1 %v18550_v16  ;;  %v18631_v14 = vld [vmem:[%s27950_s1 + $0xaac] ss:$44 sps:$4 sm:$0xff]   ;;  %v21855_v15 = vrot.slane %v1627_v10, %v21581_v49  ;;  %v18629_v16 = vld [vmem:[%s27950_s1 + $0xaa8] ss:$44 sps:$4 sm:$0xff]   ;;  %v18709_v10 = vld [vmem:[%s27950_s1 + $0xf24] ss:$44 sps:$4 sm:$0xff]  }
  0x45   :  { %8982 = vmatprep.mubr.bf16.mxu0 %v21678_v17  ;;  %9310 = vmatprep.mubr.bf16.mxu1 %v21678_v17 }
  0x47   :  { %8953 = vmatpush1.bf16.msra.mxu0 %v18545_v18  ;;  %9281 = vmatpush1.bf16.msra.mxu1 %v18548_v19  ;;  %v18632_v18 = vld [vmem:[%s27950_s1 + $0xab0] ss:$44 sps:$4 sm:$0xff]  }
  0x48   :  { %8954 = vmatprep.subr.bf16.mxu0 %v18553_v20  ;;  %9282 = vmatprep.subr.bf16.mxu1 %v18556_v21  ;;  %v18637_v19 = vld [vmem:[%s27950_s1 + $0xb04] ss:$44 sps:$4 sm:$0xff]   ;;  %v18640_v20 = vld [vmem:[%s27950_s1 + $0xb0c] ss:$44 sps:$4 sm:$0xff]   ;;  %v1643_v21 = vcombine.high %v21855_v15, %v21855_v15 }
  0x4b   :  { %8955 = vmatpush1.bf16.msra.mxu0 %v18551_v22  ;;  %9283 = vmatpush1.bf16.msra.mxu1 %v18554_v23  ;;  %v18635_v22 = vld [vmem:[%s27950_s1 + $0xb00] ss:$44 sps:$4 sm:$0xff]   ;;  %v21876_v23 = vcombine.high %v21665_v13, %v21665_v13 }
  0x4c   :  { %8956 = vmatprep.subr.bf16.mxu0 %v18559_v24  ;;  %9284 = vmatprep.subr.bf16.mxu1 %v18562_v25  ;;  %v18638_v24 = vld [vmem:[%s27950_s1 + $0xb08] ss:$44 sps:$4 sm:$0xff]  }
  0x4d   :  { %v18643_v25 = vld [vmem:[%s27950_s1 + $0xb5c] ss:$44 sps:$4 sm:$0xff]  }
  0x4f   :  { %8957 = vmatpush1.bf16.msra.mxu0 %v18557_v26  ;;  %9285 = vmatpush1.bf16.msra.mxu1 %v18560_v27  ;;  %v18646_v26 = vld [vmem:[%s27950_s1 + $0xb64] ss:$44 sps:$4 sm:$0xff]   ;;  %v21888_v27 = vrot.slane %v1643_v21, %v21581_v49  ;;  %v18724_v21 = vld [vmem:[%s27950_s1 + $0xfdc] ss:$44 sps:$4 sm:$0xff]  }
  0x50   :  { %8958 = vmatprep.subr.bf16.mxu0 %v18565_v28  ;;  %9286 = vmatprep.subr.bf16.mxu1 %v18568_v29  ;;  %v18641_v28 = vld [vmem:[%s27950_s1 + $0xb58] ss:$44 sps:$4 sm:$0xff]   ;;  %v18644_v29 = vld [vmem:[%s27950_s1 + $0xb60] ss:$44 sps:$4 sm:$0xff]  }
  0x53   :  { %8959 = vmatpush1.bf16.msra.mxu0 %v18563_v30  ;;  %9287 = vmatpush1.bf16.msra.mxu1 %v18566_v31  ;;  %v18649_v30 = vld [vmem:[%s27950_s1 + $0xbb4] ss:$44 sps:$4 sm:$0xff]   ;;  %v18652_v31 = vld [vmem:[%s27950_s1 + $0xbbc] ss:$44 sps:$4 sm:$0xff]  }
  0x54   :  { %8960 = vmatprep.subr.bf16.mxu0 %v18571_v32  ;;  %9288 = vmatprep.subr.bf16.mxu1 %v18574_v33  ;;  %v18647_v32 = vld [vmem:[%s27950_s1 + $0xbb0] ss:$44 sps:$4 sm:$0xff]   ;;  %v18650_v33 = vld [vmem:[%s27950_s1 + $0xbb8] ss:$44 sps:$4 sm:$0xff]  }
  0x57   :  { %8961 = vmatpush1.bf16.msra.mxu0 %v18569_v34  ;;  %9289 = vmatpush1.bf16.msra.mxu1 %v18572_v35  ;;  %v18655_v34 = vld [vmem:[%s27950_s1 + $0xc0c] ss:$44 sps:$4 sm:$0xff]   ;;  %v18658_v35 = vld [vmem:[%s27950_s1 + $0xc14] ss:$44 sps:$4 sm:$0xff]  }
  0x58   :  { %8962 = vmatprep.subr.bf16.mxu0 %v18577_v36  ;;  %9290 = vmatprep.subr.bf16.mxu1 %v18580_v37  ;;  %v18653_v36 = vld [vmem:[%s27950_s1 + $0xc08] ss:$44 sps:$4 sm:$0xff]   ;;  %v18656_v37 = vld [vmem:[%s27950_s1 + $0xc10] ss:$44 sps:$4 sm:$0xff]  }
  0x5b   :  { %8963 = vmatpush1.bf16.msra.mxu0 %v18575_v38  ;;  %9291 = vmatpush1.bf16.msra.mxu1 %v18578_v39  ;;  %v18661_v38 = vld [vmem:[%s27950_s1 + $0xc64] ss:$44 sps:$4 sm:$0xff]   ;;  %v18664_v39 = vld [vmem:[%s27950_s1 + $0xc6c] ss:$44 sps:$4 sm:$0xff]  }
  0x5c   :  { %8964 = vmatprep.subr.bf16.mxu0 %v18583_v40  ;;  %9292 = vmatprep.subr.bf16.mxu1 %v18586_v41  ;;  %v18659_v40 = vld [vmem:[%s27950_s1 + $0xc60] ss:$44 sps:$4 sm:$0xff]   ;;  %v18662_v41 = vld [vmem:[%s27950_s1 + $0xc68] ss:$44 sps:$4 sm:$0xff]  }
  0x5f   :  { %8965 = vmatpush1.bf16.msra.mxu0 %v18581_v43  ;;  %9293 = vmatpush1.bf16.msra.mxu1 %v18584_v44  ;;  %v18667_v43 = vld [vmem:[%s27950_s1 + $0xcbc] ss:$44 sps:$4 sm:$0xff]   ;;  %v18670_v44 = vld [vmem:[%s27950_s1 + $0xcc4] ss:$44 sps:$4 sm:$0xff]  }
  0x60   :  { %8966 = vmatprep.subr.bf16.mxu0 %v18589_v45  ;;  %9294 = vmatprep.subr.bf16.mxu1 %v18592_v46  ;;  %v18665_v45 = vld [vmem:[%s27950_s1 + $0xcb8] ss:$44 sps:$4 sm:$0xff]   ;;  %v18668_v46 = vld [vmem:[%s27950_s1 + $0xcc0] ss:$44 sps:$4 sm:$0xff]  }
  0x63   :  { %8967 = vmatpush1.bf16.msra.mxu0 %v18587_v47  ;;  %9295 = vmatpush1.bf16.msra.mxu1 %v18590_v48  ;;  %v18673_v47 = vld [vmem:[%s27950_s1 + $0xd14] ss:$44 sps:$4 sm:$0xff]   ;;  %v18676_v48 = vld [vmem:[%s27950_s1 + $0xd1c] ss:$44 sps:$4 sm:$0xff]  }
  0x64   :  { %8968 = vmatprep.subr.bf16.mxu0 %v18595_v50  ;;  %9296 = vmatprep.subr.bf16.mxu1 %v18598_v51  ;;  %v18671_v50 = vld [vmem:[%s27950_s1 + $0xd10] ss:$44 sps:$4 sm:$0xff]   ;;  %v18674_v51 = vld [vmem:[%s27950_s1 + $0xd18] ss:$44 sps:$4 sm:$0xff]  }
  0x67   :  { %8969 = vmatpush1.bf16.msra.mxu0 %v18593_v53  ;;  %9297 = vmatpush1.bf16.msra.mxu1 %v18596_v54  ;;  %v18679_v53 = vld [vmem:[%s27950_s1 + $0xd6c] ss:$44 sps:$4 sm:$0xff]   ;;  %v18682_v54 = vld [vmem:[%s27950_s1 + $0xd74] ss:$44 sps:$4 sm:$0xff]  }
  0x68   :  { %8970 = vmatprep.subr.bf16.mxu0 %v18601_v55  ;;  %9298 = vmatprep.subr.bf16.mxu1 %v18604_v56  ;;  %v18677_v55 = vld [vmem:[%s27950_s1 + $0xd68] ss:$44 sps:$4 sm:$0xff]   ;;  %v18680_v56 = vld [vmem:[%s27950_s1 + $0xd70] ss:$44 sps:$4 sm:$0xff]  }
  0x6b   :  { %8971 = vmatpush1.bf16.msra.mxu0 %v18599_v57  ;;  %9299 = vmatpush1.bf16.msra.mxu1 %v18602_v58  ;;  %v18685_v57 = vld [vmem:[%s27950_s1 + $0xdc4] ss:$44 sps:$4 sm:$0xff]   ;;  %v18688_v58 = vld [vmem:[%s27950_s1 + $0xdcc] ss:$44 sps:$4 sm:$0xff]  }
  0x6c   :  { %8972 = vmatprep.subr.bf16.mxu0 %v18607_v59  ;;  %9300 = vmatprep.subr.bf16.mxu1 %v18610_v61  ;;  %v18683_v59 = vld [vmem:[%s27950_s1 + $0xdc0] ss:$44 sps:$4 sm:$0xff]   ;;  %v18686_v61 = vld [vmem:[%s27950_s1 + $0xdc8] ss:$44 sps:$4 sm:$0xff]  }
  0x6f   :  { %8973 = vmatpush1.bf16.msra.mxu0 %v18605_v62  ;;  %9301 = vmatpush1.bf16.msra.mxu1 %v18608_v63  ;;  %v18691_v62 = vld [vmem:[%s27950_s1 + $0xe1c] ss:$44 sps:$4 sm:$0xff]   ;;  %v18694_v63 = vld [vmem:[%s27950_s1 + $0xe24] ss:$44 sps:$4 sm:$0xff]  }
  0x70   :  { %8974 = vmatprep.subr.bf16.mxu0 %v18613_v0  ;;  %9302 = vmatprep.subr.bf16.mxu1 %v18616_v1  ;;  %v18689_v0 = vld [vmem:[%s27950_s1 + $0xe18] ss:$44 sps:$4 sm:$0xff]   ;;  %v18692_v1 = vld [vmem:[%s27950_s1 + $0xe20] ss:$44 sps:$4 sm:$0xff]  }
  0x73   :  { %8975 = vmatpush1.bf16.msra.mxu0 %v18611_v2  ;;  %9303 = vmatpush1.bf16.msra.mxu1 %v18614_v3  ;;  %v18697_v2 = vld [vmem:[%s27950_s1 + $0xe74] ss:$44 sps:$4 sm:$0xff]   ;;  %v18700_v3 = vld [vmem:[%s27950_s1 + $0xe7c] ss:$44 sps:$4 sm:$0xff]  }
  0x74   :  { %8976 = vmatprep.subr.bf16.mxu0 %v18619_v4  ;;  %9304 = vmatprep.subr.bf16.mxu1 %v18622_v5  ;;  %v18695_v4 = vld [vmem:[%s27950_s1 + $0xe70] ss:$44 sps:$4 sm:$0xff]   ;;  %v18698_v5 = vld [vmem:[%s27950_s1 + $0xe78] ss:$44 sps:$4 sm:$0xff]  }
  0x77   :  { %8977 = vmatpush1.bf16.msra.mxu0 %v18617_v6  ;;  %9305 = vmatpush1.bf16.msra.mxu1 %v18620_v7  ;;  %v18703_v6 = vld [vmem:[%s27950_s1 + $0xecc] ss:$44 sps:$4 sm:$0xff]   ;;  %v18706_v7 = vld [vmem:[%s27950_s1 + $0xed4] ss:$44 sps:$4 sm:$0xff]  }
  0x78   :  { %8978 = vmatprep.subr.bf16.mxu0 %v18625_v8  ;;  %9306 = vmatprep.subr.bf16.mxu1 %v18628_v9  ;;  %v18701_v8 = vld [vmem:[%s27950_s1 + $0xec8] ss:$44 sps:$4 sm:$0xff]   ;;  %v18704_v9 = vld [vmem:[%s27950_s1 + $0xed0] ss:$44 sps:$4 sm:$0xff]  }
  0x7b   :  { %8979 = vmatpush1.bf16.msra.mxu0 %v18623_v11  ;;  %9307 = vmatpush1.bf16.msra.mxu1 %v18626_v12  ;;  %v18712_v11 = vld [vmem:[%s27950_s1 + $0xf2c] ss:$44 sps:$4 sm:$0xff]  }
  0x7c   :  { %8980 = vmatprep.subr.bf16.mxu0 %v18631_v14  ;;  %9308 = vmatprep.subr.bf16.mxu1 %v18634_v52  ;;  %v18707_v12 = vld [vmem:[%s27950_s1 + $0xf20] ss:$44 sps:$4 sm:$0xff]   ;;  %v18710_v14 = vld [vmem:[%s27950_s1 + $0xf28] ss:$44 sps:$4 sm:$0xff]  }
  0x7d   :  { %v18715_v52 = vld [vmem:[%s27950_s1 + $0xf7c] ss:$44 sps:$4 sm:$0xff]  }
  0x7f   :  { %8981 = vmatpush1.bf16.msra.mxu0 %v18629_v16  ;;  %9309 = vmatpush1.bf16.msra.mxu1 %v18632_v18  ;;  %v18718_v16 = vld [vmem:[%s27950_s1 + $0xf84] ss:$44 sps:$4 sm:$0xff]  }
  0x80   :  { %8991 = vmatprep.subr.bf16.mxu0 %v18637_v19  ;;  %9319 = vmatprep.subr.bf16.mxu1 %v18640_v20  ;;  %v18713_v18 = vld [vmem:[%s27950_s1 + $0xf78] ss:$44 sps:$4 sm:$0xff]   ;;  %v18716_v19 = vld [vmem:[%s27950_s1 + $0xf80] ss:$44 sps:$4 sm:$0xff]  }
  0x81   :  { %v18721_v20 = vld [vmem:[%s27950_s1 + $0xfd4] ss:$44 sps:$4 sm:$0xff]  }
  0x82   :  { %8983 = vmatmul.mubr.bf16.vlgmr.msra.gmra.mrb[0].mxu0 %v21876_v23  ;;  %9311 = vmatmul.mubr.bf16.vlgmr.msra.gmra.mrb[0].mxu1 %v21876_v23 }
  0x83   :  { %8992 = vmatpush1.bf16.msra.mxu0 %v18635_v22  ;;  %9320 = vmatpush1.bf16.msra.mxu1 %v18638_v24  ;;  %v18719_v22 = vld [vmem:[%s27950_s1 + $0xfd0] ss:$44 sps:$4 sm:$0xff]   ;;  %v18722_v24 = vld [vmem:[%s27950_s1 + $0xfd8] ss:$44 sps:$4 sm:$0xff]  }
  0x84   :  { %8993 = vmatprep.subr.bf16.mxu0 %v18643_v25  ;;  %9321 = vmatprep.subr.bf16.mxu1 %v18646_v26  ;;  %v18727_v25 = vld [vmem:[%s27950_s1 + $0x102c] ss:$44 sps:$4 sm:$0xff]   ;;  %v18730_v26 = vld [vmem:[%s27950_s1 + $0x1034] ss:$44 sps:$4 sm:$0xff]  }
  0x85   :  { %9023 = vmatprep.mubr.bf16.mxu0 %v21888_v27  ;;  %9351 = vmatprep.mubr.bf16.mxu1 %v21888_v27 }
  0x87   :  { %8994 = vmatpush1.bf16.msra.mxu0 %v18641_v28  ;;  %9322 = vmatpush1.bf16.msra.mxu1 %v18644_v29  ;;  %v18725_v28 = vld [vmem:[%s27950_s1 + $0x1028] ss:$44 sps:$4 sm:$0xff]   ;;  %v18728_v29 = vld [vmem:[%s27950_s1 + $0x1030] ss:$44 sps:$4 sm:$0xff]  }
  0x88   :  { %8995 = vmatprep.subr.bf16.mxu0 %v18649_v30  ;;  %9323 = vmatprep.subr.bf16.mxu1 %v18652_v31  ;;  %v18734_v30 = vld [vmem:[%s27950_s1 + $0x1084] ss:$44 sps:$4 sm:$0xff]   ;;  %v18737_v31 = vld [vmem:[%s27950_s1 + $0x108c] ss:$44 sps:$4 sm:$0xff]  }
  0x8b   :  { %8996 = vmatpush1.bf16.msra.mxu0 %v18647_v32  ;;  %9324 = vmatpush1.bf16.msra.mxu1 %v18650_v33  ;;  %v18732_v32 = vld [vmem:[%s27950_s1 + $0x1080] ss:$44 sps:$4 sm:$0xff]   ;;  %v22079_v33 = vrot.slane %v21855_v15, %v21581_v49  ;;  %v22092_v15 = vcombine.high %v21888_v27, %v21888_v27 }
  0x8c   :  { %8997 = vmatprep.subr.bf16.mxu0 %v18655_v34  ;;  %9325 = vmatprep.subr.bf16.mxu1 %v18658_v35  ;;  %v18735_v34 = vld [vmem:[%s27950_s1 + $0x1088] ss:$44 sps:$4 sm:$0xff]  }
  0x8d   :  { %v18740_v35 = vld [vmem:[%s27950_s1 + $0x10dc] ss:$44 sps:$4 sm:$0xff]  }
  0x8f   :  { %8998 = vmatpush1.bf16.msra.mxu0 %v18653_v36  ;;  %9326 = vmatpush1.bf16.msra.mxu1 %v18656_v37  ;;  %v18743_v36 = vld [vmem:[%s27950_s1 + $0x10e4] ss:$44 sps:$4 sm:$0xff]  }
  0x90   :  { %8999 = vmatprep.subr.bf16.mxu0 %v18661_v38  ;;  %9327 = vmatprep.subr.bf16.mxu1 %v18664_v39  ;;  %v18738_v37 = vld [vmem:[%s27950_s1 + $0x10d8] ss:$44 sps:$4 sm:$0xff]   ;;  %v18741_v38 = vld [vmem:[%s27950_s1 + $0x10e0] ss:$44 sps:$4 sm:$0xff]  }
  0x91   :  { %v18746_v39 = vld [vmem:[%s27950_s1 + $0x1134] ss:$44 sps:$4 sm:$0xff]  }
  0x93   :  { %9000 = vmatpush1.bf16.msra.mxu0 %v18659_v40  ;;  %9328 = vmatpush1.bf16.msra.mxu1 %v18662_v41  ;;  %v18749_v40 = vld [vmem:[%s27950_s1 + $0x113c] ss:$44 sps:$4 sm:$0xff]  }
  0x94   :  { %9001 = vmatprep.subr.bf16.mxu0 %v18667_v43  ;;  %9329 = vmatprep.subr.bf16.mxu1 %v18670_v44  ;;  %v18744_v41 = vld [vmem:[%s27950_s1 + $0x1130] ss:$44 sps:$4 sm:$0xff]   ;;  %v18747_v43 = vld [vmem:[%s27950_s1 + $0x1138] ss:$44 sps:$4 sm:$0xff]  }
  0x95   :  { %v18752_v44 = vld [vmem:[%s27950_s1 + $0x118c] ss:$44 sps:$4 sm:$0xff]  }
  0x97   :  { %9002 = vmatpush1.bf16.msra.mxu0 %v18665_v45  ;;  %9330 = vmatpush1.bf16.msra.mxu1 %v18668_v46  ;;  %v18755_v45 = vld [vmem:[%s27950_s1 + $0x1194] ss:$44 sps:$4 sm:$0xff]  }
  0x98   :  { %9003 = vmatprep.subr.bf16.mxu0 %v18673_v47  ;;  %9331 = vmatprep.subr.bf16.mxu1 %v18676_v48  ;;  %v18750_v46 = vld [vmem:[%s27950_s1 + $0x1188] ss:$44 sps:$4 sm:$0xff]   ;;  %v18753_v47 = vld [vmem:[%s27950_s1 + $0x1190] ss:$44 sps:$4 sm:$0xff]  }
  0x99   :  { %v18758_v48 = vld [vmem:[%s27950_s1 + $0x11e4] ss:$44 sps:$4 sm:$0xff]  }
  0x9b   :  { %9004 = vmatpush1.bf16.msra.mxu0 %v18671_v50  ;;  %9332 = vmatpush1.bf16.msra.mxu1 %v18674_v51  ;;  %v18761_v50 = vld [vmem:[%s27950_s1 + $0x11ec] ss:$44 sps:$4 sm:$0xff]  }
  0x9c   :  { %9005 = vmatprep.subr.bf16.mxu0 %v18679_v53  ;;  %9333 = vmatprep.subr.bf16.mxu1 %v18682_v54  ;;  %v18756_v51 = vld [vmem:[%s27950_s1 + $0x11e0] ss:$44 sps:$4 sm:$0xff]   ;;  %v18759_v53 = vld [vmem:[%s27950_s1 + $0x11e8] ss:$44 sps:$4 sm:$0xff]  }
  0x9d   :  { %v18764_v54 = vld [vmem:[%s27950_s1 + $0x123c] ss:$44 sps:$4 sm:$0xff]  }
  0x9f   :  { %9006 = vmatpush1.bf16.msra.mxu0 %v18677_v55  ;;  %9334 = vmatpush1.bf16.msra.mxu1 %v18680_v56  ;;  %v18767_v55 = vld [vmem:[%s27950_s1 + $0x1244] ss:$44 sps:$4 sm:$0xff]  }
  0xa0   :  { %9007 = vmatprep.subr.bf16.mxu0 %v18685_v57  ;;  %9335 = vmatprep.subr.bf16.mxu1 %v18688_v58  ;;  %v18762_v56 = vld [vmem:[%s27950_s1 + $0x1238] ss:$44 sps:$4 sm:$0xff]   ;;  %v18765_v57 = vld [vmem:[%s27950_s1 + $0x1240] ss:$44 sps:$4 sm:$0xff]  }
  0xa1   :  { %v18770_v58 = vld [vmem:[%s27950_s1 + $0x1294] ss:$44 sps:$4 sm:$0xff]  }
  0xa3   :  { %9008 = vmatpush1.bf16.msra.mxu0 %v18683_v59  ;;  %9336 = vmatpush1.bf16.msra.mxu1 %v18686_v61  ;;  %v18773_v59 = vld [vmem:[%s27950_s1 + $0x129c] ss:$44 sps:$4 sm:$0xff]  }
  0xa4   :  { %9009 = vmatprep.subr.bf16.mxu0 %v18691_v62  ;;  %9337 = vmatprep.subr.bf16.mxu1 %v18694_v63  ;;  %v18768_v61 = vld [vmem:[%s27950_s1 + $0x1290] ss:$44 sps:$4 sm:$0xff]   ;;  %v18771_v62 = vld [vmem:[%s27950_s1 + $0x1298] ss:$44 sps:$4 sm:$0xff]  }
  0xa5   :  { %v18776_v63 = vld [vmem:[%s27950_s1 + $0x12ec] ss:$44 sps:$4 sm:$0xff]  }
  0xa7   :  { %9010 = vmatpush1.bf16.msra.mxu0 %v18689_v0  ;;  %9338 = vmatpush1.bf16.msra.mxu1 %v18692_v1  ;;  %v18779_v0 = vld [vmem:[%s27950_s1 + $0x12f4] ss:$44 sps:$4 sm:$0xff]  }
  0xa8   :  { %9011 = vmatprep.subr.bf16.mxu0 %v18697_v2  ;;  %9339 = vmatprep.subr.bf16.mxu1 %v18700_v3  ;;  %v18774_v1 = vld [vmem:[%s27950_s1 + $0x12e8] ss:$44 sps:$4 sm:$0xff]   ;;  %v18777_v2 = vld [vmem:[%s27950_s1 + $0x12f0] ss:$44 sps:$4 sm:$0xff]  }
  0xa9   :  { %v18782_v3 = vld [vmem:[%s27950_s1 + $0x1344] ss:$44 sps:$4 sm:$0xff]  }
  0xab   :  { %9012 = vmatpush1.bf16.msra.mxu0 %v18695_v4  ;;  %9340 = vmatpush1.bf16.msra.mxu1 %v18698_v5  ;;  %v18785_v4 = vld [vmem:[%s27950_s1 + $0x134c] ss:$44 sps:$4 sm:$0xff]  }
  0xac   :  { %9013 = vmatprep.subr.bf16.mxu0 %v18703_v6  ;;  %9341 = vmatprep.subr.bf16.mxu1 %v18706_v7  ;;  %v18780_v5 = vld [vmem:[%s27950_s1 + $0x1340] ss:$44 sps:$4 sm:$0xff]   ;;  %v18783_v6 = vld [vmem:[%s27950_s1 + $0x1348] ss:$44 sps:$4 sm:$0xff]  }
  0xad   :  { %v18788_v7 = vld [vmem:[%s27950_s1 + $0x139c] ss:$44 sps:$4 sm:$0xff]  }
  0xaf   :  { %9014 = vmatpush1.bf16.msra.mxu0 %v18701_v8  ;;  %9342 = vmatpush1.bf16.msra.mxu1 %v18704_v9  ;;  %v18791_v8 = vld [vmem:[%s27950_s1 + $0x13a4] ss:$44 sps:$4 sm:$0xff]  }
  0xb0   :  { %9015 = vmatprep.subr.bf16.mxu0 %v18709_v10  ;;  %9343 = vmatprep.subr.bf16.mxu1 %v18712_v11  ;;  %v18786_v9 = vld [vmem:[%s27950_s1 + $0x1398] ss:$44 sps:$4 sm:$0xff]   ;;  %v18789_v10 = vld [vmem:[%s27950_s1 + $0x13a0] ss:$44 sps:$4 sm:$0xff]  }
  0xb1   :  { %v18794_v11 = vld [vmem:[%s27950_s1 + $0x13f4] ss:$44 sps:$4 sm:$0xff]  }
  0xb3   :  { %9016 = vmatpush1.bf16.msra.mxu0 %v18707_v12  ;;  %9344 = vmatpush1.bf16.msra.mxu1 %v18710_v14  ;;  %v18797_v12 = vld [vmem:[%s27950_s1 + $0x13fc] ss:$44 sps:$4 sm:$0xff]  }
  0xb4   :  { %9017 = vmatprep.subr.bf16.mxu0 %v18715_v52  ;;  %9345 = vmatprep.subr.bf16.mxu1 %v18718_v16  ;;  %v18792_v14 = vld [vmem:[%s27950_s1 + $0x13f0] ss:$44 sps:$4 sm:$0xff]   ;;  %v18795_v52 = vld [vmem:[%s27950_s1 + $0x13f8] ss:$44 sps:$4 sm:$0xff]  }
  0xb5   :  { %v18800_v16 = vld [vmem:[%s27950_s1 + $0x144c] ss:$44 sps:$4 sm:$0xff]  }
  0xb7   :  { %9018 = vmatpush1.bf16.msra.mxu0 %v18713_v18  ;;  %9346 = vmatpush1.bf16.msra.mxu1 %v18716_v19  ;;  %v18803_v18 = vld [vmem:[%s27950_s1 + $0x1454] ss:$44 sps:$4 sm:$0xff]  }
  0xb8   :  { %9019 = vmatprep.subr.bf16.mxu0 %v18721_v20  ;;  %9347 = vmatprep.subr.bf16.mxu1 %v18724_v21  ;;  %v18798_v19 = vld [vmem:[%s27950_s1 + $0x1448] ss:$44 sps:$4 sm:$0xff]   ;;  %v18801_v20 = vld [vmem:[%s27950_s1 + $0x1450] ss:$44 sps:$4 sm:$0xff]  }
  0xb9   :  { %v18806_v21 = vld [vmem:[%s27950_s1 + $0x14a4] ss:$44 sps:$4 sm:$0xff]  }
  0xbb   :  { %9020 = vmatpush1.bf16.msra.mxu0 %v18719_v22  ;;  %9348 = vmatpush1.bf16.msra.mxu1 %v18722_v24  ;;  %v18809_v22 = vld [vmem:[%s27950_s1 + $0x14ac] ss:$44 sps:$4 sm:$0xff]  }
  0xbc   :  { %9021 = vmatprep.subr.bf16.mxu0 %v18727_v25  ;;  %9349 = vmatprep.subr.bf16.mxu1 %v18730_v26  ;;  %v18804_v24 = vld [vmem:[%s27950_s1 + $0x14a0] ss:$44 sps:$4 sm:$0xff]   ;;  %v18807_v25 = vld [vmem:[%s27950_s1 + $0x14a8] ss:$44 sps:$4 sm:$0xff]  }
  0xbd   :  { %v18812_v26 = vld [vmem:[%s27950_s1 + $0x14fc] ss:$44 sps:$4 sm:$0xff]  }
  0xbf   :  { %9022 = vmatpush1.bf16.msra.mxu0 %v18725_v28  ;;  %9350 = vmatpush1.bf16.msra.mxu1 %v18728_v29  ;;  %v18815_v28 = vld [vmem:[%s27950_s1 + $0x1504] ss:$44 sps:$4 sm:$0xff]  }
  0xc0   :  { %9032 = vmatprep.subr.bf16.mxu0 %v18734_v30  ;;  %9360 = vmatprep.subr.bf16.mxu1 %v18737_v31  ;;  %v18810_v29 = vld [vmem:[%s27950_s1 + $0x14f8] ss:$44 sps:$4 sm:$0xff]   ;;  %v18813_v30 = vld [vmem:[%s27950_s1 + $0x1500] ss:$44 sps:$4 sm:$0xff]  }
  0xc1   :  { %v18818_v31 = vld [vmem:[%s27950_s1 + $0x1554] ss:$44 sps:$4 sm:$0xff]  }
  0xc2   :  { %9024 = vmatmul.mubr.bf16.vlgmr.msra.gmra.mrb[0].mxu0 %v22079_v33  ;;  %9352 = vmatmul.mubr.bf16.vlgmr.msra.gmra.mrb[0].mxu1 %v22079_v33 }
  0xc3   :  { %9033 = vmatpush1.bf16.msra.mxu0 %v18732_v32  ;;  %9361 = vmatpush1.bf16.msra.mxu1 %v18735_v34  ;;  %v18821_v32 = vld [vmem:[%s27950_s1 + $0x155c] ss:$44 sps:$4 sm:$0xff]  }
  0xc4   :  { %9034 = vmatprep.subr.bf16.mxu0 %v18740_v35  ;;  %9362 = vmatprep.subr.bf16.mxu1 %v18743_v36  ;;  %v22257_v34 = vld.sshfl [vmem:[%s27949_s0 + $0x8] sm:$0xff pattern:$0x75316420]  ;;  %v18816_v35 = vld [vmem:[%s27950_s1 + $0x1550] ss:$44 sps:$4 sm:$0xff]  }
  0xc5   :  { %9064 = vmatprep.mubr.bf16.mxu0 %v22092_v15  ;;  %9392 = vmatprep.mubr.bf16.mxu1 %v22092_v15  ;;  %v18819_v36 = vld [vmem:[%s27950_s1 + $0x1558] ss:$44 sps:$4 sm:$0xff]  }
  0xc7   :  { %9035 = vmatpush1.bf16.msra.mxu0 %v18738_v37  ;;  %9363 = vmatpush1.bf16.msra.mxu1 %v18741_v38  ;;  %v18824_v37 = vld [vmem:[%s27950_s1 + $0x15ac] ss:$44 sps:$4 sm:$0xff]   ;;  %v18827_v38 = vld [vmem:[%s27950_s1 + $0x15b4] ss:$44 sps:$4 sm:$0xff]  }
  0xc8   :  { %9036 = vmatprep.subr.bf16.mxu0 %v18746_v39  ;;  %9364 = vmatprep.subr.bf16.mxu1 %v18749_v40  ;;  %v18822_v39 = vld [vmem:[%s27950_s1 + $0x15a8] ss:$44 sps:$4 sm:$0xff]   ;;  %v18825_v40 = vld [vmem:[%s27950_s1 + $0x15b0] ss:$44 sps:$4 sm:$0xff]  }
  0xcb   :  { %9037 = vmatpush1.bf16.msra.mxu0 %v18744_v41  ;;  %9365 = vmatpush1.bf16.msra.mxu1 %v18747_v43  ;;  %v18830_v41 = vld [vmem:[%s27950_s1 + $0x1604] ss:$44 sps:$4 sm:$0xff]   ;;  %v18833_v43 = vld [vmem:[%s27950_s1 + $0x160c] ss:$44 sps:$4 sm:$0xff]  }
  0xcc   :  { %9038 = vmatprep.subr.bf16.mxu0 %v18752_v44  ;;  %9366 = vmatprep.subr.bf16.mxu1 %v18755_v45  ;;  %v1691_v44 = vcombine.high %v22257_v34, %v22257_v34  ;;  %v22287_v45 = vcombine.high %v22079_v33, %v22079_v33 }
  0xcf   :  { %9039 = vmatpush1.bf16.msra.mxu0 %v18750_v46  ;;  %9367 = vmatpush1.bf16.msra.mxu1 %v18753_v47  ;;  %v18828_v46 = vld [vmem:[%s27950_s1 + $0x1600] ss:$44 sps:$4 sm:$0xff]   ;;  %v18831_v47 = vld [vmem:[%s27950_s1 + $0x1608] ss:$44 sps:$4 sm:$0xff]  }
  0xd0   :  { %9040 = vmatprep.subr.bf16.mxu0 %v18758_v48  ;;  %9368 = vmatprep.subr.bf16.mxu1 %v18761_v50  ;;  %v18836_v48 = vld [vmem:[%s27950_s1 + $0x165c] ss:$44 sps:$4 sm:$0xff]   ;;  %v18839_v50 = vld [vmem:[%s27950_s1 + $0x1664] ss:$44 sps:$4 sm:$0xff]  }
  0xd3   :  { %9041 = vmatpush1.bf16.msra.mxu0 %v18756_v51  ;;  %9369 = vmatpush1.bf16.msra.mxu1 %v18759_v53  ;;  %v22302_v51 = vrot.slane %v1691_v44, %v21581_v49  ;;  %v18834_v53 = vld [vmem:[%s27950_s1 + $0x1658] ss:$44 sps:$4 sm:$0xff]  }
  0xd4   :  { %9042 = vmatprep.subr.bf16.mxu0 %v18764_v54  ;;  %9370 = vmatprep.subr.bf16.mxu1 %v18767_v55  ;;  %v18837_v54 = vld [vmem:[%s27950_s1 + $0x1660] ss:$44 sps:$4 sm:$0xff]   ;;  %v18911_v44 = vld [vmem:[%s27950_s1 + $0x1a84] ss:$44 sps:$4 sm:$0xff]  }
  0xd5   :  { %v18842_v55 = vld [vmem:[%s27950_s1 + $0x16b4] ss:$44 sps:$4 sm:$0xff]  }
  0xd7   :  { %9043 = vmatpush1.bf16.msra.mxu0 %v18762_v56  ;;  %9371 = vmatpush1.bf16.msra.mxu1 %v18765_v57  ;;  %v18845_v56 = vld [vmem:[%s27950_s1 + $0x16bc] ss:$44 sps:$4 sm:$0xff]  }
  0xd8   :  { %9044 = vmatprep.subr.bf16.mxu0 %v18770_v58  ;;  %9372 = vmatprep.subr.bf16.mxu1 %v18773_v59  ;;  %v18840_v57 = vld [vmem:[%s27950_s1 + $0x16b0] ss:$44 sps:$4 sm:$0xff]   ;;  %v18843_v58 = vld [vmem:[%s27950_s1 + $0x16b8] ss:$44 sps:$4 sm:$0xff]  }
  0xd9   :  { %v18848_v59 = vld [vmem:[%s27950_s1 + $0x170c] ss:$44 sps:$4 sm:$0xff]  }
  0xdb   :  { %9045 = vmatpush1.bf16.msra.mxu0 %v18768_v61  ;;  %9373 = vmatpush1.bf16.msra.mxu1 %v18771_v62  ;;  %v18851_v61 = vld [vmem:[%s27950_s1 + $0x1714] ss:$44 sps:$4 sm:$0xff]  }
  0xdc   :  { %9046 = vmatprep.subr.bf16.mxu0 %v18776_v63  ;;  %9374 = vmatprep.subr.bf16.mxu1 %v18779_v0  ;;  %v18846_v62 = vld [vmem:[%s27950_s1 + $0x1708] ss:$44 sps:$4 sm:$0xff]   ;;  %v18849_v63 = vld [vmem:[%s27950_s1 + $0x1710] ss:$44 sps:$4 sm:$0xff]  }
  0xdd   :  { %v18854_v0 = vld [vmem:[%s27950_s1 + $0x1764] ss:$44 sps:$4 sm:$0xff]  }
  0xdf   :  { %9047 = vmatpush1.bf16.msra.mxu0 %v18774_v1  ;;  %9375 = vmatpush1.bf16.msra.mxu1 %v18777_v2  ;;  %v18857_v1 = vld [vmem:[%s27950_s1 + $0x176c] ss:$44 sps:$4 sm:$0xff]  }
  0xe0   :  { %9048 = vmatprep.subr.bf16.mxu0 %v18782_v3  ;;  %9376 = vmatprep.subr.bf16.mxu1 %v18785_v4  ;;  %v18852_v2 = vld [vmem:[%s27950_s1 + $0x1760] ss:$44 sps:$4 sm:$0xff]   ;;  %v18855_v3 = vld [vmem:[%s27950_s1 + $0x1768] ss:$44 sps:$4 sm:$0xff]  }
  0xe1   :  { %v18860_v4 = vld [vmem:[%s27950_s1 + $0x17bc] ss:$44 sps:$4 sm:$0xff]  }
  0xe3   :  { %9049 = vmatpush1.bf16.msra.mxu0 %v18780_v5  ;;  %9377 = vmatpush1.bf16.msra.mxu1 %v18783_v6  ;;  %v18863_v5 = vld [vmem:[%s27950_s1 + $0x17c4] ss:$44 sps:$4 sm:$0xff]  }
  0xe4   :  { %9050 = vmatprep.subr.bf16.mxu0 %v18788_v7  ;;  %9378 = vmatprep.subr.bf16.mxu1 %v18791_v8  ;;  %v18858_v6 = vld [vmem:[%s27950_s1 + $0x17b8] ss:$44 sps:$4 sm:$0xff]   ;;  %v18861_v7 = vld [vmem:[%s27950_s1 + $0x17c0] ss:$44 sps:$4 sm:$0xff]  }
  0xe5   :  { %v18866_v8 = vld [vmem:[%s27950_s1 + $0x1814] ss:$44 sps:$4 sm:$0xff]  }
  0xe7   :  { %9051 = vmatpush1.bf16.msra.mxu0 %v18786_v9  ;;  %9379 = vmatpush1.bf16.msra.mxu1 %v18789_v10  ;;  %v18869_v9 = vld [vmem:[%s27950_s1 + $0x181c] ss:$44 sps:$4 sm:$0xff]  }
  0xe8   :  { %9052 = vmatprep.subr.bf16.mxu0 %v18794_v11  ;;  %9380 = vmatprep.subr.bf16.mxu1 %v18797_v12  ;;  %v18864_v10 = vld [vmem:[%s27950_s1 + $0x1810] ss:$44 sps:$4 sm:$0xff]   ;;  %v18867_v11 = vld [vmem:[%s27950_s1 + $0x1818] ss:$44 sps:$4 sm:$0xff]  }
  0xe9   :  { %v18872_v12 = vld [vmem:[%s27950_s1 + $0x186c] ss:$44 sps:$4 sm:$0xff]  }
  0xeb   :  { %9053 = vmatpush1.bf16.msra.mxu0 %v18792_v14  ;;  %9381 = vmatpush1.bf16.msra.mxu1 %v18795_v52  ;;  %v18875_v14 = vld [vmem:[%s27950_s1 + $0x1874] ss:$44 sps:$4 sm:$0xff]  }
  0xec   :  { %9054 = vmatprep.subr.bf16.mxu0 %v18800_v16  ;;  %9382 = vmatprep.subr.bf16.mxu1 %v18803_v18  ;;  %v18870_v52 = vld [vmem:[%s27950_s1 + $0x1868] ss:$44 sps:$4 sm:$0xff]   ;;  %v18873_v16 = vld [vmem:[%s27950_s1 + $0x1870] ss:$44 sps:$4 sm:$0xff]  }
  0xed   :  { %v18878_v18 = vld [vmem:[%s27950_s1 + $0x18c4] ss:$44 sps:$4 sm:$0xff]  }
  0xef   :  { %9055 = vmatpush1.bf16.msra.mxu0 %v18798_v19  ;;  %9383 = vmatpush1.bf16.msra.mxu1 %v18801_v20  ;;  %v18881_v19 = vld [vmem:[%s27950_s1 + $0x18cc] ss:$44 sps:$4 sm:$0xff]  }
  0xf0   :  { %9056 = vmatprep.subr.bf16.mxu0 %v18806_v21  ;;  %9384 = vmatprep.subr.bf16.mxu1 %v18809_v22  ;;  %v18876_v20 = vld [vmem:[%s27950_s1 + $0x18c0] ss:$44 sps:$4 sm:$0xff]   ;;  %v18879_v21 = vld [vmem:[%s27950_s1 + $0x18c8] ss:$44 sps:$4 sm:$0xff]  }
  0xf1   :  { %v18884_v22 = vld [vmem:[%s27950_s1 + $0x191c] ss:$44 sps:$4 sm:$0xff]  }
  0xf3   :  { %9057 = vmatpush1.bf16.msra.mxu0 %v18804_v24  ;;  %9385 = vmatpush1.bf16.msra.mxu1 %v18807_v25  ;;  %v18887_v24 = vld [vmem:[%s27950_s1 + $0x1924] ss:$44 sps:$4 sm:$0xff]  }
  0xf4   :  { %9058 = vmatprep.subr.bf16.mxu0 %v18812_v26  ;;  %9386 = vmatprep.subr.bf16.mxu1 %v18815_v28  ;;  %v18882_v25 = vld [vmem:[%s27950_s1 + $0x1918] ss:$44 sps:$4 sm:$0xff]   ;;  %v18885_v26 = vld [vmem:[%s27950_s1 + $0x1920] ss:$44 sps:$4 sm:$0xff]  }
  0xf5   :  { %v18890_v28 = vld [vmem:[%s27950_s1 + $0x1974] ss:$44 sps:$4 sm:$0xff]  }
  0xf7   :  { %9059 = vmatpush1.bf16.msra.mxu0 %v18810_v29  ;;  %9387 = vmatpush1.bf16.msra.mxu1 %v18813_v30  ;;  %v18893_v29 = vld [vmem:[%s27950_s1 + $0x197c] ss:$44 sps:$4 sm:$0xff]  }
  0xf8   :  { %9060 = vmatprep.subr.bf16.mxu0 %v18818_v31  ;;  %9388 = vmatprep.subr.bf16.mxu1 %v18821_v32  ;;  %v18888_v30 = vld [vmem:[%s27950_s1 + $0x1970] ss:$44 sps:$4 sm:$0xff]   ;;  %v18891_v31 = vld [vmem:[%s27950_s1 + $0x1978] ss:$44 sps:$4 sm:$0xff]  }
  0xf9   :  { %v18896_v32 = vld [vmem:[%s27950_s1 + $0x19cc] ss:$44 sps:$4 sm:$0xff]  }
  0xfb   :  { %9061 = vmatpush1.bf16.msra.mxu0 %v18816_v35  ;;  %9389 = vmatpush1.bf16.msra.mxu1 %v18819_v36  ;;  %v18899_v35 = vld [vmem:[%s27950_s1 + $0x19d4] ss:$44 sps:$4 sm:$0xff]  }
  0xfc   :  { %9062 = vmatprep.subr.bf16.mxu0 %v18824_v37  ;;  %9390 = vmatprep.subr.bf16.mxu1 %v18827_v38  ;;  %v18894_v36 = vld [vmem:[%s27950_s1 + $0x19c8] ss:$44 sps:$4 sm:$0xff]   ;;  %v18897_v37 = vld [vmem:[%s27950_s1 + $0x19d0] ss:$44 sps:$4 sm:$0xff]  }
  0xfd   :  { %v18902_v38 = vld [vmem:[%s27950_s1 + $0x1a24] ss:$44 sps:$4 sm:$0xff]  }
  0xff   :  { %9063 = vmatpush1.bf16.msra.mxu0 %v18822_v39  ;;  %9391 = vmatpush1.bf16.msra.mxu1 %v18825_v40  ;;  %v18905_v39 = vld [vmem:[%s27950_s1 + $0x1a2c] ss:$44 sps:$4 sm:$0xff]  }
 0x100   :  { %9073 = vmatprep.subr.bf16.mxu0 %v18830_v41  ;;  %9401 = vmatprep.subr.bf16.mxu1 %v18833_v43  ;;  %v18900_v40 = vld [vmem:[%s27950_s1 + $0x1a20] ss:$44 sps:$4 sm:$0xff]   ;;  %v18903_v41 = vld [vmem:[%s27950_s1 + $0x1a28] ss:$44 sps:$4 sm:$0xff]  }
 0x101   :  { %v18908_v43 = vld [vmem:[%s27950_s1 + $0x1a7c] ss:$44 sps:$4 sm:$0xff]  }
 0x102   :  { %9065 = vmatmul.mubr.bf16.vlgmr.msra.gmra.mrb[0].mxu0 %v22287_v45  ;;  %9393 = vmatmul.mubr.bf16.vlgmr.msra.gmra.mrb[0].mxu1 %v22287_v45 }
 0x103   :  { %9074 = vmatpush1.bf16.msra.mxu0 %v18828_v46  ;;  %9402 = vmatpush1.bf16.msra.mxu1 %v18831_v47  ;;  %v18906_v46 = vld [vmem:[%s27950_s1 + $0x1a78] ss:$44 sps:$4 sm:$0xff]   ;;  %v18909_v47 = vld [vmem:[%s27950_s1 + $0x1a80] ss:$44 sps:$4 sm:$0xff]  }
 0x104   :  { %9075 = vmatprep.subr.bf16.mxu0 %v18836_v48  ;;  %9403 = vmatprep.subr.bf16.mxu1 %v18839_v50  ;;  %v18914_v48 = vld [vmem:[%s27950_s1 + $0x1ad4] ss:$44 sps:$4 sm:$0xff]   ;;  %v18917_v50 = vld [vmem:[%s27950_s1 + $0x1adc] ss:$44 sps:$4 sm:$0xff]  }
 0x105   :  { %9105 = vmatprep.mubr.bf16.mxu0 %v22302_v51  ;;  %9433 = vmatprep.mubr.bf16.mxu1 %v22302_v51 }
 0x107   :  { %9076 = vmatpush1.bf16.msra.mxu0 %v18834_v53  ;;  %9404 = vmatpush1.bf16.msra.mxu1 %v18837_v54  ;;  %v18912_v53 = vld [vmem:[%s27950_s1 + $0x1ad0] ss:$44 sps:$4 sm:$0xff]   ;;  %v18915_v54 = vld [vmem:[%s27950_s1 + $0x1ad8] ss:$44 sps:$4 sm:$0xff]  }
 0x108   :  { %9077 = vmatprep.subr.bf16.mxu0 %v18842_v55  ;;  %9405 = vmatprep.subr.bf16.mxu1 %v18845_v56  ;;  %v18920_v55 = vld [vmem:[%s27950_s1 + $0x1b2c] ss:$44 sps:$4 sm:$0xff]   ;;  %v18923_v56 = vld [vmem:[%s27950_s1 + $0x1b34] ss:$44 sps:$4 sm:$0xff]  }
 0x10b   :  { %9078 = vmatpush1.bf16.msra.mxu0 %v18840_v57  ;;  %9406 = vmatpush1.bf16.msra.mxu1 %v18843_v58  ;;  %v18918_v57 = vld [vmem:[%s27950_s1 + $0x1b28] ss:$44 sps:$4 sm:$0xff]   ;;  %v18921_v58 = vld [vmem:[%s27950_s1 + $0x1b30] ss:$44 sps:$4 sm:$0xff]  }
 0x10c   :  { %9079 = vmatprep.subr.bf16.mxu0 %v18848_v59  ;;  %9407 = vmatprep.subr.bf16.mxu1 %v18851_v61  ;;  %v18926_v59 = vld [vmem:[%s27950_s1 + $0x1b84] ss:$44 sps:$4 sm:$0xff]   ;;  %v18929_v61 = vld [vmem:[%s27950_s1 + $0x1b8c] ss:$44 sps:$4 sm:$0xff]  }
 0x10f   :  { %9080 = vmatpush1.bf16.msra.mxu0 %v18846_v62  ;;  %9408 = vmatpush1.bf16.msra.mxu1 %v18849_v63  ;;  %v22490_v62 = vrot.slane %v22257_v34, %v21581_v49  ;;  %v18924_v63 = vld [vmem:[%s27950_s1 + $0x1b80] ss:$44 sps:$4 sm:$0xff]   ;;  %v18935_v34 = vld [vmem:[%s27950_s1 + $0x1be4] ss:$44 sps:$4 sm:$0xff]  }
 0x110   :  { %9081 = vmatprep.subr.bf16.mxu0 %v18854_v0  ;;  %9409 = vmatprep.subr.bf16.mxu1 %v18857_v1  ;;  %v18927_v0 = vld [vmem:[%s27950_s1 + $0x1b88] ss:$44 sps:$4 sm:$0xff]  }
 0x111   :  { %v18932_v1 = vld [vmem:[%s27950_s1 + $0x1bdc] ss:$44 sps:$4 sm:$0xff]  }
 0x113   :  { %9082 = vmatpush1.bf16.msra.mxu0 %v18852_v2  ;;  %9410 = vmatpush1.bf16.msra.mxu1 %v18855_v3  ;;  %v22506_v2 = vcombine.high %v22302_v51, %v22302_v51  ;;  %v18930_v3 = vld [vmem:[%s27950_s1 + $0x1bd8] ss:$44 sps:$4 sm:$0xff]  }
 0x114   :  { %9083 = vmatprep.subr.bf16.mxu0 %v18860_v4  ;;  %9411 = vmatprep.subr.bf16.mxu1 %v18863_v5  ;;  %v18933_v4 = vld [vmem:[%s27950_s1 + $0x1be0] ss:$44 sps:$4 sm:$0xff]  }
 0x115   :  { %v18938_v5 = vld [vmem:[%s27950_s1 + $0x1c34] ss:$44 sps:$4 sm:$0xff]  }
 0x117   :  { %9084 = vmatpush1.bf16.msra.mxu0 %v18858_v6  ;;  %9412 = vmatpush1.bf16.msra.mxu1 %v18861_v7  ;;  %v18941_v6 = vld [vmem:[%s27950_s1 + $0x1c3c] ss:$44 sps:$4 sm:$0xff]  }
 0x118   :  { %9085 = vmatprep.subr.bf16.mxu0 %v18866_v8  ;;  %9413 = vmatprep.subr.bf16.mxu1 %v18869_v9  ;;  %v18936_v7 = vld [vmem:[%s27950_s1 + $0x1c30] ss:$44 sps:$4 sm:$0xff]   ;;  %v18939_v8 = vld [vmem:[%s27950_s1 + $0x1c38] ss:$44 sps:$4 sm:$0xff]  }
 0x119   :  { %v18944_v9 = vld [vmem:[%s27950_s1 + $0x1c8c] ss:$44 sps:$4 sm:$0xff]  }
 0x11b   :  { %9086 = vmatpush1.bf16.msra.mxu0 %v18864_v10  ;;  %9414 = vmatpush1.bf16.msra.mxu1 %v18867_v11  ;;  %v18947_v10 = vld [vmem:[%s27950_s1 + $0x1c94] ss:$44 sps:$4 sm:$0xff]  }
 0x11c   :  { %9087 = vmatprep.subr.bf16.mxu0 %v18872_v12  ;;  %9415 = vmatprep.subr.bf16.mxu1 %v18875_v14  ;;  %v18942_v11 = vld [vmem:[%s27950_s1 + $0x1c88] ss:$44 sps:$4 sm:$0xff]   ;;  %v18945_v12 = vld [vmem:[%s27950_s1 + $0x1c90] ss:$44 sps:$4 sm:$0xff]  }
 0x11d   :  { %v18950_v14 = vld [vmem:[%s27950_s1 + $0x1ce4] ss:$44 sps:$4 sm:$0xff]  }
 0x11f   :  { %9088 = vmatpush1.bf16.msra.mxu0 %v18870_v52  ;;  %9416 = vmatpush1.bf16.msra.mxu1 %v18873_v16  ;;  %v18953_v52 = vld [vmem:[%s27950_s1 + $0x1cec] ss:$44 sps:$4 sm:$0xff]  }
 0x120   :  { %9089 = vmatprep.subr.bf16.mxu0 %v18878_v18  ;;  %9417 = vmatprep.subr.bf16.mxu1 %v18881_v19  ;;  %v18948_v16 = vld [vmem:[%s27950_s1 + $0x1ce0] ss:$44 sps:$4 sm:$0xff]   ;;  %v18951_v18 = vld [vmem:[%s27950_s1 + $0x1ce8] ss:$44 sps:$4 sm:$0xff]  }
 0x121   :  { %v18956_v19 = vld [vmem:[%s27950_s1 + $0x1d3c] ss:$44 sps:$4 sm:$0xff]  }
 0x123   :  { %9090 = vmatpush1.bf16.msra.mxu0 %v18876_v20  ;;  %9418 = vmatpush1.bf16.msra.mxu1 %v18879_v21  ;;  %v18959_v20 = vld [vmem:[%s27950_s1 + $0x1d44] ss:$44 sps:$4 sm:$0xff]  }
 0x124   :  { %9091 = vmatprep.subr.bf16.mxu0 %v18884_v22  ;;  %9419 = vmatprep.subr.bf16.mxu1 %v18887_v24  ;;  %v18954_v21 = vld [vmem:[%s27950_s1 + $0x1d38] ss:$44 sps:$4 sm:$0xff]   ;;  %v18957_v22 = vld [vmem:[%s27950_s1 + $0x1d40] ss:$44 sps:$4 sm:$0xff]  }
 0x125   :  { %v18962_v24 = vld [vmem:[%s27950_s1 + $0x1d94] ss:$44 sps:$4 sm:$0xff]  }
 0x127   :  { %9092 = vmatpush1.bf16.msra.mxu0 %v18882_v25  ;;  %9420 = vmatpush1.bf16.msra.mxu1 %v18885_v26  ;;  %v18965_v25 = vld [vmem:[%s27950_s1 + $0x1d9c] ss:$44 sps:$4 sm:$0xff]  }
 0x128   :  { %9093 = vmatprep.subr.bf16.mxu0 %v18890_v28  ;;  %9421 = vmatprep.subr.bf16.mxu1 %v18893_v29  ;;  %v18960_v26 = vld [vmem:[%s27950_s1 + $0x1d90] ss:$44 sps:$4 sm:$0xff]   ;;  %v18963_v28 = vld [vmem:[%s27950_s1 + $0x1d98] ss:$44 sps:$4 sm:$0xff]  }
 0x129   :  { %v18968_v29 = vld [vmem:[%s27950_s1 + $0x1dec] ss:$44 sps:$4 sm:$0xff]  }
 0x12b   :  { %9094 = vmatpush1.bf16.msra.mxu0 %v18888_v30  ;;  %9422 = vmatpush1.bf16.msra.mxu1 %v18891_v31  ;;  %v18971_v30 = vld [vmem:[%s27950_s1 + $0x1df4] ss:$44 sps:$4 sm:$0xff]  }
 0x12c   :  { %9095 = vmatprep.subr.bf16.mxu0 %v18896_v32  ;;  %9423 = vmatprep.subr.bf16.mxu1 %v18899_v35  ;;  %v18966_v31 = vld [vmem:[%s27950_s1 + $0x1de8] ss:$44 sps:$4 sm:$0xff]   ;;  %v18969_v32 = vld [vmem:[%s27950_s1 + $0x1df0] ss:$44 sps:$4 sm:$0xff]  }
 0x12d   :  { %v18974_v35 = vld [vmem:[%s27950_s1 + $0x1e44] ss:$44 sps:$4 sm:$0xff]  }
 0x12f   :  { %9096 = vmatpush1.bf16.msra.mxu0 %v18894_v36  ;;  %9424 = vmatpush1.bf16.msra.mxu1 %v18897_v37  ;;  %v18977_v36 = vld [vmem:[%s27950_s1 + $0x1e4c] ss:$44 sps:$4 sm:$0xff]  }
 0x130   :  { %9097 = vmatprep.subr.bf16.mxu0 %v18902_v38  ;;  %9425 = vmatprep.subr.bf16.mxu1 %v18905_v39  ;;  %v18972_v37 = vld [vmem:[%s27950_s1 + $0x1e40] ss:$44 sps:$4 sm:$0xff]   ;;  %v18975_v38 = vld [vmem:[%s27950_s1 + $0x1e48] ss:$44 sps:$4 sm:$0xff]  }
 0x131   :  { %v18980_v39 = vld [vmem:[%s27950_s1 + $0x1e9c] ss:$44 sps:$4 sm:$0xff]  }
 0x133   :  { %9098 = vmatpush1.bf16.msra.mxu0 %v18900_v40  ;;  %9426 = vmatpush1.bf16.msra.mxu1 %v18903_v41  ;;  %v18983_v40 = vld [vmem:[%s27950_s1 + $0x1ea4] ss:$44 sps:$4 sm:$0xff]  }
 0x134   :  { %9099 = vmatprep.subr.bf16.mxu0 %v18908_v43  ;;  %9427 = vmatprep.subr.bf16.mxu1 %v18911_v44  ;;  %v18978_v41 = vld [vmem:[%s27950_s1 + $0x1e98] ss:$44 sps:$4 sm:$0xff]   ;;  %v18981_v43 = vld [vmem:[%s27950_s1 + $0x1ea0] ss:$44 sps:$4 sm:$0xff]  }
 0x135   :  { %v18986_v44 = vld [vmem:[%s27950_s1 + $0x1ef4] ss:$44 sps:$4 sm:$0xff]  }
 0x137   :  { %9100 = vmatpush1.bf16.msra.mxu0 %v18906_v46  ;;  %9428 = vmatpush1.bf16.msra.mxu1 %v18909_v47  ;;  %v18989_v46 = vld [vmem:[%s27950_s1 + $0x1efc] ss:$44 sps:$4 sm:$0xff]  }
 0x138   :  { %9101 = vmatprep.subr.bf16.mxu0 %v18914_v48  ;;  %9429 = vmatprep.subr.bf16.mxu1 %v18917_v50  ;;  %v18984_v47 = vld [vmem:[%s27950_s1 + $0x1ef0] ss:$44 sps:$4 sm:$0xff]   ;;  %v18987_v48 = vld [vmem:[%s27950_s1 + $0x1ef8] ss:$44 sps:$4 sm:$0xff]  }
 0x139   :  { %v18992_v50 = vld [vmem:[%s27950_s1 + $0x1f4c] ss:$44 sps:$4 sm:$0xff]  }
 0x13b   :  { %9102 = vmatpush1.bf16.msra.mxu0 %v18912_v53  ;;  %9430 = vmatpush1.bf16.msra.mxu1 %v18915_v54  ;;  %v18995_v53 = vld [vmem:[%s27950_s1 + $0x1f54] ss:$44 sps:$4 sm:$0xff]  }
 0x13c   :  { %9103 = vmatprep.subr.bf16.mxu0 %v18920_v55  ;;  %9431 = vmatprep.subr.bf16.mxu1 %v18923_v56  ;;  %v18990_v54 = vld [vmem:[%s27950_s1 + $0x1f48] ss:$44 sps:$4 sm:$0xff]   ;;  %v18993_v55 = vld [vmem:[%s27950_s1 + $0x1f50] ss:$44 sps:$4 sm:$0xff]  }
 0x13d   :  { %v18998_v56 = vld [vmem:[%s27950_s1 + $0x1fa4] ss:$44 sps:$4 sm:$0xff]  }
 0x13f   :  { %9104 = vmatpush1.bf16.msra.mxu0 %v18918_v57  ;;  %9432 = vmatpush1.bf16.msra.mxu1 %v18921_v58  ;;  %v19001_v57 = vld [vmem:[%s27950_s1 + $0x1fac] ss:$44 sps:$4 sm:$0xff]  }
 0x140   :  { %9114 = vmatprep.subr.bf16.mxu0 %v18926_v59  ;;  %9442 = vmatprep.subr.bf16.mxu1 %v18929_v61  ;;  %v18996_v58 = vld [vmem:[%s27950_s1 + $0x1fa0] ss:$44 sps:$4 sm:$0xff]   ;;  %v18999_v59 = vld [vmem:[%s27950_s1 + $0x1fa8] ss:$44 sps:$4 sm:$0xff]  }
 0x141   :  { %v19004_v61 = vld [vmem:[%s27950_s1 + $0x1ffc] ss:$44 sps:$4 sm:$0xff]  }
 0x142   :  { %9106 = vmatmul.mubr.bf16.vlgmr.msra.gmra.mrb[0].mxu0 %v22490_v62  ;;  %9434 = vmatmul.mubr.bf16.vlgmr.msra.gmra.mrb[0].mxu1 %v22490_v62 }
 0x143   :  { %9115 = vmatpush1.bf16.msra.mxu0 %v18924_v63  ;;  %9443 = vmatpush1.bf16.msra.mxu1 %v18927_v0  ;;  %v19007_v63 = vld [vmem:[%s27950_s1 + $0x2004] ss:$44 sps:$4 sm:$0xff]  }
 0x144   :  { %9116 = vmatprep.subr.bf16.mxu0 %v18932_v1  ;;  %9444 = vmatprep.subr.bf16.mxu1 %v18935_v34  ;;  %v19002_v0 = vld [vmem:[%s27950_s1 + $0x1ff8] ss:$44 sps:$4 sm:$0xff]   ;;  %v19005_v1 = vld [vmem:[%s27950_s1 + $0x2000] ss:$44 sps:$4 sm:$0xff]  }
 0x145   :  { %9146 = vmatprep.mubr.bf16.mxu0 %v22506_v2  ;;  %9474 = vmatprep.mubr.bf16.mxu1 %v22506_v2  ;;  %v19010_v34 = vld [vmem:[%s27950_s1 + $0x2054] ss:$44 sps:$4 sm:$0xff]  }
 0x147   :  { %9117 = vmatpush1.bf16.msra.mxu0 %v18930_v3  ;;  %9445 = vmatpush1.bf16.msra.mxu1 %v18933_v4  ;;  %v19013_v3 = vld [vmem:[%s27950_s1 + $0x205c] ss:$44 sps:$4 sm:$0xff]  }
 0x148   :  { %9118 = vmatprep.subr.bf16.mxu0 %v18938_v5  ;;  %9446 = vmatprep.subr.bf16.mxu1 %v18941_v6  ;;  %v21373_v4 = vld [vmem:[%s27949_s0 + $0x8] sm:$0xff]  ;;  %v19008_v6 = vld [vmem:[%s27950_s1 + $0x2050] ss:$44 sps:$4 sm:$0xff]  }
 0x149   :  { %v1676_v5 = vcombine.high %v21373_v4, %v21373_v4  ;;  %v19077_v4 = vld [vmem:[%s27950_s1 + $0x2420] ss:$44 sps:$4 sm:$0xff]  }
 0x14b   :  { %9119 = vmatpush1.bf16.msra.mxu0 %v18936_v7  ;;  %9447 = vmatpush1.bf16.msra.mxu1 %v18939_v8  ;;  %v19011_v7 = vld [vmem:[%s27950_s1 + $0x2058] ss:$44 sps:$4 sm:$0xff]  }
 0x14c   :  { %9120 = vmatprep.subr.bf16.mxu0 %v18944_v9  ;;  %9448 = vmatprep.subr.bf16.mxu1 %v18947_v10  ;;  %v19016_v8 = vld [vmem:[%s27950_s1 + $0x20ac] ss:$44 sps:$4 sm:$0xff]   ;;  %v19019_v9 = vld [vmem:[%s27950_s1 + $0x20b4] ss:$44 sps:$4 sm:$0xff]   ;;  %v22684_v10 = vrot.slane %v1676_v5, %v21581_v49 }
 0x14d   :  { %v19082_v5 = vld [vmem:[%s27950_s1 + $0x2474] ss:$44 sps:$4 sm:$0xff]  }
 0x14f   :  { %9121 = vmatpush1.bf16.msra.mxu0 %v18942_v11  ;;  %9449 = vmatpush1.bf16.msra.mxu1 %v18945_v12  ;;  %v19014_v11 = vld [vmem:[%s27950_s1 + $0x20a8] ss:$44 sps:$4 sm:$0xff]   ;;  %v19017_v12 = vld [vmem:[%s27950_s1 + $0x20b0] ss:$44 sps:$4 sm:$0xff]  }
 0x150   :  { %9122 = vmatprep.subr.bf16.mxu0 %v18950_v14  ;;  %9450 = vmatprep.subr.bf16.mxu1 %v18953_v52  ;;  %v19022_v14 = vld [vmem:[%s27950_s1 + $0x2104] ss:$44 sps:$4 sm:$0xff]   ;;  %v19025_v52 = vld [vmem:[%s27950_s1 + $0x210c] ss:$44 sps:$4 sm:$0xff]  }
 0x153   :  { %9123 = vmatpush1.bf16.msra.mxu0 %v18948_v16  ;;  %9451 = vmatpush1.bf16.msra.mxu1 %v18951_v18  ;;  %v19020_v16 = vld [vmem:[%s27950_s1 + $0x2100] ss:$44 sps:$4 sm:$0xff]   ;;  %v19023_v18 = vld [vmem:[%s27950_s1 + $0x2108] ss:$44 sps:$4 sm:$0xff]  }
 0x154   :  { %9124 = vmatprep.subr.bf16.mxu0 %v18956_v19  ;;  %9452 = vmatprep.subr.bf16.mxu1 %v18959_v20  ;;  %v1692_v19 = vcombine.high %v22684_v10, %v22684_v10  ;;  %v22708_v20 = vcombine.high %v22490_v62, %v22490_v62 }
 0x157   :  { %9125 = vmatpush1.bf16.msra.mxu0 %v18954_v21  ;;  %9453 = vmatpush1.bf16.msra.mxu1 %v18957_v22  ;;  %v19028_v21 = vld [vmem:[%s27950_s1 + $0x215c] ss:$44 sps:$4 sm:$0xff]   ;;  %v19031_v22 = vld [vmem:[%s27950_s1 + $0x2164] ss:$44 sps:$4 sm:$0xff]  }
 0x158   :  { %9126 = vmatprep.subr.bf16.mxu0 %v18962_v24  ;;  %9454 = vmatprep.subr.bf16.mxu1 %v18965_v25  ;;  %v22717_v24 = vrot.slane %v1692_v19, %v21581_v49  ;;  %v19026_v25 = vld [vmem:[%s27950_s1 + $0x2158] ss:$44 sps:$4 sm:$0xff]   ;;  %v19095_v19 = vld [vmem:[%s27950_s1 + $0x2528] ss:$44 sps:$4 sm:$0xff]  }
 0x15b   :  { %9127 = vmatpush1.bf16.msra.mxu0 %v18960_v26  ;;  %9455 = vmatpush1.bf16.msra.mxu1 %v18963_v28  ;;  %v19029_v26 = vld [vmem:[%s27950_s1 + $0x2160] ss:$44 sps:$4 sm:$0xff]  }
 0x15c   :  { %9128 = vmatprep.subr.bf16.mxu0 %v18968_v29  ;;  %9456 = vmatprep.subr.bf16.mxu1 %v18971_v30  ;;  %v19034_v28 = vld [vmem:[%s27950_s1 + $0x21b4] ss:$44 sps:$4 sm:$0xff]   ;;  %v19037_v29 = vld [vmem:[%s27950_s1 + $0x21bc] ss:$44 sps:$4 sm:$0xff]  }
 0x15d   :  { %v19032_v30 = vld [vmem:[%s27950_s1 + $0x21b0] ss:$44 sps:$4 sm:$0xff]  }
 0x15f   :  { %9129 = vmatpush1.bf16.msra.mxu0 %v18966_v31  ;;  %9457 = vmatpush1.bf16.msra.mxu1 %v18969_v32  ;;  %v19035_v31 = vld [vmem:[%s27950_s1 + $0x21b8] ss:$44 sps:$4 sm:$0xff]  }
 0x160   :  { %9130 = vmatprep.subr.bf16.mxu0 %v18974_v35  ;;  %9458 = vmatprep.subr.bf16.mxu1 %v18977_v36  ;;  %v19040_v32 = vld [vmem:[%s27950_s1 + $0x220c] ss:$44 sps:$4 sm:$0xff]   ;;  %v19043_v35 = vld [vmem:[%s27950_s1 + $0x2214] ss:$44 sps:$4 sm:$0xff]  }
 0x161   :  { %v19038_v36 = vld [vmem:[%s27950_s1 + $0x2208] ss:$44 sps:$4 sm:$0xff]  }
 0x163   :  { %9131 = vmatpush1.bf16.msra.mxu0 %v18972_v37  ;;  %9459 = vmatpush1.bf16.msra.mxu1 %v18975_v38  ;;  %v19041_v37 = vld [vmem:[%s27950_s1 + $0x2210] ss:$44 sps:$4 sm:$0xff]  }
 0x164   :  { %9132 = vmatprep.subr.bf16.mxu0 %v18980_v39  ;;  %9460 = vmatprep.subr.bf16.mxu1 %v18983_v40  ;;  %v19046_v38 = vld [vmem:[%s27950_s1 + $0x2264] ss:$44 sps:$4 sm:$0xff]   ;;  %v19049_v39 = vld [vmem:[%s27950_s1 + $0x226c] ss:$44 sps:$4 sm:$0xff]  }
 0x165   :  { %v19044_v40 = vld [vmem:[%s27950_s1 + $0x2260] ss:$44 sps:$4 sm:$0xff]  }
 0x167   :  { %9133 = vmatpush1.bf16.msra.mxu0 %v18978_v41  ;;  %9461 = vmatpush1.bf16.msra.mxu1 %v18981_v43  ;;  %v19047_v41 = vld [vmem:[%s27950_s1 + $0x2268] ss:$44 sps:$4 sm:$0xff]  }
 0x168   :  { %9134 = vmatprep.subr.bf16.mxu0 %v18986_v44  ;;  %9462 = vmatprep.subr.bf16.mxu1 %v18989_v46  ;;  %v19052_v43 = vld [vmem:[%s27950_s1 + $0x22bc] ss:$44 sps:$4 sm:$0xff]   ;;  %v19055_v44 = vld [vmem:[%s27950_s1 + $0x22c4] ss:$44 sps:$4 sm:$0xff]  }
 0x169   :  { %v19050_v46 = vld [vmem:[%s27950_s1 + $0x22b8] ss:$44 sps:$4 sm:$0xff]  }
 0x16b   :  { %9135 = vmatpush1.bf16.msra.mxu0 %v18984_v47  ;;  %9463 = vmatpush1.bf16.msra.mxu1 %v18987_v48  ;;  %v19053_v47 = vld [vmem:[%s27950_s1 + $0x22c0] ss:$44 sps:$4 sm:$0xff]  }
 0x16c   :  { %9136 = vmatprep.subr.bf16.mxu0 %v18992_v50  ;;  %9464 = vmatprep.subr.bf16.mxu1 %v18995_v53  ;;  %v19058_v48 = vld [vmem:[%s27950_s1 + $0x2314] ss:$44 sps:$4 sm:$0xff]   ;;  %v19061_v50 = vld [vmem:[%s27950_s1 + $0x231c] ss:$44 sps:$4 sm:$0xff]  }
 0x16d   :  { %v19056_v53 = vld [vmem:[%s27950_s1 + $0x2310] ss:$44 sps:$4 sm:$0xff]  }
 0x16f   :  { %9137 = vmatpush1.bf16.msra.mxu0 %v18990_v54  ;;  %9465 = vmatpush1.bf16.msra.mxu1 %v18993_v55  ;;  %v19059_v54 = vld [vmem:[%s27950_s1 + $0x2318] ss:$44 sps:$4 sm:$0xff]  }
 0x170   :  { %9138 = vmatprep.subr.bf16.mxu0 %v18998_v56  ;;  %9466 = vmatprep.subr.bf16.mxu1 %v19001_v57  ;;  %v19064_v55 = vld [vmem:[%s27950_s1 + $0x236c] ss:$44 sps:$4 sm:$0xff]   ;;  %v19067_v56 = vld [vmem:[%s27950_s1 + $0x2374] ss:$44 sps:$4 sm:$0xff]  }
 0x171   :  { %v19062_v57 = vld [vmem:[%s27950_s1 + $0x2368] ss:$44 sps:$4 sm:$0xff]  }
 0x173   :  { %9139 = vmatpush1.bf16.msra.mxu0 %v18996_v58  ;;  %9467 = vmatpush1.bf16.msra.mxu1 %v18999_v59  ;;  %v19065_v58 = vld [vmem:[%s27950_s1 + $0x2370] ss:$44 sps:$4 sm:$0xff]  }
 0x174   :  { %9140 = vmatprep.subr.bf16.mxu0 %v19004_v61  ;;  %9468 = vmatprep.subr.bf16.mxu1 %v19007_v63  ;;  %v19070_v59 = vld [vmem:[%s27950_s1 + $0x23c4] ss:$44 sps:$4 sm:$0xff]   ;;  %v19073_v61 = vld [vmem:[%s27950_s1 + $0x23cc] ss:$44 sps:$4 sm:$0xff]  }
 0x175   :  { %v19068_v63 = vld [vmem:[%s27950_s1 + $0x23c0] ss:$44 sps:$4 sm:$0xff]  }
 0x177   :  { %9141 = vmatpush1.bf16.msra.mxu0 %v19002_v0  ;;  %9469 = vmatpush1.bf16.msra.mxu1 %v19005_v1  ;;  %v19071_v0 = vld [vmem:[%s27950_s1 + $0x23c8] ss:$44 sps:$4 sm:$0xff]  }
 0x178   :  { %9142 = vmatprep.subr.bf16.mxu0 %v19010_v34  ;;  %9470 = vmatprep.subr.bf16.mxu1 %v19013_v3  ;;  %v19076_v1 = vld [vmem:[%s27950_s1 + $0x241c] ss:$44 sps:$4 sm:$0xff]   ;;  %v19079_v34 = vld [vmem:[%s27950_s1 + $0x2424] ss:$44 sps:$4 sm:$0xff]  }
 0x179   :  { %v19074_v3 = vld [vmem:[%s27950_s1 + $0x2418] ss:$44 sps:$4 sm:$0xff]  }
 0x17b   :  { %9143 = vmatpush1.bf16.msra.mxu0 %v19008_v6  ;;  %9471 = vmatpush1.bf16.msra.mxu1 %v19011_v7  ;;  %v19085_v6 = vld [vmem:[%s27950_s1 + $0x247c] ss:$44 sps:$4 sm:$0xff]  }
 0x17c   :  { %9144 = vmatprep.subr.bf16.mxu0 %v19016_v8  ;;  %9472 = vmatprep.subr.bf16.mxu1 %v19019_v9  ;;  %v19080_v7 = vld [vmem:[%s27950_s1 + $0x2470] ss:$44 sps:$4 sm:$0xff]   ;;  %v19083_v8 = vld [vmem:[%s27950_s1 + $0x2478] ss:$44 sps:$4 sm:$0xff]  }
 0x17d   :  { %v19088_v9 = vld [vmem:[%s27950_s1 + $0x24cc] ss:$44 sps:$4 sm:$0xff]  }
 0x17f   :  { %9145 = vmatpush1.bf16.msra.mxu0 %v19014_v11  ;;  %9473 = vmatpush1.bf16.msra.mxu1 %v19017_v12  ;;  %v19091_v11 = vld [vmem:[%s27950_s1 + $0x24d4] ss:$44 sps:$4 sm:$0xff]  }
 0x180   :  { %9155 = vmatprep.subr.bf16.mxu0 %v19022_v14  ;;  %9483 = vmatprep.subr.bf16.mxu1 %v19025_v52  ;;  %v19086_v12 = vld [vmem:[%s27950_s1 + $0x24c8] ss:$44 sps:$4 sm:$0xff]   ;;  %v19089_v14 = vld [vmem:[%s27950_s1 + $0x24d0] ss:$44 sps:$4 sm:$0xff]  }
 0x181   :  { %v19094_v52 = vld [vmem:[%s27950_s1 + $0x2524] ss:$44 sps:$4 sm:$0xff]  }
 0x182   :  { %9147 = vmatmul.mubr.bf16.vlgmr.msra.gmra.mrb[0].mxu0 %v22708_v20  ;;  %9475 = vmatmul.mubr.bf16.vlgmr.msra.gmra.mrb[0].mxu1 %v22708_v20 }
 0x183   :  { %9156 = vmatpush1.bf16.msra.mxu0 %v19020_v16  ;;  %9484 = vmatpush1.bf16.msra.mxu1 %v19023_v18  ;;  %v19097_v16 = vld [vmem:[%s27950_s1 + $0x252c] ss:$44 sps:$4 sm:$0xff]  }
 0x184   :  { %9157 = vmatprep.subr.bf16.mxu0 %v19028_v21  ;;  %9485 = vmatprep.subr.bf16.mxu1 %v19031_v22  ;;  %v19092_v18 = vld [vmem:[%s27950_s1 + $0x2520] ss:$44 sps:$4 sm:$0xff]   ;;  %v19100_v21 = vld [vmem:[%s27950_s1 + $0x257c] ss:$44 sps:$4 sm:$0xff]   ;;  %v19103_v22 = vld [vmem:[%s27950_s1 + $0x2584] ss:$44 sps:$4 sm:$0xff]  }
 0x185   :  { %9187 = vmatprep.mubr.bf16.mxu0 %v22717_v24  ;;  %9515 = vmatprep.mubr.bf16.mxu1 %v22717_v24 }
 0x187   :  { %9158 = vmatpush1.bf16.msra.mxu0 %v19026_v25  ;;  %9486 = vmatpush1.bf16.msra.mxu1 %v19029_v26  ;;  %v19098_v25 = vld [vmem:[%s27950_s1 + $0x2578] ss:$44 sps:$4 sm:$0xff]   ;;  %v19101_v26 = vld [vmem:[%s27950_s1 + $0x2580] ss:$44 sps:$4 sm:$0xff]  }
 0x188   :  { %9159 = vmatprep.subr.bf16.mxu0 %v19034_v28  ;;  %9487 = vmatprep.subr.bf16.mxu1 %v19037_v29  ;;  %v19106_v28 = vld [vmem:[%s27950_s1 + $0x25d4] ss:$44 sps:$4 sm:$0xff]   ;;  %v19109_v29 = vld [vmem:[%s27950_s1 + $0x25dc] ss:$44 sps:$4 sm:$0xff]  }
 0x18b   :  { %9160 = vmatpush1.bf16.msra.mxu0 %v19032_v30  ;;  %9488 = vmatpush1.bf16.msra.mxu1 %v19035_v31  ;;  %v19104_v30 = vld [vmem:[%s27950_s1 + $0x25d0] ss:$44 sps:$4 sm:$0xff]   ;;  %v19107_v31 = vld [vmem:[%s27950_s1 + $0x25d8] ss:$44 sps:$4 sm:$0xff]  }
 0x18c   :  { %9161 = vmatprep.subr.bf16.mxu0 %v19040_v32  ;;  %9489 = vmatprep.subr.bf16.mxu1 %v19043_v35  ;;  %v19112_v32 = vld [vmem:[%s27950_s1 + $0x262c] ss:$44 sps:$4 sm:$0xff]   ;;  %v19115_v35 = vld [vmem:[%s27950_s1 + $0x2634] ss:$44 sps:$4 sm:$0xff]  }
 0x18f   :  { %9162 = vmatpush1.bf16.msra.mxu0 %v19038_v36  ;;  %9490 = vmatpush1.bf16.msra.mxu1 %v19041_v37  ;;  %v19110_v36 = vld [vmem:[%s27950_s1 + $0x2628] ss:$44 sps:$4 sm:$0xff]   ;;  %v19113_v37 = vld [vmem:[%s27950_s1 + $0x2630] ss:$44 sps:$4 sm:$0xff]  }
 0x190   :  { %9163 = vmatprep.subr.bf16.mxu0 %v19046_v38  ;;  %9491 = vmatprep.subr.bf16.mxu1 %v19049_v39  ;;  %v19119_v38 = vld [vmem:[%s27950_s1 + $0x2684] ss:$44 sps:$4 sm:$0xff]   ;;  %v19122_v39 = vld [vmem:[%s27950_s1 + $0x268c] ss:$44 sps:$4 sm:$0xff]  }
 0x193   :  { %9164 = vmatpush1.bf16.msra.mxu0 %v19044_v40  ;;  %9492 = vmatpush1.bf16.msra.mxu1 %v19047_v41  ;;  %v22905_v40 = vrot.slane %v22684_v10, %v21581_v49  ;;  %v19117_v41 = vld [vmem:[%s27950_s1 + $0x2680] ss:$44 sps:$4 sm:$0xff]   ;;  %v19128_v49 = vld [vmem:[%s27950_s1 + $0x26e4] ss:$44 sps:$4 sm:$0xff]   ;;  %v22921_v10 = vcombine.high %v22717_v24, %v22717_v24 }
 0x194   :  { %9165 = vmatprep.subr.bf16.mxu0 %v19052_v43  ;;  %9493 = vmatprep.subr.bf16.mxu1 %v19055_v44  ;;  %v19120_v43 = vld [vmem:[%s27950_s1 + $0x2688] ss:$44 sps:$4 sm:$0xff]  }
 0x195   :  { %v19125_v44 = vld [vmem:[%s27950_s1 + $0x26dc] ss:$44 sps:$4 sm:$0xff]  }
 0x197   :  { %9166 = vmatpush1.bf16.msra.mxu0 %v19050_v46  ;;  %9494 = vmatpush1.bf16.msra.mxu1 %v19053_v47  ;;  %v19123_v46 = vld [vmem:[%s27950_s1 + $0x26d8] ss:$44 sps:$4 sm:$0xff]   ;;  %v19126_v47 = vld [vmem:[%s27950_s1 + $0x26e0] ss:$44 sps:$4 sm:$0xff]  }
 0x198   :  { %9167 = vmatprep.subr.bf16.mxu0 %v19058_v48  ;;  %9495 = vmatprep.subr.bf16.mxu1 %v19061_v50  ;;  %v19131_v48 = vld [vmem:[%s27950_s1 + $0x2734] ss:$44 sps:$4 sm:$0xff]   ;;  %v19134_v50 = vld [vmem:[%s27950_s1 + $0x273c] ss:$44 sps:$4 sm:$0xff]  }
 0x19b   :  { %9168 = vmatpush1.bf16.msra.mxu0 %v19056_v53  ;;  %9496 = vmatpush1.bf16.msra.mxu1 %v19059_v54  ;;  %v19129_v53 = vld [vmem:[%s27950_s1 + $0x2730] ss:$44 sps:$4 sm:$0xff]   ;;  %v19132_v54 = vld [vmem:[%s27950_s1 + $0x2738] ss:$44 sps:$4 sm:$0xff]  }
 0x19c   :  { %9169 = vmatprep.subr.bf16.mxu0 %v19064_v55  ;;  %9497 = vmatprep.subr.bf16.mxu1 %v19067_v56  ;;  %v19137_v55 = vld [vmem:[%s27950_s1 + $0x278c] ss:$44 sps:$4 sm:$0xff]   ;;  %v19140_v56 = vld [vmem:[%s27950_s1 + $0x2794] ss:$44 sps:$4 sm:$0xff]  }
 0x19f   :  { %9170 = vmatpush1.bf16.msra.mxu0 %v19062_v57  ;;  %9498 = vmatpush1.bf16.msra.mxu1 %v19065_v58  ;;  %v19135_v57 = vld [vmem:[%s27950_s1 + $0x2788] ss:$44 sps:$4 sm:$0xff]   ;;  %v19138_v58 = vld [vmem:[%s27950_s1 + $0x2790] ss:$44 sps:$4 sm:$0xff]  }
 0x1a0   :  { %9171 = vmatprep.subr.bf16.mxu0 %v19070_v59  ;;  %9499 = vmatprep.subr.bf16.mxu1 %v19073_v61  ;;  %v19143_v59 = vld [vmem:[%s27950_s1 + $0x27e4] ss:$44 sps:$4 sm:$0xff]   ;;  %v19146_v61 = vld [vmem:[%s27950_s1 + $0x27ec] ss:$44 sps:$4 sm:$0xff]  }
 0x1a3   :  { %9172 = vmatpush1.bf16.msra.mxu0 %v19068_v63  ;;  %9500 = vmatpush1.bf16.msra.mxu1 %v19071_v0  ;;  %v19141_v63 = vld [vmem:[%s27950_s1 + $0x27e0] ss:$44 sps:$4 sm:$0xff]   ;;  %v19144_v0 = vld [vmem:[%s27950_s1 + $0x27e8] ss:$44 sps:$4 sm:$0xff]  }
 0x1a4   :  { %9173 = vmatprep.subr.bf16.mxu0 %v19076_v1  ;;  %9501 = vmatprep.subr.bf16.mxu1 %v19079_v34  ;;  %v19149_v1 = vld [vmem:[%s27950_s1 + $0x283c] ss:$44 sps:$4 sm:$0xff]   ;;  %v19152_v34 = vld [vmem:[%s27950_s1 + $0x2844] ss:$44 sps:$4 sm:$0xff]  }
 0x1a7   :  { %9174 = vmatpush1.bf16.msra.mxu0 %v19074_v3  ;;  %9502 = vmatpush1.bf16.msra.mxu1 %v19077_v4  ;;  %v19147_v3 = vld [vmem:[%s27950_s1 + $0x2838] ss:$44 sps:$4 sm:$0xff]   ;;  %v19150_v4 = vld [vmem:[%s27950_s1 + $0x2840] ss:$44 sps:$4 sm:$0xff]  }
 0x1a8   :  { %9175 = vmatprep.subr.bf16.mxu0 %v19082_v5  ;;  %9503 = vmatprep.subr.bf16.mxu1 %v19085_v6  ;;  %v19155_v5 = vld [vmem:[%s27950_s1 + $0x2894] ss:$44 sps:$4 sm:$0xff]   ;;  %v19158_v6 = vld [vmem:[%s27950_s1 + $0x289c] ss:$44 sps:$4 sm:$0xff]  }
 0x1ab   :  { %9176 = vmatpush1.bf16.msra.mxu0 %v19080_v7  ;;  %9504 = vmatpush1.bf16.msra.mxu1 %v19083_v8  ;;  %v19153_v7 = vld [vmem:[%s27950_s1 + $0x2890] ss:$44 sps:$4 sm:$0xff]   ;;  %v19156_v8 = vld [vmem:[%s27950_s1 + $0x2898] ss:$44 sps:$4 sm:$0xff]  }
 0x1ac   :  { %9177 = vmatprep.subr.bf16.mxu0 %v19088_v9  ;;  %9505 = vmatprep.subr.bf16.mxu1 %v19091_v11  ;;  %v19161_v9 = vld [vmem:[%s27950_s1 + $0x28ec] ss:$44 sps:$4 sm:$0xff]   ;;  %v19164_v11 = vld [vmem:[%s27950_s1 + $0x28f4] ss:$44 sps:$4 sm:$0xff]  }
 0x1af   :  { %9178 = vmatpush1.bf16.msra.mxu0 %v19086_v12  ;;  %9506 = vmatpush1.bf16.msra.mxu1 %v19089_v14  ;;  %v19159_v12 = vld [vmem:[%s27950_s1 + $0x28e8] ss:$44 sps:$4 sm:$0xff]   ;;  %v19162_v14 = vld [vmem:[%s27950_s1 + $0x28f0] ss:$44 sps:$4 sm:$0xff]  }
 0x1b0   :  { %9179 = vmatprep.subr.bf16.mxu0 %v19094_v52  ;;  %9507 = vmatprep.subr.bf16.mxu1 %v19097_v16  ;;  %v19167_v52 = vld [vmem:[%s27950_s1 + $0x2944] ss:$44 sps:$4 sm:$0xff]   ;;  %v19170_v16 = vld [vmem:[%s27950_s1 + $0x294c] ss:$44 sps:$4 sm:$0xff]  }
 0x1b3   :  { %9180 = vmatpush1.bf16.msra.mxu0 %v19092_v18  ;;  %9508 = vmatpush1.bf16.msra.mxu1 %v19095_v19  ;;  %v19165_v18 = vld [vmem:[%s27950_s1 + $0x2940] ss:$44 sps:$4 sm:$0xff]   ;;  %v19168_v19 = vld [vmem:[%s27950_s1 + $0x2948] ss:$44 sps:$4 sm:$0xff]  }
 0x1b4   :  { %9181 = vmatprep.subr.bf16.mxu0 %v19100_v21  ;;  %9509 = vmatprep.subr.bf16.mxu1 %v19103_v22  ;;  %v19173_v21 = vld [vmem:[%s27950_s1 + $0x299c] ss:$44 sps:$4 sm:$0xff]   ;;  %v19176_v22 = vld [vmem:[%s27950_s1 + $0x29a4] ss:$44 sps:$4 sm:$0xff]  }
 0x1b7   :  { %9182 = vmatpush1.bf16.msra.mxu0 %v19098_v25  ;;  %9510 = vmatpush1.bf16.msra.mxu1 %v19101_v26  ;;  %v19171_v25 = vld [vmem:[%s27950_s1 + $0x2998] ss:$44 sps:$4 sm:$0xff]   ;;  %v19174_v26 = vld [vmem:[%s27950_s1 + $0x29a0] ss:$44 sps:$4 sm:$0xff]  }
 0x1b8   :  { %9183 = vmatprep.subr.bf16.mxu0 %v19106_v28  ;;  %9511 = vmatprep.subr.bf16.mxu1 %v19109_v29  ;;  %v19179_v28 = vld [vmem:[%s27950_s1 + $0x29f4] ss:$44 sps:$4 sm:$0xff]   ;;  %v19182_v29 = vld [vmem:[%s27950_s1 + $0x29fc] ss:$44 sps:$4 sm:$0xff]  }
 0x1bb   :  { %9184 = vmatpush1.bf16.msra.mxu0 %v19104_v30  ;;  %9512 = vmatpush1.bf16.msra.mxu1 %v19107_v31  ;;  %v19177_v30 = vld [vmem:[%s27950_s1 + $0x29f0] ss:$44 sps:$4 sm:$0xff]   ;;  %v19180_v31 = vld [vmem:[%s27950_s1 + $0x29f8] ss:$44 sps:$4 sm:$0xff]  }
 0x1bc   :  { %9185 = vmatprep.subr.bf16.mxu0 %v19112_v32  ;;  %9513 = vmatprep.subr.bf16.mxu1 %v19115_v35  ;;  %v19185_v32 = vld [vmem:[%s27950_s1 + $0x2a4c] ss:$44 sps:$4 sm:$0xff]   ;;  %v19188_v35 = vld [vmem:[%s27950_s1 + $0x2a54] ss:$44 sps:$4 sm:$0xff]  }
 0x1bf   :  { %9186 = vmatpush1.bf16.msra.mxu0 %v19110_v36  ;;  %9514 = vmatpush1.bf16.msra.mxu1 %v19113_v37  ;;  %v19183_v36 = vld [vmem:[%s27950_s1 + $0x2a48] ss:$44 sps:$4 sm:$0xff]   ;;  %v19186_v37 = vld [vmem:[%s27950_s1 + $0x2a50] ss:$44 sps:$4 sm:$0xff]  }
 0x1c0   :  { %9196 = vmatprep.subr.bf16.mxu0 %v19119_v38  ;;  %9524 = vmatprep.subr.bf16.mxu1 %v19122_v39  ;;  %v19191_v38 = vld [vmem:[%s27950_s1 + $0x2aa4] ss:$44 sps:$4 sm:$0xff]   ;;  %v19194_v39 = vld [vmem:[%s27950_s1 + $0x2aac] ss:$44 sps:$4 sm:$0xff]  }
 0x1c2   :  { %9188 = vmatmul.mubr.bf16.vlgmr.msra.gmra.mrb[0].mxu0 %v22905_v40  ;;  %9516 = vmatmul.mubr.bf16.vlgmr.msra.gmra.mrb[0].mxu1 %v22905_v40 }
 0x1c3   :  { %9197 = vmatpush1.bf16.msra.mxu0 %v19117_v41  ;;  %9525 = vmatpush1.bf16.msra.mxu1 %v19120_v43  ;;  %v19189_v41 = vld [vmem:[%s27950_s1 + $0x2aa0] ss:$44 sps:$4 sm:$0xff]   ;;  %v19192_v43 = vld [vmem:[%s27950_s1 + $0x2aa8] ss:$44 sps:$4 sm:$0xff]  }
 0x1c4   :  { %9198 = vmatprep.subr.bf16.mxu0 %v19125_v44  ;;  %9526 = vmatprep.subr.bf16.mxu1 %v19128_v49  ;;  %v19197_v44 = vld [vmem:[%s27950_s1 + $0x2afc] ss:$44 sps:$4 sm:$0xff]   ;;  %v19200_v49 = vld [vmem:[%s27950_s1 + $0x2b04] ss:$44 sps:$4 sm:$0xff]  }
 0x1c5   :  { %9228 = vmatprep.mubr.bf16.mxu0 %v22921_v10  ;;  %9556 = vmatprep.mubr.bf16.mxu1 %v22921_v10 }
 0x1c7   :  { %9199 = vmatpush1.bf16.msra.mxu0 %v19123_v46  ;;  %9527 = vmatpush1.bf16.msra.mxu1 %v19126_v47  ;;  %v19195_v46 = vld [vmem:[%s27950_s1 + $0x2af8] ss:$44 sps:$4 sm:$0xff]   ;;  %v19198_v47 = vld [vmem:[%s27950_s1 + $0x2b00] ss:$44 sps:$4 sm:$0xff]  }
 0x1c8   :  { %9200 = vmatprep.subr.bf16.mxu0 %v19131_v48  ;;  %9528 = vmatprep.subr.bf16.mxu1 %v19134_v50  ;;  %v19203_v48 = vld [vmem:[%s27950_s1 + $0x2b54] ss:$44 sps:$4 sm:$0xff]   ;;  %v19206_v50 = vld [vmem:[%s27950_s1 + $0x2b5c] ss:$44 sps:$4 sm:$0xff]  }
 0x1cb   :  { %9201 = vmatpush1.bf16.msra.mxu0 %v19129_v53  ;;  %9529 = vmatpush1.bf16.msra.mxu1 %v19132_v54  ;;  %v19201_v53 = vld [vmem:[%s27950_s1 + $0x2b50] ss:$44 sps:$4 sm:$0xff]   ;;  %v19204_v54 = vld [vmem:[%s27950_s1 + $0x2b58] ss:$44 sps:$4 sm:$0xff]  }
 0x1cc   :  { %9202 = vmatprep.subr.bf16.mxu0 %v19137_v55  ;;  %9530 = vmatprep.subr.bf16.mxu1 %v19140_v56  ;;  %v19209_v55 = vld [vmem:[%s27950_s1 + $0x2bac] ss:$44 sps:$4 sm:$0xff]   ;;  %v19212_v56 = vld [vmem:[%s27950_s1 + $0x2bb4] ss:$44 sps:$4 sm:$0xff]  }
 0x1cf   :  { %9203 = vmatpush1.bf16.msra.mxu0 %v19135_v57  ;;  %9531 = vmatpush1.bf16.msra.mxu1 %v19138_v58  ;;  %v19207_v57 = vld [vmem:[%s27950_s1 + $0x2ba8] ss:$44 sps:$4 sm:$0xff]   ;;  %v19210_v58 = vld [vmem:[%s27950_s1 + $0x2bb0] ss:$44 sps:$4 sm:$0xff]  }
 0x1d0   :  { %9204 = vmatprep.subr.bf16.mxu0 %v19143_v59  ;;  %9532 = vmatprep.subr.bf16.mxu1 %v19146_v61  ;;  %v19215_v59 = vld [vmem:[%s27950_s1 + $0x14] ss:$44 sps:$4 sm:$0xff]   ;;  %v19218_v61 = vld [vmem:[%s27950_s1 + $0x1c] ss:$44 sps:$4 sm:$0xff]  }
 0x1d3   :  { %9205 = vmatpush1.bf16.msra.mxu0 %v19141_v63  ;;  %9533 = vmatpush1.bf16.msra.mxu1 %v19144_v0  ;;  %v23109_v63 = vcombine.high %v22905_v40, %v22905_v40  ;;  %v19213_v0 = vld [vmem:[%s27950_s1 + $0x10] ss:$44 sps:$4 sm:$0xff]  }
 0x1d4   :  { %9206 = vmatprep.subr.bf16.mxu0 %v19149_v1  ;;  %9534 = vmatprep.subr.bf16.mxu1 %v19152_v34  ;;  %v19216_v1 = vld [vmem:[%s27950_s1 + $0x18] ss:$44 sps:$4 sm:$0xff]  }
 0x1d5   :  { %v19221_v34 = vld [vmem:[%s27950_s1 + $0x6c] ss:$44 sps:$4 sm:$0xff]  }
 0x1d7   :  { %9207 = vmatpush1.bf16.msra.mxu0 %v19147_v3  ;;  %9535 = vmatpush1.bf16.msra.mxu1 %v19150_v4  ;;  %v19224_v3 = vld [vmem:[%s27950_s1 + $0x74] ss:$44 sps:$4 sm:$0xff]  }
 0x1d8   :  { %9208 = vmatprep.subr.bf16.mxu0 %v19155_v5  ;;  %9536 = vmatprep.subr.bf16.mxu1 %v19158_v6  ;;  %v19219_v4 = vld [vmem:[%s27950_s1 + $0x68] ss:$44 sps:$4 sm:$0xff]   ;;  %v19222_v5 = vld [vmem:[%s27950_s1 + $0x70] ss:$44 sps:$4 sm:$0xff]  }
 0x1d9   :  { %v19227_v6 = vld [vmem:[%s27950_s1 + $0xc4] ss:$44 sps:$4 sm:$0xff]  }
 0x1db   :  { %9209 = vmatpush1.bf16.msra.mxu0 %v19153_v7  ;;  %9537 = vmatpush1.bf16.msra.mxu1 %v19156_v8  ;;  %v19230_v7 = vld [vmem:[%s27950_s1 + $0xcc] ss:$44 sps:$4 sm:$0xff]  }
 0x1dc   :  { %9210 = vmatprep.subr.bf16.mxu0 %v19161_v9  ;;  %9538 = vmatprep.subr.bf16.mxu1 %v19164_v11  ;;  %v19225_v8 = vld [vmem:[%s27950_s1 + $0xc0] ss:$44 sps:$4 sm:$0xff]   ;;  %v19228_v9 = vld [vmem:[%s27950_s1 + $0xc8] ss:$44 sps:$4 sm:$0xff]  }
 0x1dd   :  { %v19233_v11 = vld [vmem:[%s27950_s1 + $0x11c] ss:$44 sps:$4 sm:$0xff]  }
 0x1df   :  { %9211 = vmatpush1.bf16.msra.mxu0 %v19159_v12  ;;  %9539 = vmatpush1.bf16.msra.mxu1 %v19162_v14  ;;  %v19236_v12 = vld [vmem:[%s27950_s1 + $0x124] ss:$44 sps:$4 sm:$0xff]  }
 0x1e0   :  { %9212 = vmatprep.subr.bf16.mxu0 %v19167_v52  ;;  %9540 = vmatprep.subr.bf16.mxu1 %v19170_v16  ;;  %v19231_v14 = vld [vmem:[%s27950_s1 + $0x118] ss:$44 sps:$4 sm:$0xff]   ;;  %v19234_v52 = vld [vmem:[%s27950_s1 + $0x120] ss:$44 sps:$4 sm:$0xff]  }
 0x1e1   :  { %v19239_v16 = vld [vmem:[%s27950_s1 + $0x174] ss:$44 sps:$4 sm:$0xff]  }
 0x1e3   :  { %9213 = vmatpush1.bf16.msra.mxu0 %v19165_v18  ;;  %9541 = vmatpush1.bf16.msra.mxu1 %v19168_v19  ;;  %v19242_v18 = vld [vmem:[%s27950_s1 + $0x17c] ss:$44 sps:$4 sm:$0xff]  }
 0x1e4   :  { %9214 = vmatprep.subr.bf16.mxu0 %v19173_v21  ;;  %9542 = vmatprep.subr.bf16.mxu1 %v19176_v22  ;;  %v19237_v19 = vld [vmem:[%s27950_s1 + $0x170] ss:$44 sps:$4 sm:$0xff]   ;;  %v19240_v21 = vld [vmem:[%s27950_s1 + $0x178] ss:$44 sps:$4 sm:$0xff]  }
 0x1e5   :  { %v19245_v22 = vld [vmem:[%s27950_s1 + $0x1cc] ss:$44 sps:$4 sm:$0xff]  }
 0x1e7   :  { %9215 = vmatpush1.bf16.msra.mxu0 %v19171_v25  ;;  %9543 = vmatpush1.bf16.msra.mxu1 %v19174_v26  ;;  %v19248_v25 = vld [vmem:[%s27950_s1 + $0x1d4] ss:$44 sps:$4 sm:$0xff]  }
 0x1e8   :  { %9216 = vmatprep.subr.bf16.mxu0 %v19179_v28  ;;  %9544 = vmatprep.subr.bf16.mxu1 %v19182_v29  ;;  %v19243_v26 = vld [vmem:[%s27950_s1 + $0x1c8] ss:$44 sps:$4 sm:$0xff]   ;;  %v19246_v28 = vld [vmem:[%s27950_s1 + $0x1d0] ss:$44 sps:$4 sm:$0xff]  }
 0x1e9   :  { %v19251_v29 = vld [vmem:[%s27950_s1 + $0x224] ss:$44 sps:$4 sm:$0xff]  }
 0x1eb   :  { %9217 = vmatpush1.bf16.msra.mxu0 %v19177_v30  ;;  %9545 = vmatpush1.bf16.msra.mxu1 %v19180_v31  ;;  %v19254_v30 = vld [vmem:[%s27950_s1 + $0x22c] ss:$44 sps:$4 sm:$0xff]  }
 0x1ec   :  { %9218 = vmatprep.subr.bf16.mxu0 %v19185_v32  ;;  %9546 = vmatprep.subr.bf16.mxu1 %v19188_v35  ;;  %v19249_v31 = vld [vmem:[%s27950_s1 + $0x220] ss:$44 sps:$4 sm:$0xff]   ;;  %v19252_v32 = vld [vmem:[%s27950_s1 + $0x228] ss:$44 sps:$4 sm:$0xff]  }
 0x1ed   :  { %v19257_v35 = vld [vmem:[%s27950_s1 + $0x27c] ss:$44 sps:$4 sm:$0xff]  }
 0x1ef   :  { %9219 = vmatpush1.bf16.msra.mxu0 %v19183_v36  ;;  %9547 = vmatpush1.bf16.msra.mxu1 %v19186_v37  ;;  %v19260_v36 = vld [vmem:[%s27950_s1 + $0x284] ss:$44 sps:$4 sm:$0xff]  }
 0x1f0   :  { %9220 = vmatprep.subr.bf16.mxu0 %v19191_v38  ;;  %9548 = vmatprep.subr.bf16.mxu1 %v19194_v39  ;;  %v19255_v37 = vld [vmem:[%s27950_s1 + $0x278] ss:$44 sps:$4 sm:$0xff]   ;;  %v19258_v38 = vld [vmem:[%s27950_s1 + $0x280] ss:$44 sps:$4 sm:$0xff]  }
 0x1f1   :  { %v19263_v39 = vld [vmem:[%s27950_s1 + $0x2d4] ss:$44 sps:$4 sm:$0xff]  }
 0x1f3   :  { %9221 = vmatpush1.bf16.msra.mxu0 %v19189_v41  ;;  %9549 = vmatpush1.bf16.msra.mxu1 %v19192_v43  ;;  %v19266_v41 = vld [vmem:[%s27950_s1 + $0x2dc] ss:$44 sps:$4 sm:$0xff]  }
 0x1f4   :  { %9222 = vmatprep.subr.bf16.mxu0 %v19197_v44  ;;  %9550 = vmatprep.subr.bf16.mxu1 %v19200_v49  ;;  %v19261_v43 = vld [vmem:[%s27950_s1 + $0x2d0] ss:$44 sps:$4 sm:$0xff]   ;;  %v19264_v44 = vld [vmem:[%s27950_s1 + $0x2d8] ss:$44 sps:$4 sm:$0xff]  }
 0x1f5   :  { %v19269_v49 = vld [vmem:[%s27950_s1 + $0x32c] ss:$44 sps:$4 sm:$0xff]  }
 0x1f7   :  { %9223 = vmatpush1.bf16.msra.mxu0 %v19195_v46  ;;  %9551 = vmatpush1.bf16.msra.mxu1 %v19198_v47  ;;  %v19272_v46 = vld [vmem:[%s27950_s1 + $0x334] ss:$44 sps:$4 sm:$0xff]  }
 0x1f8   :  { %9224 = vmatprep.subr.bf16.mxu0 %v19203_v48  ;;  %9552 = vmatprep.subr.bf16.mxu1 %v19206_v50  ;;  %v19267_v47 = vld [vmem:[%s27950_s1 + $0x328] ss:$44 sps:$4 sm:$0xff]   ;;  %v19270_v48 = vld [vmem:[%s27950_s1 + $0x330] ss:$44 sps:$4 sm:$0xff]  }
 0x1f9   :  { %v19275_v50 = vld [vmem:[%s27950_s1 + $0x384] ss:$44 sps:$4 sm:$0xff]  }
 0x1fb   :  { %9225 = vmatpush1.bf16.msra.mxu0 %v19201_v53  ;;  %9553 = vmatpush1.bf16.msra.mxu1 %v19204_v54  ;;  %v19278_v53 = vld [vmem:[%s27950_s1 + $0x38c] ss:$44 sps:$4 sm:$0xff]  }
 0x1fc   :  { %9226 = vmatprep.subr.bf16.mxu0 %v19209_v55  ;;  %9554 = vmatprep.subr.bf16.mxu1 %v19212_v56  ;;  %v19273_v54 = vld [vmem:[%s27950_s1 + $0x380] ss:$44 sps:$4 sm:$0xff]   ;;  %v19276_v55 = vld [vmem:[%s27950_s1 + $0x388] ss:$44 sps:$4 sm:$0xff]  }
 0x1fd   :  { %v19281_v56 = vld [vmem:[%s27950_s1 + $0x3dc] ss:$44 sps:$4 sm:$0xff]  }
 0x1ff   :  { %9227 = vmatpush1.bf16.msra.mxu0 %v19207_v57  ;;  %9555 = vmatpush1.bf16.msra.mxu1 %v19210_v58  ;;  %v19284_v57 = vld [vmem:[%s27950_s1 + $0x3e4] ss:$44 sps:$4 sm:$0xff]  }
 0x200   :  { %9565 = vmatprep.subr.bf16.mxu0 %v19215_v59  ;;  %9893 = vmatprep.subr.bf16.mxu1 %v19218_v61  ;;  %v19279_v58 = vld [vmem:[%s27950_s1 + $0x3d8] ss:$44 sps:$4 sm:$0xff]   ;;  %v19282_v59 = vld [vmem:[%s27950_s1 + $0x3e0] ss:$44 sps:$4 sm:$0xff]  }
 0x201   :  { %v19287_v61 = vld [vmem:[%s27950_s1 + $0x434] ss:$44 sps:$4 sm:$0xff]  }
 0x202   :  { %9229 = vmatmul.mubr.bf16.vlgmr.msra.gmra.mrb[0].mxu0 %v23109_v63  ;;  %9557 = vmatmul.mubr.bf16.vlgmr.msra.gmra.mrb[0].mxu1 %v23109_v63 }
 0x203   :  { %9566 = vmatpush1.bf16.msra.mxu0 %v19213_v0  ;;  %9894 = vmatpush1.bf16.msra.mxu1 %v19216_v1  ;;  %v19290_v0 = vld [vmem:[%s27950_s1 + $0x43c] ss:$44 sps:$4 sm:$0xff]  }
 0x204   :  { %9567 = vmatprep.subr.bf16.mxu0 %v19221_v34  ;;  %9895 = vmatprep.subr.bf16.mxu1 %v19224_v3  ;;  %v19285_v1 = vld [vmem:[%s27950_s1 + $0x430] ss:$44 sps:$4 sm:$0xff]   ;;  %v19288_v34 = vld [vmem:[%s27950_s1 + $0x438] ss:$44 sps:$4 sm:$0xff]  }
 0x205   :  { %9597 = vmatprep.mubr.bf16.mxu0 %v21612_v60  ;;  %9925 = vmatprep.mubr.bf16.mxu1 %v21612_v60  ;;  %v19293_v3 = vld [vmem:[%s27950_s1 + $0x48c] ss:$44 sps:$4 sm:$0xff]  }
 0x207   :  { %9568 = vmatpush1.bf16.msra.mxu0 %v19219_v4  ;;  %9896 = vmatpush1.bf16.msra.mxu1 %v19222_v5  ;;  %v19296_v4 = vld [vmem:[%s27950_s1 + $0x494] ss:$44 sps:$4 sm:$0xff]  }
 0x208   :  { %9569 = vmatprep.subr.bf16.mxu0 %v19227_v6  ;;  %9897 = vmatprep.subr.bf16.mxu1 %v19230_v7  ;;  %v19291_v5 = vld [vmem:[%s27950_s1 + $0x488] ss:$44 sps:$4 sm:$0xff]   ;;  %v19294_v6 = vld [vmem:[%s27950_s1 + $0x490] ss:$44 sps:$4 sm:$0xff]  }
 0x209   :  { %v19299_v7 = vld [vmem:[%s27950_s1 + $0x4e4] ss:$44 sps:$4 sm:$0xff]  }
 0x20b   :  { %9570 = vmatpush1.bf16.msra.mxu0 %v19225_v8  ;;  %9898 = vmatpush1.bf16.msra.mxu1 %v19228_v9  ;;  %v19302_v8 = vld [vmem:[%s27950_s1 + $0x4ec] ss:$44 sps:$4 sm:$0xff]  }
 0x20c   :  { %9571 = vmatprep.subr.bf16.mxu0 %v19233_v11  ;;  %9899 = vmatprep.subr.bf16.mxu1 %v19236_v12  ;;  %v19297_v9 = vld [vmem:[%s27950_s1 + $0x4e0] ss:$44 sps:$4 sm:$0xff]   ;;  %v19300_v11 = vld [vmem:[%s27950_s1 + $0x4e8] ss:$44 sps:$4 sm:$0xff]  }
 0x20d   :  { %v19305_v12 = vld [vmem:[%s27950_s1 + $0x53c] ss:$44 sps:$4 sm:$0xff]  }
 0x20f   :  { %9572 = vmatpush1.bf16.msra.mxu0 %v19231_v14  ;;  %9900 = vmatpush1.bf16.msra.mxu1 %v19234_v52  ;;  %v19308_v14 = vld [vmem:[%s27950_s1 + $0x544] ss:$44 sps:$4 sm:$0xff]  }
 0x210   :  { %9573 = vmatprep.subr.bf16.mxu0 %v19239_v16  ;;  %9901 = vmatprep.subr.bf16.mxu1 %v19242_v18  ;;  %v19303_v52 = vld [vmem:[%s27950_s1 + $0x538] ss:$44 sps:$4 sm:$0xff]   ;;  %v19306_v16 = vld [vmem:[%s27950_s1 + $0x540] ss:$44 sps:$4 sm:$0xff]  }
 0x211   :  { %v19311_v18 = vld [vmem:[%s27950_s1 + $0x594] ss:$44 sps:$4 sm:$0xff]  }
 0x213   :  { %9574 = vmatpush1.bf16.msra.mxu0 %v19237_v19  ;;  %9902 = vmatpush1.bf16.msra.mxu1 %v19240_v21  ;;  %v19314_v19 = vld [vmem:[%s27950_s1 + $0x59c] ss:$44 sps:$4 sm:$0xff]  }
 0x214   :  { %9575 = vmatprep.subr.bf16.mxu0 %v19245_v22  ;;  %9903 = vmatprep.subr.bf16.mxu1 %v19248_v25  ;;  %v19309_v21 = vld [vmem:[%s27950_s1 + $0x590] ss:$44 sps:$4 sm:$0xff]   ;;  %v19312_v22 = vld [vmem:[%s27950_s1 + $0x598] ss:$44 sps:$4 sm:$0xff]  }
 0x215   :  { %v19317_v25 = vld [vmem:[%s27950_s1 + $0x5ec] ss:$44 sps:$4 sm:$0xff]  }
 0x217   :  { %9576 = vmatpush1.bf16.msra.mxu0 %v19243_v26  ;;  %9904 = vmatpush1.bf16.msra.mxu1 %v19246_v28  ;;  %v19320_v26 = vld [vmem:[%s27950_s1 + $0x5f4] ss:$44 sps:$4 sm:$0xff]  }
 0x218   :  { %9577 = vmatprep.subr.bf16.mxu0 %v19251_v29  ;;  %9905 = vmatprep.subr.bf16.mxu1 %v19254_v30  ;;  %v19315_v28 = vld [vmem:[%s27950_s1 + $0x5e8] ss:$44 sps:$4 sm:$0xff]   ;;  %v19318_v29 = vld [vmem:[%s27950_s1 + $0x5f0] ss:$44 sps:$4 sm:$0xff]  }
 0x219   :  { %v19323_v30 = vld [vmem:[%s27950_s1 + $0x644] ss:$44 sps:$4 sm:$0xff]  }
 0x21b   :  { %9578 = vmatpush1.bf16.msra.mxu0 %v19249_v31  ;;  %9906 = vmatpush1.bf16.msra.mxu1 %v19252_v32  ;;  %v19326_v31 = vld [vmem:[%s27950_s1 + $0x64c] ss:$44 sps:$4 sm:$0xff]  }
 0x21c   :  { %9579 = vmatprep.subr.bf16.mxu0 %v19257_v35  ;;  %9907 = vmatprep.subr.bf16.mxu1 %v19260_v36  ;;  %v19321_v32 = vld [vmem:[%s27950_s1 + $0x640] ss:$44 sps:$4 sm:$0xff]   ;;  %v19324_v35 = vld [vmem:[%s27950_s1 + $0x648] ss:$44 sps:$4 sm:$0xff]  }
 0x21d   :  { %v19329_v36 = vld [vmem:[%s27950_s1 + $0x69c] ss:$44 sps:$4 sm:$0xff]  }
 0x21f   :  { %9580 = vmatpush1.bf16.msra.mxu0 %v19255_v37  ;;  %9908 = vmatpush1.bf16.msra.mxu1 %v19258_v38  ;;  %v19332_v37 = vld [vmem:[%s27950_s1 + $0x6a4] ss:$44 sps:$4 sm:$0xff]  }
 0x220   :  { %9581 = vmatprep.subr.bf16.mxu0 %v19263_v39  ;;  %9909 = vmatprep.subr.bf16.mxu1 %v19266_v41  ;;  %v19327_v38 = vld [vmem:[%s27950_s1 + $0x698] ss:$44 sps:$4 sm:$0xff]   ;;  %v19330_v39 = vld [vmem:[%s27950_s1 + $0x6a0] ss:$44 sps:$4 sm:$0xff]  }
 0x221   :  { %v19335_v41 = vld [vmem:[%s27950_s1 + $0x6f4] ss:$44 sps:$4 sm:$0xff]  }
 0x223   :  { %9582 = vmatpush1.bf16.msra.mxu0 %v19261_v43  ;;  %9910 = vmatpush1.bf16.msra.mxu1 %v19264_v44  ;;  %v19338_v43 = vld [vmem:[%s27950_s1 + $0x6fc] ss:$44 sps:$4 sm:$0xff]  }
 0x224   :  { %9583 = vmatprep.subr.bf16.mxu0 %v19269_v49  ;;  %9911 = vmatprep.subr.bf16.mxu1 %v19272_v46  ;;  %v19333_v44 = vld [vmem:[%s27950_s1 + $0x6f0] ss:$44 sps:$4 sm:$0xff]   ;;  %v19336_v49 = vld [vmem:[%s27950_s1 + $0x6f8] ss:$44 sps:$4 sm:$0xff]  }
 0x225   :  { %v19341_v46 = vld [vmem:[%s27950_s1 + $0x74c] ss:$44 sps:$4 sm:$0xff]  }
 0x227   :  { %9584 = vmatpush1.bf16.msra.mxu0 %v19267_v47  ;;  %9912 = vmatpush1.bf16.msra.mxu1 %v19270_v48  ;;  %v19344_v47 = vld [vmem:[%s27950_s1 + $0x754] ss:$44 sps:$4 sm:$0xff]  }
 0x228   :  { %9585 = vmatprep.subr.bf16.mxu0 %v19275_v50  ;;  %9913 = vmatprep.subr.bf16.mxu1 %v19278_v53  ;;  %v19339_v48 = vld [vmem:[%s27950_s1 + $0x748] ss:$44 sps:$4 sm:$0xff]   ;;  %v19342_v50 = vld [vmem:[%s27950_s1 + $0x750] ss:$44 sps:$4 sm:$0xff]  }
 0x229   :  { %v19347_v53 = vld [vmem:[%s27950_s1 + $0x7a4] ss:$44 sps:$4 sm:$0xff]  }
 0x22b   :  { %9586 = vmatpush1.bf16.msra.mxu0 %v19273_v54  ;;  %9914 = vmatpush1.bf16.msra.mxu1 %v19276_v55  ;;  %v19350_v54 = vld [vmem:[%s27950_s1 + $0x7ac] ss:$44 sps:$4 sm:$0xff]  }
 0x22c   :  { %9587 = vmatprep.subr.bf16.mxu0 %v19281_v56  ;;  %9915 = vmatprep.subr.bf16.mxu1 %v19284_v57  ;;  %v19345_v55 = vld [vmem:[%s27950_s1 + $0x7a0] ss:$44 sps:$4 sm:$0xff]   ;;  %v19348_v56 = vld [vmem:[%s27950_s1 + $0x7a8] ss:$44 sps:$4 sm:$0xff]  }
 0x22d   :  { %v19353_v57 = vld [vmem:[%s27950_s1 + $0x7fc] ss:$44 sps:$4 sm:$0xff]  }
 0x22f   :  { %9588 = vmatpush1.bf16.msra.mxu0 %v19279_v58  ;;  %9916 = vmatpush1.bf16.msra.mxu1 %v19282_v59  ;;  %v19356_v58 = vld [vmem:[%s27950_s1 + $0x804] ss:$44 sps:$4 sm:$0xff]  }
 0x230   :  { %9589 = vmatprep.subr.bf16.mxu0 %v19287_v61  ;;  %9917 = vmatprep.subr.bf16.mxu1 %v19290_v0  ;;  %v19351_v59 = vld [vmem:[%s27950_s1 + $0x7f8] ss:$44 sps:$4 sm:$0xff]   ;;  %v19354_v61 = vld [vmem:[%s27950_s1 + $0x800] ss:$44 sps:$4 sm:$0xff]  }
 0x231   :  { %v19359_v0 = vld [vmem:[%s27950_s1 + $0x854] ss:$44 sps:$4 sm:$0xff]  }
 0x233   :  { %9590 = vmatpush1.bf16.msra.mxu0 %v19285_v1  ;;  %9918 = vmatpush1.bf16.msra.mxu1 %v19288_v34  ;;  %v19362_v1 = vld [vmem:[%s27950_s1 + $0x85c] ss:$44 sps:$4 sm:$0xff]  }
 0x234   :  { %9591 = vmatprep.subr.bf16.mxu0 %v19293_v3  ;;  %9919 = vmatprep.subr.bf16.mxu1 %v19296_v4  ;;  %v19357_v34 = vld [vmem:[%s27950_s1 + $0x850] ss:$44 sps:$4 sm:$0xff]   ;;  %v19360_v3 = vld [vmem:[%s27950_s1 + $0x858] ss:$44 sps:$4 sm:$0xff]  }
 0x235   :  { %v19365_v4 = vld [vmem:[%s27950_s1 + $0x8ac] ss:$44 sps:$4 sm:$0xff]  }
 0x237   :  { %9592 = vmatpush1.bf16.msra.mxu0 %v19291_v5  ;;  %9920 = vmatpush1.bf16.msra.mxu1 %v19294_v6  ;;  %v19368_v5 = vld [vmem:[%s27950_s1 + $0x8b4] ss:$44 sps:$4 sm:$0xff]  }
 0x238   :  { %9593 = vmatprep.subr.bf16.mxu0 %v19299_v7  ;;  %9921 = vmatprep.subr.bf16.mxu1 %v19302_v8  ;;  %v19363_v6 = vld [vmem:[%s27950_s1 + $0x8a8] ss:$44 sps:$4 sm:$0xff]   ;;  %v19366_v7 = vld [vmem:[%s27950_s1 + $0x8b0] ss:$44 sps:$4 sm:$0xff]  }
 0x239   :  { %v19371_v8 = vld [vmem:[%s27950_s1 + $0x904] ss:$44 sps:$4 sm:$0xff]  }
 0x23b   :  { %9594 = vmatpush1.bf16.msra.mxu0 %v19297_v9  ;;  %9922 = vmatpush1.bf16.msra.mxu1 %v19300_v11  ;;  %v19374_v9 = vld [vmem:[%s27950_s1 + $0x90c] ss:$44 sps:$4 sm:$0xff]  }
 0x23c   :  { %9595 = vmatprep.subr.bf16.mxu0 %v19305_v12  ;;  %9923 = vmatprep.subr.bf16.mxu1 %v19308_v14  ;;  %v19369_v11 = vld [vmem:[%s27950_s1 + $0x900] ss:$44 sps:$4 sm:$0xff]   ;;  %v19372_v12 = vld [vmem:[%s27950_s1 + $0x908] ss:$44 sps:$4 sm:$0xff]  }
 0x23d   :  { %v19377_v14 = vld [vmem:[%s27950_s1 + $0x95c] ss:$44 sps:$4 sm:$0xff]  }
 0x23f   :  { %9596 = vmatpush1.bf16.msra.mxu0 %v19303_v52  ;;  %9924 = vmatpush1.bf16.msra.mxu1 %v19306_v16  ;;  %v19380_v52 = vld [vmem:[%s27950_s1 + $0x964] ss:$44 sps:$4 sm:$0xff]  }
 0x240   :  { %9606 = vmatprep.subr.bf16.mxu0 %v19311_v18  ;;  %9934 = vmatprep.subr.bf16.mxu1 %v19314_v19  ;;  %v19375_v16 = vld [vmem:[%s27950_s1 + $0x958] ss:$44 sps:$4 sm:$0xff]   ;;  %v19378_v18 = vld [vmem:[%s27950_s1 + $0x960] ss:$44 sps:$4 sm:$0xff]  }
 0x241   :  { %v19383_v19 = vld [vmem:[%s27950_s1 + $0x9b4] ss:$44 sps:$4 sm:$0xff]  }
 0x242   :  { %9598 = vmatmul.mubr.bf16.vlgmr.msra.gmra.mrb[4].mxu0 %v21665_v13  ;;  %9926 = vmatmul.mubr.bf16.vlgmr.msra.gmra.mrb[4].mxu1 %v21665_v13 }
 0x243   :  { %9607 = vmatpush1.bf16.msra.mxu0 %v19309_v21  ;;  %9935 = vmatpush1.bf16.msra.mxu1 %v19312_v22  ;;  %v19386_v21 = vld [vmem:[%s27950_s1 + $0x9bc] ss:$44 sps:$4 sm:$0xff]  }
 0x244   :  { %9608 = vmatprep.subr.bf16.mxu0 %v19317_v25  ;;  %9936 = vmatprep.subr.bf16.mxu1 %v19320_v26  ;;  %v19381_v22 = vld [vmem:[%s27950_s1 + $0x9b0] ss:$44 sps:$4 sm:$0xff]   ;;  %v19384_v25 = vld [vmem:[%s27950_s1 + $0x9b8] ss:$44 sps:$4 sm:$0xff]  }
 0x245   :  { %9638 = vmatprep.mubr.bf16.mxu0 %v21678_v17  ;;  %9966 = vmatprep.mubr.bf16.mxu1 %v21678_v17  ;;  %v19389_v26 = vld [vmem:[%s27950_s1 + $0xa0c] ss:$44 sps:$4 sm:$0xff]  }
 0x247   :  { %9609 = vmatpush1.bf16.msra.mxu0 %v19315_v28  ;;  %9937 = vmatpush1.bf16.msra.mxu1 %v19318_v29  ;;  %v19392_v28 = vld [vmem:[%s27950_s1 + $0xa14] ss:$44 sps:$4 sm:$0xff]  }
 0x248   :  { %9610 = vmatprep.subr.bf16.mxu0 %v19323_v30  ;;  %9938 = vmatprep.subr.bf16.mxu1 %v19326_v31  ;;  %v19387_v29 = vld [vmem:[%s27950_s1 + $0xa08] ss:$44 sps:$4 sm:$0xff]   ;;  %v19390_v30 = vld [vmem:[%s27950_s1 + $0xa10] ss:$44 sps:$4 sm:$0xff]  }
 0x249   :  { %v19395_v31 = vld [vmem:[%s27950_s1 + $0xa64] ss:$44 sps:$4 sm:$0xff]  }
 0x24b   :  { %9611 = vmatpush1.bf16.msra.mxu0 %v19321_v32  ;;  %9939 = vmatpush1.bf16.msra.mxu1 %v19324_v35  ;;  %v19398_v32 = vld [vmem:[%s27950_s1 + $0xa6c] ss:$44 sps:$4 sm:$0xff]  }
 0x24c   :  { %9612 = vmatprep.subr.bf16.mxu0 %v19329_v36  ;;  %9940 = vmatprep.subr.bf16.mxu1 %v19332_v37  ;;  %v19393_v35 = vld [vmem:[%s27950_s1 + $0xa60] ss:$44 sps:$4 sm:$0xff]   ;;  %v19396_v36 = vld [vmem:[%s27950_s1 + $0xa68] ss:$44 sps:$4 sm:$0xff]  }
 0x24d   :  { %v19401_v37 = vld [vmem:[%s27950_s1 + $0xabc] ss:$44 sps:$4 sm:$0xff]  }
 0x24f   :  { %9613 = vmatpush1.bf16.msra.mxu0 %v19327_v38  ;;  %9941 = vmatpush1.bf16.msra.mxu1 %v19330_v39  ;;  %v19404_v38 = vld [vmem:[%s27950_s1 + $0xac4] ss:$44 sps:$4 sm:$0xff]  }
 0x250   :  { %9614 = vmatprep.subr.bf16.mxu0 %v19335_v41  ;;  %9942 = vmatprep.subr.bf16.mxu1 %v19338_v43  ;;  %v19399_v39 = vld [vmem:[%s27950_s1 + $0xab8] ss:$44 sps:$4 sm:$0xff]   ;;  %v19402_v41 = vld [vmem:[%s27950_s1 + $0xac0] ss:$44 sps:$4 sm:$0xff]  }
 0x251   :  { %v19407_v43 = vld [vmem:[%s27950_s1 + $0xb14] ss:$44 sps:$4 sm:$0xff]  }
 0x253   :  { %9615 = vmatpush1.bf16.msra.mxu0 %v19333_v44  ;;  %9943 = vmatpush1.bf16.msra.mxu1 %v19336_v49  ;;  %v19410_v44 = vld [vmem:[%s27950_s1 + $0xb1c] ss:$44 sps:$4 sm:$0xff]  }
 0x254   :  { %9616 = vmatprep.subr.bf16.mxu0 %v19341_v46  ;;  %9944 = vmatprep.subr.bf16.mxu1 %v19344_v47  ;;  %v19405_v49 = vld [vmem:[%s27950_s1 + $0xb10] ss:$44 sps:$4 sm:$0xff]   ;;  %v19408_v46 = vld [vmem:[%s27950_s1 + $0xb18] ss:$44 sps:$4 sm:$0xff]  }
 0x255   :  { %v19413_v47 = vld [vmem:[%s27950_s1 + $0xb6c] ss:$44 sps:$4 sm:$0xff]  }
 0x257   :  { %9617 = vmatpush1.bf16.msra.mxu0 %v19339_v48  ;;  %9945 = vmatpush1.bf16.msra.mxu1 %v19342_v50  ;;  %v19416_v48 = vld [vmem:[%s27950_s1 + $0xb74] ss:$44 sps:$4 sm:$0xff]  }
 0x258   :  { %9618 = vmatprep.subr.bf16.mxu0 %v19347_v53  ;;  %9946 = vmatprep.subr.bf16.mxu1 %v19350_v54  ;;  %v19411_v50 = vld [vmem:[%s27950_s1 + $0xb68] ss:$44 sps:$4 sm:$0xff]   ;;  %v19414_v53 = vld [vmem:[%s27950_s1 + $0xb70] ss:$44 sps:$4 sm:$0xff]  }
 0x259   :  { %v19419_v54 = vld [vmem:[%s27950_s1 + $0xbc4] ss:$44 sps:$4 sm:$0xff]  }
 0x25b   :  { %9619 = vmatpush1.bf16.msra.mxu0 %v19345_v55  ;;  %9947 = vmatpush1.bf16.msra.mxu1 %v19348_v56  ;;  %v19422_v55 = vld [vmem:[%s27950_s1 + $0xbcc] ss:$44 sps:$4 sm:$0xff]  }
 0x25c   :  { %9620 = vmatprep.subr.bf16.mxu0 %v19353_v57  ;;  %9948 = vmatprep.subr.bf16.mxu1 %v19356_v58  ;;  %v19417_v56 = vld [vmem:[%s27950_s1 + $0xbc0] ss:$44 sps:$4 sm:$0xff]   ;;  %v19420_v57 = vld [vmem:[%s27950_s1 + $0xbc8] ss:$44 sps:$4 sm:$0xff]  }
 0x25d   :  { %v19425_v58 = vld [vmem:[%s27950_s1 + $0xc1c] ss:$44 sps:$4 sm:$0xff]  }
 0x25f   :  { %9621 = vmatpush1.bf16.msra.mxu0 %v19351_v59  ;;  %9949 = vmatpush1.bf16.msra.mxu1 %v19354_v61  ;;  %v19428_v59 = vld [vmem:[%s27950_s1 + $0xc24] ss:$44 sps:$4 sm:$0xff]  }
 0x260   :  { %9622 = vmatprep.subr.bf16.mxu0 %v19359_v0  ;;  %9950 = vmatprep.subr.bf16.mxu1 %v19362_v1  ;;  %v19423_v61 = vld [vmem:[%s27950_s1 + $0xc18] ss:$44 sps:$4 sm:$0xff]   ;;  %v19426_v0 = vld [vmem:[%s27950_s1 + $0xc20] ss:$44 sps:$4 sm:$0xff]  }
 0x261   :  { %v19431_v1 = vld [vmem:[%s27950_s1 + $0xc74] ss:$44 sps:$4 sm:$0xff]  }
 0x263   :  { %9623 = vmatpush1.bf16.msra.mxu0 %v19357_v34  ;;  %9951 = vmatpush1.bf16.msra.mxu1 %v19360_v3  ;;  %v19434_v34 = vld [vmem:[%s27950_s1 + $0xc7c] ss:$44 sps:$4 sm:$0xff]  }
 0x264   :  { %9624 = vmatprep.subr.bf16.mxu0 %v19365_v4  ;;  %9952 = vmatprep.subr.bf16.mxu1 %v19368_v5  ;;  %v19429_v3 = vld [vmem:[%s27950_s1 + $0xc70] ss:$44 sps:$4 sm:$0xff]   ;;  %v19432_v4 = vld [vmem:[%s27950_s1 + $0xc78] ss:$44 sps:$4 sm:$0xff]  }
 0x265   :  { %v19437_v5 = vld [vmem:[%s27950_s1 + $0xccc] ss:$44 sps:$4 sm:$0xff]  }
 0x267   :  { %9625 = vmatpush1.bf16.msra.mxu0 %v19363_v6  ;;  %9953 = vmatpush1.bf16.msra.mxu1 %v19366_v7  ;;  %v19440_v6 = vld [vmem:[%s27950_s1 + $0xcd4] ss:$44 sps:$4 sm:$0xff]  }
 0x268   :  { %9626 = vmatprep.subr.bf16.mxu0 %v19371_v8  ;;  %9954 = vmatprep.subr.bf16.mxu1 %v19374_v9  ;;  %v19435_v7 = vld [vmem:[%s27950_s1 + $0xcc8] ss:$44 sps:$4 sm:$0xff]   ;;  %v19438_v8 = vld [vmem:[%s27950_s1 + $0xcd0] ss:$44 sps:$4 sm:$0xff]  }
 0x269   :  { %v19443_v9 = vld [vmem:[%s27950_s1 + $0xd24] ss:$44 sps:$4 sm:$0xff]  }
 0x26b   :  { %9627 = vmatpush1.bf16.msra.mxu0 %v19369_v11  ;;  %9955 = vmatpush1.bf16.msra.mxu1 %v19372_v12  ;;  %v19446_v11 = vld [vmem:[%s27950_s1 + $0xd2c] ss:$44 sps:$4 sm:$0xff]  }
 0x26c   :  { %9628 = vmatprep.subr.bf16.mxu0 %v19377_v14  ;;  %9956 = vmatprep.subr.bf16.mxu1 %v19380_v52  ;;  %v19441_v12 = vld [vmem:[%s27950_s1 + $0xd20] ss:$44 sps:$4 sm:$0xff]   ;;  %v19444_v14 = vld [vmem:[%s27950_s1 + $0xd28] ss:$44 sps:$4 sm:$0xff]  }
 0x26d   :  { %v19449_v52 = vld [vmem:[%s27950_s1 + $0xd7c] ss:$44 sps:$4 sm:$0xff]  }
 0x26f   :  { %9629 = vmatpush1.bf16.msra.mxu0 %v19375_v16  ;;  %9957 = vmatpush1.bf16.msra.mxu1 %v19378_v18  ;;  %v19452_v16 = vld [vmem:[%s27950_s1 + $0xd84] ss:$44 sps:$4 sm:$0xff]  }
 0x270   :  { %9630 = vmatprep.subr.bf16.mxu0 %v19383_v19  ;;  %9958 = vmatprep.subr.bf16.mxu1 %v19386_v21  ;;  %v19447_v18 = vld [vmem:[%s27950_s1 + $0xd78] ss:$44 sps:$4 sm:$0xff]   ;;  %v19450_v19 = vld [vmem:[%s27950_s1 + $0xd80] ss:$44 sps:$4 sm:$0xff]  }
 0x271   :  { %v19455_v21 = vld [vmem:[%s27950_s1 + $0xdd4] ss:$44 sps:$4 sm:$0xff]  }
 0x273   :  { %9631 = vmatpush1.bf16.msra.mxu0 %v19381_v22  ;;  %9959 = vmatpush1.bf16.msra.mxu1 %v19384_v25  ;;  %v19458_v22 = vld [vmem:[%s27950_s1 + $0xddc] ss:$44 sps:$4 sm:$0xff]  }
 0x274   :  { %9632 = vmatprep.subr.bf16.mxu0 %v19389_v26  ;;  %9960 = vmatprep.subr.bf16.mxu1 %v19392_v28  ;;  %v19453_v25 = vld [vmem:[%s27950_s1 + $0xdd0] ss:$44 sps:$4 sm:$0xff]   ;;  %v19456_v26 = vld [vmem:[%s27950_s1 + $0xdd8] ss:$44 sps:$4 sm:$0xff]  }
 0x275   :  { %v19461_v28 = vld [vmem:[%s27950_s1 + $0xe2c] ss:$44 sps:$4 sm:$0xff]  }
 0x277   :  { %9633 = vmatpush1.bf16.msra.mxu0 %v19387_v29  ;;  %9961 = vmatpush1.bf16.msra.mxu1 %v19390_v30  ;;  %v19464_v29 = vld [vmem:[%s27950_s1 + $0xe34] ss:$44 sps:$4 sm:$0xff]  }
 0x278   :  { %9634 = vmatprep.subr.bf16.mxu0 %v19395_v31  ;;  %9962 = vmatprep.subr.bf16.mxu1 %v19398_v32  ;;  %v19459_v30 = vld [vmem:[%s27950_s1 + $0xe28] ss:$44 sps:$4 sm:$0xff]   ;;  %v19462_v31 = vld [vmem:[%s27950_s1 + $0xe30] ss:$44 sps:$4 sm:$0xff]  }
 0x279   :  { %v19467_v32 = vld [vmem:[%s27950_s1 + $0xe84] ss:$44 sps:$4 sm:$0xff]  }
 0x27b   :  { %9635 = vmatpush1.bf16.msra.mxu0 %v19393_v35  ;;  %9963 = vmatpush1.bf16.msra.mxu1 %v19396_v36  ;;  %v19470_v35 = vld [vmem:[%s27950_s1 + $0xe8c] ss:$44 sps:$4 sm:$0xff]  }
 0x27c   :  { %9636 = vmatprep.subr.bf16.mxu0 %v19401_v37  ;;  %9964 = vmatprep.subr.bf16.mxu1 %v19404_v38  ;;  %v19465_v36 = vld [vmem:[%s27950_s1 + $0xe80] ss:$44 sps:$4 sm:$0xff]   ;;  %v19468_v37 = vld [vmem:[%s27950_s1 + $0xe88] ss:$44 sps:$4 sm:$0xff]  }
 0x27d   :  { %v19473_v38 = vld [vmem:[%s27950_s1 + $0xedc] ss:$44 sps:$4 sm:$0xff]  }
 0x27f   :  { %9637 = vmatpush1.bf16.msra.mxu0 %v19399_v39  ;;  %9965 = vmatpush1.bf16.msra.mxu1 %v19402_v41  ;;  %v19476_v39 = vld [vmem:[%s27950_s1 + $0xee4] ss:$44 sps:$4 sm:$0xff]  }
 0x280   :  { %9647 = vmatprep.subr.bf16.mxu0 %v19407_v43  ;;  %9975 = vmatprep.subr.bf16.mxu1 %v19410_v44  ;;  %v19471_v41 = vld [vmem:[%s27950_s1 + $0xed8] ss:$44 sps:$4 sm:$0xff]   ;;  %v19474_v43 = vld [vmem:[%s27950_s1 + $0xee0] ss:$44 sps:$4 sm:$0xff]  }
 0x281   :  { %v19479_v44 = vld [vmem:[%s27950_s1 + $0xf34] ss:$44 sps:$4 sm:$0xff]  }
 0x282   :  { %9639 = vmatmul.mubr.bf16.vlgmr.msra.gmra.mrb[4].mxu0 %v21876_v23  ;;  %9967 = vmatmul.mubr.bf16.vlgmr.msra.gmra.mrb[4].mxu1 %v21876_v23 }
 0x283   :  { %9648 = vmatpush1.bf16.msra.mxu0 %v19405_v49  ;;  %9976 = vmatpush1.bf16.msra.mxu1 %v19408_v46  ;;  %v19482_v49 = vld [vmem:[%s27950_s1 + $0xf3c] ss:$44 sps:$4 sm:$0xff]  }
 0x284   :  { %9649 = vmatprep.subr.bf16.mxu0 %v19413_v47  ;;  %9977 = vmatprep.subr.bf16.mxu1 %v19416_v48  ;;  %v19477_v46 = vld [vmem:[%s27950_s1 + $0xf30] ss:$44 sps:$4 sm:$0xff]   ;;  %v19480_v47 = vld [vmem:[%s27950_s1 + $0xf38] ss:$44 sps:$4 sm:$0xff]  }
 0x285   :  { %9679 = vmatprep.mubr.bf16.mxu0 %v21888_v27  ;;  %10007 = vmatprep.mubr.bf16.mxu1 %v21888_v27  ;;  %v19485_v48 = vld [vmem:[%s27950_s1 + $0xf8c] ss:$44 sps:$4 sm:$0xff]  }
 0x287   :  { %9650 = vmatpush1.bf16.msra.mxu0 %v19411_v50  ;;  %9978 = vmatpush1.bf16.msra.mxu1 %v19414_v53  ;;  %v19488_v50 = vld [vmem:[%s27950_s1 + $0xf94] ss:$44 sps:$4 sm:$0xff]  }
 0x288   :  { %9651 = vmatprep.subr.bf16.mxu0 %v19419_v54  ;;  %9979 = vmatprep.subr.bf16.mxu1 %v19422_v55  ;;  %v19483_v53 = vld [vmem:[%s27950_s1 + $0xf88] ss:$44 sps:$4 sm:$0xff]   ;;  %v19486_v54 = vld [vmem:[%s27950_s1 + $0xf90] ss:$44 sps:$4 sm:$0xff]  }
 0x289   :  { %v19491_v55 = vld [vmem:[%s27950_s1 + $0xfe4] ss:$44 sps:$4 sm:$0xff]  }
 0x28b   :  { %9652 = vmatpush1.bf16.msra.mxu0 %v19417_v56  ;;  %9980 = vmatpush1.bf16.msra.mxu1 %v19420_v57  ;;  %v19494_v56 = vld [vmem:[%s27950_s1 + $0xfec] ss:$44 sps:$4 sm:$0xff]  }
 0x28c   :  { %9653 = vmatprep.subr.bf16.mxu0 %v19425_v58  ;;  %9981 = vmatprep.subr.bf16.mxu1 %v19428_v59  ;;  %v19489_v57 = vld [vmem:[%s27950_s1 + $0xfe0] ss:$44 sps:$4 sm:$0xff]   ;;  %v19492_v58 = vld [vmem:[%s27950_s1 + $0xfe8] ss:$44 sps:$4 sm:$0xff]  }
 0x28d   :  { %v19497_v59 = vld [vmem:[%s27950_s1 + $0x103c] ss:$44 sps:$4 sm:$0xff]  }
 0x28f   :  { %9654 = vmatpush1.bf16.msra.mxu0 %v19423_v61  ;;  %9982 = vmatpush1.bf16.msra.mxu1 %v19426_v0  ;;  %v19500_v61 = vld [vmem:[%s27950_s1 + $0x1044] ss:$44 sps:$4 sm:$0xff]  }
 0x290   :  { %9655 = vmatprep.subr.bf16.mxu0 %v19431_v1  ;;  %9983 = vmatprep.subr.bf16.mxu1 %v19434_v34  ;;  %v19495_v0 = vld [vmem:[%s27950_s1 + $0x1038] ss:$44 sps:$4 sm:$0xff]   ;;  %v19498_v1 = vld [vmem:[%s27950_s1 + $0x1040] ss:$44 sps:$4 sm:$0xff]  }
 0x291   :  { %v19503_v34 = vld [vmem:[%s27950_s1 + $0x1094] ss:$44 sps:$4 sm:$0xff]  }
 0x293   :  { %9656 = vmatpush1.bf16.msra.mxu0 %v19429_v3  ;;  %9984 = vmatpush1.bf16.msra.mxu1 %v19432_v4  ;;  %v19506_v3 = vld [vmem:[%s27950_s1 + $0x109c] ss:$44 sps:$4 sm:$0xff]  }
 0x294   :  { %9657 = vmatprep.subr.bf16.mxu0 %v19437_v5  ;;  %9985 = vmatprep.subr.bf16.mxu1 %v19440_v6  ;;  %v19501_v4 = vld [vmem:[%s27950_s1 + $0x1090] ss:$44 sps:$4 sm:$0xff]   ;;  %v19504_v5 = vld [vmem:[%s27950_s1 + $0x1098] ss:$44 sps:$4 sm:$0xff]  }
 0x295   :  { %v19509_v6 = vld [vmem:[%s27950_s1 + $0x10ec] ss:$44 sps:$4 sm:$0xff]  }
 0x297   :  { %9658 = vmatpush1.bf16.msra.mxu0 %v19435_v7  ;;  %9986 = vmatpush1.bf16.msra.mxu1 %v19438_v8  ;;  %v19512_v7 = vld [vmem:[%s27950_s1 + $0x10f4] ss:$44 sps:$4 sm:$0xff]  }
 0x298   :  { %9659 = vmatprep.subr.bf16.mxu0 %v19443_v9  ;;  %9987 = vmatprep.subr.bf16.mxu1 %v19446_v11  ;;  %v19507_v8 = vld [vmem:[%s27950_s1 + $0x10e8] ss:$44 sps:$4 sm:$0xff]   ;;  %v19510_v9 = vld [vmem:[%s27950_s1 + $0x10f0] ss:$44 sps:$4 sm:$0xff]  }
 0x299   :  { %v19515_v11 = vld [vmem:[%s27950_s1 + $0x1144] ss:$44 sps:$4 sm:$0xff]  }
 0x29b   :  { %9660 = vmatpush1.bf16.msra.mxu0 %v19441_v12  ;;  %9988 = vmatpush1.bf16.msra.mxu1 %v19444_v14  ;;  %v19518_v12 = vld [vmem:[%s27950_s1 + $0x114c] ss:$44 sps:$4 sm:$0xff]  }
 0x29c   :  { %9661 = vmatprep.subr.bf16.mxu0 %v19449_v52  ;;  %9989 = vmatprep.subr.bf16.mxu1 %v19452_v16  ;;  %v19513_v14 = vld [vmem:[%s27950_s1 + $0x1140] ss:$44 sps:$4 sm:$0xff]   ;;  %v19516_v52 = vld [vmem:[%s27950_s1 + $0x1148] ss:$44 sps:$4 sm:$0xff]  }
 0x29d   :  { %v19521_v16 = vld [vmem:[%s27950_s1 + $0x119c] ss:$44 sps:$4 sm:$0xff]  }
 0x29f   :  { %9662 = vmatpush1.bf16.msra.mxu0 %v19447_v18  ;;  %9990 = vmatpush1.bf16.msra.mxu1 %v19450_v19  ;;  %v19524_v18 = vld [vmem:[%s27950_s1 + $0x11a4] ss:$44 sps:$4 sm:$0xff]  }
 0x2a0   :  { %9663 = vmatprep.subr.bf16.mxu0 %v19455_v21  ;;  %9991 = vmatprep.subr.bf16.mxu1 %v19458_v22  ;;  %v19519_v19 = vld [vmem:[%s27950_s1 + $0x1198] ss:$44 sps:$4 sm:$0xff]   ;;  %v19522_v21 = vld [vmem:[%s27950_s1 + $0x11a0] ss:$44 sps:$4 sm:$0xff]  }
 0x2a1   :  { %v19527_v22 = vld [vmem:[%s27950_s1 + $0x11f4] ss:$44 sps:$4 sm:$0xff]  }
 0x2a3   :  { %9664 = vmatpush1.bf16.msra.mxu0 %v19453_v25  ;;  %9992 = vmatpush1.bf16.msra.mxu1 %v19456_v26  ;;  %v19530_v25 = vld [vmem:[%s27950_s1 + $0x11fc] ss:$44 sps:$4 sm:$0xff]  }
 0x2a4   :  { %9665 = vmatprep.subr.bf16.mxu0 %v19461_v28  ;;  %9993 = vmatprep.subr.bf16.mxu1 %v19464_v29  ;;  %v19525_v26 = vld [vmem:[%s27950_s1 + $0x11f0] ss:$44 sps:$4 sm:$0xff]   ;;  %v19528_v28 = vld [vmem:[%s27950_s1 + $0x11f8] ss:$44 sps:$4 sm:$0xff]  }
 0x2a5   :  { %v19533_v29 = vld [vmem:[%s27950_s1 + $0x124c] ss:$44 sps:$4 sm:$0xff]  }
 0x2a7   :  { %9666 = vmatpush1.bf16.msra.mxu0 %v19459_v30  ;;  %9994 = vmatpush1.bf16.msra.mxu1 %v19462_v31  ;;  %v19536_v30 = vld [vmem:[%s27950_s1 + $0x1254] ss:$44 sps:$4 sm:$0xff]  }
 0x2a8   :  { %9667 = vmatprep.subr.bf16.mxu0 %v19467_v32  ;;  %9995 = vmatprep.subr.bf16.mxu1 %v19470_v35  ;;  %v19531_v31 = vld [vmem:[%s27950_s1 + $0x1248] ss:$44 sps:$4 sm:$0xff]   ;;  %v19534_v32 = vld [vmem:[%s27950_s1 + $0x1250] ss:$44 sps:$4 sm:$0xff]  }
 0x2a9   :  { %v19539_v35 = vld [vmem:[%s27950_s1 + $0x12a4] ss:$44 sps:$4 sm:$0xff]  }
 0x2ab   :  { %9668 = vmatpush1.bf16.msra.mxu0 %v19465_v36  ;;  %9996 = vmatpush1.bf16.msra.mxu1 %v19468_v37  ;;  %v19542_v36 = vld [vmem:[%s27950_s1 + $0x12ac] ss:$44 sps:$4 sm:$0xff]  }
 0x2ac   :  { %9669 = vmatprep.subr.bf16.mxu0 %v19473_v38  ;;  %9997 = vmatprep.subr.bf16.mxu1 %v19476_v39 }
 0x2af   :  { %9670 = vmatpush1.bf16.msra.mxu0 %v19471_v41  ;;  %9998 = vmatpush1.bf16.msra.mxu1 %v19474_v43 }
 0x2b0   :  { %9671 = vmatprep.subr.bf16.mxu0 %v19479_v44  ;;  %9999 = vmatprep.subr.bf16.mxu1 %v19482_v49  ;;  %v19537_v49 = vld [vmem:[%s27950_s1 + $0x12a0] ss:$44 sps:$4 sm:$0xff]  }
 0x2b3   :  { %9672 = vmatpush1.bf16.msra.mxu0 %v19477_v46  ;;  %10000 = vmatpush1.bf16.msra.mxu1 %v19480_v47  ;;  %v19540_v46 = vld [vmem:[%s27950_s1 + $0x12a8] ss:$44 sps:$4 sm:$0xff]  }
 0x2b4   :  { %9673 = vmatprep.subr.bf16.mxu0 %v19485_v48  ;;  %10001 = vmatprep.subr.bf16.mxu1 %v19488_v50  ;;  %v19545_v50 = vld [vmem:[%s27950_s1 + $0x12fc] ss:$44 sps:$4 sm:$0xff]  }
 0x2b7   :  { %9674 = vmatpush1.bf16.msra.mxu0 %v19483_v53  ;;  %10002 = vmatpush1.bf16.msra.mxu1 %v19486_v54  ;;  %v19548_v53 = vld [vmem:[%s27950_s1 + $0x1304] ss:$44 sps:$4 sm:$0xff]  }
 0x2b8   :  { %9675 = vmatprep.subr.bf16.mxu0 %v19491_v55  ;;  %10003 = vmatprep.subr.bf16.mxu1 %v19494_v56  ;;  %v19543_v54 = vld [vmem:[%s27950_s1 + $0x12f8] ss:$44 sps:$4 sm:$0xff]   ;;  %v19546_v55 = vld [vmem:[%s27950_s1 + $0x1300] ss:$44 sps:$4 sm:$0xff]  }
 0x2b9   :  { %v19551_v56 = vld [vmem:[%s27950_s1 + $0x1354] ss:$44 sps:$4 sm:$0xff]  }
 0x2bb   :  { %9676 = vmatpush1.bf16.msra.mxu0 %v19489_v57  ;;  %10004 = vmatpush1.bf16.msra.mxu1 %v19492_v58  ;;  %v19554_v57 = vld [vmem:[%s27950_s1 + $0x135c] ss:$44 sps:$4 sm:$0xff]  }
 0x2bc   :  { %9677 = vmatprep.subr.bf16.mxu0 %v19497_v59  ;;  %10005 = vmatprep.subr.bf16.mxu1 %v19500_v61  ;;  %v19549_v58 = vld [vmem:[%s27950_s1 + $0x1350] ss:$44 sps:$4 sm:$0xff]   ;;  %v19552_v59 = vld [vmem:[%s27950_s1 + $0x1358] ss:$44 sps:$4 sm:$0xff]  }
 0x2bd   :  { %v19557_v61 = vld [vmem:[%s27950_s1 + $0x13ac] ss:$44 sps:$4 sm:$0xff]  }
 0x2bf   :  { %9678 = vmatpush1.bf16.msra.mxu0 %v19495_v0  ;;  %10006 = vmatpush1.bf16.msra.mxu1 %v19498_v1  ;;  %v19560_v0 = vld [vmem:[%s27950_s1 + $0x13b4] ss:$44 sps:$4 sm:$0xff]  }
 0x2c0   :  { %9688 = vmatprep.subr.bf16.mxu0 %v19503_v34  ;;  %10016 = vmatprep.subr.bf16.mxu1 %v19506_v3  ;;  %v19555_v1 = vld [vmem:[%s27950_s1 + $0x13a8] ss:$44 sps:$4 sm:$0xff]   ;;  %v19558_v34 = vld [vmem:[%s27950_s1 + $0x13b0] ss:$44 sps:$4 sm:$0xff]  }
 0x2c1   :  { %v19563_v3 = vld [vmem:[%s27950_s1 + $0x1404] ss:$44 sps:$4 sm:$0xff]  }
 0x2c2   :  { %9680 = vmatmul.mubr.bf16.vlgmr.msra.gmra.mrb[4].mxu0 %v22079_v33  ;;  %10008 = vmatmul.mubr.bf16.vlgmr.msra.gmra.mrb[4].mxu1 %v22079_v33 }
 0x2c3   :  { %9689 = vmatpush1.bf16.msra.mxu0 %v19501_v4  ;;  %10017 = vmatpush1.bf16.msra.mxu1 %v19504_v5  ;;  %v19566_v4 = vld [vmem:[%s27950_s1 + $0x140c] ss:$44 sps:$4 sm:$0xff]  }
 0x2c4   :  { %9690 = vmatprep.subr.bf16.mxu0 %v19509_v6  ;;  %10018 = vmatprep.subr.bf16.mxu1 %v19512_v7  ;;  %v19561_v5 = vld [vmem:[%s27950_s1 + $0x1400] ss:$44 sps:$4 sm:$0xff]   ;;  %v19564_v6 = vld [vmem:[%s27950_s1 + $0x1408] ss:$44 sps:$4 sm:$0xff]  }
 0x2c5   :  { %9720 = vmatprep.mubr.bf16.mxu0 %v22092_v15  ;;  %10048 = vmatprep.mubr.bf16.mxu1 %v22092_v15  ;;  %v19569_v7 = vld [vmem:[%s27950_s1 + $0x145c] ss:$44 sps:$4 sm:$0xff]  }
 0x2c7   :  { %9691 = vmatpush1.bf16.msra.mxu0 %v19507_v8  ;;  %10019 = vmatpush1.bf16.msra.mxu1 %v19510_v9  ;;  %v19572_v8 = vld [vmem:[%s27950_s1 + $0x1464] ss:$44 sps:$4 sm:$0xff]  }
 0x2c8   :  { %9692 = vmatprep.subr.bf16.mxu0 %v19515_v11  ;;  %10020 = vmatprep.subr.bf16.mxu1 %v19518_v12  ;;  %v19567_v9 = vld [vmem:[%s27950_s1 + $0x1458] ss:$44 sps:$4 sm:$0xff]   ;;  %v19570_v11 = vld [vmem:[%s27950_s1 + $0x1460] ss:$44 sps:$4 sm:$0xff]  }
 0x2c9   :  { %v19575_v12 = vld [vmem:[%s27950_s1 + $0x14b4] ss:$44 sps:$4 sm:$0xff]  }
 0x2cb   :  { %9693 = vmatpush1.bf16.msra.mxu0 %v19513_v14  ;;  %10021 = vmatpush1.bf16.msra.mxu1 %v19516_v52  ;;  %v19578_v14 = vld [vmem:[%s27950_s1 + $0x14bc] ss:$44 sps:$4 sm:$0xff]  }
 0x2cc   :  { %9694 = vmatprep.subr.bf16.mxu0 %v19521_v16  ;;  %10022 = vmatprep.subr.bf16.mxu1 %v19524_v18  ;;  %v19573_v52 = vld [vmem:[%s27950_s1 + $0x14b0] ss:$44 sps:$4 sm:$0xff]   ;;  %v19576_v16 = vld [vmem:[%s27950_s1 + $0x14b8] ss:$44 sps:$4 sm:$0xff]  }
 0x2cd   :  { %v19581_v18 = vld [vmem:[%s27950_s1 + $0x150c] ss:$44 sps:$4 sm:$0xff]  }
 0x2cf   :  { %9695 = vmatpush1.bf16.msra.mxu0 %v19519_v19  ;;  %10023 = vmatpush1.bf16.msra.mxu1 %v19522_v21  ;;  %v19584_v19 = vld [vmem:[%s27950_s1 + $0x1514] ss:$44 sps:$4 sm:$0xff]  }
 0x2d0   :  { %9696 = vmatprep.subr.bf16.mxu0 %v19527_v22  ;;  %10024 = vmatprep.subr.bf16.mxu1 %v19530_v25  ;;  %v19579_v21 = vld [vmem:[%s27950_s1 + $0x1508] ss:$44 sps:$4 sm:$0xff]   ;;  %v19582_v22 = vld [vmem:[%s27950_s1 + $0x1510] ss:$44 sps:$4 sm:$0xff]  }
 0x2d1   :  { %v19587_v25 = vld [vmem:[%s27950_s1 + $0x1564] ss:$44 sps:$4 sm:$0xff]  }
 0x2d3   :  { %9697 = vmatpush1.bf16.msra.mxu0 %v19525_v26  ;;  %10025 = vmatpush1.bf16.msra.mxu1 %v19528_v28  ;;  %v19590_v26 = vld [vmem:[%s27950_s1 + $0x156c] ss:$44 sps:$4 sm:$0xff]  }
 0x2d4   :  { %9698 = vmatprep.subr.bf16.mxu0 %v19533_v29  ;;  %10026 = vmatprep.subr.bf16.mxu1 %v19536_v30  ;;  %v19585_v28 = vld [vmem:[%s27950_s1 + $0x1560] ss:$44 sps:$4 sm:$0xff]   ;;  %v19588_v29 = vld [vmem:[%s27950_s1 + $0x1568] ss:$44 sps:$4 sm:$0xff]  }
 0x2d5   :  { %v23775_v37 = vpop.f32.mrb[0].mxu0  ;;  %v23777_v38 = vpop.f32.mrb[0].mxu1  ;;  %v19593_v30 = vld [vmem:[%s27950_s1 + $0x15bc] ss:$44 sps:$4 sm:$0xff]  }
 0x2d6   :  { %v23779_v39 = vpop.f32.mrb[1].mxu0  ;;  %v23781_v41 = vpop.f32.mrb[1].mxu1 }
 0x2d7   :  { %v9234_v43 = vpop.f32.mrb[2].mxu0  ;;  %v9562_v44 = vpop.f32.mrb[2].mxu1  ;;  %9699 = vmatpush1.bf16.msra.mxu0 %v19531_v31  ;;  %10027 = vmatpush1.bf16.msra.mxu1 %v19534_v32  ;;  %v19596_v31 = vld [vmem:[%s27950_s1 + $0x15c4] ss:$44 sps:$4 sm:$0xff]  }
 0x2d8   :  { %v9235_v47 = vpop.f32.mrb[3].mxu0  ;;  %v9563_v48 = vpop.f32.mrb[3].mxu1  ;;  %9700 = vmatprep.subr.bf16.mxu0 %v19539_v35  ;;  %10028 = vmatprep.subr.bf16.mxu1 %v19542_v36  ;;  %v19591_v32 = vld [vmem:[%s27950_s1 + $0x15b8] ss:$44 sps:$4 sm:$0xff]   ;;  %v19594_v35 = vld [vmem:[%s27950_s1 + $0x15c0] ss:$44 sps:$4 sm:$0xff]  }
 0x2d9   :  { %v19599_v36 = vld [vmem:[%s27950_s1 + $0x1614] ss:$44 sps:$4 sm:$0xff]   ;;  %v19602_v43 = vld [vmem:[%s27950_s1 + $0x161c] ss:$44 sps:$4 sm:$0xff]  }
 0x2da   :  { %v19597_v44 = vld [vmem:[%s27950_s1 + $0x1610] ss:$44 sps:$4 sm:$0xff]   ;;  %v19608_v47 = vld [vmem:[%s27950_s1 + $0x1674] ss:$44 sps:$4 sm:$0xff]  }
 0x2db   :  { %9701 = vmatpush1.bf16.msra.mxu0 %v19537_v49  ;;  %10029 = vmatpush1.bf16.msra.mxu1 %v19540_v46  ;;  %v19600_v49 = vld [vmem:[%s27950_s1 + $0x1618] ss:$44 sps:$4 sm:$0xff]   ;;  %v19603_v48 = vld [vmem:[%s27950_s1 + $0x1668] ss:$44 sps:$4 sm:$0xff]  }
 0x2dc   :  { %9702 = vmatprep.subr.bf16.mxu0 %v19545_v50  ;;  %10030 = vmatprep.subr.bf16.mxu1 %v19548_v53  ;;  %v19605_v46 = vld [vmem:[%s27950_s1 + $0x166c] ss:$44 sps:$4 sm:$0xff]   ;;  %v19606_v50 = vld [vmem:[%s27950_s1 + $0x1670] ss:$44 sps:$4 sm:$0xff]  }
 0x2dd   :  { %v19611_v53 = vld [vmem:[%s27950_s1 + $0x16c4] ss:$44 sps:$4 sm:$0xff]  }
 0x2df   :  { %9703 = vmatpush1.bf16.msra.mxu0 %v19543_v54  ;;  %10031 = vmatpush1.bf16.msra.mxu1 %v19546_v55  ;;  %v19614_v54 = vld [vmem:[%s27950_s1 + $0x16cc] ss:$44 sps:$4 sm:$0xff]  }
 0x2e0   :  { %9704 = vmatprep.subr.bf16.mxu0 %v19551_v56  ;;  %10032 = vmatprep.subr.bf16.mxu1 %v19554_v57  ;;  %v19609_v55 = vld [vmem:[%s27950_s1 + $0x16c0] ss:$44 sps:$4 sm:$0xff]   ;;  %v19612_v56 = vld [vmem:[%s27950_s1 + $0x16c8] ss:$44 sps:$4 sm:$0xff]  }
 0x2e1   :  { %v19617_v57 = vld [vmem:[%s27950_s1 + $0x171c] ss:$44 sps:$4 sm:$0xff]  }
 0x2e3   :  { %9705 = vmatpush1.bf16.msra.mxu0 %v19549_v58  ;;  %10033 = vmatpush1.bf16.msra.mxu1 %v19552_v59  ;;  %v19620_v58 = vld [vmem:[%s27950_s1 + $0x1724] ss:$44 sps:$4 sm:$0xff]  }
 0x2e4   :  { %9706 = vmatprep.subr.bf16.mxu0 %v19557_v61  ;;  %10034 = vmatprep.subr.bf16.mxu1 %v19560_v0  ;;  %v19615_v59 = vld [vmem:[%s27950_s1 + $0x1718] ss:$44 sps:$4 sm:$0xff]   ;;  %v19618_v61 = vld [vmem:[%s27950_s1 + $0x1720] ss:$44 sps:$4 sm:$0xff]  }
 0x2e5   :  { %v19623_v0 = vld [vmem:[%s27950_s1 + $0x1774] ss:$44 sps:$4 sm:$0xff]  }
 0x2e7   :  { %9707 = vmatpush1.bf16.msra.mxu0 %v19555_v1  ;;  %10035 = vmatpush1.bf16.msra.mxu1 %v19558_v34  ;;  %v19626_v1 = vld [vmem:[%s27950_s1 + $0x177c] ss:$44 sps:$4 sm:$0xff]  }
 0x2e8   :  { %9708 = vmatprep.subr.bf16.mxu0 %v19563_v3  ;;  %10036 = vmatprep.subr.bf16.mxu1 %v19566_v4  ;;  %v19621_v34 = vld [vmem:[%s27950_s1 + $0x1770] ss:$44 sps:$4 sm:$0xff]   ;;  %v19624_v3 = vld [vmem:[%s27950_s1 + $0x1778] ss:$44 sps:$4 sm:$0xff]  }
 0x2e9   :  { %v19629_v4 = vld [vmem:[%s27950_s1 + $0x17cc] ss:$44 sps:$4 sm:$0xff]  }
 0x2eb   :  { %9709 = vmatpush1.bf16.msra.mxu0 %v19561_v5  ;;  %10037 = vmatpush1.bf16.msra.mxu1 %v19564_v6  ;;  %v19632_v5 = vld [vmem:[%s27950_s1 + $0x17d4] ss:$44 sps:$4 sm:$0xff]  }
 0x2ec   :  { %9710 = vmatprep.subr.bf16.mxu0 %v19569_v7  ;;  %10038 = vmatprep.subr.bf16.mxu1 %v19572_v8  ;;  %v19627_v6 = vld [vmem:[%s27950_s1 + $0x17c8] ss:$44 sps:$4 sm:$0xff]   ;;  %v19630_v7 = vld [vmem:[%s27950_s1 + $0x17d0] ss:$44 sps:$4 sm:$0xff]  }
 0x2ed   :  { %v19635_v8 = vld [vmem:[%s27950_s1 + $0x1824] ss:$44 sps:$4 sm:$0xff]  }
 0x2ef   :  { %9711 = vmatpush1.bf16.msra.mxu0 %v19567_v9  ;;  %10039 = vmatpush1.bf16.msra.mxu1 %v19570_v11  ;;  %v19638_v9 = vld [vmem:[%s27950_s1 + $0x182c] ss:$44 sps:$4 sm:$0xff]  }
 0x2f0   :  { %9712 = vmatprep.subr.bf16.mxu0 %v19575_v12  ;;  %10040 = vmatprep.subr.bf16.mxu1 %v19578_v14  ;;  %v19633_v11 = vld [vmem:[%s27950_s1 + $0x1820] ss:$44 sps:$4 sm:$0xff]   ;;  %v19636_v12 = vld [vmem:[%s27950_s1 + $0x1828] ss:$44 sps:$4 sm:$0xff]  }
 0x2f1   :  { %v19641_v14 = vld [vmem:[%s27950_s1 + $0x187c] ss:$44 sps:$4 sm:$0xff]  }
 0x2f3   :  { %9713 = vmatpush1.bf16.msra.mxu0 %v19573_v52  ;;  %10041 = vmatpush1.bf16.msra.mxu1 %v19576_v16  ;;  %v19644_v52 = vld [vmem:[%s27950_s1 + $0x1884] ss:$44 sps:$4 sm:$0xff]  }
 0x2f4   :  { %9714 = vmatprep.subr.bf16.mxu0 %v19581_v18  ;;  %10042 = vmatprep.subr.bf16.mxu1 %v19584_v19  ;;  %v19639_v16 = vld [vmem:[%s27950_s1 + $0x1878] ss:$44 sps:$4 sm:$0xff]   ;;  %v19642_v18 = vld [vmem:[%s27950_s1 + $0x1880] ss:$44 sps:$4 sm:$0xff]  }
 0x2f5   :  { %v19647_v19 = vld [vmem:[%s27950_s1 + $0x18d4] ss:$44 sps:$4 sm:$0xff]  }
 0x2f7   :  { %9715 = vmatpush1.bf16.msra.mxu0 %v19579_v21  ;;  %10043 = vmatpush1.bf16.msra.mxu1 %v19582_v22  ;;  %v19650_v21 = vld [vmem:[%s27950_s1 + $0x18dc] ss:$44 sps:$4 sm:$0xff]  }
 0x2f8   :  { %9716 = vmatprep.subr.bf16.mxu0 %v19587_v25  ;;  %10044 = vmatprep.subr.bf16.mxu1 %v19590_v26  ;;  %v19645_v22 = vld [vmem:[%s27950_s1 + $0x18d0] ss:$44 sps:$4 sm:$0xff]   ;;  %v19648_v25 = vld [vmem:[%s27950_s1 + $0x18d8] ss:$44 sps:$4 sm:$0xff]  }
 0x2f9   :  { %v19653_v26 = vld [vmem:[%s27950_s1 + $0x192c] ss:$44 sps:$4 sm:$0xff]  }
 0x2fb   :  { %9717 = vmatpush1.bf16.msra.mxu0 %v19585_v28  ;;  %10045 = vmatpush1.bf16.msra.mxu1 %v19588_v29  ;;  %v19656_v28 = vld [vmem:[%s27950_s1 + $0x1934] ss:$44 sps:$4 sm:$0xff]  }
 0x2fc   :  { %9718 = vmatprep.subr.bf16.mxu0 %v19593_v30  ;;  %10046 = vmatprep.subr.bf16.mxu1 %v19596_v31  ;;  %v19651_v29 = vld [vmem:[%s27950_s1 + $0x1928] ss:$44 sps:$4 sm:$0xff]   ;;  %v19654_v30 = vld [vmem:[%s27950_s1 + $0x1930] ss:$44 sps:$4 sm:$0xff]  }
 0x2fd   :  { %v19659_v31 = vld [vmem:[%s27950_s1 + $0x1984] ss:$44 sps:$4 sm:$0xff]  }
 0x2ff   :  { %9719 = vmatpush1.bf16.msra.mxu0 %v19591_v32  ;;  %10047 = vmatpush1.bf16.msra.mxu1 %v19594_v35  ;;  %v19662_v32 = vld [vmem:[%s27950_s1 + $0x198c] ss:$44 sps:$4 sm:$0xff]  }
 0x300   :  { %9729 = vmatprep.subr.bf16.mxu0 %v19599_v36  ;;  %10057 = vmatprep.subr.bf16.mxu1 %v19602_v43  ;;  %v19657_v35 = vld [vmem:[%s27950_s1 + $0x1980] ss:$44 sps:$4 sm:$0xff]   ;;  %v19660_v36 = vld [vmem:[%s27950_s1 + $0x1988] ss:$44 sps:$4 sm:$0xff]  }
 0x301   :  { %v19665_v43 = vld [vmem:[%s27950_s1 + $0x19dc] ss:$44 sps:$4 sm:$0xff]  }
 0x302   :  { %9721 = vmatmul.mubr.bf16.vlgmr.msra.gmra.mrb[4].mxu0 %v22287_v45  ;;  %10049 = vmatmul.mubr.bf16.vlgmr.msra.gmra.mrb[4].mxu1 %v22287_v45 }
 0x303   :  { %9730 = vmatpush1.bf16.msra.mxu0 %v19597_v44  ;;  %10058 = vmatpush1.bf16.msra.mxu1 %v19600_v49  ;;  %v19668_v44 = vld [vmem:[%s27950_s1 + $0x19e4] ss:$44 sps:$4 sm:$0xff]  }
 0x304   :  { %9731 = vmatprep.subr.bf16.mxu0 %v19605_v46  ;;  %10059 = vmatprep.subr.bf16.mxu1 %v19608_v47  ;;  %v19663_v49 = vld [vmem:[%s27950_s1 + $0x19d8] ss:$44 sps:$4 sm:$0xff]   ;;  %v19666_v46 = vld [vmem:[%s27950_s1 + $0x19e0] ss:$44 sps:$4 sm:$0xff]  }
 0x305   :  { %9761 = vmatprep.mubr.bf16.mxu0 %v22302_v51  ;;  %10089 = vmatprep.mubr.bf16.mxu1 %v22302_v51  ;;  %v19671_v47 = vld [vmem:[%s27950_s1 + $0x1a34] ss:$44 sps:$4 sm:$0xff]  }
 0x307   :  { %9732 = vmatpush1.bf16.msra.mxu0 %v19603_v48  ;;  %10060 = vmatpush1.bf16.msra.mxu1 %v19606_v50  ;;  %v19674_v48 = vld [vmem:[%s27950_s1 + $0x1a3c] ss:$44 sps:$4 sm:$0xff]  }
 0x308   :  { %9733 = vmatprep.subr.bf16.mxu0 %v19611_v53  ;;  %10061 = vmatprep.subr.bf16.mxu1 %v19614_v54  ;;  %v19669_v50 = vld [vmem:[%s27950_s1 + $0x1a30] ss:$44 sps:$4 sm:$0xff]   ;;  %v19672_v53 = vld [vmem:[%s27950_s1 + $0x1a38] ss:$44 sps:$4 sm:$0xff]  }
 0x309   :  { %v19677_v54 = vld [vmem:[%s27950_s1 + $0x1a8c] ss:$44 sps:$4 sm:$0xff]  }
 0x30b   :  { %9734 = vmatpush1.bf16.msra.mxu0 %v19609_v55  ;;  %10062 = vmatpush1.bf16.msra.mxu1 %v19612_v56  ;;  %v19680_v55 = vld [vmem:[%s27950_s1 + $0x1a94] ss:$44 sps:$4 sm:$0xff]  }
 0x30c   :  { %9735 = vmatprep.subr.bf16.mxu0 %v19617_v57  ;;  %10063 = vmatprep.subr.bf16.mxu1 %v19620_v58  ;;  %v19675_v56 = vld [vmem:[%s27950_s1 + $0x1a88] ss:$44 sps:$4 sm:$0xff]   ;;  %v19678_v57 = vld [vmem:[%s27950_s1 + $0x1a90] ss:$44 sps:$4 sm:$0xff]  }
 0x30d   :  { %v19683_v58 = vld [vmem:[%s27950_s1 + $0x1ae4] ss:$44 sps:$4 sm:$0xff]  }
 0x30f   :  { %9736 = vmatpush1.bf16.msra.mxu0 %v19615_v59  ;;  %10064 = vmatpush1.bf16.msra.mxu1 %v19618_v61  ;;  %v19686_v59 = vld [vmem:[%s27950_s1 + $0x1aec] ss:$44 sps:$4 sm:$0xff]  }
 0x310   :  { %9737 = vmatprep.subr.bf16.mxu0 %v19623_v0  ;;  %10065 = vmatprep.subr.bf16.mxu1 %v19626_v1  ;;  %v19681_v61 = vld [vmem:[%s27950_s1 + $0x1ae0] ss:$44 sps:$4 sm:$0xff]   ;;  %v19684_v0 = vld [vmem:[%s27950_s1 + $0x1ae8] ss:$44 sps:$4 sm:$0xff]  }
 0x311   :  { %v19689_v1 = vld [vmem:[%s27950_s1 + $0x1b3c] ss:$44 sps:$4 sm:$0xff]  }
 0x313   :  { %9738 = vmatpush1.bf16.msra.mxu0 %v19621_v34  ;;  %10066 = vmatpush1.bf16.msra.mxu1 %v19624_v3  ;;  %v19692_v34 = vld [vmem:[%s27950_s1 + $0x1b44] ss:$44 sps:$4 sm:$0xff]  }
 0x314   :  { %9739 = vmatprep.subr.bf16.mxu0 %v19629_v4  ;;  %10067 = vmatprep.subr.bf16.mxu1 %v19632_v5  ;;  %v19687_v3 = vld [vmem:[%s27950_s1 + $0x1b38] ss:$44 sps:$4 sm:$0xff]   ;;  %v19690_v4 = vld [vmem:[%s27950_s1 + $0x1b40] ss:$44 sps:$4 sm:$0xff]  }
 0x315   :  { %v19695_v5 = vld [vmem:[%s27950_s1 + $0x1b94] ss:$44 sps:$4 sm:$0xff]  }
 0x317   :  { %9740 = vmatpush1.bf16.msra.mxu0 %v19627_v6  ;;  %10068 = vmatpush1.bf16.msra.mxu1 %v19630_v7  ;;  %v19698_v6 = vld [vmem:[%s27950_s1 + $0x1b9c] ss:$44 sps:$4 sm:$0xff]  }
 0x318   :  { %9741 = vmatprep.subr.bf16.mxu0 %v19635_v8  ;;  %10069 = vmatprep.subr.bf16.mxu1 %v19638_v9  ;;  %v19693_v7 = vld [vmem:[%s27950_s1 + $0x1b90] ss:$44 sps:$4 sm:$0xff]   ;;  %v19696_v8 = vld [vmem:[%s27950_s1 + $0x1b98] ss:$44 sps:$4 sm:$0xff]  }
 0x319   :  { %v19701_v9 = vld [vmem:[%s27950_s1 + $0x1bec] ss:$44 sps:$4 sm:$0xff]  }
 0x31b   :  { %9742 = vmatpush1.bf16.msra.mxu0 %v19633_v11  ;;  %10070 = vmatpush1.bf16.msra.mxu1 %v19636_v12  ;;  %v19704_v11 = vld [vmem:[%s27950_s1 + $0x1bf4] ss:$44 sps:$4 sm:$0xff]  }
 0x31c   :  { %9743 = vmatprep.subr.bf16.mxu0 %v19641_v14  ;;  %10071 = vmatprep.subr.bf16.mxu1 %v19644_v52  ;;  %v19699_v12 = vld [vmem:[%s27950_s1 + $0x1be8] ss:$44 sps:$4 sm:$0xff]   ;;  %v19702_v14 = vld [vmem:[%s27950_s1 + $0x1bf0] ss:$44 sps:$4 sm:$0xff]  }
 0x31d   :  { %v19707_v52 = vld [vmem:[%s27950_s1 + $0x1c44] ss:$44 sps:$4 sm:$0xff]  }
 0x31f   :  { %9744 = vmatpush1.bf16.msra.mxu0 %v19639_v16  ;;  %10072 = vmatpush1.bf16.msra.mxu1 %v19642_v18  ;;  %v19710_v16 = vld [vmem:[%s27950_s1 + $0x1c4c] ss:$44 sps:$4 sm:$0xff]  }
 0x320   :  { %9745 = vmatprep.subr.bf16.mxu0 %v19647_v19  ;;  %10073 = vmatprep.subr.bf16.mxu1 %v19650_v21  ;;  %v19705_v18 = vld [vmem:[%s27950_s1 + $0x1c40] ss:$44 sps:$4 sm:$0xff]   ;;  %v19708_v19 = vld [vmem:[%s27950_s1 + $0x1c48] ss:$44 sps:$4 sm:$0xff]  }
 0x321   :  { %v19713_v21 = vld [vmem:[%s27950_s1 + $0x1c9c] ss:$44 sps:$4 sm:$0xff]  }
 0x323   :  { %9746 = vmatpush1.bf16.msra.mxu0 %v19645_v22  ;;  %10074 = vmatpush1.bf16.msra.mxu1 %v19648_v25  ;;  %v19716_v22 = vld [vmem:[%s27950_s1 + $0x1ca4] ss:$44 sps:$4 sm:$0xff]  }
 0x324   :  { %9747 = vmatprep.subr.bf16.mxu0 %v19653_v26  ;;  %10075 = vmatprep.subr.bf16.mxu1 %v19656_v28  ;;  %v19711_v25 = vld [vmem:[%s27950_s1 + $0x1c98] ss:$44 sps:$4 sm:$0xff]   ;;  %v19714_v26 = vld [vmem:[%s27950_s1 + $0x1ca0] ss:$44 sps:$4 sm:$0xff]  }
 0x325   :  { %v19719_v28 = vld [vmem:[%s27950_s1 + $0x1cf4] ss:$44 sps:$4 sm:$0xff]  }
 0x327   :  { %9748 = vmatpush1.bf16.msra.mxu0 %v19651_v29  ;;  %10076 = vmatpush1.bf16.msra.mxu1 %v19654_v30  ;;  %v19722_v29 = vld [vmem:[%s27950_s1 + $0x1cfc] ss:$44 sps:$4 sm:$0xff]  }
 0x328   :  { %9749 = vmatprep.subr.bf16.mxu0 %v19659_v31  ;;  %10077 = vmatprep.subr.bf16.mxu1 %v19662_v32  ;;  %v19717_v30 = vld [vmem:[%s27950_s1 + $0x1cf0] ss:$44 sps:$4 sm:$0xff]   ;;  %v19720_v31 = vld [vmem:[%s27950_s1 + $0x1cf8] ss:$44 sps:$4 sm:$0xff]  }
 0x329   :  { %v19725_v32 = vld [vmem:[%s27950_s1 + $0x1d4c] ss:$44 sps:$4 sm:$0xff]  }
 0x32b   :  { %9750 = vmatpush1.bf16.msra.mxu0 %v19657_v35  ;;  %10078 = vmatpush1.bf16.msra.mxu1 %v19660_v36  ;;  %v19728_v35 = vld [vmem:[%s27950_s1 + $0x1d54] ss:$44 sps:$4 sm:$0xff]  }
 0x32c   :  { %9751 = vmatprep.subr.bf16.mxu0 %v19665_v43  ;;  %10079 = vmatprep.subr.bf16.mxu1 %v19668_v44  ;;  %v19723_v36 = vld [vmem:[%s27950_s1 + $0x1d48] ss:$44 sps:$4 sm:$0xff]   ;;  %v19726_v43 = vld [vmem:[%s27950_s1 + $0x1d50] ss:$44 sps:$4 sm:$0xff]  }
 0x32d   :  { %v19731_v44 = vld [vmem:[%s27950_s1 + $0x1da4] ss:$44 sps:$4 sm:$0xff]  }
 0x32f   :  { %9752 = vmatpush1.bf16.msra.mxu0 %v19663_v49  ;;  %10080 = vmatpush1.bf16.msra.mxu1 %v19666_v46  ;;  %v19734_v49 = vld [vmem:[%s27950_s1 + $0x1dac] ss:$44 sps:$4 sm:$0xff]  }
 0x330   :  { %9753 = vmatprep.subr.bf16.mxu0 %v19671_v47  ;;  %10081 = vmatprep.subr.bf16.mxu1 %v19674_v48  ;;  %v19729_v46 = vld [vmem:[%s27950_s1 + $0x1da0] ss:$44 sps:$4 sm:$0xff]   ;;  %v19732_v47 = vld [vmem:[%s27950_s1 + $0x1da8] ss:$44 sps:$4 sm:$0xff]  }
 0x331   :  { %v19737_v48 = vld [vmem:[%s27950_s1 + $0x1dfc] ss:$44 sps:$4 sm:$0xff]  }
 0x333   :  { %9754 = vmatpush1.bf16.msra.mxu0 %v19669_v50  ;;  %10082 = vmatpush1.bf16.msra.mxu1 %v19672_v53  ;;  %v19740_v50 = vld [vmem:[%s27950_s1 + $0x1e04] ss:$44 sps:$4 sm:$0xff]  }
 0x334   :  { %9755 = vmatprep.subr.bf16.mxu0 %v19677_v54  ;;  %10083 = vmatprep.subr.bf16.mxu1 %v19680_v55  ;;  %v19735_v53 = vld [vmem:[%s27950_s1 + $0x1df8] ss:$44 sps:$4 sm:$0xff]   ;;  %v19738_v54 = vld [vmem:[%s27950_s1 + $0x1e00] ss:$44 sps:$4 sm:$0xff]  }
 0x335   :  { %v19743_v55 = vld [vmem:[%s27950_s1 + $0x1e54] ss:$44 sps:$4 sm:$0xff]  }
 0x337   :  { %9756 = vmatpush1.bf16.msra.mxu0 %v19675_v56  ;;  %10084 = vmatpush1.bf16.msra.mxu1 %v19678_v57  ;;  %v19746_v56 = vld [vmem:[%s27950_s1 + $0x1e5c] ss:$44 sps:$4 sm:$0xff]  }
 0x338   :  { %9757 = vmatprep.subr.bf16.mxu0 %v19683_v58  ;;  %10085 = vmatprep.subr.bf16.mxu1 %v19686_v59  ;;  %v19741_v57 = vld [vmem:[%s27950_s1 + $0x1e50] ss:$44 sps:$4 sm:$0xff]   ;;  %v19744_v58 = vld [vmem:[%s27950_s1 + $0x1e58] ss:$44 sps:$4 sm:$0xff]  }
 0x339   :  { %v19749_v59 = vld [vmem:[%s27950_s1 + $0x1eac] ss:$44 sps:$4 sm:$0xff]  }
 0x33b   :  { %9758 = vmatpush1.bf16.msra.mxu0 %v19681_v61  ;;  %10086 = vmatpush1.bf16.msra.mxu1 %v19684_v0  ;;  %v19752_v61 = vld [vmem:[%s27950_s1 + $0x1eb4] ss:$44 sps:$4 sm:$0xff]  }
 0x33c   :  { %9759 = vmatprep.subr.bf16.mxu0 %v19689_v1  ;;  %10087 = vmatprep.subr.bf16.mxu1 %v19692_v34  ;;  %v19747_v0 = vld [vmem:[%s27950_s1 + $0x1ea8] ss:$44 sps:$4 sm:$0xff]   ;;  %v19750_v1 = vld [vmem:[%s27950_s1 + $0x1eb0] ss:$44 sps:$4 sm:$0xff]  }
 0x33d   :  { %v19755_v34 = vld [vmem:[%s27950_s1 + $0x1f04] ss:$44 sps:$4 sm:$0xff]  }
 0x33f   :  { %9760 = vmatpush1.bf16.msra.mxu0 %v19687_v3  ;;  %10088 = vmatpush1.bf16.msra.mxu1 %v19690_v4  ;;  %v19758_v3 = vld [vmem:[%s27950_s1 + $0x1f0c] ss:$44 sps:$4 sm:$0xff]  }
 0x340   :  { %9770 = vmatprep.subr.bf16.mxu0 %v19695_v5  ;;  %10098 = vmatprep.subr.bf16.mxu1 %v19698_v6  ;;  %v19753_v4 = vld [vmem:[%s27950_s1 + $0x1f00] ss:$44 sps:$4 sm:$0xff]   ;;  %v19756_v5 = vld [vmem:[%s27950_s1 + $0x1f08] ss:$44 sps:$4 sm:$0xff]  }
 0x341   :  { %v19761_v6 = vld [vmem:[%s27950_s1 + $0x1f5c] ss:$44 sps:$4 sm:$0xff]  }
 0x342   :  { %9762 = vmatmul.mubr.bf16.vlgmr.msra.gmra.mrb[4].mxu0 %v22490_v62  ;;  %10090 = vmatmul.mubr.bf16.vlgmr.msra.gmra.mrb[4].mxu1 %v22490_v62 }
 0x343   :  { %9771 = vmatpush1.bf16.msra.mxu0 %v19693_v7  ;;  %10099 = vmatpush1.bf16.msra.mxu1 %v19696_v8  ;;  %v19764_v7 = vld [vmem:[%s27950_s1 + $0x1f64] ss:$44 sps:$4 sm:$0xff]  }
 0x344   :  { %9772 = vmatprep.subr.bf16.mxu0 %v19701_v9  ;;  %10100 = vmatprep.subr.bf16.mxu1 %v19704_v11  ;;  %v19759_v8 = vld [vmem:[%s27950_s1 + $0x1f58] ss:$44 sps:$4 sm:$0xff]   ;;  %v19762_v9 = vld [vmem:[%s27950_s1 + $0x1f60] ss:$44 sps:$4 sm:$0xff]  }
 0x345   :  { %9802 = vmatprep.mubr.bf16.mxu0 %v22506_v2  ;;  %10130 = vmatprep.mubr.bf16.mxu1 %v22506_v2  ;;  %v19767_v11 = vld [vmem:[%s27950_s1 + $0x1fb4] ss:$44 sps:$4 sm:$0xff]  }
 0x347   :  { %9773 = vmatpush1.bf16.msra.mxu0 %v19699_v12  ;;  %10101 = vmatpush1.bf16.msra.mxu1 %v19702_v14  ;;  %v19770_v12 = vld [vmem:[%s27950_s1 + $0x1fbc] ss:$44 sps:$4 sm:$0xff]  }
 0x348   :  { %9774 = vmatprep.subr.bf16.mxu0 %v19707_v52  ;;  %10102 = vmatprep.subr.bf16.mxu1 %v19710_v16  ;;  %v19765_v14 = vld [vmem:[%s27950_s1 + $0x1fb0] ss:$44 sps:$4 sm:$0xff]   ;;  %v19768_v52 = vld [vmem:[%s27950_s1 + $0x1fb8] ss:$44 sps:$4 sm:$0xff]  }
 0x349   :  { %v19773_v16 = vld [vmem:[%s27950_s1 + $0x200c] ss:$44 sps:$4 sm:$0xff]  }
 0x34b   :  { %9775 = vmatpush1.bf16.msra.mxu0 %v19705_v18  ;;  %10103 = vmatpush1.bf16.msra.mxu1 %v19708_v19  ;;  %v19776_v18 = vld [vmem:[%s27950_s1 + $0x2014] ss:$44 sps:$4 sm:$0xff]  }
 0x34c   :  { %9776 = vmatprep.subr.bf16.mxu0 %v19713_v21  ;;  %10104 = vmatprep.subr.bf16.mxu1 %v19716_v22  ;;  %v19771_v19 = vld [vmem:[%s27950_s1 + $0x2008] ss:$44 sps:$4 sm:$0xff]   ;;  %v19774_v21 = vld [vmem:[%s27950_s1 + $0x2010] ss:$44 sps:$4 sm:$0xff]  }
 0x34d   :  { %v19779_v22 = vld [vmem:[%s27950_s1 + $0x2064] ss:$44 sps:$4 sm:$0xff]  }
 0x34f   :  { %9777 = vmatpush1.bf16.msra.mxu0 %v19711_v25  ;;  %10105 = vmatpush1.bf16.msra.mxu1 %v19714_v26  ;;  %v19782_v25 = vld [vmem:[%s27950_s1 + $0x206c] ss:$44 sps:$4 sm:$0xff]  }
 0x350   :  { %9778 = vmatprep.subr.bf16.mxu0 %v19719_v28  ;;  %10106 = vmatprep.subr.bf16.mxu1 %v19722_v29  ;;  %v19777_v26 = vld [vmem:[%s27950_s1 + $0x2060] ss:$44 sps:$4 sm:$0xff]   ;;  %v19780_v28 = vld [vmem:[%s27950_s1 + $0x2068] ss:$44 sps:$4 sm:$0xff]  }
 0x351   :  { %v19785_v29 = vld [vmem:[%s27950_s1 + $0x20bc] ss:$44 sps:$4 sm:$0xff]  }
 0x353   :  { %9779 = vmatpush1.bf16.msra.mxu0 %v19717_v30  ;;  %10107 = vmatpush1.bf16.msra.mxu1 %v19720_v31  ;;  %v19788_v30 = vld [vmem:[%s27950_s1 + $0x20c4] ss:$44 sps:$4 sm:$0xff]  }
 0x354   :  { %9780 = vmatprep.subr.bf16.mxu0 %v19725_v32  ;;  %10108 = vmatprep.subr.bf16.mxu1 %v19728_v35  ;;  %v19783_v31 = vld [vmem:[%s27950_s1 + $0x20b8] ss:$44 sps:$4 sm:$0xff]   ;;  %v19786_v32 = vld [vmem:[%s27950_s1 + $0x20c0] ss:$44 sps:$4 sm:$0xff]  }
 0x355   :  { %v19791_v35 = vld [vmem:[%s27950_s1 + $0x2114] ss:$44 sps:$4 sm:$0xff]  }
 0x357   :  { %9781 = vmatpush1.bf16.msra.mxu0 %v19723_v36  ;;  %10109 = vmatpush1.bf16.msra.mxu1 %v19726_v43  ;;  %v19794_v36 = vld [vmem:[%s27950_s1 + $0x211c] ss:$44 sps:$4 sm:$0xff]  }
 0x358   :  { %9782 = vmatprep.subr.bf16.mxu0 %v19731_v44  ;;  %10110 = vmatprep.subr.bf16.mxu1 %v19734_v49  ;;  %v19789_v43 = vld [vmem:[%s27950_s1 + $0x2110] ss:$44 sps:$4 sm:$0xff]   ;;  %v19792_v44 = vld [vmem:[%s27950_s1 + $0x2118] ss:$44 sps:$4 sm:$0xff]  }
 0x359   :  { %v19797_v49 = vld [vmem:[%s27950_s1 + $0x216c] ss:$44 sps:$4 sm:$0xff]  }
 0x35b   :  { %9783 = vmatpush1.bf16.msra.mxu0 %v19729_v46  ;;  %10111 = vmatpush1.bf16.msra.mxu1 %v19732_v47  ;;  %v19800_v46 = vld [vmem:[%s27950_s1 + $0x2174] ss:$44 sps:$4 sm:$0xff]  }
 0x35c   :  { %9784 = vmatprep.subr.bf16.mxu0 %v19737_v48  ;;  %10112 = vmatprep.subr.bf16.mxu1 %v19740_v50  ;;  %v19795_v47 = vld [vmem:[%s27950_s1 + $0x2168] ss:$44 sps:$4 sm:$0xff]   ;;  %v19798_v48 = vld [vmem:[%s27950_s1 + $0x2170] ss:$44 sps:$4 sm:$0xff]  }
 0x35d   :  { %v19803_v50 = vld [vmem:[%s27950_s1 + $0x21c4] ss:$44 sps:$4 sm:$0xff]  }
 0x35f   :  { %9785 = vmatpush1.bf16.msra.mxu0 %v19735_v53  ;;  %10113 = vmatpush1.bf16.msra.mxu1 %v19738_v54  ;;  %v19806_v53 = vld [vmem:[%s27950_s1 + $0x21cc] ss:$44 sps:$4 sm:$0xff]  }
 0x360   :  { %9786 = vmatprep.subr.bf16.mxu0 %v19743_v55  ;;  %10114 = vmatprep.subr.bf16.mxu1 %v19746_v56  ;;  %v19801_v54 = vld [vmem:[%s27950_s1 + $0x21c0] ss:$44 sps:$4 sm:$0xff]   ;;  %v19804_v55 = vld [vmem:[%s27950_s1 + $0x21c8] ss:$44 sps:$4 sm:$0xff]  }
 0x361   :  { %v19809_v56 = vld [vmem:[%s27950_s1 + $0x221c] ss:$44 sps:$4 sm:$0xff]  }
 0x363   :  { %9787 = vmatpush1.bf16.msra.mxu0 %v19741_v57  ;;  %10115 = vmatpush1.bf16.msra.mxu1 %v19744_v58  ;;  %v19812_v57 = vld [vmem:[%s27950_s1 + $0x2224] ss:$44 sps:$4 sm:$0xff]  }
 0x364   :  { %9788 = vmatprep.subr.bf16.mxu0 %v19749_v59  ;;  %10116 = vmatprep.subr.bf16.mxu1 %v19752_v61  ;;  %v19807_v58 = vld [vmem:[%s27950_s1 + $0x2218] ss:$44 sps:$4 sm:$0xff]   ;;  %v19810_v59 = vld [vmem:[%s27950_s1 + $0x2220] ss:$44 sps:$4 sm:$0xff]  }
 0x365   :  { %v19815_v61 = vld [vmem:[%s27950_s1 + $0x2274] ss:$44 sps:$4 sm:$0xff]  }
 0x367   :  { %9789 = vmatpush1.bf16.msra.mxu0 %v19747_v0  ;;  %10117 = vmatpush1.bf16.msra.mxu1 %v19750_v1  ;;  %v19818_v0 = vld [vmem:[%s27950_s1 + $0x227c] ss:$44 sps:$4 sm:$0xff]  }
 0x368   :  { %9790 = vmatprep.subr.bf16.mxu0 %v19755_v34  ;;  %10118 = vmatprep.subr.bf16.mxu1 %v19758_v3  ;;  %v19813_v1 = vld [vmem:[%s27950_s1 + $0x2270] ss:$44 sps:$4 sm:$0xff]   ;;  %v19816_v34 = vld [vmem:[%s27950_s1 + $0x2278] ss:$44 sps:$4 sm:$0xff]  }
 0x369   :  { %v19821_v3 = vld [vmem:[%s27950_s1 + $0x22cc] ss:$44 sps:$4 sm:$0xff]  }
 0x36b   :  { %9791 = vmatpush1.bf16.msra.mxu0 %v19753_v4  ;;  %10119 = vmatpush1.bf16.msra.mxu1 %v19756_v5  ;;  %v19824_v4 = vld [vmem:[%s27950_s1 + $0x22d4] ss:$44 sps:$4 sm:$0xff]  }
 0x36c   :  { %9792 = vmatprep.subr.bf16.mxu0 %v19761_v6  ;;  %10120 = vmatprep.subr.bf16.mxu1 %v19764_v7  ;;  %v19819_v5 = vld [vmem:[%s27950_s1 + $0x22c8] ss:$44 sps:$4 sm:$0xff]   ;;  %v19822_v6 = vld [vmem:[%s27950_s1 + $0x22d0] ss:$44 sps:$4 sm:$0xff]  }
 0x36d   :  { %v19827_v7 = vld [vmem:[%s27950_s1 + $0x2324] ss:$44 sps:$4 sm:$0xff]  }
 0x36f   :  { %9793 = vmatpush1.bf16.msra.mxu0 %v19759_v8  ;;  %10121 = vmatpush1.bf16.msra.mxu1 %v19762_v9  ;;  %v19830_v8 = vld [vmem:[%s27950_s1 + $0x232c] ss:$44 sps:$4 sm:$0xff]  }
 0x370   :  { %9794 = vmatprep.subr.bf16.mxu0 %v19767_v11  ;;  %10122 = vmatprep.subr.bf16.mxu1 %v19770_v12  ;;  %v19825_v9 = vld [vmem:[%s27950_s1 + $0x2320] ss:$44 sps:$4 sm:$0xff]   ;;  %v19828_v11 = vld [vmem:[%s27950_s1 + $0x2328] ss:$44 sps:$4 sm:$0xff]  }
 0x371   :  { %v19833_v12 = vld [vmem:[%s27950_s1 + $0x237c] ss:$44 sps:$4 sm:$0xff]  }
 0x373   :  { %9795 = vmatpush1.bf16.msra.mxu0 %v19765_v14  ;;  %10123 = vmatpush1.bf16.msra.mxu1 %v19768_v52  ;;  %v19836_v14 = vld [vmem:[%s27950_s1 + $0x2384] ss:$44 sps:$4 sm:$0xff]  }
 0x374   :  { %9796 = vmatprep.subr.bf16.mxu0 %v19773_v16  ;;  %10124 = vmatprep.subr.bf16.mxu1 %v19776_v18  ;;  %v19831_v52 = vld [vmem:[%s27950_s1 + $0x2378] ss:$44 sps:$4 sm:$0xff]   ;;  %v19834_v16 = vld [vmem:[%s27950_s1 + $0x2380] ss:$44 sps:$4 sm:$0xff]  }
 0x375   :  { %v19839_v18 = vld [vmem:[%s27950_s1 + $0x23d4] ss:$44 sps:$4 sm:$0xff]  }
 0x377   :  { %9797 = vmatpush1.bf16.msra.mxu0 %v19771_v19  ;;  %10125 = vmatpush1.bf16.msra.mxu1 %v19774_v21  ;;  %v19842_v19 = vld [vmem:[%s27950_s1 + $0x23dc] ss:$44 sps:$4 sm:$0xff]  }
 0x378   :  { %9798 = vmatprep.subr.bf16.mxu0 %v19779_v22  ;;  %10126 = vmatprep.subr.bf16.mxu1 %v19782_v25  ;;  %v19837_v21 = vld [vmem:[%s27950_s1 + $0x23d0] ss:$44 sps:$4 sm:$0xff]   ;;  %v19840_v22 = vld [vmem:[%s27950_s1 + $0x23d8] ss:$44 sps:$4 sm:$0xff]  }
 0x379   :  { %v19845_v25 = vld [vmem:[%s27950_s1 + $0x242c] ss:$44 sps:$4 sm:$0xff]  }
 0x37b   :  { %9799 = vmatpush1.bf16.msra.mxu0 %v19777_v26  ;;  %10127 = vmatpush1.bf16.msra.mxu1 %v19780_v28  ;;  %v19848_v26 = vld [vmem:[%s27950_s1 + $0x2434] ss:$44 sps:$4 sm:$0xff]  }
 0x37c   :  { %9800 = vmatprep.subr.bf16.mxu0 %v19785_v29  ;;  %10128 = vmatprep.subr.bf16.mxu1 %v19788_v30  ;;  %v19843_v28 = vld [vmem:[%s27950_s1 + $0x2428] ss:$44 sps:$4 sm:$0xff]   ;;  %v19846_v29 = vld [vmem:[%s27950_s1 + $0x2430] ss:$44 sps:$4 sm:$0xff]  }
 0x37d   :  { %v19851_v30 = vld [vmem:[%s27950_s1 + $0x2484] ss:$44 sps:$4 sm:$0xff]  }
 0x37f   :  { %9801 = vmatpush1.bf16.msra.mxu0 %v19783_v31  ;;  %10129 = vmatpush1.bf16.msra.mxu1 %v19786_v32  ;;  %v19854_v31 = vld [vmem:[%s27950_s1 + $0x248c] ss:$44 sps:$4 sm:$0xff]  }
 0x380   :  { %9811 = vmatprep.subr.bf16.mxu0 %v19791_v35  ;;  %10139 = vmatprep.subr.bf16.mxu1 %v19794_v36  ;;  %v19849_v32 = vld [vmem:[%s27950_s1 + $0x2480] ss:$44 sps:$4 sm:$0xff]   ;;  %v19852_v35 = vld [vmem:[%s27950_s1 + $0x2488] ss:$44 sps:$4 sm:$0xff]  }
 0x381   :  { %v19857_v36 = vld [vmem:[%s27950_s1 + $0x24dc] ss:$44 sps:$4 sm:$0xff]  }
 0x382   :  { %9803 = vmatmul.mubr.bf16.vlgmr.msra.gmra.mrb[4].mxu0 %v22708_v20  ;;  %10131 = vmatmul.mubr.bf16.vlgmr.msra.gmra.mrb[4].mxu1 %v22708_v20 }
 0x383   :  { %9812 = vmatpush1.bf16.msra.mxu0 %v19789_v43  ;;  %10140 = vmatpush1.bf16.msra.mxu1 %v19792_v44  ;;  %v19860_v43 = vld [vmem:[%s27950_s1 + $0x24e4] ss:$44 sps:$4 sm:$0xff]  }
 0x384   :  { %9813 = vmatprep.subr.bf16.mxu0 %v19797_v49  ;;  %10141 = vmatprep.subr.bf16.mxu1 %v19800_v46  ;;  %v19855_v44 = vld [vmem:[%s27950_s1 + $0x24d8] ss:$44 sps:$4 sm:$0xff]   ;;  %v19858_v49 = vld [vmem:[%s27950_s1 + $0x24e0] ss:$44 sps:$4 sm:$0xff]  }
 0x385   :  { %9843 = vmatprep.mubr.bf16.mxu0 %v22717_v24  ;;  %10171 = vmatprep.mubr.bf16.mxu1 %v22717_v24  ;;  %v19863_v46 = vld [vmem:[%s27950_s1 + $0x2534] ss:$44 sps:$4 sm:$0xff]  }
 0x387   :  { %9814 = vmatpush1.bf16.msra.mxu0 %v19795_v47  ;;  %10142 = vmatpush1.bf16.msra.mxu1 %v19798_v48  ;;  %v19866_v47 = vld [vmem:[%s27950_s1 + $0x253c] ss:$44 sps:$4 sm:$0xff]  }
 0x388   :  { %9815 = vmatprep.subr.bf16.mxu0 %v19803_v50  ;;  %10143 = vmatprep.subr.bf16.mxu1 %v19806_v53  ;;  %v19861_v48 = vld [vmem:[%s27950_s1 + $0x2530] ss:$44 sps:$4 sm:$0xff]   ;;  %v19864_v50 = vld [vmem:[%s27950_s1 + $0x2538] ss:$44 sps:$4 sm:$0xff]  }
 0x389   :  { %v19869_v53 = vld [vmem:[%s27950_s1 + $0x258c] ss:$44 sps:$4 sm:$0xff]  }
 0x38b   :  { %9816 = vmatpush1.bf16.msra.mxu0 %v19801_v54  ;;  %10144 = vmatpush1.bf16.msra.mxu1 %v19804_v55  ;;  %v19872_v54 = vld [vmem:[%s27950_s1 + $0x2594] ss:$44 sps:$4 sm:$0xff]  }
 0x38c   :  { %9817 = vmatprep.subr.bf16.mxu0 %v19809_v56  ;;  %10145 = vmatprep.subr.bf16.mxu1 %v19812_v57  ;;  %v19867_v55 = vld [vmem:[%s27950_s1 + $0x2588] ss:$44 sps:$4 sm:$0xff]   ;;  %v19870_v56 = vld [vmem:[%s27950_s1 + $0x2590] ss:$44 sps:$4 sm:$0xff]  }
 0x38d   :  { %v19875_v57 = vld [vmem:[%s27950_s1 + $0x25e4] ss:$44 sps:$4 sm:$0xff]  }
 0x38f   :  { %9818 = vmatpush1.bf16.msra.mxu0 %v19807_v58  ;;  %10146 = vmatpush1.bf16.msra.mxu1 %v19810_v59  ;;  %v19878_v58 = vld [vmem:[%s27950_s1 + $0x25ec] ss:$44 sps:$4 sm:$0xff]  }
 0x390   :  { %9819 = vmatprep.subr.bf16.mxu0 %v19815_v61  ;;  %10147 = vmatprep.subr.bf16.mxu1 %v19818_v0  ;;  %v19873_v59 = vld [vmem:[%s27950_s1 + $0x25e0] ss:$44 sps:$4 sm:$0xff]   ;;  %v19876_v61 = vld [vmem:[%s27950_s1 + $0x25e8] ss:$44 sps:$4 sm:$0xff]  }
 0x391   :  { %v19881_v0 = vld [vmem:[%s27950_s1 + $0x263c] ss:$44 sps:$4 sm:$0xff]  }
 0x393   :  { %9820 = vmatpush1.bf16.msra.mxu0 %v19813_v1  ;;  %10148 = vmatpush1.bf16.msra.mxu1 %v19816_v34  ;;  %v19884_v1 = vld [vmem:[%s27950_s1 + $0x2644] ss:$44 sps:$4 sm:$0xff]  }
 0x394   :  { %9821 = vmatprep.subr.bf16.mxu0 %v19821_v3  ;;  %10149 = vmatprep.subr.bf16.mxu1 %v19824_v4  ;;  %v19879_v34 = vld [vmem:[%s27950_s1 + $0x2638] ss:$44 sps:$4 sm:$0xff]   ;;  %v19882_v3 = vld [vmem:[%s27950_s1 + $0x2640] ss:$44 sps:$4 sm:$0xff]  }
 0x395   :  { %v19887_v4 = vld [vmem:[%s27950_s1 + $0x2694] ss:$44 sps:$4 sm:$0xff]  }
 0x397   :  { %9822 = vmatpush1.bf16.msra.mxu0 %v19819_v5  ;;  %10150 = vmatpush1.bf16.msra.mxu1 %v19822_v6  ;;  %v19890_v5 = vld [vmem:[%s27950_s1 + $0x269c] ss:$44 sps:$4 sm:$0xff]  }
 0x398   :  { %9823 = vmatprep.subr.bf16.mxu0 %v19827_v7  ;;  %10151 = vmatprep.subr.bf16.mxu1 %v19830_v8  ;;  %v19885_v6 = vld [vmem:[%s27950_s1 + $0x2690] ss:$44 sps:$4 sm:$0xff]   ;;  %v19888_v7 = vld [vmem:[%s27950_s1 + $0x2698] ss:$44 sps:$4 sm:$0xff]  }
 0x399   :  { %v19893_v8 = vld [vmem:[%s27950_s1 + $0x26ec] ss:$44 sps:$4 sm:$0xff]  }
 0x39b   :  { %9824 = vmatpush1.bf16.msra.mxu0 %v19825_v9  ;;  %10152 = vmatpush1.bf16.msra.mxu1 %v19828_v11  ;;  %v19896_v9 = vld [vmem:[%s27950_s1 + $0x26f4] ss:$44 sps:$4 sm:$0xff]  }
 0x39c   :  { %9825 = vmatprep.subr.bf16.mxu0 %v19833_v12  ;;  %10153 = vmatprep.subr.bf16.mxu1 %v19836_v14  ;;  %v19891_v11 = vld [vmem:[%s27950_s1 + $0x26e8] ss:$44 sps:$4 sm:$0xff]   ;;  %v19894_v12 = vld [vmem:[%s27950_s1 + $0x26f0] ss:$44 sps:$4 sm:$0xff]  }
 0x39d   :  { %v19899_v14 = vld [vmem:[%s27950_s1 + $0x2744] ss:$44 sps:$4 sm:$0xff]  }
 0x39f   :  { %9826 = vmatpush1.bf16.msra.mxu0 %v19831_v52  ;;  %10154 = vmatpush1.bf16.msra.mxu1 %v19834_v16  ;;  %v19902_v52 = vld [vmem:[%s27950_s1 + $0x274c] ss:$44 sps:$4 sm:$0xff]  }
 0x3a0   :  { %9827 = vmatprep.subr.bf16.mxu0 %v19839_v18  ;;  %10155 = vmatprep.subr.bf16.mxu1 %v19842_v19  ;;  %v19897_v16 = vld [vmem:[%s27950_s1 + $0x2740] ss:$44 sps:$4 sm:$0xff]   ;;  %v19900_v18 = vld [vmem:[%s27950_s1 + $0x2748] ss:$44 sps:$4 sm:$0xff]  }
 0x3a1   :  { %v19905_v19 = vld [vmem:[%s27950_s1 + $0x279c] ss:$44 sps:$4 sm:$0xff]  }
 0x3a3   :  { %9828 = vmatpush1.bf16.msra.mxu0 %v19837_v21  ;;  %10156 = vmatpush1.bf16.msra.mxu1 %v19840_v22  ;;  %v19908_v21 = vld [vmem:[%s27950_s1 + $0x27a4] ss:$44 sps:$4 sm:$0xff]  }
 0x3a4   :  { %9829 = vmatprep.subr.bf16.mxu0 %v19845_v25  ;;  %10157 = vmatprep.subr.bf16.mxu1 %v19848_v26  ;;  %v19903_v22 = vld [vmem:[%s27950_s1 + $0x2798] ss:$44 sps:$4 sm:$0xff]   ;;  %v19906_v25 = vld [vmem:[%s27950_s1 + $0x27a0] ss:$44 sps:$4 sm:$0xff]  }
 0x3a5   :  { %v19911_v26 = vld [vmem:[%s27950_s1 + $0x27f4] ss:$44 sps:$4 sm:$0xff]  }
 0x3a7   :  { %9830 = vmatpush1.bf16.msra.mxu0 %v19843_v28  ;;  %10158 = vmatpush1.bf16.msra.mxu1 %v19846_v29  ;;  %v19914_v28 = vld [vmem:[%s27950_s1 + $0x27fc] ss:$44 sps:$4 sm:$0xff]  }
 0x3a8   :  { %9831 = vmatprep.subr.bf16.mxu0 %v19851_v30  ;;  %10159 = vmatprep.subr.bf16.mxu1 %v19854_v31  ;;  %v19909_v29 = vld [vmem:[%s27950_s1 + $0x27f0] ss:$44 sps:$4 sm:$0xff]   ;;  %v19912_v30 = vld [vmem:[%s27950_s1 + $0x27f8] ss:$44 sps:$4 sm:$0xff]  }
 0x3a9   :  { %v19917_v31 = vld [vmem:[%s27950_s1 + $0x284c] ss:$44 sps:$4 sm:$0xff]  }
 0x3ab   :  { %9832 = vmatpush1.bf16.msra.mxu0 %v19849_v32  ;;  %10160 = vmatpush1.bf16.msra.mxu1 %v19852_v35  ;;  %v19920_v32 = vld [vmem:[%s27950_s1 + $0x2854] ss:$44 sps:$4 sm:$0xff]  }
 0x3ac   :  { %9833 = vmatprep.subr.bf16.mxu0 %v19857_v36  ;;  %10161 = vmatprep.subr.bf16.mxu1 %v19860_v43  ;;  %v19915_v35 = vld [vmem:[%s27950_s1 + $0x2848] ss:$44 sps:$4 sm:$0xff]   ;;  %v19918_v36 = vld [vmem:[%s27950_s1 + $0x2850] ss:$44 sps:$4 sm:$0xff]  }
 0x3ad   :  { %v19923_v43 = vld [vmem:[%s27950_s1 + $0x28a4] ss:$44 sps:$4 sm:$0xff]  }
 0x3af   :  { %9834 = vmatpush1.bf16.msra.mxu0 %v19855_v44  ;;  %10162 = vmatpush1.bf16.msra.mxu1 %v19858_v49  ;;  %v19926_v44 = vld [vmem:[%s27950_s1 + $0x28ac] ss:$44 sps:$4 sm:$0xff]  }
 0x3b0   :  { %9835 = vmatprep.subr.bf16.mxu0 %v19863_v46  ;;  %10163 = vmatprep.subr.bf16.mxu1 %v19866_v47  ;;  %v19921_v49 = vld [vmem:[%s27950_s1 + $0x28a0] ss:$44 sps:$4 sm:$0xff]   ;;  %v19924_v46 = vld [vmem:[%s27950_s1 + $0x28a8] ss:$44 sps:$4 sm:$0xff]  }
 0x3b1   :  { %v19929_v47 = vld [vmem:[%s27950_s1 + $0x28fc] ss:$44 sps:$4 sm:$0xff]  }
 0x3b3   :  { %9836 = vmatpush1.bf16.msra.mxu0 %v19861_v48  ;;  %10164 = vmatpush1.bf16.msra.mxu1 %v19864_v50  ;;  %v19932_v48 = vld [vmem:[%s27950_s1 + $0x2904] ss:$44 sps:$4 sm:$0xff]  }
 0x3b4   :  { %9837 = vmatprep.subr.bf16.mxu0 %v19869_v53  ;;  %10165 = vmatprep.subr.bf16.mxu1 %v19872_v54  ;;  %v19927_v50 = vld [vmem:[%s27950_s1 + $0x28f8] ss:$44 sps:$4 sm:$0xff]   ;;  %v19930_v53 = vld [vmem:[%s27950_s1 + $0x2900] ss:$44 sps:$4 sm:$0xff]  }
 0x3b5   :  { %v19935_v54 = vld [vmem:[%s27950_s1 + $0x2954] ss:$44 sps:$4 sm:$0xff]  }
 0x3b7   :  { %9838 = vmatpush1.bf16.msra.mxu0 %v19867_v55  ;;  %10166 = vmatpush1.bf16.msra.mxu1 %v19870_v56  ;;  %v19938_v55 = vld [vmem:[%s27950_s1 + $0x295c] ss:$44 sps:$4 sm:$0xff]  }
 0x3b8   :  { %9839 = vmatprep.subr.bf16.mxu0 %v19875_v57  ;;  %10167 = vmatprep.subr.bf16.mxu1 %v19878_v58  ;;  %v19933_v56 = vld [vmem:[%s27950_s1 + $0x2950] ss:$44 sps:$4 sm:$0xff]   ;;  %v19936_v57 = vld [vmem:[%s27950_s1 + $0x2958] ss:$44 sps:$4 sm:$0xff]  }
 0x3b9   :  { %v19941_v58 = vld [vmem:[%s27950_s1 + $0x29ac] ss:$44 sps:$4 sm:$0xff]  }
 0x3bb   :  { %9840 = vmatpush1.bf16.msra.mxu0 %v19873_v59  ;;  %10168 = vmatpush1.bf16.msra.mxu1 %v19876_v61  ;;  %v19944_v59 = vld [vmem:[%s27950_s1 + $0x29b4] ss:$44 sps:$4 sm:$0xff]  }
 0x3bc   :  { %9841 = vmatprep.subr.bf16.mxu0 %v19881_v0  ;;  %10169 = vmatprep.subr.bf16.mxu1 %v19884_v1  ;;  %v19939_v61 = vld [vmem:[%s27950_s1 + $0x29a8] ss:$44 sps:$4 sm:$0xff]   ;;  %v19942_v0 = vld [vmem:[%s27950_s1 + $0x29b0] ss:$44 sps:$4 sm:$0xff]  }
 0x3bd   :  { %v19947_v1 = vld [vmem:[%s27950_s1 + $0x2a04] ss:$44 sps:$4 sm:$0xff]  }
 0x3bf   :  { %9842 = vmatpush1.bf16.msra.mxu0 %v19879_v34  ;;  %10170 = vmatpush1.bf16.msra.mxu1 %v19882_v3  ;;  %v19950_v34 = vld [vmem:[%s27950_s1 + $0x2a0c] ss:$44 sps:$4 sm:$0xff]  }
 0x3c0   :  { %9852 = vmatprep.subr.bf16.mxu0 %v19887_v4  ;;  %10180 = vmatprep.subr.bf16.mxu1 %v19890_v5  ;;  %v19945_v3 = vld [vmem:[%s27950_s1 + $0x2a00] ss:$44 sps:$4 sm:$0xff]   ;;  %v19948_v4 = vld [vmem:[%s27950_s1 + $0x2a08] ss:$44 sps:$4 sm:$0xff]  }
 0x3c1   :  { %v19953_v5 = vld [vmem:[%s27950_s1 + $0x2a5c] ss:$44 sps:$4 sm:$0xff]  }
 0x3c2   :  { %9844 = vmatmul.mubr.bf16.vlgmr.msra.gmra.mrb[4].mxu0 %v22905_v40  ;;  %10172 = vmatmul.mubr.bf16.vlgmr.msra.gmra.mrb[4].mxu1 %v22905_v40 }
 0x3c3   :  { %9853 = vmatpush1.bf16.msra.mxu0 %v19885_v6  ;;  %10181 = vmatpush1.bf16.msra.mxu1 %v19888_v7  ;;  %v19956_v6 = vld [vmem:[%s27950_s1 + $0x2a64] ss:$44 sps:$4 sm:$0xff]  }
 0x3c4   :  { %9854 = vmatprep.subr.bf16.mxu0 %v19893_v8  ;;  %10182 = vmatprep.subr.bf16.mxu1 %v19896_v9  ;;  %v19951_v7 = vld [vmem:[%s27950_s1 + $0x2a58] ss:$44 sps:$4 sm:$0xff]   ;;  %v19954_v8 = vld [vmem:[%s27950_s1 + $0x2a60] ss:$44 sps:$4 sm:$0xff]  }
 0x3c5   :  { %9884 = vmatprep.mubr.bf16.mxu0 %v22921_v10  ;;  %10212 = vmatprep.mubr.bf16.mxu1 %v22921_v10  ;;  %v19959_v9 = vld [vmem:[%s27950_s1 + $0x2ab4] ss:$44 sps:$4 sm:$0xff]  }
 0x3c7   :  { %9855 = vmatpush1.bf16.msra.mxu0 %v19891_v11  ;;  %10183 = vmatpush1.bf16.msra.mxu1 %v19894_v12  ;;  %v19962_v11 = vld [vmem:[%s27950_s1 + $0x2abc] ss:$44 sps:$4 sm:$0xff]  }
 0x3c8   :  { %9856 = vmatprep.subr.bf16.mxu0 %v19899_v14  ;;  %10184 = vmatprep.subr.bf16.mxu1 %v19902_v52  ;;  %v19957_v12 = vld [vmem:[%s27950_s1 + $0x2ab0] ss:$44 sps:$4 sm:$0xff]   ;;  %v19960_v14 = vld [vmem:[%s27950_s1 + $0x2ab8] ss:$44 sps:$4 sm:$0xff]  }
 0x3c9   :  { %v19965_v52 = vld [vmem:[%s27950_s1 + $0x2b0c] ss:$44 sps:$4 sm:$0xff]  }
 0x3cb   :  { %9857 = vmatpush1.bf16.msra.mxu0 %v19897_v16  ;;  %10185 = vmatpush1.bf16.msra.mxu1 %v19900_v18  ;;  %v19968_v16 = vld [vmem:[%s27950_s1 + $0x2b14] ss:$44 sps:$4 sm:$0xff]  }
 0x3cc   :  { %9858 = vmatprep.subr.bf16.mxu0 %v19905_v19  ;;  %10186 = vmatprep.subr.bf16.mxu1 %v19908_v21  ;;  %v19963_v18 = vld [vmem:[%s27950_s1 + $0x2b08] ss:$44 sps:$4 sm:$0xff]   ;;  %v19966_v19 = vld [vmem:[%s27950_s1 + $0x2b10] ss:$44 sps:$4 sm:$0xff]  }
 0x3cd   :  { %v19971_v21 = vld [vmem:[%s27950_s1 + $0x2b64] ss:$44 sps:$4 sm:$0xff]  }
 0x3cf   :  { %9859 = vmatpush1.bf16.msra.mxu0 %v19903_v22  ;;  %10187 = vmatpush1.bf16.msra.mxu1 %v19906_v25  ;;  %v19974_v22 = vld [vmem:[%s27950_s1 + $0x2b6c] ss:$44 sps:$4 sm:$0xff]  }
 0x3d0   :  { %9860 = vmatprep.subr.bf16.mxu0 %v19911_v26  ;;  %10188 = vmatprep.subr.bf16.mxu1 %v19914_v28  ;;  %v19969_v25 = vld [vmem:[%s27950_s1 + $0x2b60] ss:$44 sps:$4 sm:$0xff]   ;;  %v19972_v26 = vld [vmem:[%s27950_s1 + $0x2b68] ss:$44 sps:$4 sm:$0xff]  }
 0x3d1   :  { %v19977_v28 = vld [vmem:[%s27950_s1 + $0x2bbc] ss:$44 sps:$4 sm:$0xff]  }
 0x3d3   :  { %9861 = vmatpush1.bf16.msra.mxu0 %v19909_v29  ;;  %10189 = vmatpush1.bf16.msra.mxu1 %v19912_v30  ;;  %v19980_v29 = vld [vmem:[%s27950_s1 + $0x2bc4] ss:$44 sps:$4 sm:$0xff]  }
 0x3d4   :  { %9862 = vmatprep.subr.bf16.mxu0 %v19917_v31  ;;  %10190 = vmatprep.subr.bf16.mxu1 %v19920_v32  ;;  %v19975_v30 = vld [vmem:[%s27950_s1 + $0x2bb8] ss:$44 sps:$4 sm:$0xff]   ;;  %v19978_v31 = vld [vmem:[%s27950_s1 + $0x2bc0] ss:$44 sps:$4 sm:$0xff]  }
 0x3d5   :  { %v19983_v32 = vld [vmem:[%s27950_s1 + $0x24] ss:$44 sps:$4 sm:$0xff]  }
 0x3d7   :  { %9863 = vmatpush1.bf16.msra.mxu0 %v19915_v35  ;;  %10191 = vmatpush1.bf16.msra.mxu1 %v19918_v36  ;;  %v19984_v35 = vld [vmem:[%s27950_s1 + $0x2e8] ss:$44 sps:$4 sm:$0xff]   ;;  %v19981_v36 = vld [vmem:[%s27950_s1 + $0x20] ss:$44 sps:$4 sm:$0xff]  }
 0x3d8   :  { %9864 = vmatprep.subr.bf16.mxu0 %v19923_v43  ;;  %10192 = vmatprep.subr.bf16.mxu1 %v19926_v44  ;;  %v19985_v43 = vld [vmem:[%s27950_s1 + $0x28] ss:$44 sps:$4 sm:$0xff]  }
 0x3d9   :  { %v19988_v44 = vld [vmem:[%s27950_s1 + $0x7c] ss:$44 sps:$4 sm:$0xff]  }
 0x3db   :  { %9865 = vmatpush1.bf16.msra.mxu0 %v19921_v49  ;;  %10193 = vmatpush1.bf16.msra.mxu1 %v19924_v46  ;;  %v19989_v49 = vld [vmem:[%s27950_s1 + $0x340] ss:$44 sps:$4 sm:$0xff]   ;;  %v19986_v46 = vld [vmem:[%s27950_s1 + $0x78] ss:$44 sps:$4 sm:$0xff]  }
 0x3dc   :  { %9866 = vmatprep.subr.bf16.mxu0 %v19929_v47  ;;  %10194 = vmatprep.subr.bf16.mxu1 %v19932_v48  ;;  %v19990_v47 = vld [vmem:[%s27950_s1 + $0x80] ss:$44 sps:$4 sm:$0xff]  }
 0x3dd   :  { %v19993_v48 = vld [vmem:[%s27950_s1 + $0xd4] ss:$44 sps:$4 sm:$0xff]  }
 0x3df   :  { %9867 = vmatpush1.bf16.msra.mxu0 %v19927_v50  ;;  %10195 = vmatpush1.bf16.msra.mxu1 %v19930_v53  ;;  %v19994_v50 = vld [vmem:[%s27950_s1 + $0x398] ss:$44 sps:$4 sm:$0xff]   ;;  %v19991_v53 = vld [vmem:[%s27950_s1 + $0xd0] ss:$44 sps:$4 sm:$0xff]  }
 0x3e0   :  { %9868 = vmatprep.subr.bf16.mxu0 %v19935_v54  ;;  %10196 = vmatprep.subr.bf16.mxu1 %v19938_v55  ;;  %v19995_v54 = vld [vmem:[%s27950_s1 + $0xd8] ss:$44 sps:$4 sm:$0xff]  }
 0x3e1   :  { %v19998_v55 = vld [vmem:[%s27950_s1 + $0x12c] ss:$44 sps:$4 sm:$0xff]  }
 0x3e3   :  { %9869 = vmatpush1.bf16.msra.mxu0 %v19933_v56  ;;  %10197 = vmatpush1.bf16.msra.mxu1 %v19936_v57  ;;  %v19999_v56 = vld [vmem:[%s27950_s1 + $0x3f0] ss:$44 sps:$4 sm:$0xff]  }
 0x3e4   :  { %9870 = vmatprep.subr.bf16.mxu0 %v19941_v58  ;;  %10198 = vmatprep.subr.bf16.mxu1 %v19944_v59  ;;  %v20000_v57 = vld [vmem:[%s27950_s1 + $0x130] ss:$44 sps:$4 sm:$0xff]   ;;  %v20004_v59 = vld [vmem:[%s27950_s1 + $0x448] ss:$44 sps:$4 sm:$0xff]  }
 0x3e5   :  { %v20003_v58 = vld [vmem:[%s27950_s1 + $0x184] ss:$44 sps:$4 sm:$0xff]  }
 0x3e7   :  { %9871 = vmatpush1.bf16.msra.mxu0 %v19939_v61  ;;  %10199 = vmatpush1.bf16.msra.mxu1 %v19942_v0  ;;  %v20001_v61 = vld [vmem:[%s27950_s1 + $0x180] ss:$44 sps:$4 sm:$0xff]   ;;  %v20005_v0 = vld [vmem:[%s27950_s1 + $0x188] ss:$44 sps:$4 sm:$0xff]  }
 0x3e8   :  { %9872 = vmatprep.subr.bf16.mxu0 %v19947_v1  ;;  %10200 = vmatprep.subr.bf16.mxu1 %v19950_v34  ;;  %v20008_v1 = vld [vmem:[%s27950_s1 + $0x1dc] ss:$44 sps:$4 sm:$0xff]   ;;  %v20009_v34 = vld [vmem:[%s27950_s1 + $0x4a0] ss:$44 sps:$4 sm:$0xff]  }
 0x3eb   :  { %9873 = vmatpush1.bf16.msra.mxu0 %v19945_v3  ;;  %10201 = vmatpush1.bf16.msra.mxu1 %v19948_v4  ;;  %v20006_v3 = vld [vmem:[%s27950_s1 + $0x1d8] ss:$44 sps:$4 sm:$0xff]   ;;  %v20010_v4 = vld [vmem:[%s27950_s1 + $0x1e0] ss:$44 sps:$4 sm:$0xff]  }
 0x3ec   :  { %9874 = vmatprep.subr.bf16.mxu0 %v19953_v5  ;;  %10202 = vmatprep.subr.bf16.mxu1 %v19956_v6  ;;  %v20013_v5 = vld [vmem:[%s27950_s1 + $0x234] ss:$44 sps:$4 sm:$0xff]   ;;  %v20014_v6 = vld [vmem:[%s27950_s1 + $0x4f8] ss:$44 sps:$4 sm:$0xff]  }
 0x3ef   :  { %9875 = vmatpush1.bf16.msra.mxu0 %v19951_v7  ;;  %10203 = vmatpush1.bf16.msra.mxu1 %v19954_v8  ;;  %v20011_v7 = vld [vmem:[%s27950_s1 + $0x230] ss:$44 sps:$4 sm:$0xff]   ;;  %v20015_v8 = vld [vmem:[%s27950_s1 + $0x238] ss:$44 sps:$4 sm:$0xff]  }
 0x3f0   :  { %9876 = vmatprep.subr.bf16.mxu0 %v19959_v9  ;;  %10204 = vmatprep.subr.bf16.mxu1 %v19962_v11  ;;  %v20018_v9 = vld [vmem:[%s27950_s1 + $0x28c] ss:$44 sps:$4 sm:$0xff]   ;;  %v20019_v11 = vld [vmem:[%s27950_s1 + $0x550] ss:$44 sps:$4 sm:$0xff]  }
 0x3f3   :  { %9877 = vmatpush1.bf16.msra.mxu0 %v19957_v12  ;;  %10205 = vmatpush1.bf16.msra.mxu1 %v19960_v14  ;;  %v20016_v12 = vld [vmem:[%s27950_s1 + $0x288] ss:$44 sps:$4 sm:$0xff]   ;;  %v20020_v14 = vld [vmem:[%s27950_s1 + $0x290] ss:$44 sps:$4 sm:$0xff]  }
 0x3f4   :  { %9878 = vmatprep.subr.bf16.mxu0 %v19965_v52  ;;  %10206 = vmatprep.subr.bf16.mxu1 %v19968_v16  ;;  %v20023_v52 = vld [vmem:[%s27950_s1 + $0x2e4] ss:$44 sps:$4 sm:$0xff]   ;;  %v20024_v16 = vld [vmem:[%s27950_s1 + $0x868] ss:$44 sps:$4 sm:$0xff]  }
 0x3f7   :  { %9879 = vmatpush1.bf16.msra.mxu0 %v19963_v18  ;;  %10207 = vmatpush1.bf16.msra.mxu1 %v19966_v19  ;;  %v20021_v18 = vld [vmem:[%s27950_s1 + $0x2e0] ss:$44 sps:$4 sm:$0xff]   ;;  %v20025_v19 = vld [vmem:[%s27950_s1 + $0x5a8] ss:$44 sps:$4 sm:$0xff]  }
 0x3f8   :  { %9880 = vmatprep.subr.bf16.mxu0 %v19971_v21  ;;  %10208 = vmatprep.subr.bf16.mxu1 %v19974_v22  ;;  %v20028_v21 = vld [vmem:[%s27950_s1 + $0x33c] ss:$44 sps:$4 sm:$0xff]   ;;  %v20029_v22 = vld [vmem:[%s27950_s1 + $0x8c0] ss:$44 sps:$4 sm:$0xff]  }
 0x3fb   :  { %9881 = vmatpush1.bf16.msra.mxu0 %v19969_v25  ;;  %10209 = vmatpush1.bf16.msra.mxu1 %v19972_v26  ;;  %v20026_v25 = vld [vmem:[%s27950_s1 + $0x338] ss:$44 sps:$4 sm:$0xff]   ;;  %v20030_v26 = vld [vmem:[%s27950_s1 + $0x600] ss:$44 sps:$4 sm:$0xff]  }
 0x3fc   :  { %9882 = vmatprep.subr.bf16.mxu0 %v19977_v28  ;;  %10210 = vmatprep.subr.bf16.mxu1 %v19980_v29  ;;  %v20033_v28 = vld [vmem:[%s27950_s1 + $0x394] ss:$44 sps:$4 sm:$0xff]   ;;  %v20034_v29 = vld [vmem:[%s27950_s1 + $0x918] ss:$44 sps:$4 sm:$0xff]  }
 0x3ff   :  { %9883 = vmatpush1.bf16.msra.mxu0 %v19975_v30  ;;  %10211 = vmatpush1.bf16.msra.mxu1 %v19978_v31  ;;  %v20031_v30 = vld [vmem:[%s27950_s1 + $0x390] ss:$44 sps:$4 sm:$0xff]   ;;  %v20035_v31 = vld [vmem:[%s27950_s1 + $0x658] ss:$44 sps:$4 sm:$0xff]  }
 0x400   :  { %10221 = vmatprep.subr.bf16.mxu0 %v19983_v32  ;;  %17907 = vmatprep.subr.bf16.mxu1 %v19984_v35  ;;  %v20038_v32 = vld [vmem:[%s27950_s1 + $0x3ec] ss:$44 sps:$4 sm:$0xff]   ;;  %v20039_v35 = vld [vmem:[%s27950_s1 + $0x970] ss:$44 sps:$4 sm:$0xff]  }
 0x402   :  { %9885 = vmatmul.mubr.bf16.vlgmr.msra.gmra.mrb[4].mxu0 %v23109_v63  ;;  %10213 = vmatmul.mubr.bf16.vlgmr.msra.gmra.mrb[4].mxu1 %v23109_v63 }
 0x403   :  { %10222 = vmatpush1.bf16.msra.mxu0 %v19981_v36  ;;  %17908 = vmatpush3.bf16.msra.mxu1 %v19985_v43  ;;  %v20036_v36 = vld [vmem:[%s27950_s1 + $0x3e8] ss:$44 sps:$4 sm:$0xff]   ;;  %v20040_v43 = vld [vmem:[%s27950_s1 + $0x6b0] ss:$44 sps:$4 sm:$0xff]  }
 0x404   :  { %10223 = vmatprep.subr.bf16.mxu0 %v19988_v44  ;;  %17909 = vmatprep.subr.bf16.mxu1 %v19989_v49  ;;  %v20043_v44 = vld [vmem:[%s27950_s1 + $0x444] ss:$44 sps:$4 sm:$0xff]   ;;  %v20044_v49 = vld [vmem:[%s27950_s1 + $0x9c8] ss:$44 sps:$4 sm:$0xff]  }
 0x405   :  { %10581 = vmatprep.mubr.bf16.mxu1 %v21612_v60  ;;  %10253 = vmatprep.mubr.bf16.mxu0 %v21612_v60  ;;  %v19996_v60 = vld [vmem:[%s27950_s1 + $0x128] ss:$44 sps:$4 sm:$0xff]  }
 0x407   :  { %10224 = vmatpush1.bf16.msra.mxu0 %v19986_v46  ;;  %17910 = vmatpush3.bf16.msra.mxu1 %v19990_v47  ;;  %v20041_v46 = vld [vmem:[%s27950_s1 + $0x440] ss:$44 sps:$4 sm:$0xff]   ;;  %v20045_v47 = vld [vmem:[%s27950_s1 + $0x708] ss:$44 sps:$4 sm:$0xff]  }
 0x408   :  { %10225 = vmatprep.subr.bf16.mxu0 %v19993_v48  ;;  %17911 = vmatprep.subr.bf16.mxu1 %v19994_v50  ;;  %v20048_v48 = vld [vmem:[%s27950_s1 + $0x49c] ss:$44 sps:$4 sm:$0xff]   ;;  %v20049_v50 = vld [vmem:[%s27950_s1 + $0xa20] ss:$44 sps:$4 sm:$0xff]  }
 0x40b   :  { %10226 = vmatpush1.bf16.msra.mxu0 %v19991_v53  ;;  %17912 = vmatpush3.bf16.msra.mxu1 %v19995_v54  ;;  %v20046_v53 = vld [vmem:[%s27950_s1 + $0x498] ss:$44 sps:$4 sm:$0xff]   ;;  %v20050_v54 = vld [vmem:[%s27950_s1 + $0x760] ss:$44 sps:$4 sm:$0xff]  }
 0x40c   :  { %10227 = vmatprep.subr.bf16.mxu0 %v19998_v55  ;;  %17913 = vmatprep.subr.bf16.mxu1 %v19999_v56  ;;  %v20053_v55 = vld [vmem:[%s27950_s1 + $0x4f4] ss:$44 sps:$4 sm:$0xff]   ;;  %v20054_v56 = vld [vmem:[%s27950_s1 + $0xa78] ss:$44 sps:$4 sm:$0xff]  }
 0x40f   :  { %10228 = vmatpush1.bf16.msra.mxu0 %v19996_v60  ;;  %17914 = vmatpush3.bf16.msra.mxu1 %v20000_v57  ;;  %v20051_v60 = vld [vmem:[%s27950_s1 + $0x4f0] ss:$44 sps:$4 sm:$0xff]   ;;  %v20055_v57 = vld [vmem:[%s27950_s1 + $0x7b8] ss:$44 sps:$4 sm:$0xff]  }
 0x410   :  { %10229 = vmatprep.subr.bf16.mxu0 %v20003_v58  ;;  %17915 = vmatprep.subr.bf16.mxu1 %v20004_v59  ;;  %v20058_v58 = vld [vmem:[%s27950_s1 + $0x54c] ss:$44 sps:$4 sm:$0xff]   ;;  %v20059_v59 = vld [vmem:[%s27950_s1 + $0xad0] ss:$44 sps:$4 sm:$0xff]  }
 0x413   :  { %10230 = vmatpush1.bf16.msra.mxu0 %v20001_v61  ;;  %17916 = vmatpush3.bf16.msra.mxu1 %v20005_v0  ;;  %v20056_v61 = vld [vmem:[%s27950_s1 + $0x548] ss:$44 sps:$4 sm:$0xff]   ;;  %v20060_v0 = vld [vmem:[%s27950_s1 + $0x810] ss:$44 sps:$4 sm:$0xff]  }
 0x414   :  { %10231 = vmatprep.subr.bf16.mxu0 %v20008_v1  ;;  %17917 = vmatprep.subr.bf16.mxu1 %v20009_v34  ;;  %v20063_v1 = vld [vmem:[%s27950_s1 + $0x5a4] ss:$44 sps:$4 sm:$0xff]   ;;  %v20064_v34 = vld [vmem:[%s27950_s1 + $0xde8] ss:$44 sps:$4 sm:$0xff]  }
 0x417   :  { %10232 = vmatpush1.bf16.msra.mxu0 %v20006_v3  ;;  %17918 = vmatpush3.bf16.msra.mxu1 %v20010_v4  ;;  %v20061_v3 = vld [vmem:[%s27950_s1 + $0x5a0] ss:$44 sps:$4 sm:$0xff]   ;;  %v20065_v4 = vld [vmem:[%s27950_s1 + $0xb28] ss:$44 sps:$4 sm:$0xff]  }
 0x418   :  { %10233 = vmatprep.subr.bf16.mxu0 %v20013_v5  ;;  %17919 = vmatprep.subr.bf16.mxu1 %v20014_v6  ;;  %v20068_v5 = vld [vmem:[%s27950_s1 + $0x5fc] ss:$44 sps:$4 sm:$0xff]   ;;  %v20069_v6 = vld [vmem:[%s27950_s1 + $0xe40] ss:$44 sps:$4 sm:$0xff]  }
 0x41b   :  { %10234 = vmatpush1.bf16.msra.mxu0 %v20011_v7  ;;  %17920 = vmatpush3.bf16.msra.mxu1 %v20015_v8  ;;  %v20066_v7 = vld [vmem:[%s27950_s1 + $0x5f8] ss:$44 sps:$4 sm:$0xff]   ;;  %v20070_v8 = vld [vmem:[%s27950_s1 + $0xb80] ss:$44 sps:$4 sm:$0xff]  }
 0x41c   :  { %10235 = vmatprep.subr.bf16.mxu0 %v20018_v9  ;;  %17921 = vmatprep.subr.bf16.mxu1 %v20019_v11  ;;  %v20073_v9 = vld [vmem:[%s27950_s1 + $0x654] ss:$44 sps:$4 sm:$0xff]   ;;  %v20074_v11 = vld [vmem:[%s27950_s1 + $0xe98] ss:$44 sps:$4 sm:$0xff]  }
 0x41f   :  { %10236 = vmatpush1.bf16.msra.mxu0 %v20016_v12  ;;  %17922 = vmatpush3.bf16.msra.mxu1 %v20020_v14  ;;  %v20075_v12 = vld [vmem:[%s27950_s1 + $0xbd8] ss:$44 sps:$4 sm:$0xff]  }
 0x420   :  { %10237 = vmatprep.subr.bf16.mxu0 %v20023_v52  ;;  %17929 = vmatprep.subr.bf16.mxu1 %v20024_v16  ;;  %v20078_v14 = vld [vmem:[%s27950_s1 + $0x6ac] ss:$44 sps:$4 sm:$0xff]   ;;  %v20079_v52 = vld [vmem:[%s27950_s1 + $0xef0] ss:$44 sps:$4 sm:$0xff]  }
 0x421   :  { %v20080_v16 = vld [vmem:[%s27950_s1 + $0xc30] ss:$44 sps:$4 sm:$0xff]  }
 0x422   :  { %10582 = vmatmul.mubr.bf16.vlgmr.msra.gmra.mrb[8].mxu1 %v21665_v13 }
 0x423   :  { %10238 = vmatpush1.bf16.msra.mxu0 %v20021_v18  ;;  %17930 = vmatpush3.bf16.msra.mxu1 %v20025_v19  ;;  %v20083_v18 = vld [vmem:[%s27950_s1 + $0x704] ss:$44 sps:$4 sm:$0xff]   ;;  %v20084_v19 = vld [vmem:[%s27950_s1 + $0xf48] ss:$44 sps:$4 sm:$0xff]  }
 0x424   :  { %10239 = vmatprep.subr.bf16.mxu0 %v20028_v21  ;;  %17931 = vmatprep.subr.bf16.mxu1 %v20029_v22  ;;  %v20081_v21 = vld [vmem:[%s27950_s1 + $0x700] ss:$44 sps:$4 sm:$0xff]   ;;  %v20085_v22 = vld [vmem:[%s27950_s1 + $0xc88] ss:$44 sps:$4 sm:$0xff]  }
 0x425   :  { %10621 = vmatprep.mubr.bf16.mxu1 %v21678_v17 }
 0x427   :  { %10240 = vmatpush1.bf16.msra.mxu0 %v20026_v25  ;;  %17932 = vmatpush3.bf16.msra.mxu1 %v20030_v26  ;;  %v20088_v25 = vld [vmem:[%s27950_s1 + $0x75c] ss:$44 sps:$4 sm:$0xff]   ;;  %v20089_v26 = vld [vmem:[%s27950_s1 + $0xfa0] ss:$44 sps:$4 sm:$0xff]  }
 0x428   :  { %10241 = vmatprep.subr.bf16.mxu0 %v20033_v28  ;;  %17933 = vmatprep.subr.bf16.mxu1 %v20034_v29  ;;  %v20086_v28 = vld [vmem:[%s27950_s1 + $0x758] ss:$44 sps:$4 sm:$0xff]   ;;  %v20090_v29 = vld [vmem:[%s27950_s1 + $0xce0] ss:$44 sps:$4 sm:$0xff]  }
 0x42b   :  { %10242 = vmatpush1.bf16.msra.mxu0 %v20031_v30  ;;  %17934 = vmatpush3.bf16.msra.mxu1 %v20035_v31  ;;  %v20093_v30 = vld [vmem:[%s27950_s1 + $0x7b4] ss:$44 sps:$4 sm:$0xff]   ;;  %v20094_v31 = vld [vmem:[%s27950_s1 + $0xff8] ss:$44 sps:$4 sm:$0xff]  }
 0x42c   :  { %10243 = vmatprep.subr.bf16.mxu0 %v20038_v32  ;;  %17935 = vmatprep.subr.bf16.mxu1 %v20039_v35  ;;  %v20091_v32 = vld [vmem:[%s27950_s1 + $0x7b0] ss:$44 sps:$4 sm:$0xff]   ;;  %v20095_v35 = vld [vmem:[%s27950_s1 + $0xd38] ss:$44 sps:$4 sm:$0xff]  }
 0x42f   :  { %10244 = vmatpush1.bf16.msra.mxu0 %v20036_v36  ;;  %17936 = vmatpush3.bf16.msra.mxu1 %v20040_v43  ;;  %v20098_v36 = vld [vmem:[%s27950_s1 + $0x80c] ss:$44 sps:$4 sm:$0xff]   ;;  %v20099_v43 = vld [vmem:[%s27950_s1 + $0x1050] ss:$44 sps:$4 sm:$0xff]  }
 0x430   :  { %10245 = vmatprep.subr.bf16.mxu0 %v20043_v44  ;;  %17937 = vmatprep.subr.bf16.mxu1 %v20044_v49  ;;  %v20096_v44 = vld [vmem:[%s27950_s1 + $0x808] ss:$44 sps:$4 sm:$0xff]   ;;  %v20100_v49 = vld [vmem:[%s27950_s1 + $0xd90] ss:$44 sps:$4 sm:$0xff]  }
 0x433   :  { %10246 = vmatpush1.bf16.msra.mxu0 %v20041_v46  ;;  %17938 = vmatpush3.bf16.msra.mxu1 %v20045_v47  ;;  %v20103_v46 = vld [vmem:[%s27950_s1 + $0x864] ss:$44 sps:$4 sm:$0xff]   ;;  %v20104_v47 = vld [vmem:[%s27950_s1 + $0x1368] ss:$44 sps:$4 sm:$0xff]  }
 0x434   :  { %10247 = vmatprep.subr.bf16.mxu0 %v20048_v48  ;;  %17939 = vmatprep.subr.bf16.mxu1 %v20049_v50  ;;  %v20101_v48 = vld [vmem:[%s27950_s1 + $0x860] ss:$44 sps:$4 sm:$0xff]   ;;  %v20105_v50 = vld [vmem:[%s27950_s1 + $0x10a8] ss:$44 sps:$4 sm:$0xff]  }
 0x437   :  { %10248 = vmatpush1.bf16.msra.mxu0 %v20046_v53  ;;  %17940 = vmatpush3.bf16.msra.mxu1 %v20050_v54  ;;  %v20108_v53 = vld [vmem:[%s27950_s1 + $0x8bc] ss:$44 sps:$4 sm:$0xff]   ;;  %v20109_v54 = vld [vmem:[%s27950_s1 + $0x13c0] ss:$44 sps:$4 sm:$0xff]  }
 0x438   :  { %10249 = vmatprep.subr.bf16.mxu0 %v20053_v55  ;;  %17941 = vmatprep.subr.bf16.mxu1 %v20054_v56  ;;  %v20106_v55 = vld [vmem:[%s27950_s1 + $0x8b8] ss:$44 sps:$4 sm:$0xff]   ;;  %v20110_v56 = vld [vmem:[%s27950_s1 + $0x1100] ss:$44 sps:$4 sm:$0xff]  }
 0x43b   :  { %10250 = vmatpush1.bf16.msra.mxu0 %v20051_v60  ;;  %17942 = vmatpush3.bf16.msra.mxu1 %v20055_v57  ;;  %v20113_v60 = vld [vmem:[%s27950_s1 + $0x914] ss:$44 sps:$4 sm:$0xff]   ;;  %v20114_v57 = vld [vmem:[%s27950_s1 + $0x1418] ss:$44 sps:$4 sm:$0xff]  }
 0x43c   :  { %10251 = vmatprep.subr.bf16.mxu0 %v20058_v58  ;;  %17943 = vmatprep.subr.bf16.mxu1 %v20059_v59  ;;  %v20111_v58 = vld [vmem:[%s27950_s1 + $0x910] ss:$44 sps:$4 sm:$0xff]   ;;  %v20115_v59 = vld [vmem:[%s27950_s1 + $0x1158] ss:$44 sps:$4 sm:$0xff]  }
 0x43f   :  { %10252 = vmatpush1.bf16.msra.mxu0 %v20056_v61  ;;  %17944 = vmatpush3.bf16.msra.mxu1 %v20060_v0  ;;  %v20118_v61 = vld [vmem:[%s27950_s1 + $0x96c] ss:$44 sps:$4 sm:$0xff]   ;;  %v20119_v0 = vld [vmem:[%s27950_s1 + $0x1470] ss:$44 sps:$4 sm:$0xff]  }
 0x440   :  { %10262 = vmatprep.subr.bf16.mxu0 %v20063_v1  ;;  %17951 = vmatprep.subr.bf16.mxu1 %v20064_v34  ;;  %v20116_v1 = vld [vmem:[%s27950_s1 + $0x968] ss:$44 sps:$4 sm:$0xff]   ;;  %v20120_v34 = vld [vmem:[%s27950_s1 + $0x11b0] ss:$44 sps:$4 sm:$0xff]  }
 0x442   :  { %10254 = vmatmul.mubr.bf16.vlgmr.msra.gmra.mrb[8].mxu0 %v21665_v13  ;;  %10622 = vmatmul.mubr.bf16.vlgmr.msra.gmra.mrb[12].mxu1 %v21876_v23  ;;  %v20071_v13 = vld [vmem:[%s27950_s1 + $0x650] ss:$44 sps:$4 sm:$0xff]  }
 0x443   :  { %10263 = vmatpush1.bf16.msra.mxu0 %v20061_v3  ;;  %17952 = vmatpush3.bf16.msra.mxu1 %v20065_v4  ;;  %v20123_v3 = vld [vmem:[%s27950_s1 + $0x9c4] ss:$44 sps:$4 sm:$0xff]   ;;  %v20124_v4 = vld [vmem:[%s27950_s1 + $0x14c8] ss:$44 sps:$4 sm:$0xff]  }
 0x444   :  { %10264 = vmatprep.subr.bf16.mxu0 %v20068_v5  ;;  %17953 = vmatprep.subr.bf16.mxu1 %v20069_v6  ;;  %v20121_v5 = vld [vmem:[%s27950_s1 + $0x9c0] ss:$44 sps:$4 sm:$0xff]   ;;  %v20125_v6 = vld [vmem:[%s27950_s1 + $0x1208] ss:$44 sps:$4 sm:$0xff]  }
 0x445   :  { %10661 = vmatprep.mubr.bf16.mxu1 %v21888_v27  ;;  %10294 = vmatprep.mubr.bf16.mxu0 %v21678_v17  ;;  %v20076_v17 = vld [vmem:[%s27950_s1 + $0x6a8] ss:$44 sps:$4 sm:$0xff]  }
 0x447   :  { %10265 = vmatpush1.bf16.msra.mxu0 %v20066_v7  ;;  %17954 = vmatpush3.bf16.msra.mxu1 %v20070_v8  ;;  %v20128_v7 = vld [vmem:[%s27950_s1 + $0xa1c] ss:$44 sps:$4 sm:$0xff]   ;;  %v20129_v8 = vld [vmem:[%s27950_s1 + $0x1520] ss:$44 sps:$4 sm:$0xff]  }
 0x448   :  { %10266 = vmatprep.subr.bf16.mxu0 %v20073_v9  ;;  %17955 = vmatprep.subr.bf16.mxu1 %v20074_v11  ;;  %v20126_v9 = vld [vmem:[%s27950_s1 + $0xa18] ss:$44 sps:$4 sm:$0xff]   ;;  %v20130_v11 = vld [vmem:[%s27950_s1 + $0x1260] ss:$44 sps:$4 sm:$0xff]  }
 0x44b   :  { %10267 = vmatpush1.bf16.msra.mxu0 %v20071_v13  ;;  %17956 = vmatpush3.bf16.msra.mxu1 %v20075_v12  ;;  %v20133_v13 = vld [vmem:[%s27950_s1 + $0xa74] ss:$44 sps:$4 sm:$0xff]   ;;  %v20134_v12 = vld [vmem:[%s27950_s1 + $0x1578] ss:$44 sps:$4 sm:$0xff]  }
 0x44c   :  { %10268 = vmatprep.subr.bf16.mxu0 %v20078_v14  ;;  %17957 = vmatprep.subr.bf16.mxu1 %v20079_v52  ;;  %v20131_v14 = vld [vmem:[%s27950_s1 + $0xa70] ss:$44 sps:$4 sm:$0xff]   ;;  %v20135_v52 = vld [vmem:[%s27950_s1 + $0x12b8] ss:$44 sps:$4 sm:$0xff]  }
 0x44f   :  { %10269 = vmatpush1.bf16.msra.mxu0 %v20076_v17  ;;  %17958 = vmatpush3.bf16.msra.mxu1 %v20080_v16  ;;  %v20138_v17 = vld [vmem:[%s27950_s1 + $0xacc] ss:$44 sps:$4 sm:$0xff]   ;;  %v20139_v16 = vld [vmem:[%s27950_s1 + $0x15d0] ss:$44 sps:$4 sm:$0xff]  }
 0x450   :  { %10270 = vmatprep.subr.bf16.mxu0 %v20083_v18  ;;  %17959 = vmatprep.subr.bf16.mxu1 %v20084_v19  ;;  %v20136_v18 = vld [vmem:[%s27950_s1 + $0xac8] ss:$44 sps:$4 sm:$0xff]   ;;  %v20140_v19 = vld [vmem:[%s27950_s1 + $0x1310] ss:$44 sps:$4 sm:$0xff]  }
 0x453   :  { %10271 = vmatpush1.bf16.msra.mxu0 %v20081_v21  ;;  %17960 = vmatpush3.bf16.msra.mxu1 %v20085_v22  ;;  %v20143_v21 = vld [vmem:[%s27950_s1 + $0xb24] ss:$44 sps:$4 sm:$0xff]   ;;  %v20144_v22 = vld [vmem:[%s27950_s1 + $0x18e8] ss:$44 sps:$4 sm:$0xff]  }
 0x454   :  { %10272 = vmatprep.subr.bf16.mxu0 %v20088_v25  ;;  %17961 = vmatprep.subr.bf16.mxu1 %v20089_v26  ;;  %v20141_v25 = vld [vmem:[%s27950_s1 + $0xb20] ss:$44 sps:$4 sm:$0xff]   ;;  %v20145_v26 = vld [vmem:[%s27950_s1 + $0x1628] ss:$44 sps:$4 sm:$0xff]  }
 0x457   :  { %10273 = vmatpush1.bf16.msra.mxu0 %v20086_v28  ;;  %17962 = vmatpush3.bf16.msra.mxu1 %v20090_v29  ;;  %v20148_v28 = vld [vmem:[%s27950_s1 + $0xb7c] ss:$44 sps:$4 sm:$0xff]   ;;  %v20149_v29 = vld [vmem:[%s27950_s1 + $0x1940] ss:$44 sps:$4 sm:$0xff]  }
 0x458   :  { %10274 = vmatprep.subr.bf16.mxu0 %v20093_v30  ;;  %17963 = vmatprep.subr.bf16.mxu1 %v20094_v31  ;;  %v20146_v30 = vld [vmem:[%s27950_s1 + $0xb78] ss:$44 sps:$4 sm:$0xff]   ;;  %v20150_v31 = vld [vmem:[%s27950_s1 + $0x1680] ss:$44 sps:$4 sm:$0xff]  }
 0x45b   :  { %10275 = vmatpush1.bf16.msra.mxu0 %v20091_v32  ;;  %17964 = vmatpush3.bf16.msra.mxu1 %v20095_v35  ;;  %v20153_v32 = vld [vmem:[%s27950_s1 + $0xbd4] ss:$44 sps:$4 sm:$0xff]   ;;  %v20154_v35 = vld [vmem:[%s27950_s1 + $0x1998] ss:$44 sps:$4 sm:$0xff]  }
 0x45c   :  { %10276 = vmatprep.subr.bf16.mxu0 %v20098_v36  ;;  %17965 = vmatprep.subr.bf16.mxu1 %v20099_v43  ;;  %v20155_v36 = vld [vmem:[%s27950_s1 + $0x16d8] ss:$44 sps:$4 sm:$0xff]  }
 0x45d   :  { %v20158_v43 = vld [vmem:[%s27950_s1 + $0xc2c] ss:$44 sps:$4 sm:$0xff]  }
 0x45f   :  { %10277 = vmatpush1.bf16.msra.mxu0 %v20096_v44  ;;  %17966 = vmatpush3.bf16.msra.mxu1 %v20100_v49  ;;  %v20156_v44 = vld [vmem:[%s27950_s1 + $0xc28] ss:$44 sps:$4 sm:$0xff]   ;;  %v20160_v49 = vld [vmem:[%s27950_s1 + $0x1730] ss:$44 sps:$4 sm:$0xff]  }
 0x460   :  { %10278 = vmatprep.subr.bf16.mxu0 %v20103_v46  ;;  %17973 = vmatprep.subr.bf16.mxu1 %v20104_v47  ;;  %v20163_v46 = vld [vmem:[%s27950_s1 + $0xc84] ss:$44 sps:$4 sm:$0xff]   ;;  %v20164_v47 = vld [vmem:[%s27950_s1 + $0x1a48] ss:$44 sps:$4 sm:$0xff]  }
 0x462   :  { %10662 = vmatmul.mubr.bf16.vlgmr.msra.gmra.mrb[16].mxu1 %v22079_v33 }
 0x463   :  { %10279 = vmatpush1.bf16.msra.mxu0 %v20101_v48  ;;  %17974 = vmatpush3.bf16.msra.mxu1 %v20105_v50  ;;  %v20161_v48 = vld [vmem:[%s27950_s1 + $0xc80] ss:$44 sps:$4 sm:$0xff]   ;;  %v20165_v50 = vld [vmem:[%s27950_s1 + $0x1788] ss:$44 sps:$4 sm:$0xff]  }
 0x464   :  { %10280 = vmatprep.subr.bf16.mxu0 %v20108_v53  ;;  %17975 = vmatprep.subr.bf16.mxu1 %v20109_v54  ;;  %v20168_v53 = vld [vmem:[%s27950_s1 + $0xcdc] ss:$44 sps:$4 sm:$0xff]   ;;  %v20169_v54 = vld [vmem:[%s27950_s1 + $0x1aa0] ss:$44 sps:$4 sm:$0xff]  }
 0x465   :  { %10701 = vmatprep.mubr.bf16.mxu1 %v22092_v15 }
 0x467   :  { %10281 = vmatpush1.bf16.msra.mxu0 %v20106_v55  ;;  %17976 = vmatpush3.bf16.msra.mxu1 %v20110_v56  ;;  %v20166_v55 = vld [vmem:[%s27950_s1 + $0xcd8] ss:$44 sps:$4 sm:$0xff]   ;;  %v20170_v56 = vld [vmem:[%s27950_s1 + $0x17e0] ss:$44 sps:$4 sm:$0xff]  }
 0x468   :  { %10282 = vmatprep.subr.bf16.mxu0 %v20113_v60  ;;  %17977 = vmatprep.subr.bf16.mxu1 %v20114_v57  ;;  %v20173_v60 = vld [vmem:[%s27950_s1 + $0xd34] ss:$44 sps:$4 sm:$0xff]   ;;  %v20174_v57 = vld [vmem:[%s27950_s1 + $0x1af8] ss:$44 sps:$4 sm:$0xff]  }
 0x46b   :  { %10283 = vmatpush1.bf16.msra.mxu0 %v20111_v58  ;;  %17978 = vmatpush3.bf16.msra.mxu1 %v20115_v59  ;;  %v20171_v58 = vld [vmem:[%s27950_s1 + $0xd30] ss:$44 sps:$4 sm:$0xff]   ;;  %v20175_v59 = vld [vmem:[%s27950_s1 + $0x1838] ss:$44 sps:$4 sm:$0xff]  }
 0x46c   :  { %10284 = vmatprep.subr.bf16.mxu0 %v20118_v61  ;;  %17979 = vmatprep.subr.bf16.mxu1 %v20119_v0  ;;  %v20178_v61 = vld [vmem:[%s27950_s1 + $0xd8c] ss:$44 sps:$4 sm:$0xff]   ;;  %v20179_v0 = vld [vmem:[%s27950_s1 + $0x1b50] ss:$44 sps:$4 sm:$0xff]  }
 0x46f   :  { %10285 = vmatpush1.bf16.msra.mxu0 %v20116_v1  ;;  %17980 = vmatpush3.bf16.msra.mxu1 %v20120_v34  ;;  %v20176_v1 = vld [vmem:[%s27950_s1 + $0xd88] ss:$44 sps:$4 sm:$0xff]   ;;  %v20180_v34 = vld [vmem:[%s27950_s1 + $0x1890] ss:$44 sps:$4 sm:$0xff]  }
 0x470   :  { %10286 = vmatprep.subr.bf16.mxu0 %v20123_v3  ;;  %17981 = vmatprep.subr.bf16.mxu1 %v20124_v4  ;;  %v20183_v3 = vld [vmem:[%s27950_s1 + $0xde4] ss:$44 sps:$4 sm:$0xff]   ;;  %v20184_v4 = vld [vmem:[%s27950_s1 + $0x1e68] ss:$44 sps:$4 sm:$0xff]  }
 0x473   :  { %10287 = vmatpush1.bf16.msra.mxu0 %v20121_v5  ;;  %17982 = vmatpush3.bf16.msra.mxu1 %v20125_v6  ;;  %v20181_v5 = vld [vmem:[%s27950_s1 + $0xde0] ss:$44 sps:$4 sm:$0xff]   ;;  %v20185_v6 = vld [vmem:[%s27950_s1 + $0x1ba8] ss:$44 sps:$4 sm:$0xff]  }
 0x474   :  { %10288 = vmatprep.subr.bf16.mxu0 %v20128_v7  ;;  %17983 = vmatprep.subr.bf16.mxu1 %v20129_v8  ;;  %v20188_v7 = vld [vmem:[%s27950_s1 + $0xe3c] ss:$44 sps:$4 sm:$0xff]   ;;  %v20189_v8 = vld [vmem:[%s27950_s1 + $0x1ec0] ss:$44 sps:$4 sm:$0xff]  }
 0x477   :  { %10289 = vmatpush1.bf16.msra.mxu0 %v20126_v9  ;;  %17984 = vmatpush3.bf16.msra.mxu1 %v20130_v11 }
 0x478   :  { %10290 = vmatprep.subr.bf16.mxu0 %v20133_v13  ;;  %17985 = vmatprep.subr.bf16.mxu1 %v20134_v12 }
 0x47b   :  { %10291 = vmatpush1.bf16.msra.mxu0 %v20131_v14  ;;  %17986 = vmatpush3.bf16.msra.mxu1 %v20135_v52 }
 0x47c   :  { %10292 = vmatprep.subr.bf16.mxu0 %v20138_v17  ;;  %17987 = vmatprep.subr.bf16.mxu1 %v20139_v16 }
 0x47f   :  { %10293 = vmatpush1.bf16.msra.mxu0 %v20136_v18  ;;  %17988 = vmatpush3.bf16.msra.mxu1 %v20140_v19 }
 0x480   :  { %10303 = vmatprep.subr.bf16.mxu0 %v20143_v21  ;;  %17995 = vmatprep.subr.bf16.mxu1 %v20144_v22 }
 0x482   :  { %10295 = vmatmul.mubr.bf16.vlgmr.msra.gmra.mrb[8].mxu0 %v21876_v23  ;;  %10702 = vmatmul.mubr.bf16.vlgmr.msra.gmra.mrb[20].mxu1 %v22287_v45  ;;  %v20151_v23 = vld [vmem:[%s27950_s1 + $0xbd0] ss:$44 sps:$4 sm:$0xff]  }
 0x483   :  { %10304 = vmatpush1.bf16.msra.mxu0 %v20141_v25  ;;  %17996 = vmatpush3.bf16.msra.mxu1 %v20145_v26 }
 0x484   :  { %10305 = vmatprep.subr.bf16.mxu0 %v20148_v28  ;;  %17997 = vmatprep.subr.bf16.mxu1 %v20149_v29 }
 0x485   :  { %10741 = vmatprep.mubr.bf16.mxu1 %v22302_v51  ;;  %10335 = vmatprep.mubr.bf16.mxu0 %v21888_v27  ;;  %v20159_v27 = vld [vmem:[%s27950_s1 + $0x19f0] ss:$44 sps:$4 sm:$0xff]  }
 0x487   :  { %10306 = vmatpush1.bf16.msra.mxu0 %v20146_v30  ;;  %17998 = vmatpush3.bf16.msra.mxu1 %v20150_v31 }
 0x488   :  { %10307 = vmatprep.subr.bf16.mxu0 %v20153_v32  ;;  %17999 = vmatprep.subr.bf16.mxu1 %v20154_v35 }
 0x48b   :  { %10308 = vmatpush1.bf16.msra.mxu0 %v20151_v23  ;;  %18000 = vmatpush3.bf16.msra.mxu1 %v20155_v36 }
 0x48c   :  { %10309 = vmatprep.subr.bf16.mxu0 %v20158_v43  ;;  %18001 = vmatprep.subr.bf16.mxu1 %v20159_v27 }
 0x48f   :  { %10310 = vmatpush1.bf16.msra.mxu0 %v20156_v44  ;;  %18002 = vmatpush3.bf16.msra.mxu1 %v20160_v49 }
 0x490   :  { %10311 = vmatprep.subr.bf16.mxu0 %v20163_v46  ;;  %18003 = vmatprep.subr.bf16.mxu1 %v20164_v47 }
 0x493   :  { %10312 = vmatpush1.bf16.msra.mxu0 %v20161_v48  ;;  %18004 = vmatpush3.bf16.msra.mxu1 %v20165_v50 }
 0x494   :  { %10313 = vmatprep.subr.bf16.mxu0 %v20168_v53  ;;  %18005 = vmatprep.subr.bf16.mxu1 %v20169_v54 }
 0x497   :  { %10314 = vmatpush1.bf16.msra.mxu0 %v20166_v55  ;;  %18006 = vmatpush3.bf16.msra.mxu1 %v20170_v56 }
 0x498   :  { %10315 = vmatprep.subr.bf16.mxu0 %v20173_v60  ;;  %18007 = vmatprep.subr.bf16.mxu1 %v20174_v57 }
 0x49b   :  { %10316 = vmatpush1.bf16.msra.mxu0 %v20171_v58  ;;  %18008 = vmatpush3.bf16.msra.mxu1 %v20175_v59 }
 0x49c   :  { %10317 = vmatprep.subr.bf16.mxu0 %v20178_v61  ;;  %18009 = vmatprep.subr.bf16.mxu1 %v20179_v0 }
 0x49f   :  { %10318 = vmatpush1.bf16.msra.mxu0 %v20176_v1  ;;  %18010 = vmatpush3.bf16.msra.mxu1 %v20180_v34 }
 0x4a0   :  { %10319 = vmatprep.subr.bf16.mxu0 %v20183_v3  ;;  %18017 = vmatprep.subr.bf16.mxu1 %v20184_v4 }
 0x4a2   :  { %10742 = vmatmul.mubr.bf16.vlgmr.msra.gmra.mrb[24].mxu1 %v22490_v62 }
 0x4a3   :  { %12 = vsyncpa [#allocation3], 0  ;;  %10320 = vmatpush1.bf16.msra.mxu0 %v20181_v5  ;;  %18018 = vmatpush3.bf16.msra.mxu1 %v20185_v6  ;;  %v20186_v9 = vld [vmem:[%s27950_s1 + $0xe38] ss:$44 sps:$4 sm:$0xff]   ;;  %v20190_v11 = vld [vmem:[%s27950_s1 + $0x1c00] ss:$44 sps:$4 sm:$0xff]  }
 0x4a4   :  { %10321 = vmatprep.subr.bf16.mxu0 %v20188_v7  ;;  %18019 = vmatprep.subr.bf16.mxu1 %v20189_v8  ;;  %v20193_v13 = vld [vmem:[%s27950_s1 + $0xe94] ss:$44 sps:$4 sm:$0xff]   ;;  %v20194_v12 = vld [vmem:[%s27950_s1 + $0x1f18] ss:$44 sps:$4 sm:$0xff]   ;;  %v20191_v14 = vld [vmem:[%s27950_s1 + $0xe90] ss:$44 sps:$4 sm:$0xff]  }
 0x4a5   :  { %10781 = vmatprep.mubr.bf16.mxu1 %v22506_v2  ;;  %v20195_v52 = vld [vmem:[%s27950_s1 + $0x1c58] ss:$44 sps:$4 sm:$0xff]   ;;  %v20199_v16 = vld [vmem:[%s27950_s1 + $0x1f70] ss:$44 sps:$4 sm:$0xff]   ;;  %v20196_v18 = vld [vmem:[%s27950_s1 + $0xee8] ss:$44 sps:$4 sm:$0xff]  }
 0x4a6   :  { %v20198_v17 = vld [vmem:[%s27950_s1 + $0xeec] ss:$44 sps:$4 sm:$0xff]   ;;  %v20200_v19 = vld [vmem:[%s27950_s1 + $0x1cb0] ss:$44 sps:$4 sm:$0xff]   ;;  %v20204_v22 = vld [vmem:[%s27950_s1 + $0x1fc8] ss:$44 sps:$4 sm:$0xff]  }
 0x4a7   :  { %10322 = vmatpush1.bf16.msra.mxu0 %v20186_v9  ;;  %18020 = vmatpush3.bf16.msra.mxu1 %v20190_v11  ;;  %v20203_v21 = vld [vmem:[%s27950_s1 + $0xf44] ss:$44 sps:$4 sm:$0xff]   ;;  %v20201_v25 = vld [vmem:[%s27950_s1 + $0xf40] ss:$44 sps:$4 sm:$0xff]   ;;  %v20205_v26 = vld [vmem:[%s27950_s1 + $0x1d08] ss:$44 sps:$4 sm:$0xff]  }
 0x4a8   :  { %10323 = vmatprep.subr.bf16.mxu0 %v20193_v13  ;;  %18021 = vmatprep.subr.bf16.mxu1 %v20194_v12  ;;  %v20208_v28 = vld [vmem:[%s27950_s1 + $0xf9c] ss:$44 sps:$4 sm:$0xff]   ;;  %v20209_v29 = vld [vmem:[%s27950_s1 + $0x2020] ss:$44 sps:$4 sm:$0xff]   ;;  %v20206_v30 = vld [vmem:[%s27950_s1 + $0xf98] ss:$44 sps:$4 sm:$0xff]  }
 0x4a9   :  { %v20210_v31 = vld [vmem:[%s27950_s1 + $0x1d60] ss:$44 sps:$4 sm:$0xff]   ;;  %v20214_v35 = vld [vmem:[%s27950_s1 + $0x2078] ss:$44 sps:$4 sm:$0xff]   ;;  %v20211_v23 = vld [vmem:[%s27950_s1 + $0xff0] ss:$44 sps:$4 sm:$0xff]  }
 0x4aa   :  { %v20213_v32 = vld [vmem:[%s27950_s1 + $0xff4] ss:$44 sps:$4 sm:$0xff]   ;;  %v20215_v36 = vld [vmem:[%s27950_s1 + $0x1db8] ss:$44 sps:$4 sm:$0xff]   ;;  %v20219_v27 = vld [vmem:[%s27950_s1 + $0x20d0] ss:$44 sps:$4 sm:$0xff]  }
 0x4ab   :  { %10324 = vmatpush1.bf16.msra.mxu0 %v20191_v14  ;;  %18022 = vmatpush3.bf16.msra.mxu1 %v20195_v52  ;;  %v20218_v43 = vld [vmem:[%s27950_s1 + $0x104c] ss:$44 sps:$4 sm:$0xff]   ;;  %v20216_v44 = vld [vmem:[%s27950_s1 + $0x1048] ss:$44 sps:$4 sm:$0xff]   ;;  %v20220_v49 = vld [vmem:[%s27950_s1 + $0x1e10] ss:$44 sps:$4 sm:$0xff]  }
 0x4ac   :  { %10325 = vmatprep.subr.bf16.mxu0 %v20198_v17  ;;  %18023 = vmatprep.subr.bf16.mxu1 %v20199_v16  ;;  %v20223_v46 = vld [vmem:[%s27950_s1 + $0x10a4] ss:$44 sps:$4 sm:$0xff]   ;;  %v20224_v47 = vld [vmem:[%s27950_s1 + $0x23e8] ss:$44 sps:$4 sm:$0xff]   ;;  %v20221_v48 = vld [vmem:[%s27950_s1 + $0x10a0] ss:$44 sps:$4 sm:$0xff]  }
 0x4ad   :  { %v20225_v50 = vld [vmem:[%s27950_s1 + $0x2128] ss:$44 sps:$4 sm:$0xff]   ;;  %v20229_v54 = vld [vmem:[%s27950_s1 + $0x2440] ss:$44 sps:$4 sm:$0xff]   ;;  %v20226_v55 = vld [vmem:[%s27950_s1 + $0x10f8] ss:$44 sps:$4 sm:$0xff]  }
 0x4ae   :  { %v20228_v53 = vld [vmem:[%s27950_s1 + $0x10fc] ss:$44 sps:$4 sm:$0xff]   ;;  %v20230_v56 = vld [vmem:[%s27950_s1 + $0x2180] ss:$44 sps:$4 sm:$0xff]   ;;  %v20235_v58 = vld [vmem:[%s27950_s1 + $0x21d8] ss:$44 sps:$4 sm:$0xff]  }
 0x4af   :  { %10326 = vmatpush1.bf16.msra.mxu0 %v20196_v18  ;;  %18024 = vmatpush3.bf16.msra.mxu1 %v20200_v19  ;;  %v20233_v60 = vld [vmem:[%s27950_s1 + $0x1154] ss:$44 sps:$4 sm:$0xff]   ;;  %v20231_v57 = vld [vmem:[%s27950_s1 + $0x1150] ss:$44 sps:$4 sm:$0xff]   ;;  %v20238_v59 = vld [vmem:[%s27950_s1 + $0x11ac] ss:$44 sps:$4 sm:$0xff]  }
 0x4b0   :  { %10327 = vmatprep.subr.bf16.mxu0 %v20203_v21  ;;  %18025 = vmatprep.subr.bf16.mxu1 %v20204_v22  ;;  %v20236_v61 = vld [vmem:[%s27950_s1 + $0x11a8] ss:$44 sps:$4 sm:$0xff]   ;;  %v20240_v0 = vld [vmem:[%s27950_s1 + $0x2230] ss:$44 sps:$4 sm:$0xff]   ;;  %v20241_v3 = vld [vmem:[%s27950_s1 + $0x1200] ss:$44 sps:$4 sm:$0xff]  }
 0x4b1   :  { %v20243_v1 = vld [vmem:[%s27950_s1 + $0x1204] ss:$44 sps:$4 sm:$0xff]   ;;  %v20244_v34 = vld [vmem:[%s27950_s1 + $0x2548] ss:$44 sps:$4 sm:$0xff]   ;;  %v20249_v6 = vld [vmem:[%s27950_s1 + $0x25a0] ss:$44 sps:$4 sm:$0xff]  }
 0x4b2   :  { %v20245_v4 = vld [vmem:[%s27950_s1 + $0x2288] ss:$44 sps:$4 sm:$0xff]   ;;  %v20246_v7 = vld [vmem:[%s27950_s1 + $0x1258] ss:$44 sps:$4 sm:$0xff]   ;;  %v20250_v8 = vld [vmem:[%s27950_s1 + $0x22e0] ss:$44 sps:$4 sm:$0xff]  }
 0x4b3   :  { %10328 = vmatpush1.bf16.msra.mxu0 %v20201_v25  ;;  %18026 = vmatpush3.bf16.msra.mxu1 %v20205_v26  ;;  %v20248_v5 = vld [vmem:[%s27950_s1 + $0x125c] ss:$44 sps:$4 sm:$0xff]   ;;  %v20253_v9 = vld [vmem:[%s27950_s1 + $0x12b4] ss:$44 sps:$4 sm:$0xff]   ;;  %v20254_v11 = vld [vmem:[%s27950_s1 + $0x25f8] ss:$44 sps:$4 sm:$0xff]  }
 0x4b4   :  { %10329 = vmatprep.subr.bf16.mxu0 %v20208_v28  ;;  %18027 = vmatprep.subr.bf16.mxu1 %v20209_v29  ;;  %v20251_v18 = vld [vmem:[%s27950_s1 + $0x12b0] ss:$44 sps:$4 sm:$0xff]   ;;  %v20255_v19 = vld [vmem:[%s27950_s1 + $0x2338] ss:$44 sps:$4 sm:$0xff]   ;;  %v20256_v28 = vld [vmem:[%s27950_s1 + $0x1308] ss:$44 sps:$4 sm:$0xff]  }
 0x4b5   :  { %v20258_v25 = vld [vmem:[%s27950_s1 + $0x130c] ss:$44 sps:$4 sm:$0xff]   ;;  %v20259_v26 = vld [vmem:[%s27950_s1 + $0x2650] ss:$44 sps:$4 sm:$0xff]   ;;  %vm15842_vm0 = vcmask 1041408   ;;  %vm21404_vm1 = vmmov 0  }
 0x4b6   :  { %v20260_v29 = vld [vmem:[%s27950_s1 + $0x2390] ss:$44 sps:$4 sm:$0xff]   ;;  %s21405_s0 = smov [#allocation2]   ;;  %vm15866_vm2 = vcmask 812032  }
 0x4b7   :  { %10330 = vmatpush1.bf16.msra.mxu0 %v20206_v30  ;;  %18028 = vmatpush3.bf16.msra.mxu1 %v20210_v31  ;;  %v20263_v30 = vld [vmem:[%s27950_s1 + $0x1364] ss:$44 sps:$4 sm:$0xff]   ;;  %v20264_v31 = vld [vmem:[%s27950_s1 + $0x2968] ss:$44 sps:$4 sm:$0xff]   ;;  %s15874_s12 = sshll.u32 %s21405_s0, 4  ;;  %s15875_s12 = int_to_ptr.vmem [resolvable:$true] %s15874_s12 }
 0x4b8   :  { %10331 = vmatprep.subr.bf16.mxu0 %v20213_v32  ;;  %18029 = vmatprep.subr.bf16.mxu1 %v20214_v35  ;;  %v20261_v32 = vld [vmem:[%s27950_s1 + $0x1360] ss:$44 sps:$4 sm:$0xff]   ;;  %v20265_v35 = vld [vmem:[%s27950_s1 + $0x26a8] ss:$44 sps:$4 sm:$0xff]   ;;  %s21377_s13 = scalar_lea.vmem %s15875_s12, 32  ;;  %p21382_p1 = scmp.lt.s32.totalorder %s15875_s12, %s15875_s12 }
 0x4b9   :  { %p21378_p0 = scmp.ne.s32.totalorder %s15875_s12, %s21377_s13  ;;  %p21383_p2 = scmp.lt.s32.totalorder %s21377_s13, %s21377_s13 }
 0x4bb   :  { %10332 = vmatpush1.bf16.msra.mxu0 %v20211_v23  ;;  %18030 = vmatpush3.bf16.msra.mxu1 %v20215_v36  ;;  %v20268_v23 = vld [vmem:[%s27950_s1 + $0x13bc] ss:$44 sps:$4 sm:$0xff]   ;;  %v20269_v36 = vld [vmem:[%s27950_s1 + $0x29c0] ss:$44 sps:$4 sm:$0xff]   ;;  %p21384_p3 = por %p21383_p2, %p21382_p1 }
 0x4bc   :  { %10333 = vmatprep.subr.bf16.mxu0 %v20218_v43  ;;  %18031 = vmatprep.subr.bf16.mxu1 %v20219_v27  ;;  %v20266_v43 = vld [vmem:[%s27950_s1 + $0x13b8] ss:$44 sps:$4 sm:$0xff]   ;;  %v20270_v27 = vld [vmem:[%s27950_s1 + $0x2700] ss:$44 sps:$4 sm:$0xff]  }
 0x4bd   :  { %p21385_p4 = pnand %p21384_p3, %p21378_p0 }
 0x4bf   :  { %10334 = vmatpush1.bf16.msra.mxu0 %v20216_v44  ;;  %18032 = vmatpush3.bf16.msra.mxu1 %v20220_v49  ;;  %v20273_v44 = vld [vmem:[%s27950_s1 + $0x1414] ss:$44 sps:$4 sm:$0xff]   ;;  %v20274_v49 = vld [vmem:[%s27950_s1 + $0x2a18] ss:$44 sps:$4 sm:$0xff]  }
 0x4c0   :  { %10344 = vmatprep.subr.bf16.mxu0 %v20223_v46  ;;  %18039 = vmatprep.subr.bf16.mxu1 %v20224_v47  ;;  %v20271_v46 = vld [vmem:[%s27950_s1 + $0x1410] ss:$44 sps:$4 sm:$0xff]   ;;  %v20275_v47 = vld [vmem:[%s27950_s1 + $0x2758] ss:$44 sps:$4 sm:$0xff]  }
 0x4c2   :  { %10336 = vmatmul.mubr.bf16.vlgmr.msra.gmra.mrb[8].mxu0 %v22079_v33  ;;  %10782 = vmatmul.mubr.bf16.vlgmr.msra.gmra.mrb[28].mxu1 %v22708_v20  ;;  %v20234_v33 = vld [vmem:[%s27950_s1 + $0x2498] ss:$44 sps:$4 sm:$0xff]  }
 0x4c3   :  { %10345 = vmatpush1.bf16.msra.mxu0 %v20221_v48  ;;  %18040 = vmatpush3.bf16.msra.mxu1 %v20225_v50  ;;  %v20278_v48 = vld [vmem:[%s27950_s1 + $0x146c] ss:$44 sps:$4 sm:$0xff]   ;;  %v20279_v50 = vld [vmem:[%s27950_s1 + $0x2a70] ss:$44 sps:$4 sm:$0xff]  }
 0x4c4   :  { %10346 = vmatprep.subr.bf16.mxu0 %v20228_v53  ;;  %18041 = vmatprep.subr.bf16.mxu1 %v20229_v54  ;;  %v20276_v53 = vld [vmem:[%s27950_s1 + $0x1468] ss:$44 sps:$4 sm:$0xff]   ;;  %v20280_v54 = vld [vmem:[%s27950_s1 + $0x27b0] ss:$44 sps:$4 sm:$0xff]  }
 0x4c5   :  { %10821 = vmatprep.mubr.bf16.mxu1 %v22717_v24  ;;  %10376 = vmatprep.mubr.bf16.mxu0 %v22092_v15  ;;  %v20239_v15 = vld [vmem:[%s27950_s1 + $0x24f0] ss:$44 sps:$4 sm:$0xff]  }
 0x4c7   :  { %10347 = vmatpush1.bf16.msra.mxu0 %v20226_v55  ;;  %18042 = vmatpush3.bf16.msra.mxu1 %v20230_v56  ;;  %v20283_v55 = vld [vmem:[%s27950_s1 + $0x14c4] ss:$44 sps:$4 sm:$0xff]   ;;  %v20284_v56 = vld [vmem:[%s27950_s1 + $0x2ac8] ss:$44 sps:$4 sm:$0xff]  }
 0x4c8   :  { %10348 = vmatprep.subr.bf16.mxu0 %v20233_v60  ;;  %18043 = vmatprep.subr.bf16.mxu1 %v20234_v33  ;;  %v20281_v60 = vld [vmem:[%s27950_s1 + $0x14c0] ss:$44 sps:$4 sm:$0xff]   ;;  %v20285_v33 = vld [vmem:[%s27950_s1 + $0x2808] ss:$44 sps:$4 sm:$0xff]  }
 0x4cb   :  { %10349 = vmatpush1.bf16.msra.mxu0 %v20231_v57  ;;  %18044 = vmatpush3.bf16.msra.mxu1 %v20235_v58  ;;  %v20288_v57 = vld [vmem:[%s27950_s1 + $0x151c] ss:$44 sps:$4 sm:$0xff]   ;;  %v20289_v58 = vld [vmem:[%s27950_s1 + $0x2b20] ss:$44 sps:$4 sm:$0xff]  }
 0x4cc   :  { %10350 = vmatprep.subr.bf16.mxu0 %v20238_v59  ;;  %18045 = vmatprep.subr.bf16.mxu1 %v20239_v15  ;;  %v20286_v59 = vld [vmem:[%s27950_s1 + $0x1518] ss:$44 sps:$4 sm:$0xff]   ;;  %v20290_v15 = vld [vmem:[%s27950_s1 + $0x2860] ss:$44 sps:$4 sm:$0xff]  }
 0x4cf   :  { %10351 = vmatpush1.bf16.msra.mxu0 %v20236_v61  ;;  %18046 = vmatpush3.bf16.msra.mxu1 %v20240_v0  ;;  %v20293_v61 = vld [vmem:[%s27950_s1 + $0x1574] ss:$44 sps:$4 sm:$0xff]   ;;  %v20294_v0 = vld [vmem:[%s27950_s1 + $0x2b78] ss:$44 sps:$4 sm:$0xff]  }
 0x4d0   :  { %10352 = vmatprep.subr.bf16.mxu0 %v20243_v1  ;;  %18047 = vmatprep.subr.bf16.mxu1 %v20244_v34  ;;  %v25464_v1 = vsub.s32 1, %v21563_v42  ;;  %v25469_v34 = vld [vmem:[%s27951_s2] sm:$0xff] }
 0x4d3   :  { %10353 = vmatpush1.bf16.msra.mxu0 %v20241_v3  ;;  %18048 = vmatpush3.bf16.msra.mxu1 %v20245_v4  ;;  %v20291_v3 = vld [vmem:[%s27950_s1 + $0x1570] ss:$44 sps:$4 sm:$0xff]   ;;  %v20295_v4 = vld [vmem:[%s27950_s1 + $0x28b8] ss:$44 sps:$4 sm:$0xff]  }
 0x4d4   :  { %10354 = vmatprep.subr.bf16.mxu0 %v20248_v5  ;;  %18049 = vmatprep.subr.bf16.mxu1 %v20249_v6  ;;  %v20298_v5 = vld [vmem:[%s27950_s1 + $0x15cc] ss:$44 sps:$4 sm:$0xff]   ;;  %v20299_v6 = vld [vmem:[%s27950_s1 + $0x2bd0] ss:$44 sps:$4 sm:$0xff]  }
 0x4d5   :  { %v25357_v13 = vpop.f32.mrb[4].mxu0  ;;  %v25359_v12 = vpop.f32.mrb[4].mxu1 }
 0x4d6   :  { %v25361_v14 = vpop.f32.mrb[5].mxu0  ;;  %v25363_v52 = vpop.f32.mrb[5].mxu1 }
 0x4d7   :  { %v9890_v17 = vpop.f32.mrb[6].mxu0  ;;  %v10218_v16 = vpop.f32.mrb[6].mxu1  ;;  %10355 = vmatpush1.bf16.msra.mxu0 %v20246_v7  ;;  %18050 = vmatpush3.bf16.msra.mxu1 %v20250_v8  ;;  %v1577_v7 = vrot.slane %v25469_v34, %v25464_v1  ;;  %v20296_v8 = vld [vmem:[%s27950_s1 + $0x15c8] ss:$44 sps:$4 sm:$0xff]  }
 0x4d8   :  { %v9891_v21 = vpop.f32.mrb[7].mxu0  ;;  %v10219_v22 = vpop.f32.mrb[7].mxu1  ;;  %10356 = vmatprep.subr.bf16.mxu0 %v20253_v9  ;;  %18051 = vmatprep.subr.bf16.mxu1 %v20254_v11  ;;  %v20300_v9 = vld [vmem:[%s27950_s1 + $0x2910] ss:$44 sps:$4 sm:$0xff]   ;;  %v20306_v17 = vld [vmem:[%s27952_s3 + $0x4] ss:$28 sps:$4 sm:$0xff]  }
 0x4d9   :  { %v20303_v11 = vld [vmem:[%s27950_s1 + $0x1624] ss:$44 sps:$4 sm:$0xff]   ;;  %v18223_v16 = vadd.f32 %v23779_v39, %v1577_v7  ;;  %v20309_v21 = vld [vmem:[%s27950_s1 + $0x167c] ss:$44 sps:$4 sm:$0xff]  }
 0x4da   :  { %v20312_v39 = vld [vmem:[%s27952_s3 + $0x3c] ss:$28 sps:$4 sm:$0xff]   ;;  %v20348_v7 = vld [vmem:[%s27952_s3 + $0x18c] ss:$28 sps:$4 sm:$0xff]  }
 0x4db   :  { %10357 = vmatpush1.bf16.msra.mxu0 %v20251_v18  ;;  %18052 = vmatpush3.bf16.msra.mxu1 %v20255_v19  ;;  %v20301_v18 = vld [vmem:[%s27950_s1 + $0x1620] ss:$44 sps:$4 sm:$0xff]   ;;  %v25510_v22 = vpack.c.bf16 %v18223_v16, %v18223_v16  ;;  %v20351_v16 = vld [vmem:[%s27950_s1 + $0x18e4] ss:$44 sps:$4 sm:$0xff]  }
 0x4dc   :  { %10358 = vmatprep.subr.bf16.mxu0 %v20258_v25  ;;  %18053 = vmatprep.subr.bf16.mxu1 %v20259_v26  ;;  %v20304_v19 = vld [vmem:[%s27952_s3] ss:$28 sps:$4 sm:$0xff]   ;;  %v20307_v25 = vld [vmem:[%s27950_s1 + $0x1678] ss:$44 sps:$4 sm:$0xff]  }
 0x4dd   :  { %v20310_v26 = vld [vmem:[%s27952_s3 + $0x38] ss:$28 sps:$4 sm:$0xff]  }
 0x4df   :  { %10359 = vmatpush1.bf16.msra.mxu0 %v20256_v28  ;;  %18054 = vmatpush3.bf16.msra.mxu1 %v20260_v29  ;;  %v20315_v28 = vld [vmem:[%s27950_s1 + $0x16d4] ss:$44 sps:$4 sm:$0xff]  }
 0x4e0   :  { %10360 = vmatprep.subr.bf16.mxu0 %v20263_v30  ;;  %18061 = vmatprep.subr.bf16.mxu1 %v20264_v31 }
 0x4e2   :  { %10822 = vmatmul.mubr.bf16.vlgmr.msra.gmra.mrb[32].mxu1 %v22905_v40 }
 0x4e3   :  { %10361 = vmatpush1.bf16.msra.mxu0 %v20261_v32  ;;  %18062 = vmatpush3.bf16.msra.mxu1 %v20265_v35  ;;  %v20313_v35 = vld [vmem:[%s27950_s1 + $0x16d0] ss:$44 sps:$4 sm:$0xff]  }
 0x4e4   :  { %10362 = vmatprep.subr.bf16.mxu0 %v20268_v23  ;;  %18063 = vmatprep.subr.bf16.mxu1 %v20269_v36  ;;  %v20316_v23 = vld [vmem:[%s27952_s3 + $0x70] ss:$28 sps:$4 sm:$0xff]  }
 0x4e5   :  { %10861 = vmatprep.mubr.bf16.mxu1 %v22921_v10 }
 0x4e7   :  { %10363 = vmatpush1.bf16.msra.mxu0 %v20266_v43  ;;  %18064 = vmatpush3.bf16.msra.mxu1 %v20270_v27  ;;  %v20324_v43 = vld [vmem:[%s27952_s3 + $0xac] ss:$28 sps:$4 sm:$0xff]  }
 0x4e8   :  { %10364 = vmatprep.subr.bf16.mxu0 %v20273_v44  ;;  %18065 = vmatprep.subr.bf16.mxu1 %v20274_v49  ;;  %v20319_v27 = vld [vmem:[%s27950_s1 + $0x1728] ss:$44 sps:$4 sm:$0xff]   ;;  %v20327_v49 = vld [vmem:[%s27950_s1 + $0x1784] ss:$44 sps:$4 sm:$0xff]  }
 0x4e9   :  { %v20322_v44 = vld [vmem:[%s27952_s3 + $0xa8] ss:$28 sps:$4 sm:$0xff]  }
 0x4eb   :  { %10365 = vmatpush1.bf16.msra.mxu0 %v20271_v46  ;;  %18066 = vmatpush3.bf16.msra.mxu1 %v20275_v47  ;;  %v20330_v46 = vld [vmem:[%s27952_s3 + $0xe4] ss:$28 sps:$4 sm:$0xff]   ;;  %v1567_v47 = vld [vmem:[%s27951_s2 + $0x8] sm:$0x7] }
 0x4ec   :  { %10366 = vmatprep.subr.bf16.mxu0 %v20278_v48  ;;  %18067 = vmatprep.subr.bf16.mxu1 %v20279_v50  ;;  %v25556_v48 = vsub.s32 2, %v21563_v42  ;;  %v20325_v50 = vld [vmem:[%s27950_s1 + $0x1780] ss:$44 sps:$4 sm:$0xff]  }
 0x4ef   :  { %10367 = vmatpush1.bf16.msra.mxu0 %v20276_v53  ;;  %18068 = vmatpush3.bf16.msra.mxu1 %v20280_v54  ;;  %v20328_v53 = vld [vmem:[%s27952_s3 + $0xe0] ss:$28 sps:$4 sm:$0xff]  }
 0x4f0   :  { %10368 = vmatprep.subr.bf16.mxu0 %v20283_v55  ;;  %18069 = vmatprep.subr.bf16.mxu1 %v20284_v56  ;;  %v20333_v54 = vld [vmem:[%s27950_s1 + $0x17dc] ss:$44 sps:$4 sm:$0xff]   ;;  %v1613_v56 = vrot.slane %v1567_v47, %v25556_v48  ;;  %v20379_v47 = vld [vmem:[%s27950_s1 + $0x1a98] ss:$44 sps:$4 sm:$0xff]  }
 0x4f1   :  { %v20336_v55 = vld [vmem:[%s27952_s3 + $0x11c] ss:$28 sps:$4 sm:$0xff]  }
 0x4f3   :  { %10369 = vmatpush1.bf16.msra.mxu0 %v20281_v60  ;;  %18070 = vmatpush3.bf16.msra.mxu1 %v20285_v33  ;;  %v20331_v60 = vld [vmem:[%s27950_s1 + $0x17d8] ss:$44 sps:$4 sm:$0xff]  }
 0x4f4   :  { %10370 = vmatprep.subr.bf16.mxu0 %v20288_v57  ;;  %18071 = vmatprep.subr.bf16.mxu1 %v20289_v58  ;;  %v20334_v33 = vld [vmem:[%s27952_s3 + $0x118] ss:$28 sps:$4 sm:$0xff]  }
 0x4f5   :  { %v17923_v29 = vpop.f32.mrb[8].mxu1  ;;  %v20339_v57 = vld [vmem:[%s27950_s1 + $0x1834] ss:$44 sps:$4 sm:$0xff]  }
 0x4f6   :  { %v17924_v30 = vpop.f32.mrb[9].mxu1  ;;  %v20342_v58 = vld [vmem:[%s27952_s3 + $0x154] ss:$28 sps:$4 sm:$0xff]  }
 0x4f7   :  { %10371 = vmatpush1.bf16.msra.mxu0 %v20286_v59  ;;  %18072 = vmatpush3.bf16.msra.mxu1 %v20290_v15  ;;  %v17925_v31 = vadd.f32 %v17924_v30, %v17923_v29  ;;  %v17926_v32 = vpop.f32.mrb[10].mxu1  ;;  %v20366_v29 = vld [vmem:[%s27952_s3 + $0x234] ss:$28 sps:$4 sm:$0xff]  }
 0x4f8   :  { %10372 = vmatprep.subr.bf16.mxu0 %v20293_v61  ;;  %18073 = vmatprep.subr.bf16.mxu1 %v20294_v0  ;;  %v17927_v36 = vpop.f32.mrb[11].mxu1  ;;  %v20337_v0 = vld [vmem:[%s27950_s1 + $0x1830] ss:$44 sps:$4 sm:$0xff]   ;;  %v20369_v32 = vld [vmem:[%s27950_s1 + $0x19ec] ss:$44 sps:$4 sm:$0xff]  }
 0x4f9   :  { %v10584_v59 = vadd.f32 %v17925_v31, %v1613_v56  ;;  %v20361_v30 = vld [vmem:[%s27950_s1 + $0x1990] ss:$44 sps:$4 sm:$0xff]   ;;  %v20370_v36 = vld [vmem:[%s27952_s3 + $0x268] ss:$28 sps:$4 sm:$0xff]  }
 0x4fa   :  { %v20364_v31 = vld [vmem:[%s27952_s3 + $0x230] ss:$28 sps:$4 sm:$0xff]  }
 0x4fb   :  { %10373 = vmatpush1.bf16.msra.mxu0 %v20291_v3  ;;  %18074 = vmatpush3.bf16.msra.mxu1 %v20295_v4  ;;  %v20340_v3 = vld [vmem:[%s27952_s3 + $0x150] ss:$28 sps:$4 sm:$0xff]  }
 0x4fc   :  { %10374 = vmatprep.subr.bf16.mxu0 %v20298_v5  ;;  %18075 = vmatprep.subr.bf16.mxu1 %v20299_v6  ;;  %v20345_v6 = vld [vmem:[%s27950_s1 + $0x188c] ss:$44 sps:$4 sm:$0xff]  }
 0x4ff   :  { %10375 = vmatpush1.bf16.msra.mxu0 %v20296_v8  ;;  %18076 = vmatpush3.bf16.msra.mxu1 %v20300_v9 }
 0x500   :  { %10385 = vmatprep.subr.bf16.mxu0 %v20303_v11  ;;  %14789 = vmatprep.subr.bf16.mxu1 %v20306_v17  ;;  %v20343_v11 = vld [vmem:[%s27950_s1 + $0x1888] ss:$44 sps:$4 sm:$0xff]  }
 0x501   :  { %v20346_v17 = vld [vmem:[%s27952_s3 + $0x188] ss:$28 sps:$4 sm:$0xff]  }
 0x502   :  { %10862 = vmatmul.mubr.bf16.vlgmr.msra.gmra.mrb[36].mxu1 %v23109_v63  ;;  %10377 = vmatmul.mubr.bf16.vlgmr.msra.gmra.mrb[8].mxu0 %v22287_v45  ;;  %v20318_v45 = vld [vmem:[%s27952_s3 + $0x74] ss:$28 sps:$4 sm:$0xff]  }
 0x503   :  { %10386 = vmatpush1.bf16.msra.mxu0 %v20301_v18  ;;  %14790 = vmatpush1.bf16.msra.mxu1 %v20304_v19  ;;  %v20354_v18 = vld [vmem:[%s27952_s3 + $0x1c4] ss:$28 sps:$4 sm:$0xff]  }
 0x504   :  { %14821 = vmatprep.mubr.bf16.mxu1 %v25510_v22  ;;  %10387 = vmatprep.subr.bf16.mxu0 %v20309_v21  ;;  %v20349_v19 = vld [vmem:[%s27950_s1 + $0x18e0] ss:$44 sps:$4 sm:$0xff]  }
 0x505   :  { %14791 = vmatprep.subr.bf16.mxu1 %v20312_v39  ;;  %10417 = vmatprep.mubr.bf16.mxu0 %v22302_v51  ;;  %v20321_v51 = vld [vmem:[%s27950_s1 + $0x172c] ss:$44 sps:$4 sm:$0xff]   ;;  %v20352_v21 = vld [vmem:[%s27952_s3 + $0x1c0] ss:$28 sps:$4 sm:$0xff]  }
 0x506   :  { %v20357_v39 = vld [vmem:[%s27950_s1 + $0x193c] ss:$44 sps:$4 sm:$0xff]  }
 0x507   :  { %10388 = vmatpush1.bf16.msra.mxu0 %v20307_v25  ;;  %14792 = vmatpush1.bf16.msra.mxu1 %v20310_v26  ;;  %v20360_v25 = vld [vmem:[%s27952_s3 + $0x1fc] ss:$28 sps:$4 sm:$0xff]  }
 0x508   :  { %10389 = vmatprep.subr.bf16.mxu0 %v20315_v28  ;;  %14793 = vmatprep.subr.bf16.mxu1 %v20318_v45  ;;  %v20355_v26 = vld [vmem:[%s27950_s1 + $0x1938] ss:$44 sps:$4 sm:$0xff]   ;;  %v20363_v45 = vld [vmem:[%s27950_s1 + $0x1994] ss:$44 sps:$4 sm:$0xff]  }
 0x509   :  { %v20358_v28 = vld [vmem:[%s27952_s3 + $0x1f8] ss:$28 sps:$4 sm:$0xff]  }
 0x50b   :  { %10390 = vmatpush1.bf16.msra.mxu0 %v20313_v35  ;;  %14794 = vmatpush1.bf16.msra.mxu1 %v20316_v23  ;;  %v20372_v35 = vld [vmem:[%s27952_s3 + $0x26c] ss:$28 sps:$4 sm:$0xff]  }
 0x50c   :  { %10391 = vmatprep.subr.bf16.mxu0 %v20321_v51  ;;  %14795 = vmatprep.subr.bf16.mxu1 %v20324_v43  ;;  %v20367_v23 = vld [vmem:[%s27950_s1 + $0x19e8] ss:$44 sps:$4 sm:$0xff]   ;;  %v20375_v51 = vld [vmem:[%s27950_s1 + $0x1a44] ss:$44 sps:$4 sm:$0xff]  }
 0x50d   :  { %v20378_v43 = vld [vmem:[%s27952_s3 + $0x2a4] ss:$28 sps:$4 sm:$0xff]  }
 0x50f   :  { %10392 = vmatpush1.bf16.msra.mxu0 %v20319_v27  ;;  %14796 = vmatpush1.bf16.msra.mxu1 %v20322_v44  ;;  %v20373_v27 = vld [vmem:[%s27950_s1 + $0x1a40] ss:$44 sps:$4 sm:$0xff]  }
 0x510   :  { %10393 = vmatprep.subr.bf16.mxu0 %v20327_v49  ;;  %14797 = vmatprep.subr.bf16.mxu1 %v20330_v46  ;;  %v20376_v44 = vld [vmem:[%s27952_s3 + $0x2a0] ss:$28 sps:$4 sm:$0xff]  }
 0x511   :  { %v20381_v49 = vld [vmem:[%s27950_s1 + $0x1a9c] ss:$44 sps:$4 sm:$0xff]  }
 0x512   :  { %v20384_v46 = vld [vmem:[%s27952_s3 + $0x2dc] ss:$28 sps:$4 sm:$0xff]  }
 0x513   :  { %10394 = vmatpush1.bf16.msra.mxu0 %v20325_v50  ;;  %14798 = vmatpush1.bf16.msra.mxu1 %v20328_v53  ;;  %v20382_v50 = vld [vmem:[%s27952_s3 + $0x2d8] ss:$28 sps:$4 sm:$0xff]   ;;  %v25676_v53 = vsub.s32 0, %v21563_v42 }
 0x514   :  { %10395 = vmatprep.subr.bf16.mxu0 %v20333_v54  ;;  %14799 = vmatprep.subr.bf16.mxu1 %v20336_v55  ;;  %v20387_v54 = vld [vmem:[%s27950_s1 + $0x1af4] ss:$44 sps:$4 sm:$0xff]  }
 0x515   :  { %v17945_v15 = vpop.f32.mrb[12].mxu1  ;;  %v20390_v55 = vld [vmem:[%s27952_s3 + $0x314] ss:$28 sps:$4 sm:$0xff]  }
 0x516   :  { %v17946_v61 = vpop.f32.mrb[13].mxu1 }
 0x517   :  { %10396 = vmatpush1.bf16.msra.mxu0 %v20331_v60  ;;  %14800 = vmatpush1.bf16.msra.mxu1 %v20334_v33  ;;  %v17947_v4 = vadd.f32 %v17946_v61, %v17945_v15  ;;  %v17948_v5 = vpop.f32.mrb[14].mxu1  ;;  %v1584_v60 = vsub.s32 3, %v21563_v42  ;;  %v1573_v61 = vrot.slane %v25469_v34, %v25676_v53 }
 0x518   :  { %10397 = vmatprep.subr.bf16.mxu0 %v20339_v57  ;;  %14801 = vmatprep.subr.bf16.mxu1 %v20342_v58  ;;  %v17949_v8 = vpop.f32.mrb[15].mxu1  ;;  %v20385_v57 = vld [vmem:[%s27950_s1 + $0x1af0] ss:$44 sps:$4 sm:$0xff]  }
 0x519   :  { %v25595_v9 = vadd.f32 %v17947_v4, %v10584_v59  ;;  %v20388_v58 = vld [vmem:[%s27952_s3 + $0x310] ss:$28 sps:$4 sm:$0xff]   ;;  %v20394_v8 = vld [vmem:[%s27952_s3 + $0x348] ss:$28 sps:$4 sm:$0xff]  }
 0x51b   :  { %10398 = vmatpush1.bf16.msra.mxu0 %v20337_v0  ;;  %14802 = vmatpush1.bf16.msra.mxu1 %v20340_v3  ;;  %v20393_v0 = vld [vmem:[%s27950_s1 + $0x1b4c] ss:$44 sps:$4 sm:$0xff]  }
 0x51c   :  { %10399 = vmatprep.subr.bf16.mxu0 %v20345_v6  ;;  %14803 = vmatprep.subr.bf16.mxu1 %v20348_v7  ;;  %v20396_v3 = vld [vmem:[%s27952_s3 + $0x34c] ss:$28 sps:$4 sm:$0xff]   ;;  %v1585_v6 = vrot.slane %v25469_v34, %v1584_v60 }
 0x51d   :  { %v20391_v7 = vld [vmem:[%s27950_s1 + $0x1b48] ss:$44 sps:$4 sm:$0xff]  }
 0x51f   :  { %10400 = vmatpush1.bf16.msra.mxu0 %v20343_v11  ;;  %14804 = vmatpush1.bf16.msra.mxu1 %v20346_v17  ;;  %v18222_v11 = vadd.f32 %v23775_v37, %v1573_v61  ;;  %v20402_v17 = vld [vmem:[%s27952_s3 + $0x384] ss:$28 sps:$4 sm:$0xff]  }
 0x520   :  { %10401 = vmatprep.subr.bf16.mxu0 %v20351_v16  ;;  %14805 = vmatprep.subr.bf16.mxu1 %v20354_v18  ;;  %v18225_v16 = vadd.f32 %v23781_v41, %v1585_v6  ;;  %v20397_v18 = vld [vmem:[%s27950_s1 + $0x1ba0] ss:$44 sps:$4 sm:$0xff]   ;;  %v20408_v41 = vld [vmem:[%s27952_s3 + $0x3bc] ss:$28 sps:$4 sm:$0xff]  }
 0x521   :  { %v20400_v37 = vld [vmem:[%s27952_s3 + $0x380] ss:$28 sps:$4 sm:$0xff]  }
 0x522   :  { %v20445_v6 = vld [vmem:[%s27950_s1 + $0x1e60] ss:$44 sps:$4 sm:$0xff]  }
 0x523   :  { %10402 = vmatpush1.bf16.msra.mxu0 %v20349_v19  ;;  %14806 = vmatpush1.bf16.msra.mxu1 %v20352_v21  ;;  %v25725_v19 = vpack.c.bf16 %v18222_v11, %v18222_v11  ;;  %v20405_v21 = vld [vmem:[%s27950_s1 + $0x1bfc] ss:$44 sps:$4 sm:$0xff]  }
 0x524   :  { %10403 = vmatprep.subr.bf16.mxu0 %v20357_v39  ;;  %14807 = vmatprep.subr.bf16.mxu1 %v20360_v25  ;;  %v25733_v39 = vpack.c.bf16 %v18225_v16, %v18225_v16  ;;  %v20403_v25 = vld [vmem:[%s27950_s1 + $0x1bf8] ss:$44 sps:$4 sm:$0xff]   ;;  %v20459_v16 = vld [vmem:[%s27950_s1 + $0x1f14] ss:$44 sps:$4 sm:$0xff]  }
 0x525   :  { %v20456_v11 = vld [vmem:[%s27952_s3 + $0x57c] ss:$28 sps:$4 sm:$0xff]  }
 0x527   :  { %10404 = vmatpush1.bf16.msra.mxu0 %v20355_v26  ;;  %14808 = vmatpush1.bf16.msra.mxu1 %v20358_v28  ;;  %v20406_v26 = vld [vmem:[%s27952_s3 + $0x3b8] ss:$28 sps:$4 sm:$0xff]  }
 0x528   :  { %10405 = vmatprep.subr.bf16.mxu0 %v20363_v45  ;;  %14809 = vmatprep.subr.bf16.mxu1 %v20366_v29  ;;  %v20411_v28 = vld [vmem:[%s27950_s1 + $0x1c54] ss:$44 sps:$4 sm:$0xff]   ;;  %v20409_v45 = vld [vmem:[%s27950_s1 + $0x1c50] ss:$44 sps:$4 sm:$0xff]  }
 0x529   :  { %v20412_v29 = vld [vmem:[%s27952_s3 + $0x3f0] ss:$28 sps:$4 sm:$0xff]  }
 0x52b   :  { %10406 = vmatpush1.bf16.msra.mxu0 %v20361_v30  ;;  %14810 = vmatpush1.bf16.msra.mxu1 %v20364_v31  ;;  %v20417_v30 = vld [vmem:[%s27950_s1 + $0x1cac] ss:$44 sps:$4 sm:$0xff]   ;;  %v20415_v31 = vld [vmem:[%s27950_s1 + $0x1ca8] ss:$44 sps:$4 sm:$0xff]  }
 0x52c   :  { %10407 = vmatprep.subr.bf16.mxu0 %v20369_v32  ;;  %14811 = vmatprep.subr.bf16.mxu1 %v20372_v35  ;;  %v20418_v32 = vld [vmem:[%s27952_s3 + $0x428] ss:$28 sps:$4 sm:$0xff]  }
 0x52d   :  { %v20423_v35 = vld [vmem:[%s27950_s1 + $0x1d04] ss:$44 sps:$4 sm:$0xff]  }
 0x52f   :  { %10408 = vmatpush1.bf16.msra.mxu0 %v20367_v23  ;;  %14812 = vmatpush1.bf16.msra.mxu1 %v20370_v36  ;;  %v20426_v23 = vld [vmem:[%s27952_s3 + $0x464] ss:$28 sps:$4 sm:$0xff]  }
 0x530   :  { %10409 = vmatprep.subr.bf16.mxu0 %v20375_v51  ;;  %14813 = vmatprep.subr.bf16.mxu1 %v20378_v43  ;;  %v20421_v36 = vld [vmem:[%s27950_s1 + $0x1d00] ss:$44 sps:$4 sm:$0xff]   ;;  %v20429_v43 = vld [vmem:[%s27950_s1 + $0x1d5c] ss:$44 sps:$4 sm:$0xff]  }
 0x531   :  { %v20424_v51 = vld [vmem:[%s27952_s3 + $0x460] ss:$28 sps:$4 sm:$0xff]  }
 0x533   :  { %10410 = vmatpush1.bf16.msra.mxu0 %v20373_v27  ;;  %14814 = vmatpush1.bf16.msra.mxu1 %v20376_v44  ;;  %v20432_v27 = vld [vmem:[%s27952_s3 + $0x49c] ss:$28 sps:$4 sm:$0xff]  }
 0x534   :  { %10411 = vmatprep.subr.bf16.mxu0 %v20381_v49  ;;  %14815 = vmatprep.subr.bf16.mxu1 %v20384_v46  ;;  %v20427_v44 = vld [vmem:[%s27950_s1 + $0x1d58] ss:$44 sps:$4 sm:$0xff]   ;;  %v20435_v46 = vld [vmem:[%s27950_s1 + $0x1db4] ss:$44 sps:$4 sm:$0xff]  }
 0x535   :  { %v17967_v56 = vpop.f32.mrb[16].mxu1  ;;  %v20430_v49 = vld [vmem:[%s27952_s3 + $0x498] ss:$28 sps:$4 sm:$0xff]  }
 0x536   :  { %v17968_v33 = vpop.f32.mrb[17].mxu1 }
 0x537   :  { %10412 = vmatpush1.bf16.msra.mxu0 %v20379_v47  ;;  %14816 = vmatpush1.bf16.msra.mxu1 %v20382_v50  ;;  %v17969_v59 = vadd.f32 %v17968_v33, %v17967_v56  ;;  %v17970_v15 = vpop.f32.mrb[18].mxu1  ;;  %v20438_v47 = vld [vmem:[%s27952_s3 + $0x4d4] ss:$28 sps:$4 sm:$0xff]  }
 0x538   :  { %10413 = vmatprep.subr.bf16.mxu0 %v20387_v54  ;;  %14817 = vmatprep.subr.bf16.mxu1 %v20390_v55  ;;  %v17971_v4 = vpop.f32.mrb[19].mxu1  ;;  %v20433_v55 = vld [vmem:[%s27950_s1 + $0x1db0] ss:$44 sps:$4 sm:$0xff]  }
 0x539   :  { %v25700_v5 = vadd.f32 %v17969_v59, %v25595_v9  ;;  %v20399_v9 = vld [vmem:[%s27950_s1 + $0x1ba4] ss:$44 sps:$4 sm:$0xff]   ;;  %v20444_v59 = vld [vmem:[%s27952_s3 + $0x50c] ss:$28 sps:$4 sm:$0xff]  }
 0x53a   :  { %v20436_v56 = vld [vmem:[%s27952_s3 + $0x4d0] ss:$28 sps:$4 sm:$0xff]  }
 0x53b   :  { %10414 = vmatpush1.bf16.msra.mxu0 %v20385_v57  ;;  %14818 = vmatpush1.bf16.msra.mxu1 %v20388_v58  ;;  %v20441_v58 = vld [vmem:[%s27950_s1 + $0x1e0c] ss:$44 sps:$4 sm:$0xff]   ;;  %v20447_v4 = vld [vmem:[%s27950_s1 + $0x1e64] ss:$44 sps:$4 sm:$0xff]  }
 0x53c   :  { %10415 = vmatprep.subr.bf16.mxu0 %v20393_v0  ;;  %14819 = vmatprep.subr.bf16.mxu1 %v20396_v3  ;;  %v20439_v0 = vld [vmem:[%s27950_s1 + $0x1e08] ss:$44 sps:$4 sm:$0xff]  }
 0x53d   :  { %v20442_v3 = vld [vmem:[%s27952_s3 + $0x508] ss:$28 sps:$4 sm:$0xff]  }
 0x53f   :  { %10416 = vmatpush1.bf16.msra.mxu0 %v20391_v7  ;;  %14820 = vmatpush1.bf16.msra.mxu1 %v20394_v8  ;;  %v20448_v7 = vld [vmem:[%s27952_s3 + $0x540] ss:$28 sps:$4 sm:$0xff]  }
 0x540   :  { %10426 = vmatprep.subr.bf16.mxu0 %v20399_v9  ;;  %14830 = vmatprep.subr.bf16.mxu1 %v20402_v17  ;;  %v20453_v8 = vld [vmem:[%s27950_s1 + $0x1ebc] ss:$44 sps:$4 sm:$0xff]   ;;  %v20451_v9 = vld [vmem:[%s27950_s1 + $0x1eb8] ss:$44 sps:$4 sm:$0xff]  }
 0x541   :  { %v20454_v17 = vld [vmem:[%s27952_s3 + $0x578] ss:$28 sps:$4 sm:$0xff]  }
 0x542   :  { %14822 = vmatmul.mubr.bf16.vlgmr.msra.gmra.mrb[40].mxu1 %v25725_v19  ;;  %10418 = vmatmul.mubr.bf16.vlgmr.msra.gmra.mrb[8].mxu0 %v22490_v62  ;;  %v20414_v62 = vld [vmem:[%s27952_s3 + $0x3f4] ss:$28 sps:$4 sm:$0xff]  }
 0x543   :  { %10427 = vmatpush1.bf16.msra.mxu0 %v20397_v18  ;;  %14831 = vmatpush1.bf16.msra.mxu1 %v20400_v37  ;;  %v20462_v18 = vld [vmem:[%s27952_s3 + $0x5b4] ss:$28 sps:$4 sm:$0xff]  }
 0x544   :  { %14862 = vmatprep.mubr.bf16.mxu1 %v25733_v39  ;;  %10428 = vmatprep.subr.bf16.mxu0 %v20405_v21  ;;  %v20457_v37 = vld [vmem:[%s27950_s1 + $0x1f10] ss:$44 sps:$4 sm:$0xff]  }
 0x545   :  { %14832 = vmatprep.subr.bf16.mxu1 %v20408_v41  ;;  %10458 = vmatprep.mubr.bf16.mxu0 %v22506_v2  ;;  %v20420_v2 = vld [vmem:[%s27952_s3 + $0x42c] ss:$28 sps:$4 sm:$0xff]  }
 0x546   :  { %v20460_v21 = vld [vmem:[%s27952_s3 + $0x5b0] ss:$28 sps:$4 sm:$0xff]  }
 0x547   :  { %10429 = vmatpush1.bf16.msra.mxu0 %v20403_v25  ;;  %14833 = vmatpush1.bf16.msra.mxu1 %v20406_v26  ;;  %v20465_v41 = vld [vmem:[%s27950_s1 + $0x1f6c] ss:$44 sps:$4 sm:$0xff]   ;;  %v20463_v26 = vld [vmem:[%s27950_s1 + $0x1f68] ss:$44 sps:$4 sm:$0xff]  }
 0x548   :  { %10430 = vmatprep.subr.bf16.mxu0 %v20411_v28  ;;  %14834 = vmatprep.subr.bf16.mxu1 %v20414_v62  ;;  %v20468_v25 = vld [vmem:[%s27952_s3 + $0x5ec] ss:$28 sps:$4 sm:$0xff]   ;;  %v20471_v62 = vld [vmem:[%s27950_s1 + $0x1fc4] ss:$44 sps:$4 sm:$0xff]  }
 0x549   :  { %v20466_v28 = vld [vmem:[%s27952_s3 + $0x5e8] ss:$28 sps:$4 sm:$0xff]  }
 0x54b   :  { %10431 = vmatpush1.bf16.msra.mxu0 %v20409_v45  ;;  %14835 = vmatpush1.bf16.msra.mxu1 %v20412_v29  ;;  %v20474_v45 = vld [vmem:[%s27952_s3 + $0x624] ss:$28 sps:$4 sm:$0xff]  }
 0x54c   :  { %10432 = vmatprep.subr.bf16.mxu0 %v20417_v30  ;;  %14836 = vmatprep.subr.bf16.mxu1 %v20420_v2  ;;  %v20469_v29 = vld [vmem:[%s27950_s1 + $0x1fc0] ss:$44 sps:$4 sm:$0xff]   ;;  %v20477_v2 = vld [vmem:[%s27950_s1 + $0x201c] ss:$44 sps:$4 sm:$0xff]  }
 0x54d   :  { %v20472_v30 = vld [vmem:[%s27952_s3 + $0x620] ss:$28 sps:$4 sm:$0xff]  }
 0x54f   :  { %10433 = vmatpush1.bf16.msra.mxu0 %v20415_v31  ;;  %14837 = vmatpush1.bf16.msra.mxu1 %v20418_v32  ;;  %v20480_v31 = vld [vmem:[%s27952_s3 + $0x65c] ss:$28 sps:$4 sm:$0xff]  }
 0x550   :  { %10434 = vmatprep.subr.bf16.mxu0 %v20423_v35  ;;  %14838 = vmatprep.subr.bf16.mxu1 %v20426_v23  ;;  %v20475_v32 = vld [vmem:[%s27950_s1 + $0x2018] ss:$44 sps:$4 sm:$0xff]   ;;  %v20483_v23 = vld [vmem:[%s27950_s1 + $0x2074] ss:$44 sps:$4 sm:$0xff]  }
 0x551   :  { %v20478_v35 = vld [vmem:[%s27952_s3 + $0x658] ss:$28 sps:$4 sm:$0xff]  }
 0x553   :  { %10435 = vmatpush1.bf16.msra.mxu0 %v20421_v36  ;;  %14839 = vmatpush1.bf16.msra.mxu1 %v20424_v51  ;;  %v20486_v36 = vld [vmem:[%s27952_s3 + $0x694] ss:$28 sps:$4 sm:$0xff]  }
 0x554   :  { %10436 = vmatprep.subr.bf16.mxu0 %v20429_v43  ;;  %14840 = vmatprep.subr.bf16.mxu1 %v20432_v27  ;;  %v1592_v43 = vsub.s32 5, %v21563_v42 }
 0x555   :  { %v17989_v50 = vpop.f32.mrb[20].mxu1 }
 0x556   :  { %v17990_v54 = vpop.f32.mrb[21].mxu1 }
 0x557   :  { %10437 = vmatpush1.bf16.msra.mxu0 %v20427_v44  ;;  %14841 = vmatpush1.bf16.msra.mxu1 %v20430_v49  ;;  %v17991_v33 = vadd.f32 %v17990_v54, %v17989_v50  ;;  %v17992_v57 = vpop.f32.mrb[22].mxu1  ;;  %v20481_v44 = vld [vmem:[%s27950_s1 + $0x2070] ss:$44 sps:$4 sm:$0xff]   ;;  %v1581_v50 = vrot.slane %v25469_v34, %v25556_v48  ;;  %v20489_v54 = vld [vmem:[%s27950_s1 + $0x20cc] ss:$44 sps:$4 sm:$0xff]  }
 0x558   :  { %10438 = vmatprep.subr.bf16.mxu0 %v20435_v46  ;;  %14842 = vmatprep.subr.bf16.mxu1 %v20438_v47  ;;  %v17993_v15 = vpop.f32.mrb[23].mxu1  ;;  %v20484_v49 = vld [vmem:[%s27952_s3 + $0x690] ss:$28 sps:$4 sm:$0xff]   ;;  %v1593_v57 = vrot.slane %v25469_v34, %v1592_v43 }
 0x559   :  { %v25812_v61 = vadd.f32 %v17991_v33, %v25700_v5  ;;  %v20450_v5 = vld [vmem:[%s27952_s3 + $0x544] ss:$28 sps:$4 sm:$0xff]   ;;  %v18224_v15 = vadd.f32 %v23777_v38, %v1581_v50  ;;  %v20535_v50 = vld [vmem:[%s27950_s1 + $0x2388] ss:$44 sps:$4 sm:$0xff]  }
 0x55a   :  { %v20496_v38 = vld [vmem:[%s27952_s3 + $0x700] ss:$28 sps:$4 sm:$0xff]  }
 0x55b   :  { %10439 = vmatpush1.bf16.msra.mxu0 %v20433_v55  ;;  %14843 = vmatpush1.bf16.msra.mxu1 %v20436_v56  ;;  %v20492_v55 = vld [vmem:[%s27952_s3 + $0x6cc] ss:$28 sps:$4 sm:$0xff]  }
 0x55c   :  { %10440 = vmatprep.subr.bf16.mxu0 %v20441_v58  ;;  %14844 = vmatprep.subr.bf16.mxu1 %v20444_v59  ;;  %v20487_v58 = vld [vmem:[%s27950_s1 + $0x20c8] ss:$44 sps:$4 sm:$0xff]  }
 0x55d   :  { %v20490_v59 = vld [vmem:[%s27952_s3 + $0x6c8] ss:$28 sps:$4 sm:$0xff]  }
 0x55f   :  { %10441 = vmatpush1.bf16.msra.mxu0 %v20439_v0  ;;  %14845 = vmatpush1.bf16.msra.mxu1 %v20442_v3  ;;  %v20498_v0 = vld [vmem:[%s27952_s3 + $0x704] ss:$28 sps:$4 sm:$0xff]   ;;  %v18227_v3 = vadd.f32 %v25361_v14, %v1593_v57  ;;  %v20504_v14 = vld [vmem:[%s27952_s3 + $0x73c] ss:$28 sps:$4 sm:$0xff]  }
 0x560   :  { %10442 = vmatprep.subr.bf16.mxu0 %v20447_v4  ;;  %14846 = vmatprep.subr.bf16.mxu1 %v20450_v5  ;;  %v20493_v4 = vld [vmem:[%s27950_s1 + $0x2120] ss:$44 sps:$4 sm:$0xff]   ;;  %v25939_v5 = vpack.c.bf16 %v18224_v15, %v18224_v15  ;;  %v20547_v15 = vld [vmem:[%s27950_s1 + $0x2438] ss:$44 sps:$4 sm:$0xff]  }
 0x561   :  { %v20544_v57 = vld [vmem:[%s27952_s3 + $0x8c0] ss:$28 sps:$4 sm:$0xff]  }
 0x563   :  { %10443 = vmatpush1.bf16.msra.mxu0 %v20445_v6  ;;  %14847 = vmatpush1.bf16.msra.mxu1 %v20448_v7  ;;  %v20501_v6 = vld [vmem:[%s27950_s1 + $0x217c] ss:$44 sps:$4 sm:$0xff]   ;;  %v25947_v7 = vpack.c.bf16 %v18227_v3, %v18227_v3  ;;  %v20558_v3 = vld [vmem:[%s27952_s3 + $0x934] ss:$28 sps:$4 sm:$0xff]  }
 0x564   :  { %10444 = vmatprep.subr.bf16.mxu0 %v20453_v8  ;;  %14848 = vmatprep.subr.bf16.mxu1 %v20456_v11  ;;  %v20499_v8 = vld [vmem:[%s27950_s1 + $0x2178] ss:$44 sps:$4 sm:$0xff]  }
 0x565   :  { %v20502_v11 = vld [vmem:[%s27952_s3 + $0x738] ss:$28 sps:$4 sm:$0xff]  }
 0x567   :  { %10445 = vmatpush1.bf16.msra.mxu0 %v20451_v9  ;;  %14849 = vmatpush1.bf16.msra.mxu1 %v20454_v17  ;;  %v20507_v9 = vld [vmem:[%s27950_s1 + $0x21d4] ss:$44 sps:$4 sm:$0xff]   ;;  %v20505_v17 = vld [vmem:[%s27950_s1 + $0x21d0] ss:$44 sps:$4 sm:$0xff]  }
 0x568   :  { %10446 = vmatprep.subr.bf16.mxu0 %v20459_v16  ;;  %14850 = vmatprep.subr.bf16.mxu1 %v20462_v18  ;;  %v20508_v16 = vld [vmem:[%s27952_s3 + $0x770] ss:$28 sps:$4 sm:$0xff]  }
 0x569   :  { %v20513_v18 = vld [vmem:[%s27950_s1 + $0x222c] ss:$44 sps:$4 sm:$0xff]  }
 0x56b   :  { %10447 = vmatpush1.bf16.msra.mxu0 %v20457_v37  ;;  %14851 = vmatpush1.bf16.msra.mxu1 %v20460_v21  ;;  %v20511_v37 = vld [vmem:[%s27950_s1 + $0x2228] ss:$44 sps:$4 sm:$0xff]  }
 0x56c   :  { %10448 = vmatprep.subr.bf16.mxu0 %v20465_v41  ;;  %14852 = vmatprep.subr.bf16.mxu1 %v20468_v25  ;;  %v20514_v21 = vld [vmem:[%s27952_s3 + $0x7a8] ss:$28 sps:$4 sm:$0xff]  }
 0x56d   :  { %v20519_v41 = vld [vmem:[%s27950_s1 + $0x2284] ss:$44 sps:$4 sm:$0xff]  }
 0x56e   :  { %v20522_v25 = vld [vmem:[%s27952_s3 + $0x7e4] ss:$28 sps:$4 sm:$0xff]  }
 0x56f   :  { %10449 = vmatpush1.bf16.msra.mxu0 %v20463_v26  ;;  %14853 = vmatpush1.bf16.msra.mxu1 %v20466_v28  ;;  %v20517_v26 = vld [vmem:[%s27950_s1 + $0x2280] ss:$44 sps:$4 sm:$0xff]  }
 0x570   :  { %10450 = vmatprep.subr.bf16.mxu0 %v20471_v62  ;;  %14854 = vmatprep.subr.bf16.mxu1 %v20474_v45  ;;  %v20520_v28 = vld [vmem:[%s27952_s3 + $0x7e0] ss:$28 sps:$4 sm:$0xff]  }
 0x571   :  { %v20525_v62 = vld [vmem:[%s27950_s1 + $0x22dc] ss:$44 sps:$4 sm:$0xff]  }
 0x572   :  { %v20528_v45 = vld [vmem:[%s27952_s3 + $0x81c] ss:$28 sps:$4 sm:$0xff]  }
 0x573   :  { %10451 = vmatpush1.bf16.msra.mxu0 %v20469_v29  ;;  %14855 = vmatpush1.bf16.msra.mxu1 %v20472_v30  ;;  %v20523_v29 = vld [vmem:[%s27950_s1 + $0x22d8] ss:$44 sps:$4 sm:$0xff]  }
 0x574   :  { %10452 = vmatprep.subr.bf16.mxu0 %v20477_v2  ;;  %14856 = vmatprep.subr.bf16.mxu1 %v20480_v31  ;;  %v20526_v30 = vld [vmem:[%s27952_s3 + $0x818] ss:$28 sps:$4 sm:$0xff]  }
 0x575   :  { %v18011_v51 = vpop.f32.mrb[24].mxu1  ;;  %v20531_v2 = vld [vmem:[%s27950_s1 + $0x2334] ss:$44 sps:$4 sm:$0xff]  }
 0x576   :  { %v18012_v27 = vpop.f32.mrb[25].mxu1  ;;  %v20534_v31 = vld [vmem:[%s27952_s3 + $0x854] ss:$28 sps:$4 sm:$0xff]  }
 0x577   :  { %10453 = vmatpush1.bf16.msra.mxu0 %v20475_v32  ;;  %14857 = vmatpush1.bf16.msra.mxu1 %v20478_v35  ;;  %v18013_v46 = vadd.f32 %v18012_v27, %v18011_v51  ;;  %v18014_v47 = vpop.f32.mrb[26].mxu1  ;;  %v20532_v51 = vld [vmem:[%s27952_s3 + $0x850] ss:$28 sps:$4 sm:$0xff]  }
 0x578   :  { %10454 = vmatprep.subr.bf16.mxu0 %v20483_v23  ;;  %14858 = vmatprep.subr.bf16.mxu1 %v20486_v36  ;;  %v18015_v56 = vpop.f32.mrb[27].mxu1  ;;  %v20529_v36 = vld [vmem:[%s27950_s1 + $0x2330] ss:$44 sps:$4 sm:$0xff]  }
 0x579   :  { %v25914_v33 = vadd.f32 %v18013_v46, %v25812_v61  ;;  %v20495_v61 = vld [vmem:[%s27950_s1 + $0x2124] ss:$44 sps:$4 sm:$0xff]  }
 0x57a   :  { %v20546_v56 = vld [vmem:[%s27952_s3 + $0x8c4] ss:$28 sps:$4 sm:$0xff]  }
 0x57b   :  { %10455 = vmatpush1.bf16.msra.mxu0 %v20481_v44  ;;  %14859 = vmatpush1.bf16.msra.mxu1 %v20484_v49  ;;  %v20537_v44 = vld [vmem:[%s27950_s1 + $0x238c] ss:$44 sps:$4 sm:$0xff]  }
 0x57c   :  { %10456 = vmatprep.subr.bf16.mxu0 %v20489_v54  ;;  %14860 = vmatprep.subr.bf16.mxu1 %v20492_v55  ;;  %v20540_v49 = vld [vmem:[%s27952_s3 + $0x88c] ss:$28 sps:$4 sm:$0xff]   ;;  %v20543_v55 = vld [vmem:[%s27950_s1 + $0x23e4] ss:$44 sps:$4 sm:$0xff]  }
 0x57d   :  { %v20538_v54 = vld [vmem:[%s27952_s3 + $0x888] ss:$28 sps:$4 sm:$0xff]  }
 0x57f   :  { %10457 = vmatpush1.bf16.msra.mxu0 %v20487_v58  ;;  %14861 = vmatpush1.bf16.msra.mxu1 %v20490_v59  ;;  %v20549_v58 = vld [vmem:[%s27950_s1 + $0x243c] ss:$44 sps:$4 sm:$0xff]  }
 0x580   :  { %10467 = vmatprep.subr.bf16.mxu0 %v20495_v61  ;;  %14871 = vmatprep.subr.bf16.mxu1 %v20498_v0  ;;  %v20552_v59 = vld [vmem:[%s27952_s3 + $0x8fc] ss:$28 sps:$4 sm:$0xff]   ;;  %v20555_v0 = vld [vmem:[%s27950_s1 + $0x2494] ss:$44 sps:$4 sm:$0xff]  }
 0x581   :  { %v20550_v61 = vld [vmem:[%s27952_s3 + $0x8f8] ss:$28 sps:$4 sm:$0xff]  }
 0x582   :  { %14863 = vmatmul.mubr.bf16.vlgmr.msra.gmra.mrb[40].mxu1 %v25939_v5  ;;  %10459 = vmatmul.mubr.bf16.vlgmr.msra.gmra.mrb[8].mxu0 %v22708_v20  ;;  %v20510_v20 = vld [vmem:[%s27952_s3 + $0x774] ss:$28 sps:$4 sm:$0xff]  }
 0x583   :  { %10468 = vmatpush1.bf16.msra.mxu0 %v20493_v4  ;;  %14872 = vmatpush1.bf16.msra.mxu1 %v20496_v38  ;;  %v20553_v4 = vld [vmem:[%s27950_s1 + $0x2490] ss:$44 sps:$4 sm:$0xff]  }
 0x584   :  { %14903 = vmatprep.mubr.bf16.mxu1 %v25947_v7  ;;  %10469 = vmatprep.subr.bf16.mxu0 %v20501_v6  ;;  %v20556_v38 = vld [vmem:[%s27952_s3 + $0x930] ss:$28 sps:$4 sm:$0xff]  }
 0x585   :  { %14873 = vmatprep.subr.bf16.mxu1 %v20504_v14  ;;  %10499 = vmatprep.mubr.bf16.mxu0 %v22717_v24  ;;  %v20516_v24 = vld [vmem:[%s27952_s3 + $0x7ac] ss:$28 sps:$4 sm:$0xff]  }
 0x586   :  { %v20561_v6 = vld [vmem:[%s27950_s1 + $0x24ec] ss:$44 sps:$4 sm:$0xff]  }
 0x587   :  { %10470 = vmatpush1.bf16.msra.mxu0 %v20499_v8  ;;  %14874 = vmatpush1.bf16.msra.mxu1 %v20502_v11  ;;  %v20564_v14 = vld [vmem:[%s27952_s3 + $0x96c] ss:$28 sps:$4 sm:$0xff]  }
 0x588   :  { %10471 = vmatprep.subr.bf16.mxu0 %v20507_v9  ;;  %14875 = vmatprep.subr.bf16.mxu1 %v20510_v20  ;;  %v20559_v8 = vld [vmem:[%s27950_s1 + $0x24e8] ss:$44 sps:$4 sm:$0xff]   ;;  %v20567_v9 = vld [vmem:[%s27950_s1 + $0x2544] ss:$44 sps:$4 sm:$0xff]  }
 0x589   :  { %v20562_v11 = vld [vmem:[%s27952_s3 + $0x968] ss:$28 sps:$4 sm:$0xff]  }
 0x58a   :  { %v20570_v20 = vld [vmem:[%s27952_s3 + $0x9a4] ss:$28 sps:$4 sm:$0xff]  }
 0x58b   :  { %10472 = vmatpush1.bf16.msra.mxu0 %v20505_v17  ;;  %14876 = vmatpush1.bf16.msra.mxu1 %v20508_v16  ;;  %v20565_v17 = vld [vmem:[%s27950_s1 + $0x2540] ss:$44 sps:$4 sm:$0xff]  }
 0x58c   :  { %10473 = vmatprep.subr.bf16.mxu0 %v20513_v18  ;;  %14877 = vmatprep.subr.bf16.mxu1 %v20516_v24  ;;  %v20568_v16 = vld [vmem:[%s27952_s3 + $0x9a0] ss:$28 sps:$4 sm:$0xff]  }
 0x58d   :  { %v20573_v18 = vld [vmem:[%s27950_s1 + $0x259c] ss:$44 sps:$4 sm:$0xff]  }
 0x58e   :  { %v20576_v24 = vld [vmem:[%s27952_s3 + $0x9dc] ss:$28 sps:$4 sm:$0xff]  }
 0x58f   :  { %10474 = vmatpush1.bf16.msra.mxu0 %v20511_v37  ;;  %14878 = vmatpush1.bf16.msra.mxu1 %v20514_v21  ;;  %v20571_v37 = vld [vmem:[%s27950_s1 + $0x2598] ss:$44 sps:$4 sm:$0xff]  }
 0x590   :  { %10475 = vmatprep.subr.bf16.mxu0 %v20519_v41  ;;  %14879 = vmatprep.subr.bf16.mxu1 %v20522_v25  ;;  %v20574_v21 = vld [vmem:[%s27952_s3 + $0x9d8] ss:$28 sps:$4 sm:$0xff]   ;;  %v26107_v41 = vsub.s32 4, %v21563_v42 }
 0x591   :  { %v20579_v25 = vld [vmem:[%s27950_s1 + $0x25f4] ss:$44 sps:$4 sm:$0xff]  }
 0x593   :  { %10476 = vmatpush1.bf16.msra.mxu0 %v20517_v26  ;;  %14880 = vmatpush1.bf16.msra.mxu1 %v20520_v28  ;;  %v20582_v26 = vld [vmem:[%s27952_s3 + $0xa14] ss:$28 sps:$4 sm:$0xff]  }
 0x594   :  { %10477 = vmatprep.subr.bf16.mxu0 %v20525_v62  ;;  %14881 = vmatprep.subr.bf16.mxu1 %v20528_v45  ;;  %v1600_v62 = vsub.s32 7, %v21563_v42 }
 0x595   :  { %v18033_v32 = vpop.f32.mrb[28].mxu1 }
 0x596   :  { %v18034_v35 = vpop.f32.mrb[29].mxu1 }
 0x597   :  { %10478 = vmatpush1.bf16.msra.mxu0 %v20523_v29  ;;  %14882 = vmatpush1.bf16.msra.mxu1 %v20526_v30  ;;  %v18035_v23 = vadd.f32 %v18034_v35, %v18033_v32  ;;  %v18036_v27 = vpop.f32.mrb[30].mxu1  ;;  %v20577_v30 = vld [vmem:[%s27950_s1 + $0x25f0] ss:$44 sps:$4 sm:$0xff]   ;;  %v1589_v32 = vrot.slane %v25469_v34, %v26107_v41  ;;  %v20585_v35 = vld [vmem:[%s27950_s1 + $0x264c] ss:$44 sps:$4 sm:$0xff]  }
 0x598   :  { %10479 = vmatprep.subr.bf16.mxu0 %v20531_v2  ;;  %14883 = vmatprep.subr.bf16.mxu1 %v20534_v31  ;;  %v18037_v46 = vpop.f32.mrb[31].mxu1  ;;  %v20580_v2 = vld [vmem:[%s27952_s3 + $0xa10] ss:$28 sps:$4 sm:$0xff]   ;;  %v1601_v27 = vrot.slane %v25469_v34, %v1600_v62  ;;  %v20594_v34 = vld [vmem:[%s27952_s3 + $0xa84] ss:$28 sps:$4 sm:$0xff]  }
 0x599   :  { %v26026_v47 = vadd.f32 %v18035_v23, %v25914_v33  ;;  %v20541_v33 = vld [vmem:[%s27950_s1 + $0x23e0] ss:$44 sps:$4 sm:$0xff]   ;;  %v18226_v46 = vadd.f32 %v25357_v13, %v1589_v32  ;;  %v20639_v32 = vld [vmem:[%s27950_s1 + $0x2964] ss:$44 sps:$4 sm:$0xff]  }
 0x59a   :  { %v20588_v23 = vld [vmem:[%s27952_s3 + $0xa4c] ss:$28 sps:$4 sm:$0xff]   ;;  %v20592_v13 = vld [vmem:[%s27952_s3 + $0xa80] ss:$28 sps:$4 sm:$0xff]  }
 0x59b   :  { %10480 = vmatpush1.bf16.msra.mxu0 %v20529_v36  ;;  %14884 = vmatpush1.bf16.msra.mxu1 %v20532_v51  ;;  %v20633_v62 = vld [vmem:[%s27950_s1 + $0x290c] ss:$44 sps:$4 sm:$0xff]  }
 0x59c   :  { %10481 = vmatprep.subr.bf16.mxu0 %v20537_v44  ;;  %14885 = vmatprep.subr.bf16.mxu1 %v20540_v49  ;;  %v20583_v44 = vld [vmem:[%s27950_s1 + $0x2648] ss:$44 sps:$4 sm:$0xff]  }
 0x59d   :  { %v20586_v49 = vld [vmem:[%s27952_s3 + $0xa48] ss:$28 sps:$4 sm:$0xff]  }
 0x59f   :  { %10482 = vmatpush1.bf16.msra.mxu0 %v20535_v50  ;;  %14886 = vmatpush1.bf16.msra.mxu1 %v20538_v54  ;;  %v18229_v50 = vadd.f32 %v25363_v52, %v1601_v27  ;;  %v20589_v54 = vld [vmem:[%s27950_s1 + $0x26a0] ss:$44 sps:$4 sm:$0xff]   ;;  %v20600_v52 = vld [vmem:[%s27952_s3 + $0xabc] ss:$28 sps:$4 sm:$0xff]  }
 0x5a0   :  { %10483 = vmatprep.subr.bf16.mxu0 %v20543_v55  ;;  %14887 = vmatprep.subr.bf16.mxu1 %v20546_v56  ;;  %v26154_v55 = vpack.c.bf16 %v18226_v46, %v18226_v46  ;;  %v20597_v56 = vld [vmem:[%s27950_s1 + $0x26fc] ss:$44 sps:$4 sm:$0xff]   ;;  %v20651_v46 = vld [vmem:[%s27950_s1 + $0x2a14] ss:$44 sps:$4 sm:$0xff]  }
 0x5a1   :  { %v20648_v27 = vld [vmem:[%s27952_s3 + $0xc7c] ss:$28 sps:$4 sm:$0xff]  }
 0x5a3   :  { %10484 = vmatpush1.bf16.msra.mxu0 %v20541_v33  ;;  %14888 = vmatpush1.bf16.msra.mxu1 %v20544_v57  ;;  %v26162_v33 = vpack.c.bf16 %v18229_v50, %v18229_v50  ;;  %v20595_v57 = vld [vmem:[%s27950_s1 + $0x26f8] ss:$44 sps:$4 sm:$0xff]   ;;  %v20652_v50 = vld [vmem:[%s27952_s3 + $0xcb0] ss:$28 sps:$4 sm:$0xff]  }
 0x5a4   :  { %10485 = vmatprep.subr.bf16.mxu0 %v20549_v58  ;;  %14889 = vmatprep.subr.bf16.mxu1 %v20552_v59  ;;  %v20598_v58 = vld [vmem:[%s27952_s3 + $0xab8] ss:$28 sps:$4 sm:$0xff]  }
 0x5a5   :  { %v20603_v59 = vld [vmem:[%s27950_s1 + $0x2754] ss:$44 sps:$4 sm:$0xff]  }
 0x5a7   :  { %10486 = vmatpush1.bf16.msra.mxu0 %v20547_v15  ;;  %14890 = vmatpush1.bf16.msra.mxu1 %v20550_v61  ;;  %v20601_v15 = vld [vmem:[%s27950_s1 + $0x2750] ss:$44 sps:$4 sm:$0xff]  }
 0x5a8   :  { %10487 = vmatprep.subr.bf16.mxu0 %v20555_v0  ;;  %14891 = vmatprep.subr.bf16.mxu1 %v20558_v3  ;;  %v20604_v61 = vld [vmem:[%s27952_s3 + $0xaf0] ss:$28 sps:$4 sm:$0xff]   ;;  %v20607_v3 = vld [vmem:[%s27950_s1 + $0x27a8] ss:$44 sps:$4 sm:$0xff]  }
 0x5a9   :  { %v20609_v0 = vld [vmem:[%s27950_s1 + $0x27ac] ss:$44 sps:$4 sm:$0xff]  }
 0x5ab   :  { %10488 = vmatpush1.bf16.msra.mxu0 %v20553_v4  ;;  %14892 = vmatpush1.bf16.msra.mxu1 %v20556_v38  ;;  %v20610_v4 = vld [vmem:[%s27952_s3 + $0xb28] ss:$28 sps:$4 sm:$0xff]  }
 0x5ac   :  { %10489 = vmatprep.subr.bf16.mxu0 %v20561_v6  ;;  %14893 = vmatprep.subr.bf16.mxu1 %v20564_v14  ;;  %v20615_v38 = vld [vmem:[%s27950_s1 + $0x2804] ss:$44 sps:$4 sm:$0xff]   ;;  %v20613_v14 = vld [vmem:[%s27950_s1 + $0x2800] ss:$44 sps:$4 sm:$0xff]  }
 0x5ad   :  { %v20618_v6 = vld [vmem:[%s27952_s3 + $0xb64] ss:$28 sps:$4 sm:$0xff]  }
 0x5af   :  { %10490 = vmatpush1.bf16.msra.mxu0 %v20559_v8  ;;  %14894 = vmatpush1.bf16.msra.mxu1 %v20562_v11  ;;  %v20616_v8 = vld [vmem:[%s27952_s3 + $0xb60] ss:$28 sps:$4 sm:$0xff]  }
 0x5b0   :  { %10491 = vmatprep.subr.bf16.mxu0 %v20567_v9  ;;  %14895 = vmatprep.subr.bf16.mxu1 %v20570_v20  ;;  %v20621_v11 = vld [vmem:[%s27950_s1 + $0x285c] ss:$44 sps:$4 sm:$0xff]   ;;  %v20619_v20 = vld [vmem:[%s27950_s1 + $0x2858] ss:$44 sps:$4 sm:$0xff]  }
 0x5b1   :  { %v20624_v9 = vld [vmem:[%s27952_s3 + $0xb9c] ss:$28 sps:$4 sm:$0xff]  }
 0x5b3   :  { %10492 = vmatpush1.bf16.msra.mxu0 %v20565_v17  ;;  %14896 = vmatpush1.bf16.msra.mxu1 %v20568_v16  ;;  %v20622_v17 = vld [vmem:[%s27952_s3 + $0xb98] ss:$28 sps:$4 sm:$0xff]  }
 0x5b4   :  { %10493 = vmatprep.subr.bf16.mxu0 %v20573_v18  ;;  %14897 = vmatprep.subr.bf16.mxu1 %v20576_v24  ;;  %v20627_v16 = vld [vmem:[%s27950_s1 + $0x28b4] ss:$44 sps:$4 sm:$0xff]  }
 0x5b5   :  { %v18055_v28 = vpop.f32.mrb[32].mxu1  ;;  %v20630_v18 = vld [vmem:[%s27952_s3 + $0xbd4] ss:$28 sps:$4 sm:$0xff]  }
 0x5b6   :  { %v18056_v45 = vpop.f32.mrb[33].mxu1 }
 0x5b7   :  { %v18057_v29 = vadd.f32 %v18056_v45, %v18055_v28  ;;  %10494 = vmatpush1.bf16.msra.mxu0 %v20571_v37  ;;  %14898 = vmatpush1.bf16.msra.mxu1 %v20574_v21  ;;  %v18058_v31 = vpop.f32.mrb[34].mxu1  ;;  %v20636_v45 = vld [vmem:[%s27952_s3 + $0xc0c] ss:$28 sps:$4 sm:$0xff]  }
 0x5b8   :  { %10495 = vmatprep.subr.bf16.mxu0 %v20579_v25  ;;  %14899 = vmatprep.subr.bf16.mxu1 %v20582_v26  ;;  %v18059_v36 = vpop.f32.mrb[35].mxu1  ;;  %v20625_v25 = vld [vmem:[%s27950_s1 + $0x28b0] ss:$44 sps:$4 sm:$0xff]   ;;  %v20634_v31 = vld [vmem:[%s27952_s3 + $0xc08] ss:$28 sps:$4 sm:$0xff]  }
 0x5b9   :  { %v26131_v51 = vadd.f32 %v18057_v29, %v26026_v47  ;;  %v20591_v47 = vld [vmem:[%s27950_s1 + $0x26a4] ss:$44 sps:$4 sm:$0xff]   ;;  %v20640_v36 = vld [vmem:[%s27952_s3 + $0xc40] ss:$28 sps:$4 sm:$0xff]  }
 0x5ba   :  { %v20628_v26 = vld [vmem:[%s27952_s3 + $0xbd0] ss:$28 sps:$4 sm:$0xff]  }
 0x5bb   :  { %10496 = vmatpush1.bf16.msra.mxu0 %v20577_v30  ;;  %14900 = vmatpush1.bf16.msra.mxu1 %v20580_v2  ;;  %v20631_v2 = vld [vmem:[%s27950_s1 + $0x2908] ss:$44 sps:$4 sm:$0xff]  }
 0x5bc   :  { %10497 = vmatprep.subr.bf16.mxu0 %v20585_v35  ;;  %14901 = vmatprep.subr.bf16.mxu1 %v20588_v23  ;;  %v20642_v35 = vld [vmem:[%s27952_s3 + $0xc44] ss:$28 sps:$4 sm:$0xff]  }
 0x5bd   :  { %v20637_v23 = vld [vmem:[%s27950_s1 + $0x2960] ss:$44 sps:$4 sm:$0xff]  }
 0x5bf   :  { %10498 = vmatpush1.bf16.msra.mxu0 %v20583_v44  ;;  %14902 = vmatpush1.bf16.msra.mxu1 %v20586_v49  ;;  %v20643_v44 = vld [vmem:[%s27950_s1 + $0x29b8] ss:$44 sps:$4 sm:$0xff]  }
 0x5c0   :  { %10508 = vmatprep.subr.bf16.mxu0 %v20591_v47  ;;  %14912 = vmatprep.subr.bf16.mxu1 %v20594_v34  ;;  %v20646_v49 = vld [vmem:[%s27952_s3 + $0xc78] ss:$28 sps:$4 sm:$0xff]   ;;  %v20649_v34 = vld [vmem:[%s27950_s1 + $0x2a10] ss:$44 sps:$4 sm:$0xff]  }
 0x5c1   :  { %v20654_v47 = vld [vmem:[%s27952_s3 + $0xcb4] ss:$28 sps:$4 sm:$0xff]  }
 0x5c2   :  { %14904 = vmatmul.mubr.bf16.vlgmr.msra.gmra.mrb[40].mxu1 %v26154_v55  ;;  %10500 = vmatmul.mubr.bf16.vlgmr.msra.gmra.mrb[8].mxu0 %v22905_v40  ;;  %v20606_v40 = vld [vmem:[%s27952_s3 + $0xaf4] ss:$28 sps:$4 sm:$0xff]  }
 0x5c3   :  { %10509 = vmatpush1.bf16.msra.mxu0 %v20589_v54  ;;  %14913 = vmatpush1.bf16.msra.mxu1 %v20592_v13  ;;  %v20657_v54 = vld [vmem:[%s27950_s1 + $0x2a6c] ss:$44 sps:$4 sm:$0xff]  }
 0x5c4   :  { %14944 = vmatprep.mubr.bf16.mxu1 %v26162_v33  ;;  %10510 = vmatprep.subr.bf16.mxu0 %v20597_v56  ;;  %v20660_v13 = vld [vmem:[%s27952_s3 + $0xcec] ss:$28 sps:$4 sm:$0xff]  }
 0x5c5   :  { %14914 = vmatprep.subr.bf16.mxu1 %v20600_v52  ;;  %10540 = vmatprep.mubr.bf16.mxu0 %v22921_v10  ;;  %v20612_v10 = vld [vmem:[%s27952_s3 + $0xb2c] ss:$28 sps:$4 sm:$0xff]  }
 0x5c6   :  { %v20655_v56 = vld [vmem:[%s27950_s1 + $0x2a68] ss:$44 sps:$4 sm:$0xff]  }
 0x5c7   :  { %10511 = vmatpush1.bf16.msra.mxu0 %v20595_v57  ;;  %14915 = vmatpush1.bf16.msra.mxu1 %v20598_v58  ;;  %v20658_v52 = vld [vmem:[%s27952_s3 + $0xce8] ss:$28 sps:$4 sm:$0xff]  }
 0x5c8   :  { %10512 = vmatprep.subr.bf16.mxu0 %v20603_v59  ;;  %14916 = vmatprep.subr.bf16.mxu1 %v20606_v40  ;;  %v20663_v57 = vld [vmem:[%s27950_s1 + $0x2ac4] ss:$44 sps:$4 sm:$0xff]   ;;  %v20661_v59 = vld [vmem:[%s27950_s1 + $0x2ac0] ss:$44 sps:$4 sm:$0xff]  }
 0x5c9   :  { %v20666_v58 = vld [vmem:[%s27952_s3 + $0xd24] ss:$28 sps:$4 sm:$0xff]  }
 0x5ca   :  { %v20664_v40 = vld [vmem:[%s27952_s3 + $0xd20] ss:$28 sps:$4 sm:$0xff]  }
 0x5cb   :  { %10513 = vmatpush1.bf16.msra.mxu0 %v20601_v15  ;;  %14917 = vmatpush1.bf16.msra.mxu1 %v20604_v61  ;;  %v20669_v15 = vld [vmem:[%s27950_s1 + $0x2b1c] ss:$44 sps:$4 sm:$0xff]  }
 0x5cc   :  { %10514 = vmatprep.subr.bf16.mxu0 %v20609_v0  ;;  %14918 = vmatprep.subr.bf16.mxu1 %v20612_v10  ;;  %v20672_v61 = vld [vmem:[%s27952_s3 + $0xd5c] ss:$28 sps:$4 sm:$0xff]  }
 0x5cd   :  { %v20667_v0 = vld [vmem:[%s27950_s1 + $0x2b18] ss:$44 sps:$4 sm:$0xff]  }
 0x5ce   :  { %v20670_v10 = vld [vmem:[%s27952_s3 + $0xd58] ss:$28 sps:$4 sm:$0xff]  }
 0x5cf   :  { %10515 = vmatpush1.bf16.msra.mxu0 %v20607_v3  ;;  %14919 = vmatpush1.bf16.msra.mxu1 %v20610_v4  ;;  %v26322_v3 = vsub.s32 6, %v21563_v42  ;;  %v20675_v4 = vld [vmem:[%s27950_s1 + $0x2b74] ss:$44 sps:$4 sm:$0xff]  }
 0x5d0   :  { %10516 = vmatprep.subr.bf16.mxu0 %v20615_v38  ;;  %14920 = vmatprep.subr.bf16.mxu1 %v20618_v6  ;;  %v20678_v38 = vld [vmem:[%s27952_s3 + $0xd94] ss:$28 sps:$4 sm:$0xff]  }
 0x5d1   :  { %v20673_v6 = vld [vmem:[%s27950_s1 + $0x2b70] ss:$44 sps:$4 sm:$0xff]  }
 0x5d3   :  { %10517 = vmatpush1.bf16.msra.mxu0 %v20613_v14  ;;  %14921 = vmatpush1.bf16.msra.mxu1 %v20616_v8  ;;  %v20676_v14 = vld [vmem:[%s27952_s3 + $0xd90] ss:$28 sps:$4 sm:$0xff]   ;;  %v21374_v8 = vld [vmem:[%s27951_s2] sm:$0xff] }
 0x5d4   :  { %10518 = vmatprep.subr.bf16.mxu0 %v20621_v11  ;;  %14922 = vmatprep.subr.bf16.mxu1 %v20624_v9  ;;  %v1597_v11 = vrot.slane %v21374_v8, %v26322_v3  ;;  %v20681_v9 = vld [vmem:[%s27950_s1 + $0x2bcc] ss:$44 sps:$4 sm:$0xff]   ;;  %v20840_v8 = vld [vmem:[%s27952_s3 + $0xf54] ss:$28 sps:$4 sm:$0xff]  }
 0x5d5   :  { %v18077_v24 = vpop.f32.mrb[36].mxu1 }
 0x5d6   :  { %v18078_v37 = vpop.f32.mrb[37].mxu1 }
 0x5d7   :  { %v18079_v21 = vadd.f32 %v18078_v37, %v18077_v24  ;;  %10519 = vmatpush1.bf16.msra.mxu0 %v20619_v20  ;;  %14923 = vmatpush1.bf16.msra.mxu1 %v20622_v17  ;;  %v18080_v28 = vpop.f32.mrb[38].mxu1  ;;  %v20684_v20 = vld [vmem:[%s27952_s3 + $0xdcc] ss:$28 sps:$4 sm:$0xff]  }
 0x5d8   :  { %10520 = vmatprep.subr.bf16.mxu0 %v20627_v16  ;;  %14924 = vmatprep.subr.bf16.mxu1 %v20630_v18  ;;  %v18081_v29 = vpop.f32.mrb[39].mxu1  ;;  %v20679_v17 = vld [vmem:[%s27950_s1 + $0x2bc8] ss:$44 sps:$4 sm:$0xff]   ;;  %v18228_v18 = vadd.f32 %v25359_v12, %v1597_v11  ;;  %v20688_v12 = vld [vmem:[%s27952_s3 + $0x40] ss:$28 sps:$4 sm:$0xff]  }
 0x5d9   :  { %v26241_v30 = vadd.f32 %v18079_v21, %v26131_v51  ;;  %v20645_v51 = vld [vmem:[%s27950_s1 + $0x29bc] ss:$44 sps:$4 sm:$0xff]   ;;  %v20691_v28 = vld [vmem:[%s27952_s3 + $0x78] ss:$28 sps:$4 sm:$0xff]  }
 0x5da   :  { %v20682_v16 = vld [vmem:[%s27952_s3 + $0xdc8] ss:$28 sps:$4 sm:$0xff]   ;;  %v26359_v21 = vpack.c.bf16 %v18228_v18, %v18228_v18  ;;  %v20724_v11 = vld [vmem:[%s27952_s3 + $0x2e0] ss:$28 sps:$4 sm:$0xff]   ;;  %v20732_v18 = vld [vmem:[%s27952_s3 + $0x354] ss:$28 sps:$4 sm:$0xff]  }
 0x5db   :  { %10521 = vmatpush1.bf16.msra.mxu0 %v20625_v25  ;;  %14925 = vmatpush1.bf16.msra.mxu1 %v20628_v26  ;;  %v20687_v24 = vld [vmem:[%s27952_s3 + $0xc] ss:$28 sps:$4 sm:$0xff]   ;;  %v20690_v25 = vld [vmem:[%s27952_s3 + $0x44] ss:$28 sps:$4 sm:$0xff]   ;;  %v20693_v26 = vld [vmem:[%s27952_s3 + $0x7c] ss:$28 sps:$4 sm:$0xff]  }
 0x5dc   :  { %10522 = vmatprep.subr.bf16.mxu0 %v20633_v62  ;;  %14926 = vmatprep.subr.bf16.mxu1 %v20636_v45  ;;  %v20685_v37 = vld [vmem:[%s27952_s3 + $0x8] ss:$28 sps:$4 sm:$0xff]   ;;  %v20694_v62 = vld [vmem:[%s27952_s3 + $0xb0] ss:$28 sps:$4 sm:$0xff]  }
 0x5dd   :  { %v20699_v45 = vld [vmem:[%s27952_s3 + $0xec] ss:$28 sps:$4 sm:$0xff]  }
 0x5de   :  { %v20697_v29 = vld [vmem:[%s27952_s3 + $0xe8] ss:$28 sps:$4 sm:$0xff]  }
 0x5df   :  { %10523 = vmatpush1.bf16.msra.mxu0 %v20631_v2  ;;  %14927 = vmatpush1.bf16.msra.mxu1 %v20634_v31  ;;  %v20702_v2 = vld [vmem:[%s27952_s3 + $0x124] ss:$28 sps:$4 sm:$0xff]  }
 0x5e0   :  { %10524 = vmatprep.subr.bf16.mxu0 %v20639_v32  ;;  %14928 = vmatprep.subr.bf16.mxu1 %v20642_v35  ;;  %v20700_v31 = vld [vmem:[%s27952_s3 + $0x120] ss:$28 sps:$4 sm:$0xff]   ;;  %v20703_v35 = vld [vmem:[%s27952_s3 + $0x158] ss:$28 sps:$4 sm:$0xff]  }
 0x5e1   :  { %v20705_v32 = vld [vmem:[%s27952_s3 + $0x15c] ss:$28 sps:$4 sm:$0xff]  }
 0x5e3   :  { %10525 = vmatpush1.bf16.msra.mxu0 %v20637_v23  ;;  %14929 = vmatpush1.bf16.msra.mxu1 %v20640_v36  ;;  %v20708_v23 = vld [vmem:[%s27952_s3 + $0x194] ss:$28 sps:$4 sm:$0xff]   ;;  %v20802_v36 = vld [vmem:[%s27952_s3 + $0xe00] ss:$28 sps:$4 sm:$0xff]  }
 0x5e4   :  { %10526 = vmatprep.subr.bf16.mxu0 %v20645_v51  ;;  %14930 = vmatprep.subr.bf16.mxu1 %v20648_v27  ;;  %v20804_v51 = vld [vmem:[%s27952_s3 + $0xe04] ss:$28 sps:$4 sm:$0xff]   ;;  %v20706_v27 = vld [vmem:[%s27952_s3 + $0x190] ss:$28 sps:$4 sm:$0xff]  }
 0x5e7   :  { %10527 = vmatpush1.bf16.msra.mxu0 %v20643_v44  ;;  %14931 = vmatpush1.bf16.msra.mxu1 %v20646_v49  ;;  %v20711_v44 = vld [vmem:[%s27952_s3 + $0x1cc] ss:$28 sps:$4 sm:$0xff]   ;;  %v20808_v49 = vld [vmem:[%s27952_s3 + $0xe38] ss:$28 sps:$4 sm:$0xff]  }
 0x5e8   :  { %10528 = vmatprep.subr.bf16.mxu0 %v20651_v46  ;;  %14932 = vmatprep.subr.bf16.mxu1 %v20654_v47  ;;  %v20810_v46 = vld [vmem:[%s27952_s3 + $0xe3c] ss:$28 sps:$4 sm:$0xff]   ;;  %v20709_v47 = vld [vmem:[%s27952_s3 + $0x1c8] ss:$28 sps:$4 sm:$0xff]  }
 0x5eb   :  { %10529 = vmatpush1.bf16.msra.mxu0 %v20649_v34  ;;  %14933 = vmatpush1.bf16.msra.mxu1 %v20652_v50  ;;  %v20714_v34 = vld [vmem:[%s27952_s3 + $0x204] ss:$28 sps:$4 sm:$0xff]   ;;  %v20814_v50 = vld [vmem:[%s27952_s3 + $0xe70] ss:$28 sps:$4 sm:$0xff]  }
 0x5ec   :  { %10530 = vmatprep.subr.bf16.mxu0 %v20657_v54  ;;  %14934 = vmatprep.subr.bf16.mxu1 %v20660_v13  ;;  %v20816_v54 = vld [vmem:[%s27952_s3 + $0xe74] ss:$28 sps:$4 sm:$0xff]   ;;  %v20712_v13 = vld [vmem:[%s27952_s3 + $0x200] ss:$28 sps:$4 sm:$0xff]  }
 0x5ef   :  { %10531 = vmatpush1.bf16.msra.mxu0 %v20655_v56  ;;  %14935 = vmatpush1.bf16.msra.mxu1 %v20658_v52  ;;  %v20717_v56 = vld [vmem:[%s27952_s3 + $0x23c] ss:$28 sps:$4 sm:$0xff]   ;;  %v20820_v52 = vld [vmem:[%s27952_s3 + $0xea8] ss:$28 sps:$4 sm:$0xff]  }
 0x5f0   :  { %10532 = vmatprep.subr.bf16.mxu0 %v20663_v57  ;;  %14936 = vmatprep.subr.bf16.mxu1 %v20666_v58  ;;  %v20822_v57 = vld [vmem:[%s27952_s3 + $0xeac] ss:$28 sps:$4 sm:$0xff]   ;;  %v20715_v58 = vld [vmem:[%s27952_s3 + $0x238] ss:$28 sps:$4 sm:$0xff]  }
 0x5f3   :  { %10533 = vmatpush1.bf16.msra.mxu0 %v20661_v59  ;;  %14937 = vmatpush1.bf16.msra.mxu1 %v20664_v40  ;;  %v20720_v59 = vld [vmem:[%s27952_s3 + $0x274] ss:$28 sps:$4 sm:$0xff]   ;;  %v20826_v40 = vld [vmem:[%s27952_s3 + $0xee0] ss:$28 sps:$4 sm:$0xff]  }
 0x5f4   :  { %10534 = vmatprep.subr.bf16.mxu0 %v20669_v15  ;;  %14938 = vmatprep.subr.bf16.mxu1 %v20672_v61  ;;  %v20828_v15 = vld [vmem:[%s27952_s3 + $0xee4] ss:$28 sps:$4 sm:$0xff]   ;;  %v20718_v61 = vld [vmem:[%s27952_s3 + $0x270] ss:$28 sps:$4 sm:$0xff]  }
 0x5f7   :  { %10535 = vmatpush1.bf16.msra.mxu0 %v20667_v0  ;;  %14939 = vmatpush1.bf16.msra.mxu1 %v20670_v10  ;;  %v20723_v0 = vld [vmem:[%s27952_s3 + $0x2ac] ss:$28 sps:$4 sm:$0xff]   ;;  %v20832_v10 = vld [vmem:[%s27952_s3 + $0xf18] ss:$28 sps:$4 sm:$0xff]  }
 0x5f8   :  { %10536 = vmatprep.subr.bf16.mxu0 %v20675_v4  ;;  %14940 = vmatprep.subr.bf16.mxu1 %v20678_v38  ;;  %v20834_v4 = vld [vmem:[%s27952_s3 + $0xf1c] ss:$28 sps:$4 sm:$0xff]   ;;  %v20721_v38 = vld [vmem:[%s27952_s3 + $0x2a8] ss:$28 sps:$4 sm:$0xff]  }
 0x5fb   :  { %10537 = vmatpush1.bf16.msra.mxu0 %v20673_v6  ;;  %14941 = vmatpush1.bf16.msra.mxu1 %v20676_v14  ;;  %v20726_v6 = vld [vmem:[%s27952_s3 + $0x2e4] ss:$28 sps:$4 sm:$0xff]   ;;  %v20838_v14 = vld [vmem:[%s27952_s3 + $0xf50] ss:$28 sps:$4 sm:$0xff]  }
 0x5fc   :  { %10538 = vmatprep.subr.bf16.mxu0 %v20681_v9  ;;  %14942 = vmatprep.subr.bf16.mxu1 %v20684_v20  ;;  %v20729_v9 = vld [vmem:[%s27952_s3 + $0x31c] ss:$28 sps:$4 sm:$0xff]   ;;  %v20844_v20 = vld [vmem:[%s27952_s3 + $0xf88] ss:$28 sps:$4 sm:$0xff]  }
 0x5ff   :  { %10539 = vmatpush1.bf16.msra.mxu0 %v20679_v17  ;;  %14943 = vmatpush1.bf16.msra.mxu1 %v20682_v16  ;;  %v20846_v17 = vld [vmem:[%s27952_s3 + $0xf8c] ss:$28 sps:$4 sm:$0xff]   ;;  %v20727_v16 = vld [vmem:[%s27952_s3 + $0x318] ss:$28 sps:$4 sm:$0xff]  }
 0x600   :  { %15035 = vmatprep.subr.bf16.mxu0 %v20687_v24  ;;  %14953 = vmatprep.subr.bf16.mxu1 %v20804_v51  ;;  %v20850_v24 = vld [vmem:[%s27952_s3 + $0xfc0] ss:$28 sps:$4 sm:$0xff]  }
 0x601   :  { %v20876_v51 = vld [vmem:[%s27952_s3 + $0x10a4] ss:$28 sps:$4 sm:$0xff]  }
 0x602   :  { %10541 = vmatmul.mubr.bf16.vlgmr.msra.gmra.mrb[8].mxu0 %v23109_v63  ;;  %14945 = vmatmul.mubr.bf16.vlgmr.msra.gmra.mrb[40].mxu1 %v26359_v21  ;;  %v20696_v63 = vld [vmem:[%s27952_s3 + $0xb4] ss:$28 sps:$4 sm:$0xff]  }
 0x603   :  { %15036 = vmatpush1.bf16.msra.mxu0 %v20685_v37  ;;  %15067 = vmatprep.mubr.bf16.mxu0 %v25510_v22  ;;  %v20852_v37 = vld [vmem:[%s27952_s3 + $0xfc4] ss:$28 sps:$4 sm:$0xff]  }
 0x604   :  { %15037 = vmatprep.subr.bf16.mxu0 %v20690_v25  ;;  %14954 = vmatpush1.bf16.msra.mxu1 %v20802_v36  ;;  %v20730_v25 = vld [vmem:[%s27952_s3 + $0x350] ss:$28 sps:$4 sm:$0xff]  }
 0x605   :  { %14955 = vmatprep.subr.bf16.mxu1 %v20810_v46  ;;  %v20744_v36 = vld [vmem:[%s27952_s3 + $0x434] ss:$28 sps:$4 sm:$0xff]   ;;  %v20882_v46 = vld [vmem:[%s27952_s3 + $0x10dc] ss:$28 sps:$4 sm:$0xff]  }
 0x607   :  { %15038 = vmatpush1.bf16.msra.mxu0 %v20688_v12  ;;  %v20735_v12 = vld [vmem:[%s27952_s3 + $0x38c] ss:$28 sps:$4 sm:$0xff]  }
 0x608   :  { %15039 = vmatprep.subr.bf16.mxu0 %v20693_v26  ;;  %14956 = vmatpush1.bf16.msra.mxu1 %v20808_v49  ;;  %v20856_v26 = vld [vmem:[%s27952_s3 + $0xff8] ss:$28 sps:$4 sm:$0xff]   ;;  %v20747_v49 = vld [vmem:[%s27952_s3 + $0x46c] ss:$28 sps:$4 sm:$0xff]  }
 0x609   :  { %14957 = vmatprep.subr.bf16.mxu1 %v20816_v54  ;;  %v20888_v54 = vld [vmem:[%s27952_s3 + $0x1114] ss:$28 sps:$4 sm:$0xff]  }
 0x60b   :  { %15040 = vmatpush1.bf16.msra.mxu0 %v20691_v28  ;;  %v20858_v28 = vld [vmem:[%s27952_s3 + $0xffc] ss:$28 sps:$4 sm:$0xff]  }
 0x60c   :  { %15041 = vmatprep.subr.bf16.mxu0 %v20696_v63  ;;  %14958 = vmatpush1.bf16.msra.mxu1 %v20814_v50  ;;  %v20733_v63 = vld [vmem:[%s27952_s3 + $0x388] ss:$28 sps:$4 sm:$0xff]  }
 0x60d   :  { %14959 = vmatprep.subr.bf16.mxu1 %v20822_v57  ;;  %v20750_v50 = vld [vmem:[%s27952_s3 + $0x4a4] ss:$28 sps:$4 sm:$0xff]   ;;  %v20894_v57 = vld [vmem:[%s27952_s3 + $0x114c] ss:$28 sps:$4 sm:$0xff]  }
 0x60f   :  { %15042 = vmatpush1.bf16.msra.mxu0 %v20694_v62  ;;  %v20738_v62 = vld [vmem:[%s27952_s3 + $0x3c4] ss:$28 sps:$4 sm:$0xff]  }
 0x610   :  { %15043 = vmatprep.subr.bf16.mxu0 %v20699_v45  ;;  %14960 = vmatpush1.bf16.msra.mxu1 %v20820_v52  ;;  %v20862_v45 = vld [vmem:[%s27952_s3 + $0x1030] ss:$28 sps:$4 sm:$0xff]   ;;  %v20753_v52 = vld [vmem:[%s27952_s3 + $0x4dc] ss:$28 sps:$4 sm:$0xff]  }
 0x611   :  { %14961 = vmatprep.subr.bf16.mxu1 %v20828_v15  ;;  %v20900_v15 = vld [vmem:[%s27952_s3 + $0x1184] ss:$28 sps:$4 sm:$0xff]  }
 0x613   :  { %15044 = vmatpush1.bf16.msra.mxu0 %v20697_v29  ;;  %v20864_v29 = vld [vmem:[%s27952_s3 + $0x1034] ss:$28 sps:$4 sm:$0xff]  }
 0x614   :  { %15045 = vmatprep.subr.bf16.mxu0 %v20702_v2  ;;  %14962 = vmatpush1.bf16.msra.mxu1 %v20826_v40  ;;  %v20736_v2 = vld [vmem:[%s27952_s3 + $0x3c0] ss:$28 sps:$4 sm:$0xff]   ;;  %v20756_v40 = vld [vmem:[%s27952_s3 + $0x514] ss:$28 sps:$4 sm:$0xff]  }
 0x615   :  { %14963 = vmatprep.subr.bf16.mxu1 %v20834_v4  ;;  %v20762_v4 = vld [vmem:[%s27952_s3 + $0x584] ss:$28 sps:$4 sm:$0xff]  }
 0x617   :  { %15046 = vmatpush1.bf16.msra.mxu0 %v20700_v31  ;;  %v20741_v31 = vld [vmem:[%s27952_s3 + $0x3fc] ss:$28 sps:$4 sm:$0xff]  }
 0x618   :  { %15047 = vmatprep.subr.bf16.mxu0 %v20705_v32  ;;  %14964 = vmatpush1.bf16.msra.mxu1 %v20832_v10  ;;  %v20870_v32 = vld [vmem:[%s27952_s3 + $0x106c] ss:$28 sps:$4 sm:$0xff]  }
 0x619   :  { %14965 = vmatprep.subr.bf16.mxu1 %v20840_v8  ;;  %v20757_v10 = vld [vmem:[%s27952_s3 + $0x548] ss:$28 sps:$4 sm:$0xff]   ;;  %v20768_v8 = vld [vmem:[%s27952_s3 + $0x5f4] ss:$28 sps:$4 sm:$0xff]  }
 0x61b   :  { %15048 = vmatpush1.bf16.msra.mxu0 %v20703_v35  ;;  %v20868_v35 = vld [vmem:[%s27952_s3 + $0x1068] ss:$28 sps:$4 sm:$0xff]  }
 0x61c   :  { %15049 = vmatprep.subr.bf16.mxu0 %v20708_v23  ;;  %14966 = vmatpush1.bf16.msra.mxu1 %v20838_v14  ;;  %v20739_v23 = vld [vmem:[%s27952_s3 + $0x3f8] ss:$28 sps:$4 sm:$0xff]  }
 0x61d   :  { %14967 = vmatprep.subr.bf16.mxu1 %v20846_v17  ;;  %v20763_v14 = vld [vmem:[%s27952_s3 + $0x5b8] ss:$28 sps:$4 sm:$0xff]   ;;  %v20774_v17 = vld [vmem:[%s27952_s3 + $0x664] ss:$28 sps:$4 sm:$0xff]  }
 0x61f   :  { %15050 = vmatpush1.bf16.msra.mxu0 %v20706_v27  ;;  %v20874_v27 = vld [vmem:[%s27952_s3 + $0x10a0] ss:$28 sps:$4 sm:$0xff]  }
 0x620   :  { %15051 = vmatprep.subr.bf16.mxu0 %v20711_v44  ;;  %14968 = vmatpush1.bf16.msra.mxu1 %v20844_v20  ;;  %v20742_v44 = vld [vmem:[%s27952_s3 + $0x430] ss:$28 sps:$4 sm:$0xff]   ;;  %v20769_v20 = vld [vmem:[%s27952_s3 + $0x628] ss:$28 sps:$4 sm:$0xff]  }
 0x621   :  { %14969 = vmatprep.subr.bf16.mxu1 %v20852_v37  ;;  %v20780_v37 = vld [vmem:[%s27952_s3 + $0x6d4] ss:$28 sps:$4 sm:$0xff]  }
 0x623   :  { %15052 = vmatpush1.bf16.msra.mxu0 %v20709_v47  ;;  %v20880_v47 = vld [vmem:[%s27952_s3 + $0x10d8] ss:$28 sps:$4 sm:$0xff]  }
 0x624   :  { %15053 = vmatprep.subr.bf16.mxu0 %v20714_v34  ;;  %14970 = vmatpush1.bf16.msra.mxu1 %v20850_v24  ;;  %v20745_v34 = vld [vmem:[%s27952_s3 + $0x468] ss:$28 sps:$4 sm:$0xff]   ;;  %v20775_v24 = vld [vmem:[%s27952_s3 + $0x698] ss:$28 sps:$4 sm:$0xff]  }
 0x625   :  { %14971 = vmatprep.subr.bf16.mxu1 %v20858_v28  ;;  %v20786_v28 = vld [vmem:[%s27952_s3 + $0x744] ss:$28 sps:$4 sm:$0xff]  }
 0x627   :  { %15054 = vmatpush1.bf16.msra.mxu0 %v20712_v13  ;;  %v20886_v13 = vld [vmem:[%s27952_s3 + $0x1110] ss:$28 sps:$4 sm:$0xff]  }
 0x628   :  { %15055 = vmatprep.subr.bf16.mxu0 %v20717_v56  ;;  %14972 = vmatpush1.bf16.msra.mxu1 %v20856_v26  ;;  %v20748_v56 = vld [vmem:[%s27952_s3 + $0x4a0] ss:$28 sps:$4 sm:$0xff]   ;;  %v20781_v26 = vld [vmem:[%s27952_s3 + $0x708] ss:$28 sps:$4 sm:$0xff]  }
 0x629   :  { %14973 = vmatprep.subr.bf16.mxu1 %v20864_v29  ;;  %v20792_v29 = vld [vmem:[%s27952_s3 + $0x7b4] ss:$28 sps:$4 sm:$0xff]  }
 0x62b   :  { %15056 = vmatpush1.bf16.msra.mxu0 %v20715_v58  ;;  %v20751_v58 = vld [vmem:[%s27952_s3 + $0x4d8] ss:$28 sps:$4 sm:$0xff]  }
 0x62c   :  { %15057 = vmatprep.subr.bf16.mxu0 %v20720_v59  ;;  %14974 = vmatpush1.bf16.msra.mxu1 %v20862_v45  ;;  %v20892_v59 = vld [vmem:[%s27952_s3 + $0x1148] ss:$28 sps:$4 sm:$0xff]   ;;  %v20787_v45 = vld [vmem:[%s27952_s3 + $0x778] ss:$28 sps:$4 sm:$0xff]  }
 0x62d   :  { %14975 = vmatprep.subr.bf16.mxu1 %v20870_v32  ;;  %v20793_v32 = vld [vmem:[%s27952_s3 + $0x7e8] ss:$28 sps:$4 sm:$0xff]  }
 0x62f   :  { %15058 = vmatpush1.bf16.msra.mxu0 %v20718_v61  ;;  %v20754_v61 = vld [vmem:[%s27952_s3 + $0x510] ss:$28 sps:$4 sm:$0xff]  }
 0x630   :  { %15059 = vmatprep.subr.bf16.mxu0 %v20723_v0  ;;  %14976 = vmatpush1.bf16.msra.mxu1 %v20868_v35  ;;  %v20759_v0 = vld [vmem:[%s27952_s3 + $0x54c] ss:$28 sps:$4 sm:$0xff]   ;;  %v20798_v35 = vld [vmem:[%s27952_s3 + $0x824] ss:$28 sps:$4 sm:$0xff]  }
 0x631   :  { %14977 = vmatprep.subr.bf16.mxu1 %v20876_v51  ;;  %v20799_v51 = vld [vmem:[%s27952_s3 + $0x858] ss:$28 sps:$4 sm:$0xff]  }
 0x633   :  { %15060 = vmatpush1.bf16.msra.mxu0 %v20721_v38  ;;  %v20760_v38 = vld [vmem:[%s27952_s3 + $0x580] ss:$28 sps:$4 sm:$0xff]  }
 0x634   :  { %15061 = vmatprep.subr.bf16.mxu0 %v20726_v6  ;;  %14978 = vmatpush1.bf16.msra.mxu1 %v20874_v27  ;;  %v20765_v6 = vld [vmem:[%s27952_s3 + $0x5bc] ss:$28 sps:$4 sm:$0xff]   ;;  %v20807_v27 = vld [vmem:[%s27952_s3 + $0x894] ss:$28 sps:$4 sm:$0xff]  }
 0x635   :  { %14979 = vmatprep.subr.bf16.mxu1 %v20882_v46  ;;  %v20811_v46 = vld [vmem:[%s27952_s3 + $0x8c8] ss:$28 sps:$4 sm:$0xff]  }
 0x637   :  { %15062 = vmatpush1.bf16.msra.mxu0 %v20724_v11  ;;  %v20766_v11 = vld [vmem:[%s27952_s3 + $0x5f0] ss:$28 sps:$4 sm:$0xff]  }
 0x638   :  { %15063 = vmatprep.subr.bf16.mxu0 %v20729_v9  ;;  %14980 = vmatpush1.bf16.msra.mxu1 %v20880_v47  ;;  %v20771_v9 = vld [vmem:[%s27952_s3 + $0x62c] ss:$28 sps:$4 sm:$0xff]   ;;  %v20819_v47 = vld [vmem:[%s27952_s3 + $0x904] ss:$28 sps:$4 sm:$0xff]  }
 0x639   :  { %14981 = vmatprep.subr.bf16.mxu1 %v20888_v54  ;;  %v20823_v54 = vld [vmem:[%s27952_s3 + $0x938] ss:$28 sps:$4 sm:$0xff]  }
 0x63b   :  { %15064 = vmatpush1.bf16.msra.mxu0 %v20727_v16  ;;  %v20772_v16 = vld [vmem:[%s27952_s3 + $0x660] ss:$28 sps:$4 sm:$0xff]  }
 0x63c   :  { %15065 = vmatprep.subr.bf16.mxu0 %v20732_v18  ;;  %14982 = vmatpush1.bf16.msra.mxu1 %v20886_v13  ;;  %v20777_v18 = vld [vmem:[%s27952_s3 + $0x69c] ss:$28 sps:$4 sm:$0xff]   ;;  %v20831_v13 = vld [vmem:[%s27952_s3 + $0x974] ss:$28 sps:$4 sm:$0xff]  }
 0x63d   :  { %14983 = vmatprep.subr.bf16.mxu1 %v20894_v57  ;;  %v20835_v57 = vld [vmem:[%s27952_s3 + $0x9a8] ss:$28 sps:$4 sm:$0xff]  }
 0x63f   :  { %15066 = vmatpush1.bf16.msra.mxu0 %v20730_v25  ;;  %v20778_v25 = vld [vmem:[%s27952_s3 + $0x6d0] ss:$28 sps:$4 sm:$0xff]  }
 0x640   :  { %15076 = vmatprep.subr.bf16.mxu0 %v20735_v12  ;;  %14984 = vmatpush1.bf16.msra.mxu1 %v20892_v59  ;;  %v20783_v12 = vld [vmem:[%s27952_s3 + $0x70c] ss:$28 sps:$4 sm:$0xff]   ;;  %v20841_v59 = vld [vmem:[%s27952_s3 + $0x9e0] ss:$28 sps:$4 sm:$0xff]  }
 0x641   :  { %14994 = vmatprep.subr.bf16.mxu1 %v20900_v15  ;;  %v20847_v15 = vld [vmem:[%s27952_s3 + $0xa18] ss:$28 sps:$4 sm:$0xff]  }
 0x642   :  { %15068 = vmatmul.mubr.bf16.vlgmr.msra.gmra.mrb[12].mxu0 %v25725_v19 }
 0x643   :  { %15077 = vmatpush1.bf16.msra.mxu0 %v20733_v63  ;;  %15108 = vmatprep.mubr.bf16.mxu0 %v25733_v39  ;;  %v20784_v63 = vld [vmem:[%s27952_s3 + $0x740] ss:$28 sps:$4 sm:$0xff]  }
 0x644   :  { %15078 = vmatprep.subr.bf16.mxu0 %v20738_v62  ;;  %v20789_v62 = vld [vmem:[%s27952_s3 + $0x77c] ss:$28 sps:$4 sm:$0xff]  }
 0x647   :  { %15079 = vmatpush1.bf16.msra.mxu0 %v20736_v2  ;;  %v20790_v2 = vld [vmem:[%s27952_s3 + $0x7b0] ss:$28 sps:$4 sm:$0xff]  }
 0x648   :  { %15080 = vmatprep.subr.bf16.mxu0 %v20741_v31  ;;  %v20795_v31 = vld [vmem:[%s27952_s3 + $0x7ec] ss:$28 sps:$4 sm:$0xff]  }
 0x64b   :  { %15081 = vmatpush1.bf16.msra.mxu0 %v20739_v23  ;;  %v20796_v23 = vld [vmem:[%s27952_s3 + $0x820] ss:$28 sps:$4 sm:$0xff]  }
 0x64c   :  { %15082 = vmatprep.subr.bf16.mxu0 %v20744_v36  ;;  %v20801_v36 = vld [vmem:[%s27952_s3 + $0x85c] ss:$28 sps:$4 sm:$0xff]  }
 0x64f   :  { %15083 = vmatpush1.bf16.msra.mxu0 %v20742_v44  ;;  %v20805_v44 = vld [vmem:[%s27952_s3 + $0x890] ss:$28 sps:$4 sm:$0xff]  }
 0x650   :  { %15084 = vmatprep.subr.bf16.mxu0 %v20747_v49  ;;  %v20813_v49 = vld [vmem:[%s27952_s3 + $0x8cc] ss:$28 sps:$4 sm:$0xff]  }
 0x653   :  { %15085 = vmatpush1.bf16.msra.mxu0 %v20745_v34  ;;  %v20817_v34 = vld [vmem:[%s27952_s3 + $0x900] ss:$28 sps:$4 sm:$0xff]  }
 0x654   :  { %15086 = vmatprep.subr.bf16.mxu0 %v20750_v50  ;;  %v20825_v50 = vld [vmem:[%s27952_s3 + $0x93c] ss:$28 sps:$4 sm:$0xff]  }
 0x657   :  { %15087 = vmatpush1.bf16.msra.mxu0 %v20748_v56  ;;  %v20829_v56 = vld [vmem:[%s27952_s3 + $0x970] ss:$28 sps:$4 sm:$0xff]  }
 0x658   :  { %15088 = vmatprep.subr.bf16.mxu0 %v20753_v52  ;;  %v20837_v52 = vld [vmem:[%s27952_s3 + $0x9ac] ss:$28 sps:$4 sm:$0xff]  }
 0x65b   :  { %15089 = vmatpush1.bf16.msra.mxu0 %v20751_v58  ;;  %v20843_v58 = vld [vmem:[%s27952_s3 + $0x9e4] ss:$28 sps:$4 sm:$0xff]  }
 0x65c   :  { %15090 = vmatprep.subr.bf16.mxu0 %v20756_v40  ;;  %v20849_v40 = vld [vmem:[%s27952_s3 + $0xa1c] ss:$28 sps:$4 sm:$0xff]  }
 0x65f   :  { %15091 = vmatpush1.bf16.msra.mxu0 %v20754_v61  ;;  %v20855_v61 = vld [vmem:[%s27952_s3 + $0xa54] ss:$28 sps:$4 sm:$0xff]  }
 0x660   :  { %15092 = vmatprep.subr.bf16.mxu0 %v20759_v0  ;;  %v20853_v0 = vld [vmem:[%s27952_s3 + $0xa50] ss:$28 sps:$4 sm:$0xff]  }
 0x663   :  { %15093 = vmatpush1.bf16.msra.mxu0 %v20757_v10  ;;  %v20861_v10 = vld [vmem:[%s27952_s3 + $0xa8c] ss:$28 sps:$4 sm:$0xff]  }
 0x664   :  { %15094 = vmatprep.subr.bf16.mxu0 %v20762_v4  ;;  %v20859_v4 = vld [vmem:[%s27952_s3 + $0xa88] ss:$28 sps:$4 sm:$0xff]  }
 0x667   :  { %15095 = vmatpush1.bf16.msra.mxu0 %v20760_v38  ;;  %v20867_v38 = vld [vmem:[%s27952_s3 + $0xac4] ss:$28 sps:$4 sm:$0xff]  }
 0x668   :  { %15096 = vmatprep.subr.bf16.mxu0 %v20765_v6  ;;  %v20865_v6 = vld [vmem:[%s27952_s3 + $0xac0] ss:$28 sps:$4 sm:$0xff]  }
 0x66b   :  { %15097 = vmatpush1.bf16.msra.mxu0 %v20763_v14  ;;  %v20873_v14 = vld [vmem:[%s27952_s3 + $0xafc] ss:$28 sps:$4 sm:$0xff]  }
 0x66c   :  { %15098 = vmatprep.subr.bf16.mxu0 %v20768_v8  ;;  %v20871_v8 = vld [vmem:[%s27952_s3 + $0xaf8] ss:$28 sps:$4 sm:$0xff]  }
 0x66f   :  { %15099 = vmatpush1.bf16.msra.mxu0 %v20766_v11  ;;  %v20879_v11 = vld [vmem:[%s27952_s3 + $0xb34] ss:$28 sps:$4 sm:$0xff]  }
 0x670   :  { %15100 = vmatprep.subr.bf16.mxu0 %v20771_v9  ;;  %v20877_v9 = vld [vmem:[%s27952_s3 + $0xb30] ss:$28 sps:$4 sm:$0xff]  }
 0x673   :  { %15101 = vmatpush1.bf16.msra.mxu0 %v20769_v20  ;;  %v20885_v20 = vld [vmem:[%s27952_s3 + $0xb6c] ss:$28 sps:$4 sm:$0xff]  }
 0x674   :  { %15102 = vmatprep.subr.bf16.mxu0 %v20774_v17  ;;  %v20883_v17 = vld [vmem:[%s27952_s3 + $0xb68] ss:$28 sps:$4 sm:$0xff]  }
 0x677   :  { %15103 = vmatpush1.bf16.msra.mxu0 %v20772_v16  ;;  %v20891_v16 = vld [vmem:[%s27952_s3 + $0xba4] ss:$28 sps:$4 sm:$0xff]  }
 0x678   :  { %15104 = vmatprep.subr.bf16.mxu0 %v20777_v18  ;;  %v21375_v18 = vld [vmem:[%s27951_s2 + $0x8] sm:$0x7] }
 0x67b   :  { %15105 = vmatpush1.bf16.msra.mxu0 %v20775_v24  ;;  %v1605_v24 = vrot.slane %v21375_v18, %v25676_v53 }
 0x67c   :  { %15106 = vmatprep.subr.bf16.mxu0 %v20780_v37  ;;  %v1609_v37 = vrot.slane %v21375_v18, %v25464_v1  ;;  %v20951_v18 = vld [vmem:[%s27952_s3 + $0xdd4] ss:$28 sps:$4 sm:$0xff]  }
 0x67f   :  { %15107 = vmatpush1.bf16.msra.mxu0 %v20778_v25  ;;  %v20889_v25 = vld [vmem:[%s27952_s3 + $0xba0] ss:$28 sps:$4 sm:$0xff]  }
 0x680   :  { %15117 = vmatprep.subr.bf16.mxu0 %v20783_v12  ;;  %v20897_v12 = vld [vmem:[%s27952_s3 + $0xbdc] ss:$28 sps:$4 sm:$0xff]  }
 0x682   :  { %15109 = vmatmul.mubr.bf16.vlgmr.msra.gmra.mrb[12].mxu0 %v25939_v5 }
 0x683   :  { %15118 = vmatpush1.bf16.msra.mxu0 %v20781_v26  ;;  %15149 = vmatprep.mubr.bf16.mxu0 %v25947_v7 }
 0x684   :  { %15119 = vmatprep.subr.bf16.mxu0 %v20786_v28 }
 0x687   :  { %15120 = vmatpush1.bf16.msra.mxu0 %v20784_v63 }
 0x688   :  { %15121 = vmatprep.subr.bf16.mxu0 %v20789_v62 }
 0x68b   :  { %15122 = vmatpush1.bf16.msra.mxu0 %v20787_v45 }
 0x68c   :  { %15123 = vmatprep.subr.bf16.mxu0 %v20792_v29  ;;  %v20895_v29 = vld [vmem:[%s27952_s3 + $0xbd8] ss:$28 sps:$4 sm:$0xff]  }
 0x68f   :  { %15124 = vmatpush1.bf16.msra.mxu0 %v20790_v2 }
 0x690   :  { %15125 = vmatprep.subr.bf16.mxu0 %v20795_v31  ;;  %v20903_v31 = vld [vmem:[%s27952_s3 + $0xc14] ss:$28 sps:$4 sm:$0xff]  }
 0x693   :  { %15126 = vmatpush1.bf16.msra.mxu0 %v20793_v32 }
 0x694   :  { %15127 = vmatprep.subr.bf16.mxu0 %v20798_v35  ;;  %v20898_v35 = vld [vmem:[%s27952_s3 + $0x1180] ss:$28 sps:$4 sm:$0xff]  }
 0x697   :  { %15128 = vmatpush1.bf16.msra.mxu0 %v20796_v23 }
 0x698   :  { %15129 = vmatprep.subr.bf16.mxu0 %v20801_v36  ;;  %v20906_v36 = vld [vmem:[%s27952_s3 + $0x11bc] ss:$28 sps:$4 sm:$0xff]  }
 0x69b   :  { %15130 = vmatpush1.bf16.msra.mxu0 %v20799_v51  ;;  %v20901_v51 = vld [vmem:[%s27952_s3 + $0xc10] ss:$28 sps:$4 sm:$0xff]  }
 0x69c   :  { %15131 = vmatprep.subr.bf16.mxu0 %v20807_v27  ;;  %v20909_v27 = vld [vmem:[%s27952_s3 + $0xc4c] ss:$28 sps:$4 sm:$0xff]  }
 0x69f   :  { %15132 = vmatpush1.bf16.msra.mxu0 %v20805_v44  ;;  %v20904_v44 = vld [vmem:[%s27952_s3 + $0x11b8] ss:$28 sps:$4 sm:$0xff]  }
 0x6a0   :  { %15133 = vmatprep.subr.bf16.mxu0 %v20813_v49  ;;  %v21402_v49 = vmov 0  }
 0x6a3   :  { %15134 = vmatpush1.bf16.msra.mxu0 %v20811_v46  ;;  %v20912_v46 = vld [vmem:[%s27952_s3 + $0x11f4] ss:$28 sps:$4 sm:$0xff]  }
 0x6a4   :  { %15135 = vmatprep.subr.bf16.mxu0 %v20819_v47  ;;  %v20907_v47 = vld [vmem:[%s27952_s3 + $0xc48] ss:$28 sps:$4 sm:$0xff]  }
 0x6a7   :  { %15136 = vmatpush1.bf16.msra.mxu0 %v20817_v34  ;;  %v20915_v34 = vld [vmem:[%s27952_s3 + $0xc84] ss:$28 sps:$4 sm:$0xff]  }
 0x6a8   :  { %15137 = vmatprep.subr.bf16.mxu0 %v20825_v50  ;;  %v20910_v50 = vld [vmem:[%s27952_s3 + $0x11f0] ss:$28 sps:$4 sm:$0xff]  }
 0x6ab   :  { %15138 = vmatpush1.bf16.msra.mxu0 %v20823_v54  ;;  %v20918_v54 = vld [vmem:[%s27952_s3 + $0x122c] ss:$28 sps:$4 sm:$0xff]  }
 0x6ac   :  { %15139 = vmatprep.subr.bf16.mxu0 %v20831_v13  ;;  %v20913_v13 = vld [vmem:[%s27952_s3 + $0xc80] ss:$28 sps:$4 sm:$0xff]  }
 0x6af   :  { %15140 = vmatpush1.bf16.msra.mxu0 %v20829_v56  ;;  %v20921_v56 = vld [vmem:[%s27952_s3 + $0xcbc] ss:$28 sps:$4 sm:$0xff]  }
 0x6b0   :  { %15141 = vmatprep.subr.bf16.mxu0 %v20837_v52  ;;  %v20916_v52 = vld [vmem:[%s27952_s3 + $0x1228] ss:$28 sps:$4 sm:$0xff]  }
 0x6b3   :  { %15142 = vmatpush1.bf16.msra.mxu0 %v20835_v57  ;;  %v20924_v57 = vld [vmem:[%s27952_s3 + $0x1264] ss:$28 sps:$4 sm:$0xff]  }
 0x6b4   :  { %15143 = vmatprep.subr.bf16.mxu0 %v20843_v58  ;;  %v20919_v58 = vld [vmem:[%s27952_s3 + $0xcb8] ss:$28 sps:$4 sm:$0xff]  }
 0x6b7   :  { %15144 = vmatpush1.bf16.msra.mxu0 %v20841_v59  ;;  %v20927_v59 = vld [vmem:[%s27952_s3 + $0xcf4] ss:$28 sps:$4 sm:$0xff]  }
 0x6b8   :  { %15145 = vmatprep.subr.bf16.mxu0 %v20849_v40  ;;  %v20922_v40 = vld [vmem:[%s27952_s3 + $0x1260] ss:$28 sps:$4 sm:$0xff]  }
 0x6bb   :  { %15146 = vmatpush1.bf16.msra.mxu0 %v20847_v15  ;;  %v20930_v15 = vld [vmem:[%s27952_s3 + $0x129c] ss:$28 sps:$4 sm:$0xff]  }
 0x6bc   :  { %15147 = vmatprep.subr.bf16.mxu0 %v20855_v61  ;;  %v20925_v61 = vld [vmem:[%s27952_s3 + $0xcf0] ss:$28 sps:$4 sm:$0xff]  }
 0x6bf   :  { %15148 = vmatpush1.bf16.msra.mxu0 %v20853_v0  ;;  %v20933_v0 = vld [vmem:[%s27952_s3 + $0xd2c] ss:$28 sps:$4 sm:$0xff]  }
 0x6c0   :  { %15158 = vmatprep.subr.bf16.mxu0 %v20861_v10  ;;  %v20928_v10 = vld [vmem:[%s27952_s3 + $0x1298] ss:$28 sps:$4 sm:$0xff]  }
 0x6c2   :  { %15150 = vmatmul.mubr.bf16.vlgmr.msra.gmra.mrb[12].mxu0 %v26154_v55 }
 0x6c3   :  { %15159 = vmatpush1.bf16.msra.mxu0 %v20859_v4  ;;  %15190 = vmatprep.mubr.bf16.mxu0 %v26162_v33  ;;  %v20936_v4 = vld [vmem:[%s27952_s3 + $0x12d4] ss:$28 sps:$4 sm:$0xff]  }
 0x6c4   :  { %15160 = vmatprep.subr.bf16.mxu0 %v20867_v38  ;;  %v20931_v38 = vld [vmem:[%s27952_s3 + $0xd28] ss:$28 sps:$4 sm:$0xff]  }
 0x6c7   :  { %15161 = vmatpush1.bf16.msra.mxu0 %v20865_v6  ;;  %v20939_v6 = vld [vmem:[%s27952_s3 + $0xd64] ss:$28 sps:$4 sm:$0xff]  }
 0x6c8   :  { %15162 = vmatprep.subr.bf16.mxu0 %v20873_v14  ;;  %v20934_v14 = vld [vmem:[%s27952_s3 + $0x12d0] ss:$28 sps:$4 sm:$0xff]  }
 0x6cb   :  { %15163 = vmatpush1.bf16.msra.mxu0 %v20871_v8  ;;  %v20942_v8 = vld [vmem:[%s27952_s3 + $0x130c] ss:$28 sps:$4 sm:$0xff]  }
 0x6cc   :  { %15164 = vmatprep.subr.bf16.mxu0 %v20879_v11  ;;  %v20937_v11 = vld [vmem:[%s27952_s3 + $0xd60] ss:$28 sps:$4 sm:$0xff]  }
 0x6cf   :  { %15165 = vmatpush1.bf16.msra.mxu0 %v20877_v9  ;;  %v20945_v9 = vld [vmem:[%s27952_s3 + $0xd9c] ss:$28 sps:$4 sm:$0xff]  }
 0x6d0   :  { %15166 = vmatprep.subr.bf16.mxu0 %v20885_v20  ;;  %v20940_v20 = vld [vmem:[%s27952_s3 + $0x1308] ss:$28 sps:$4 sm:$0xff]  }
 0x6d3   :  { %15167 = vmatpush1.bf16.msra.mxu0 %v20883_v17  ;;  %v20948_v17 = vld [vmem:[%s27952_s3 + $0x14] ss:$28 sps:$4 sm:$0xff]  }
 0x6d4   :  { %15168 = vmatprep.subr.bf16.mxu0 %v20891_v16  ;;  %v20943_v16 = vld [vmem:[%s27952_s3 + $0xd98] ss:$28 sps:$4 sm:$0xff]  }
 0x6d5   :  { %v10542_v26 = vpop.f32.mrb[8].mxu0 }
 0x6d6   :  { %v18230_v28 = vadd.f32 %v10542_v26, %v1605_v24  ;;  %v10544_v63 = vpop.f32.mrb[9].mxu0  ;;  %v20946_v24 = vld [vmem:[%s27952_s3 + $0x10] ss:$28 sps:$4 sm:$0xff]  }
 0x6d7   :  { %v18231_v62 = vadd.f32 %v10544_v63, %v1609_v37  ;;  %v10546_v45 = vpop.f32.mrb[10].mxu0  ;;  %15169 = vmatpush1.bf16.msra.mxu0 %v20889_v25  ;;  %v26909_v37 = vpack.c.bf16 %v26241_v30, %v26241_v30  ;;  %v20954_v25 = vld [vmem:[%s27952_s3 + $0x4c] ss:$28 sps:$4 sm:$0xff]  }
 0x6d8   :  { %v10547_v2 = vpop.f32.mrb[11].mxu0  ;;  %15170 = vmatprep.subr.bf16.mxu0 %v20897_v12  ;;  %v26806_v23 = vpack.c.bf16 %v18230_v28, %v18230_v28  ;;  %v20949_v12 = vld [vmem:[%s27952_s3 + $0xdd0] ss:$28 sps:$4 sm:$0xff]   ;;  %v20952_v30 = vld [vmem:[%s27952_s3 + $0x48] ss:$28 sps:$4 sm:$0xff]  }
 0x6d9   :  { %v26801_v32 = vpack.c.bf16 %v18231_v62, %v18231_v62  ;;  %v20957_v26 = vld [vmem:[%s27952_s3 + $0xe0c] ss:$28 sps:$4 sm:$0xff]   ;;  %v20960_v28 = vld [vmem:[%s27952_s3 + $0x84] ss:$28 sps:$4 sm:$0xff]  }
 0x6da   :  { %v20955_v63 = vld [vmem:[%s27952_s3 + $0xe08] ss:$28 sps:$4 sm:$0xff]   ;;  %v20958_v45 = vld [vmem:[%s27952_s3 + $0x80] ss:$28 sps:$4 sm:$0xff]  }
 0x6db   :  { %14985 = vmatprep.mubr.bf16.mxu1 %v26801_v32  ;;  %15171 = vmatpush1.bf16.msra.mxu0 %v20895_v29  ;;  %v20963_v62 = vld [vmem:[%s27952_s3 + $0xe44] ss:$28 sps:$4 sm:$0xff]   ;;  %v20966_v29 = vld [vmem:[%s27952_s3 + $0xbc] ss:$28 sps:$4 sm:$0xff]  }
 0x6dc   :  { %14986 = vmatmul.mubr.bf16.vlgmr.msra.gmra.mrb[40].mxu1 %v26806_v23  ;;  %15172 = vmatprep.subr.bf16.mxu0 %v20903_v31  ;;  %v20961_v2 = vld [vmem:[%s27952_s3 + $0xe40] ss:$28 sps:$4 sm:$0xff]  }
 0x6dd   :  { %14995 = vmatpush1.bf16.msra.mxu1 %v20898_v35  ;;  %15026 = vmatprep.mubr.bf16.mxu1 %v21402_v49  ;;  %v20969_v31 = vld [vmem:[%s27952_s3 + $0xe7c] ss:$28 sps:$4 sm:$0xff]  }
 0x6de   :  { %14996 = vmatprep.subr.bf16.mxu1 %v20906_v36  ;;  %v20964_v35 = vld [vmem:[%s27952_s3 + $0xb8] ss:$28 sps:$4 sm:$0xff]  }
 0x6df   :  { %15173 = vmatpush1.bf16.msra.mxu0 %v20901_v51  ;;  %v20972_v36 = vld [vmem:[%s27952_s3 + $0xf4] ss:$28 sps:$4 sm:$0xff]  }
 0x6e0   :  { %15174 = vmatprep.subr.bf16.mxu0 %v20909_v27  ;;  %v20967_v51 = vld [vmem:[%s27952_s3 + $0xe78] ss:$28 sps:$4 sm:$0xff]  }
 0x6e1   :  { %14997 = vmatpush1.bf16.msra.mxu1 %v20904_v44  ;;  %v20975_v27 = vld [vmem:[%s27952_s3 + $0xeb4] ss:$28 sps:$4 sm:$0xff]  }
 0x6e2   :  { %14998 = vmatprep.subr.bf16.mxu1 %v20912_v46  ;;  %v20970_v44 = vld [vmem:[%s27952_s3 + $0xf0] ss:$28 sps:$4 sm:$0xff]  }
 0x6e3   :  { %15175 = vmatpush1.bf16.msra.mxu0 %v20907_v47  ;;  %v20978_v46 = vld [vmem:[%s27952_s3 + $0x12c] ss:$28 sps:$4 sm:$0xff]  }
 0x6e4   :  { %15176 = vmatprep.subr.bf16.mxu0 %v20915_v34  ;;  %v20973_v47 = vld [vmem:[%s27952_s3 + $0xeb0] ss:$28 sps:$4 sm:$0xff]  }
 0x6e5   :  { %14999 = vmatpush1.bf16.msra.mxu1 %v20910_v50  ;;  %v20981_v34 = vld [vmem:[%s27952_s3 + $0xeec] ss:$28 sps:$4 sm:$0xff]  }
 0x6e6   :  { %15000 = vmatprep.subr.bf16.mxu1 %v20918_v54  ;;  %v20976_v50 = vld [vmem:[%s27952_s3 + $0x128] ss:$28 sps:$4 sm:$0xff]  }
 0x6e7   :  { %15177 = vmatpush1.bf16.msra.mxu0 %v20913_v13  ;;  %v20984_v54 = vld [vmem:[%s27952_s3 + $0x164] ss:$28 sps:$4 sm:$0xff]  }
 0x6e8   :  { %15178 = vmatprep.subr.bf16.mxu0 %v20921_v56  ;;  %v20979_v13 = vld [vmem:[%s27952_s3 + $0xee8] ss:$28 sps:$4 sm:$0xff]  }
 0x6e9   :  { %15001 = vmatpush1.bf16.msra.mxu1 %v20916_v52  ;;  %v20987_v56 = vld [vmem:[%s27952_s3 + $0xf24] ss:$28 sps:$4 sm:$0xff]  }
 0x6ea   :  { %15002 = vmatprep.subr.bf16.mxu1 %v20924_v57  ;;  %v20982_v52 = vld [vmem:[%s27952_s3 + $0x160] ss:$28 sps:$4 sm:$0xff]  }
 0x6eb   :  { %15179 = vmatpush1.bf16.msra.mxu0 %v20919_v58  ;;  %v20990_v57 = vld [vmem:[%s27952_s3 + $0x19c] ss:$28 sps:$4 sm:$0xff]  }
 0x6ec   :  { %15180 = vmatprep.subr.bf16.mxu0 %v20927_v59  ;;  %v20985_v58 = vld [vmem:[%s27952_s3 + $0xf20] ss:$28 sps:$4 sm:$0xff]  }
 0x6ed   :  { %15003 = vmatpush1.bf16.msra.mxu1 %v20922_v40  ;;  %v20993_v59 = vld [vmem:[%s27952_s3 + $0xf5c] ss:$28 sps:$4 sm:$0xff]  }
 0x6ee   :  { %15004 = vmatprep.subr.bf16.mxu1 %v20930_v15  ;;  %v20988_v40 = vld [vmem:[%s27952_s3 + $0x198] ss:$28 sps:$4 sm:$0xff]  }
 0x6ef   :  { %15181 = vmatpush1.bf16.msra.mxu0 %v20925_v61  ;;  %v20996_v15 = vld [vmem:[%s27952_s3 + $0x1d4] ss:$28 sps:$4 sm:$0xff]  }
 0x6f0   :  { %15182 = vmatprep.subr.bf16.mxu0 %v20933_v0  ;;  %v20991_v61 = vld [vmem:[%s27952_s3 + $0xf58] ss:$28 sps:$4 sm:$0xff]  }
 0x6f1   :  { %15005 = vmatpush1.bf16.msra.mxu1 %v20928_v10  ;;  %v20999_v0 = vld [vmem:[%s27952_s3 + $0xf94] ss:$28 sps:$4 sm:$0xff]  }
 0x6f2   :  { %15006 = vmatprep.subr.bf16.mxu1 %v20936_v4  ;;  %v20994_v10 = vld [vmem:[%s27952_s3 + $0x1d0] ss:$28 sps:$4 sm:$0xff]  }
 0x6f3   :  { %15183 = vmatpush1.bf16.msra.mxu0 %v20931_v38  ;;  %v21002_v4 = vld [vmem:[%s27952_s3 + $0x20c] ss:$28 sps:$4 sm:$0xff]  }
 0x6f4   :  { %15184 = vmatprep.subr.bf16.mxu0 %v20939_v6  ;;  %v20997_v38 = vld [vmem:[%s27952_s3 + $0xf90] ss:$28 sps:$4 sm:$0xff]  }
 0x6f5   :  { %15007 = vmatpush1.bf16.msra.mxu1 %v20934_v14  ;;  %v21005_v6 = vld [vmem:[%s27952_s3 + $0xfcc] ss:$28 sps:$4 sm:$0xff]  }
 0x6f6   :  { %15008 = vmatprep.subr.bf16.mxu1 %v20942_v8  ;;  %v21000_v14 = vld [vmem:[%s27952_s3 + $0x208] ss:$28 sps:$4 sm:$0xff]  }
 0x6f7   :  { %15185 = vmatpush1.bf16.msra.mxu0 %v20937_v11  ;;  %v21008_v8 = vld [vmem:[%s27952_s3 + $0x244] ss:$28 sps:$4 sm:$0xff]  }
 0x6f8   :  { %15186 = vmatprep.subr.bf16.mxu0 %v20945_v9  ;;  %v21003_v11 = vld [vmem:[%s27952_s3 + $0xfc8] ss:$28 sps:$4 sm:$0xff]  }
 0x6f9   :  { %15009 = vmatpush1.bf16.msra.mxu1 %v20940_v20  ;;  %v21011_v9 = vld [vmem:[%s27952_s3 + $0x1004] ss:$28 sps:$4 sm:$0xff]  }
 0x6fa   :  { %15281 = vmatprep.subr.bf16.mxu1 %v20948_v17  ;;  %v21006_v20 = vld [vmem:[%s27952_s3 + $0x240] ss:$28 sps:$4 sm:$0xff]  }
 0x6fb   :  { %15187 = vmatpush1.bf16.msra.mxu0 %v20943_v16  ;;  %v21014_v17 = vld [vmem:[%s27952_s3 + $0x27c] ss:$28 sps:$4 sm:$0xff]  }
 0x6fc   :  { %15027 = vmatmul.mubr.bf16.vlgmr.msra.gmra.mrb[40].mxu1 %v26909_v37  ;;  %15188 = vmatprep.subr.bf16.mxu0 %v20951_v18  ;;  %v21009_v16 = vld [vmem:[%s27952_s3 + $0x1000] ss:$28 sps:$4 sm:$0xff]  }
 0x6fd   :  { %15282 = vmatpush1.bf16.msra.mxu1 %v20946_v24  ;;  %15313 = vmatprep.mubr.bf16.mxu1 %v25510_v22  ;;  %v21017_v18 = vld [vmem:[%s27952_s3 + $0x103c] ss:$28 sps:$4 sm:$0xff]  }
 0x6fe   :  { %15283 = vmatprep.subr.bf16.mxu1 %v20954_v25  ;;  %v21012_v24 = vld [vmem:[%s27952_s3 + $0x278] ss:$28 sps:$4 sm:$0xff]  }
 0x6ff   :  { %15189 = vmatpush1.bf16.msra.mxu0 %v20949_v12  ;;  %v21020_v25 = vld [vmem:[%s27952_s3 + $0x2b4] ss:$28 sps:$4 sm:$0xff]  }
 0x700   :  { %15199 = vmatprep.subr.bf16.mxu0 %v20957_v26  ;;  %v21015_v12 = vld [vmem:[%s27952_s3 + $0x1038] ss:$28 sps:$4 sm:$0xff]  }
 0x701   :  { %15284 = vmatpush1.bf16.msra.mxu1 %v20952_v30  ;;  %v21023_v26 = vld [vmem:[%s27952_s3 + $0x1074] ss:$28 sps:$4 sm:$0xff]  }
 0x702   :  { %15191 = vmatmul.mubr.bf16.vlgmr.msra.gmra.mrb[12].mxu0 %v26359_v21  ;;  %15285 = vmatprep.subr.bf16.mxu1 %v20960_v28  ;;  %v21018_v30 = vld [vmem:[%s27952_s3 + $0x2b0] ss:$28 sps:$4 sm:$0xff]  }
 0x703   :  { %15200 = vmatpush1.bf16.msra.mxu0 %v20955_v63  ;;  %15231 = vmatprep.mubr.bf16.mxu0 %v26801_v32  ;;  %v21026_v28 = vld [vmem:[%s27952_s3 + $0x2ec] ss:$28 sps:$4 sm:$0xff]  }
 0x704   :  { %15201 = vmatprep.subr.bf16.mxu0 %v20963_v62  ;;  %v21021_v63 = vld [vmem:[%s27952_s3 + $0x1070] ss:$28 sps:$4 sm:$0xff]  }
 0x705   :  { %15286 = vmatpush1.bf16.msra.mxu1 %v20958_v45  ;;  %v21029_v62 = vld [vmem:[%s27952_s3 + $0x10ac] ss:$28 sps:$4 sm:$0xff]  }
 0x706   :  { %15287 = vmatprep.subr.bf16.mxu1 %v20966_v29  ;;  %v21024_v45 = vld [vmem:[%s27952_s3 + $0x2e8] ss:$28 sps:$4 sm:$0xff]  }
 0x707   :  { %15202 = vmatpush1.bf16.msra.mxu0 %v20961_v2  ;;  %v21032_v29 = vld [vmem:[%s27952_s3 + $0x324] ss:$28 sps:$4 sm:$0xff]  }
 0x708   :  { %15203 = vmatprep.subr.bf16.mxu0 %v20969_v31  ;;  %v21027_v2 = vld [vmem:[%s27952_s3 + $0x10a8] ss:$28 sps:$4 sm:$0xff]  }
 0x709   :  { %15288 = vmatpush1.bf16.msra.mxu1 %v20964_v35  ;;  %v21035_v31 = vld [vmem:[%s27952_s3 + $0x10e4] ss:$28 sps:$4 sm:$0xff]  }
 0x70a   :  { %15289 = vmatprep.subr.bf16.mxu1 %v20972_v36  ;;  %v21030_v35 = vld [vmem:[%s27952_s3 + $0x320] ss:$28 sps:$4 sm:$0xff]  }
 0x70b   :  { %15204 = vmatpush1.bf16.msra.mxu0 %v20967_v51  ;;  %v21038_v36 = vld [vmem:[%s27952_s3 + $0x35c] ss:$28 sps:$4 sm:$0xff]  }
 0x70c   :  { %15205 = vmatprep.subr.bf16.mxu0 %v20975_v27  ;;  %v21033_v51 = vld [vmem:[%s27952_s3 + $0x10e0] ss:$28 sps:$4 sm:$0xff]  }
 0x70d   :  { %15290 = vmatpush1.bf16.msra.mxu1 %v20970_v44  ;;  %v21041_v27 = vld [vmem:[%s27952_s3 + $0x111c] ss:$28 sps:$4 sm:$0xff]  }
 0x70e   :  { %15291 = vmatprep.subr.bf16.mxu1 %v20978_v46  ;;  %v21036_v44 = vld [vmem:[%s27952_s3 + $0x358] ss:$28 sps:$4 sm:$0xff]  }
 0x70f   :  { %15206 = vmatpush1.bf16.msra.mxu0 %v20973_v47  ;;  %v21044_v46 = vld [vmem:[%s27952_s3 + $0x394] ss:$28 sps:$4 sm:$0xff]  }
 0x710   :  { %15207 = vmatprep.subr.bf16.mxu0 %v20981_v34  ;;  %v21039_v47 = vld [vmem:[%s27952_s3 + $0x1118] ss:$28 sps:$4 sm:$0xff]  }
 0x711   :  { %15292 = vmatpush1.bf16.msra.mxu1 %v20976_v50  ;;  %v21047_v34 = vld [vmem:[%s27952_s3 + $0x1154] ss:$28 sps:$4 sm:$0xff]  }
 0x712   :  { %15293 = vmatprep.subr.bf16.mxu1 %v20984_v54  ;;  %v21042_v50 = vld [vmem:[%s27952_s3 + $0x390] ss:$28 sps:$4 sm:$0xff]  }
 0x713   :  { %15208 = vmatpush1.bf16.msra.mxu0 %v20979_v13  ;;  %v21050_v54 = vld [vmem:[%s27952_s3 + $0x3cc] ss:$28 sps:$4 sm:$0xff]  }
 0x714   :  { %15209 = vmatprep.subr.bf16.mxu0 %v20987_v56  ;;  %v21045_v13 = vld [vmem:[%s27952_s3 + $0x1150] ss:$28 sps:$4 sm:$0xff]  }
 0x715   :  { %15294 = vmatpush1.bf16.msra.mxu1 %v20982_v52  ;;  %v21053_v56 = vld [vmem:[%s27952_s3 + $0x118c] ss:$28 sps:$4 sm:$0xff]  }
 0x716   :  { %15295 = vmatprep.subr.bf16.mxu1 %v20990_v57  ;;  %v21048_v52 = vld [vmem:[%s27952_s3 + $0x3c8] ss:$28 sps:$4 sm:$0xff]  }
 0x717   :  { %15210 = vmatpush1.bf16.msra.mxu0 %v20985_v58  ;;  %v21056_v57 = vld [vmem:[%s27952_s3 + $0x404] ss:$28 sps:$4 sm:$0xff]  }
 0x718   :  { %15211 = vmatprep.subr.bf16.mxu0 %v20993_v59  ;;  %v21051_v58 = vld [vmem:[%s27952_s3 + $0x1188] ss:$28 sps:$4 sm:$0xff]  }
 0x719   :  { %15296 = vmatpush1.bf16.msra.mxu1 %v20988_v40  ;;  %v21059_v59 = vld [vmem:[%s27952_s3 + $0x11c4] ss:$28 sps:$4 sm:$0xff]  }
 0x71a   :  { %15297 = vmatprep.subr.bf16.mxu1 %v20996_v15  ;;  %v21054_v40 = vld [vmem:[%s27952_s3 + $0x400] ss:$28 sps:$4 sm:$0xff]  }
 0x71b   :  { %15212 = vmatpush1.bf16.msra.mxu0 %v20991_v61  ;;  %v21062_v15 = vld [vmem:[%s27952_s3 + $0x43c] ss:$28 sps:$4 sm:$0xff]  }
 0x71c   :  { %15213 = vmatprep.subr.bf16.mxu0 %v20999_v0  ;;  %v21057_v61 = vld [vmem:[%s27952_s3 + $0x11c0] ss:$28 sps:$4 sm:$0xff]  }
 0x71d   :  { %15298 = vmatpush1.bf16.msra.mxu1 %v20994_v10  ;;  %v21065_v0 = vld [vmem:[%s27952_s3 + $0x11fc] ss:$28 sps:$4 sm:$0xff]  }
 0x71e   :  { %15299 = vmatprep.subr.bf16.mxu1 %v21002_v4  ;;  %v21060_v10 = vld [vmem:[%s27952_s3 + $0x438] ss:$28 sps:$4 sm:$0xff]  }
 0x71f   :  { %15214 = vmatpush1.bf16.msra.mxu0 %v20997_v38  ;;  %v21068_v4 = vld [vmem:[%s27952_s3 + $0x474] ss:$28 sps:$4 sm:$0xff]  }
 0x720   :  { %15215 = vmatprep.subr.bf16.mxu0 %v21005_v6  ;;  %v21063_v38 = vld [vmem:[%s27952_s3 + $0x11f8] ss:$28 sps:$4 sm:$0xff]  }
 0x721   :  { %15300 = vmatpush1.bf16.msra.mxu1 %v21000_v14  ;;  %v21071_v6 = vld [vmem:[%s27952_s3 + $0x1234] ss:$28 sps:$4 sm:$0xff]  }
 0x722   :  { %15301 = vmatprep.subr.bf16.mxu1 %v21008_v8  ;;  %v21066_v14 = vld [vmem:[%s27952_s3 + $0x470] ss:$28 sps:$4 sm:$0xff]  }
 0x723   :  { %15216 = vmatpush1.bf16.msra.mxu0 %v21003_v11  ;;  %v21074_v8 = vld [vmem:[%s27952_s3 + $0x4ac] ss:$28 sps:$4 sm:$0xff]  }
 0x724   :  { %15217 = vmatprep.subr.bf16.mxu0 %v21011_v9  ;;  %v21069_v11 = vld [vmem:[%s27952_s3 + $0x1230] ss:$28 sps:$4 sm:$0xff]  }
 0x725   :  { %15302 = vmatpush1.bf16.msra.mxu1 %v21006_v20  ;;  %v21077_v9 = vld [vmem:[%s27952_s3 + $0x126c] ss:$28 sps:$4 sm:$0xff]  }
 0x726   :  { %15303 = vmatprep.subr.bf16.mxu1 %v21014_v17  ;;  %v21072_v20 = vld [vmem:[%s27952_s3 + $0x4a8] ss:$28 sps:$4 sm:$0xff]  }
 0x727   :  { %15218 = vmatpush1.bf16.msra.mxu0 %v21009_v16  ;;  %v21080_v17 = vld [vmem:[%s27952_s3 + $0x4e4] ss:$28 sps:$4 sm:$0xff]  }
 0x728   :  { %15219 = vmatprep.subr.bf16.mxu0 %v21017_v18  ;;  %v21075_v16 = vld [vmem:[%s27952_s3 + $0x1268] ss:$28 sps:$4 sm:$0xff]  }
 0x729   :  { %15304 = vmatpush1.bf16.msra.mxu1 %v21012_v24  ;;  %v21083_v18 = vld [vmem:[%s27952_s3 + $0x12a4] ss:$28 sps:$4 sm:$0xff]  }
 0x72a   :  { %15305 = vmatprep.subr.bf16.mxu1 %v21020_v25  ;;  %v21078_v24 = vld [vmem:[%s27952_s3 + $0x4e0] ss:$28 sps:$4 sm:$0xff]  }
 0x72b   :  { %15220 = vmatpush1.bf16.msra.mxu0 %v21015_v12  ;;  %v21086_v25 = vld [vmem:[%s27952_s3 + $0x51c] ss:$28 sps:$4 sm:$0xff]  }
 0x72c   :  { %15221 = vmatprep.subr.bf16.mxu0 %v21023_v26  ;;  %v21081_v12 = vld [vmem:[%s27952_s3 + $0x12a0] ss:$28 sps:$4 sm:$0xff]  }
 0x72d   :  { %15306 = vmatpush1.bf16.msra.mxu1 %v21018_v30  ;;  %v21089_v26 = vld [vmem:[%s27952_s3 + $0x12dc] ss:$28 sps:$4 sm:$0xff]  }
 0x72e   :  { %15307 = vmatprep.subr.bf16.mxu1 %v21026_v28  ;;  %v21084_v30 = vld [vmem:[%s27952_s3 + $0x518] ss:$28 sps:$4 sm:$0xff]  }
 0x72f   :  { %15222 = vmatpush1.bf16.msra.mxu0 %v21021_v63  ;;  %v21092_v28 = vld [vmem:[%s27952_s3 + $0x554] ss:$28 sps:$4 sm:$0xff]  }
 0x730   :  { %15223 = vmatprep.subr.bf16.mxu0 %v21029_v62  ;;  %v21087_v63 = vld [vmem:[%s27952_s3 + $0x12d8] ss:$28 sps:$4 sm:$0xff]  }
 0x731   :  { %15308 = vmatpush1.bf16.msra.mxu1 %v21024_v45  ;;  %v21095_v62 = vld [vmem:[%s27952_s3 + $0x1314] ss:$28 sps:$4 sm:$0xff]  }
 0x732   :  { %15309 = vmatprep.subr.bf16.mxu1 %v21032_v29  ;;  %v21090_v45 = vld [vmem:[%s27952_s3 + $0x550] ss:$28 sps:$4 sm:$0xff]  }
 0x733   :  { %15224 = vmatpush1.bf16.msra.mxu0 %v21027_v2  ;;  %v21098_v29 = vld [vmem:[%s27952_s3 + $0x58c] ss:$28 sps:$4 sm:$0xff]  }
 0x734   :  { %15225 = vmatprep.subr.bf16.mxu0 %v21035_v31  ;;  %v21093_v2 = vld [vmem:[%s27952_s3 + $0x1310] ss:$28 sps:$4 sm:$0xff]   ;;  %v21099_v31 = vld [vmem:[%s27952_s3 + $0x1d8] ss:$28 sps:$4 sm:$0xff]  }
 0x735   :  { %15310 = vmatpush1.bf16.msra.mxu1 %v21030_v35  ;;  %v21096_v35 = vld [vmem:[%s27952_s3 + $0x588] ss:$28 sps:$4 sm:$0xff]  }
 0x736   :  { %15311 = vmatprep.subr.bf16.mxu1 %v21038_v36  ;;  %v21102_v36 = vld [vmem:[%s27952_s3 + $0x5c4] ss:$28 sps:$4 sm:$0xff]  }
 0x737   :  { %15226 = vmatpush1.bf16.msra.mxu0 %v21033_v51  ;;  %v21103_v51 = vld [vmem:[%s27952_s3 + $0x18] ss:$28 sps:$4 sm:$0xff]  }
 0x738   :  { %15227 = vmatprep.subr.bf16.mxu0 %v21041_v27  ;;  %v21104_v27 = vld [vmem:[%s27952_s3 + $0x210] ss:$28 sps:$4 sm:$0xff]  }
 0x739   :  { %15312 = vmatpush1.bf16.msra.mxu1 %v21036_v44  ;;  %v21100_v44 = vld [vmem:[%s27952_s3 + $0x5c0] ss:$28 sps:$4 sm:$0xff]  }
 0x73a   :  { %15322 = vmatprep.subr.bf16.mxu1 %v21044_v46  ;;  %v21107_v46 = vld [vmem:[%s27952_s3 + $0x5fc] ss:$28 sps:$4 sm:$0xff]  }
 0x73b   :  { %15228 = vmatpush1.bf16.msra.mxu0 %v21039_v47  ;;  %v21108_v47 = vld [vmem:[%s27952_s3 + $0x50] ss:$28 sps:$4 sm:$0xff]  }
 0x73c   :  { %15314 = vmatmul.mubr.bf16.vlgmr.msra.gmra.mrb[44].mxu1 %v25725_v19  ;;  %15229 = vmatprep.subr.bf16.mxu0 %v21047_v34  ;;  %v21109_v34 = vld [vmem:[%s27952_s3 + $0x248] ss:$28 sps:$4 sm:$0xff]  }
 0x73d   :  { %15323 = vmatpush1.bf16.msra.mxu1 %v21042_v50  ;;  %15354 = vmatprep.mubr.bf16.mxu1 %v25733_v39  ;;  %v21105_v50 = vld [vmem:[%s27952_s3 + $0x5f8] ss:$28 sps:$4 sm:$0xff]  }
 0x73e   :  { %15324 = vmatprep.subr.bf16.mxu1 %v21050_v54  ;;  %v21112_v54 = vld [vmem:[%s27952_s3 + $0x634] ss:$28 sps:$4 sm:$0xff]  }
 0x73f   :  { %15230 = vmatpush1.bf16.msra.mxu0 %v21045_v13  ;;  %v21114_v13 = vld [vmem:[%s27952_s3 + $0x280] ss:$28 sps:$4 sm:$0xff]  }
 0x740   :  { %15240 = vmatprep.subr.bf16.mxu0 %v21053_v56  ;;  %v21110_v56 = vld [vmem:[%s27952_s3 + $0x630] ss:$28 sps:$4 sm:$0xff]  }
 0x741   :  { %15325 = vmatpush1.bf16.msra.mxu1 %v21048_v52  ;;  %v21117_v52 = vld [vmem:[%s27952_s3 + $0x66c] ss:$28 sps:$4 sm:$0xff]  }
 0x742   :  { %15232 = vmatmul.mubr.bf16.vlgmr.msra.gmra.mrb[12].mxu0 %v26806_v23  ;;  %15326 = vmatprep.subr.bf16.mxu1 %v21056_v57  ;;  %v21118_v57 = vld [vmem:[%s27952_s3 + $0xc0] ss:$28 sps:$4 sm:$0xff]  }
 0x743   :  { %15241 = vmatpush1.bf16.msra.mxu0 %v21051_v58  ;;  %15272 = vmatprep.mubr.bf16.mxu0 %v21402_v49  ;;  %v21119_v58 = vld [vmem:[%s27952_s3 + $0x2b8] ss:$28 sps:$4 sm:$0xff]  }
 0x744   :  { %15242 = vmatprep.subr.bf16.mxu0 %v21059_v59  ;;  %v21115_v59 = vld [vmem:[%s27952_s3 + $0x668] ss:$28 sps:$4 sm:$0xff]  }
 0x745   :  { %15327 = vmatpush1.bf16.msra.mxu1 %v21054_v40  ;;  %v21122_v40 = vld [vmem:[%s27952_s3 + $0x6a4] ss:$28 sps:$4 sm:$0xff]  }
 0x746   :  { %15328 = vmatprep.subr.bf16.mxu1 %v21062_v15  ;;  %v21123_v15 = vld [vmem:[%s27952_s3 + $0xf8] ss:$28 sps:$4 sm:$0xff]  }
 0x747   :  { %15243 = vmatpush1.bf16.msra.mxu0 %v21057_v61  ;;  %v21124_v61 = vld [vmem:[%s27952_s3 + $0x2f0] ss:$28 sps:$4 sm:$0xff]  }
 0x748   :  { %15244 = vmatprep.subr.bf16.mxu0 %v21065_v0  ;;  %v21120_v0 = vld [vmem:[%s27952_s3 + $0x6a0] ss:$28 sps:$4 sm:$0xff]  }
 0x749   :  { %15329 = vmatpush1.bf16.msra.mxu1 %v21060_v10  ;;  %v21127_v10 = vld [vmem:[%s27952_s3 + $0x6dc] ss:$28 sps:$4 sm:$0xff]  }
 0x74a   :  { %15330 = vmatprep.subr.bf16.mxu1 %v21068_v4  ;;  %v21128_v4 = vld [vmem:[%s27952_s3 + $0x130] ss:$28 sps:$4 sm:$0xff]  }
 0x74b   :  { %15245 = vmatpush1.bf16.msra.mxu0 %v21063_v38  ;;  %v21129_v38 = vld [vmem:[%s27952_s3 + $0x328] ss:$28 sps:$4 sm:$0xff]  }
 0x74c   :  { %15246 = vmatprep.subr.bf16.mxu0 %v21071_v6  ;;  %v21125_v6 = vld [vmem:[%s27952_s3 + $0x6d8] ss:$28 sps:$4 sm:$0xff]  }
 0x74d   :  { %15331 = vmatpush1.bf16.msra.mxu1 %v21066_v14  ;;  %v21132_v14 = vld [vmem:[%s27952_s3 + $0x714] ss:$28 sps:$4 sm:$0xff]  }
 0x74e   :  { %15332 = vmatprep.subr.bf16.mxu1 %v21074_v8  ;;  %v21133_v8 = vld [vmem:[%s27952_s3 + $0x168] ss:$28 sps:$4 sm:$0xff]  }
 0x74f   :  { %15247 = vmatpush1.bf16.msra.mxu0 %v21069_v11  ;;  %v21134_v11 = vld [vmem:[%s27952_s3 + $0x360] ss:$28 sps:$4 sm:$0xff]  }
 0x750   :  { %15248 = vmatprep.subr.bf16.mxu0 %v21077_v9  ;;  %v21130_v9 = vld [vmem:[%s27952_s3 + $0x710] ss:$28 sps:$4 sm:$0xff]  }
 0x751   :  { %15333 = vmatpush1.bf16.msra.mxu1 %v21072_v20  ;;  %v21137_v20 = vld [vmem:[%s27952_s3 + $0x74c] ss:$28 sps:$4 sm:$0xff]  }
 0x752   :  { %15334 = vmatprep.subr.bf16.mxu1 %v21080_v17  ;;  %v21138_v17 = vld [vmem:[%s27952_s3 + $0x1a0] ss:$28 sps:$4 sm:$0xff]  }
 0x753   :  { %15249 = vmatpush1.bf16.msra.mxu0 %v21075_v16  ;;  %v21139_v16 = vld [vmem:[%s27952_s3 + $0x558] ss:$28 sps:$4 sm:$0xff]  }
 0x754   :  { %15250 = vmatprep.subr.bf16.mxu0 %v21083_v18  ;;  %v21135_v18 = vld [vmem:[%s27952_s3 + $0x748] ss:$28 sps:$4 sm:$0xff]  }
 0x755   :  { %15335 = vmatpush1.bf16.msra.mxu1 %v21078_v24  ;;  %v21142_v24 = vld [vmem:[%s27952_s3 + $0x784] ss:$28 sps:$4 sm:$0xff]  }
 0x756   :  { %15336 = vmatprep.subr.bf16.mxu1 %v21086_v25  ;;  %v21143_v25 = vld [vmem:[%s27952_s3 + $0x398] ss:$28 sps:$4 sm:$0xff]  }
 0x757   :  { %15251 = vmatpush1.bf16.msra.mxu0 %v21081_v12  ;;  %v21144_v12 = vld [vmem:[%s27952_s3 + $0x590] ss:$28 sps:$4 sm:$0xff]  }
 0x758   :  { %15252 = vmatprep.subr.bf16.mxu0 %v21089_v26  ;;  %v21140_v26 = vld [vmem:[%s27952_s3 + $0x780] ss:$28 sps:$4 sm:$0xff]  }
 0x759   :  { %15337 = vmatpush1.bf16.msra.mxu1 %v21084_v30  ;;  %v21147_v30 = vld [vmem:[%s27952_s3 + $0x7bc] ss:$28 sps:$4 sm:$0xff]  }
 0x75a   :  { %15338 = vmatprep.subr.bf16.mxu1 %v21092_v28  ;;  %v21148_v28 = vld [vmem:[%s27952_s3 + $0x3d0] ss:$28 sps:$4 sm:$0xff]  }
 0x75b   :  { %15253 = vmatpush1.bf16.msra.mxu0 %v21087_v63  ;;  %v21149_v63 = vld [vmem:[%s27952_s3 + $0x5c8] ss:$28 sps:$4 sm:$0xff]  }
 0x75c   :  { %15254 = vmatprep.subr.bf16.mxu0 %v21095_v62  ;;  %v21152_v62 = vld [vmem:[%s27952_s3 + $0x7f4] ss:$28 sps:$4 sm:$0xff]  }
 0x75d   :  { %15339 = vmatpush1.bf16.msra.mxu1 %v21090_v45  ;;  %v21154_v45 = vld [vmem:[%s27952_s3 + $0x600] ss:$28 sps:$4 sm:$0xff]  }
 0x75e   :  { %15340 = vmatprep.subr.bf16.mxu1 %v21098_v29  ;;  %v21150_v29 = vld [vmem:[%s27952_s3 + $0x7f0] ss:$28 sps:$4 sm:$0xff]  }
 0x75f   :  { %15255 = vmatpush1.bf16.msra.mxu0 %v21093_v2  ;;  %v21157_v2 = vld [vmem:[%s27952_s3 + $0x82c] ss:$28 sps:$4 sm:$0xff]  }
 0x760   :  { %18083 = vmatprep.subr.bf16.mxu0 %v21099_v31  ;;  %v21158_v31 = vld [vmem:[%s27952_s3 + $0x440] ss:$28 sps:$4 sm:$0xff]  }
 0x761   :  { %15341 = vmatpush1.bf16.msra.mxu1 %v21096_v35  ;;  %v21159_v35 = vld [vmem:[%s27952_s3 + $0x638] ss:$28 sps:$4 sm:$0xff]  }
 0x762   :  { %15273 = vmatmul.mubr.bf16.vlgmr.msra.gmra.mrb[12].mxu0 %v26909_v37  ;;  %15342 = vmatprep.subr.bf16.mxu1 %v21102_v36  ;;  %v21155_v36 = vld [vmem:[%s27952_s3 + $0x828] ss:$28 sps:$4 sm:$0xff]  }
 0x763   :  { %18084 = vmatpush3.bf16.msra.mxu0 %v21103_v51  ;;  %15559 = vmatprep.mubr.bf16.mxu0 %v25510_v22  ;;  %v21113_v22 = vld [vmem:[%s27952_s3 + $0x88] ss:$28 sps:$4 sm:$0xff]  }
 0x764   :  { %18085 = vmatprep.subr.bf16.mxu0 %v21104_v27  ;;  %v21162_v51 = vld [vmem:[%s27952_s3 + $0x864] ss:$28 sps:$4 sm:$0xff]   ;;  %v21163_v27 = vld [vmem:[%s27952_s3 + $0x478] ss:$28 sps:$4 sm:$0xff]  }
 0x765   :  { %15343 = vmatpush1.bf16.msra.mxu1 %v21100_v44  ;;  %v21164_v44 = vld [vmem:[%s27952_s3 + $0x670] ss:$28 sps:$4 sm:$0xff]  }
 0x766   :  { %15344 = vmatprep.subr.bf16.mxu1 %v21107_v46  ;;  %v21160_v46 = vld [vmem:[%s27952_s3 + $0x860] ss:$28 sps:$4 sm:$0xff]  }
 0x767   :  { %18086 = vmatpush3.bf16.msra.mxu0 %v21108_v47  ;;  %v21167_v47 = vld [vmem:[%s27952_s3 + $0x89c] ss:$28 sps:$4 sm:$0xff]  }
 0x768   :  { %18087 = vmatprep.subr.bf16.mxu0 %v21109_v34  ;;  %v21168_v34 = vld [vmem:[%s27952_s3 + $0x4b0] ss:$28 sps:$4 sm:$0xff]  }
 0x769   :  { %15345 = vmatpush1.bf16.msra.mxu1 %v21105_v50  ;;  %v21169_v50 = vld [vmem:[%s27952_s3 + $0x6a8] ss:$28 sps:$4 sm:$0xff]  }
 0x76a   :  { %15346 = vmatprep.subr.bf16.mxu1 %v21112_v54  ;;  %v21165_v54 = vld [vmem:[%s27952_s3 + $0x898] ss:$28 sps:$4 sm:$0xff]  }
 0x76b   :  { %18088 = vmatpush3.bf16.msra.mxu0 %v21113_v22  ;;  %v21172_v22 = vld [vmem:[%s27952_s3 + $0x8d4] ss:$28 sps:$4 sm:$0xff]  }
 0x76c   :  { %18089 = vmatprep.subr.bf16.mxu0 %v21114_v13  ;;  %v21173_v13 = vld [vmem:[%s27952_s3 + $0x4e8] ss:$28 sps:$4 sm:$0xff]  }
 0x76d   :  { %15347 = vmatpush1.bf16.msra.mxu1 %v21110_v56  ;;  %v21174_v56 = vld [vmem:[%s27952_s3 + $0x6e0] ss:$28 sps:$4 sm:$0xff]  }
 0x76e   :  { %15348 = vmatprep.subr.bf16.mxu1 %v21117_v52  ;;  %v21170_v52 = vld [vmem:[%s27952_s3 + $0x8d0] ss:$28 sps:$4 sm:$0xff]  }
 0x76f   :  { %18090 = vmatpush3.bf16.msra.mxu0 %v21118_v57  ;;  %v21177_v57 = vld [vmem:[%s27952_s3 + $0x90c] ss:$28 sps:$4 sm:$0xff]  }
 0x770   :  { %18091 = vmatprep.subr.bf16.mxu0 %v21119_v58  ;;  %v21178_v58 = vld [vmem:[%s27952_s3 + $0x520] ss:$28 sps:$4 sm:$0xff]  }
 0x771   :  { %15349 = vmatpush1.bf16.msra.mxu1 %v21115_v59  ;;  %v21179_v59 = vld [vmem:[%s27952_s3 + $0x8d8] ss:$28 sps:$4 sm:$0xff]  }
 0x772   :  { %15350 = vmatprep.subr.bf16.mxu1 %v21122_v40  ;;  %v21175_v40 = vld [vmem:[%s27952_s3 + $0x908] ss:$28 sps:$4 sm:$0xff]  }
 0x773   :  { %18092 = vmatpush3.bf16.msra.mxu0 %v21123_v15  ;;  %v21182_v15 = vld [vmem:[%s27952_s3 + $0x944] ss:$28 sps:$4 sm:$0xff]  }
 0x774   :  { %18093 = vmatprep.subr.bf16.mxu0 %v21124_v61  ;;  %v21183_v61 = vld [vmem:[%s27952_s3 + $0x718] ss:$28 sps:$4 sm:$0xff]  }
 0x775   :  { %15351 = vmatpush1.bf16.msra.mxu1 %v21120_v0  ;;  %v21184_v0 = vld [vmem:[%s27952_s3 + $0x910] ss:$28 sps:$4 sm:$0xff]  }
 0x776   :  { %15352 = vmatprep.subr.bf16.mxu1 %v21127_v10  ;;  %v21180_v10 = vld [vmem:[%s27952_s3 + $0x940] ss:$28 sps:$4 sm:$0xff]  }
 0x777   :  { %18094 = vmatpush3.bf16.msra.mxu0 %v21128_v4  ;;  %v21187_v4 = vld [vmem:[%s27952_s3 + $0x97c] ss:$28 sps:$4 sm:$0xff]  }
 0x778   :  { %18095 = vmatprep.subr.bf16.mxu0 %v21129_v38  ;;  %v21188_v38 = vld [vmem:[%s27952_s3 + $0x750] ss:$28 sps:$4 sm:$0xff]  }
 0x779   :  { %15353 = vmatpush1.bf16.msra.mxu1 %v21125_v6  ;;  %v21189_v6 = vld [vmem:[%s27952_s3 + $0x948] ss:$28 sps:$4 sm:$0xff]  }
 0x77a   :  { %15363 = vmatprep.subr.bf16.mxu1 %v21132_v14  ;;  %v21192_v14 = vld [vmem:[%s27952_s3 + $0x9b4] ss:$28 sps:$4 sm:$0xff]  }
 0x77b   :  { %18096 = vmatpush3.bf16.msra.mxu0 %v21133_v8  ;;  %v21194_v8 = vld [vmem:[%s27952_s3 + $0x980] ss:$28 sps:$4 sm:$0xff]  }
 0x77c   :  { %15355 = vmatmul.mubr.bf16.vlgmr.msra.gmra.mrb[44].mxu1 %v25939_v5  ;;  %18097 = vmatprep.subr.bf16.mxu0 %v21134_v11  ;;  %v21190_v11 = vld [vmem:[%s27952_s3 + $0x9b0] ss:$28 sps:$4 sm:$0xff]  }
 0x77d   :  { %15364 = vmatpush1.bf16.msra.mxu1 %v21130_v9  ;;  %15395 = vmatprep.mubr.bf16.mxu1 %v25947_v7  ;;  %v21197_v9 = vld [vmem:[%s27952_s3 + $0x9ec] ss:$28 sps:$4 sm:$0xff]  }
 0x77e   :  { %15365 = vmatprep.subr.bf16.mxu1 %v21137_v20  ;;  %v21198_v20 = vld [vmem:[%s27952_s3 + $0x7c0] ss:$28 sps:$4 sm:$0xff]  }
 0x77f   :  { %18098 = vmatpush3.bf16.msra.mxu0 %v21138_v17  ;;  %v21199_v17 = vld [vmem:[%s27952_s3 + $0x9b8] ss:$28 sps:$4 sm:$0xff]  }
 0x780   :  { %18105 = vmatprep.subr.bf16.mxu0 %v21139_v16  ;;  %v21195_v16 = vld [vmem:[%s27952_s3 + $0x9e8] ss:$28 sps:$4 sm:$0xff]  }
 0x781   :  { %15366 = vmatpush1.bf16.msra.mxu1 %v21135_v18  ;;  %v21202_v18 = vld [vmem:[%s27952_s3 + $0xa24] ss:$28 sps:$4 sm:$0xff]  }
 0x782   :  { %15560 = vmatmul.mubr.bf16.vlgmr.msra.gmra.mrb[16].mxu0 %v25725_v19  ;;  %15367 = vmatprep.subr.bf16.mxu1 %v21142_v24  ;;  %v21145_v19 = vld [vmem:[%s27952_s3 + $0x7b8] ss:$28 sps:$4 sm:$0xff]  }
 0x783   :  { %18106 = vmatpush3.bf16.msra.mxu0 %v21143_v25  ;;  %15599 = vmatprep.mubr.bf16.mxu0 %v25733_v39  ;;  %v21153_v39 = vld [vmem:[%s27952_s3 + $0x408] ss:$28 sps:$4 sm:$0xff]   ;;  %v21203_v24 = vld [vmem:[%s27952_s3 + $0x7f8] ss:$28 sps:$4 sm:$0xff]   ;;  %v21204_v25 = vld [vmem:[%s27952_s3 + $0x9f0] ss:$28 sps:$4 sm:$0xff]  }
 0x784   :  { %18107 = vmatprep.subr.bf16.mxu0 %v21144_v12  ;;  %v21200_v12 = vld [vmem:[%s27952_s3 + $0xa20] ss:$28 sps:$4 sm:$0xff]  }
 0x785   :  { %15368 = vmatpush1.bf16.msra.mxu1 %v21140_v26  ;;  %v21207_v26 = vld [vmem:[%s27952_s3 + $0xa5c] ss:$28 sps:$4 sm:$0xff]  }
 0x786   :  { %15369 = vmatprep.subr.bf16.mxu1 %v21147_v30  ;;  %v21208_v30 = vld [vmem:[%s27952_s3 + $0x830] ss:$28 sps:$4 sm:$0xff]  }
 0x787   :  { %18108 = vmatpush3.bf16.msra.mxu0 %v21148_v28  ;;  %v21209_v28 = vld [vmem:[%s27952_s3 + $0xa28] ss:$28 sps:$4 sm:$0xff]  }
 0x788   :  { %18109 = vmatprep.subr.bf16.mxu0 %v21149_v63  ;;  %v21205_v63 = vld [vmem:[%s27952_s3 + $0xa58] ss:$28 sps:$4 sm:$0xff]  }
 0x789   :  { %15370 = vmatpush1.bf16.msra.mxu1 %v21145_v19  ;;  %v21212_v19 = vld [vmem:[%s27952_s3 + $0xa94] ss:$28 sps:$4 sm:$0xff]  }
 0x78a   :  { %15371 = vmatprep.subr.bf16.mxu1 %v21152_v62  ;;  %v21213_v62 = vld [vmem:[%s27952_s3 + $0x868] ss:$28 sps:$4 sm:$0xff]  }
 0x78b   :  { %18110 = vmatpush3.bf16.msra.mxu0 %v21153_v39  ;;  %v21214_v39 = vld [vmem:[%s27952_s3 + $0xa60] ss:$28 sps:$4 sm:$0xff]  }
 0x78c   :  { %18111 = vmatprep.subr.bf16.mxu0 %v21154_v45  ;;  %v21210_v45 = vld [vmem:[%s27952_s3 + $0xa90] ss:$28 sps:$4 sm:$0xff]  }
 0x78d   :  { %15372 = vmatpush1.bf16.msra.mxu1 %v21150_v29  ;;  %v21217_v29 = vld [vmem:[%s27952_s3 + $0xacc] ss:$28 sps:$4 sm:$0xff]  }
 0x78e   :  { %15373 = vmatprep.subr.bf16.mxu1 %v21157_v2  ;;  %v21218_v2 = vld [vmem:[%s27952_s3 + $0x8a0] ss:$28 sps:$4 sm:$0xff]  }
 0x78f   :  { %18112 = vmatpush3.bf16.msra.mxu0 %v21158_v31  ;;  %v21219_v31 = vld [vmem:[%s27952_s3 + $0xc58] ss:$28 sps:$4 sm:$0xff]  }
 0x790   :  { %18113 = vmatprep.subr.bf16.mxu0 %v21159_v35  ;;  %v21215_v35 = vld [vmem:[%s27952_s3 + $0xac8] ss:$28 sps:$4 sm:$0xff]  }
 0x791   :  { %15374 = vmatpush1.bf16.msra.mxu1 %v21155_v36  ;;  %v21222_v36 = vld [vmem:[%s27952_s3 + $0xb04] ss:$28 sps:$4 sm:$0xff]  }
 0x792   :  { %15375 = vmatprep.subr.bf16.mxu1 %v21162_v51  ;;  %v21223_v51 = vld [vmem:[%s27952_s3 + $0xa98] ss:$28 sps:$4 sm:$0xff]  }
 0x793   :  { %18114 = vmatpush3.bf16.msra.mxu0 %v21163_v27  ;;  %v21224_v27 = vld [vmem:[%s27952_s3 + $0xc90] ss:$28 sps:$4 sm:$0xff]  }
 0x794   :  { %18115 = vmatprep.subr.bf16.mxu0 %v21164_v44  ;;  %v21220_v44 = vld [vmem:[%s27952_s3 + $0xb00] ss:$28 sps:$4 sm:$0xff]  }
 0x795   :  { %15376 = vmatpush1.bf16.msra.mxu1 %v21160_v46  ;;  %v21227_v46 = vld [vmem:[%s27952_s3 + $0xb3c] ss:$28 sps:$4 sm:$0xff]  }
 0x796   :  { %15377 = vmatprep.subr.bf16.mxu1 %v21167_v47  ;;  %v21228_v47 = vld [vmem:[%s27952_s3 + $0xad0] ss:$28 sps:$4 sm:$0xff]  }
 0x797   :  { %18116 = vmatpush3.bf16.msra.mxu0 %v21168_v34  ;;  %v27540_v34 = vld [vmem:[%s27954_s5] sm:$0x7f] }
 0x798   :  { %18117 = vmatprep.subr.bf16.mxu0 %v21169_v50  ;;  %v21225_v50 = vld [vmem:[%s27952_s3 + $0xb38] ss:$28 sps:$4 sm:$0xff]  }
 0x799   :  { %15378 = vmatpush1.bf16.msra.mxu1 %v21165_v54  ;;  %v27552_v54 = vunpack.c.l.bf16 %v27540_v34 }
 0x79a   :  { %15379 = vmatprep.subr.bf16.mxu1 %v21172_v22  ;;  %v21233_v22 = vld [vmem:[%s27952_s3 + $0xb08] ss:$28 sps:$4 sm:$0xff]  }
 0x79b   :  { %18118 = vmatpush3.bf16.msra.mxu0 %v21173_v13  ;;  %v21234_v13 = vld [vmem:[%s27952_s3 + $0xd00] ss:$28 sps:$4 sm:$0xff]  }
 0x79c   :  { %18119 = vmatprep.subr.bf16.mxu0 %v21174_v56  ;;  %v21230_v56 = vld [vmem:[%s27952_s3 + $0xb70] ss:$28 sps:$4 sm:$0xff]  }
 0x79d   :  { %15380 = vmatpush1.bf16.msra.mxu1 %v21170_v52  ;;  %v27566_v52 = vld [vmem:[%s27953_s4] sm:$0xff] }
 0x79e   :  { %15381 = vmatprep.subr.bf16.mxu1 %v21177_v57  ;;  %v15775_v57 = vrot.slane %v27552_v54, %v25676_v53 }
 0x79f   :  { %18120 = vmatpush3.bf16.msra.mxu0 %v21178_v58  ;;  %v21237_v58 = vld [vmem:[%s27952_s3 + $0xbac] ss:$28 sps:$4 sm:$0xff]  }
 0x7a0   :  { %18127 = vmatprep.subr.bf16.mxu0 %v21179_v59  ;;  %v15779_v59 = vrot.slane %v27552_v54, %v25556_v48 }
 0x7a1   :  { %15382 = vmatpush1.bf16.msra.mxu1 %v21175_v40  ;;  %v21238_v40 = vld [vmem:[%s27952_s3 + $0xb40] ss:$28 sps:$4 sm:$0xff]  }
 0x7a2   :  { %15600 = vmatmul.mubr.bf16.vlgmr.msra.gmra.mrb[20].mxu0 %v25939_v5  ;;  %15383 = vmatprep.subr.bf16.mxu1 %v21182_v15  ;;  %v21185_v5 = vld [vmem:[%s27952_s3 + $0x978] ss:$28 sps:$4 sm:$0xff]   ;;  %v11589_v15 = vrot.slane %v27566_v52, %v25676_v53 }
 0x7a3   :  { %18128 = vmatpush3.bf16.msra.mxu0 %v21183_v61  ;;  %15639 = vmatprep.mubr.bf16.mxu0 %v25947_v7  ;;  %v21193_v7 = vld [vmem:[%s27952_s3 + $0x788] ss:$28 sps:$4 sm:$0xff]   ;;  %v21239_v61 = vld [vmem:[%s27952_s3 + $0xd38] ss:$28 sps:$4 sm:$0xff]  }
 0x7a4   :  { %18129 = vmatprep.subr.bf16.mxu0 %v21184_v0  ;;  %v11593_v0 = vrot.slane %v27566_v52, %v25464_v1 }
 0x7a5   :  { %15384 = vmatpush1.bf16.msra.mxu1 %v21180_v10  ;;  %v21235_v10 = vld [vmem:[%s27952_s3 + $0xba8] ss:$28 sps:$4 sm:$0xff]  }
 0x7a6   :  { %15385 = vmatprep.subr.bf16.mxu1 %v21187_v4  ;;  %v15810_v4 = vrot.slane %v15775_v57, %v25676_v53  ;;  %v21277_v57 = vld [vmem:[%s27952_s3 + $0xda4] ss:$28 sps:$4 sm:$0xff]  }
 0x7a7   :  { %18130 = vmatpush3.bf16.msra.mxu0 %v21188_v38  ;;  %v21242_v38 = vld [vmem:[%s27952_s3 + $0xbe4] ss:$28 sps:$4 sm:$0xff]  }
 0x7a8   :  { %18131 = vmatprep.subr.bf16.mxu0 %v21189_v6 }
 0x7a9   :  { %15386 = vmatpush1.bf16.msra.mxu1 %v21185_v5  ;;  %v15814_v5 = vrot.slane %v15779_v59, %v25676_v53  ;;  %v21275_v59 = vld [vmem:[%s27952_s3 + $0xda0] ss:$28 sps:$4 sm:$0xff]  }
 0x7aa   :  { %15387 = vmatprep.subr.bf16.mxu1 %v21192_v14  ;;  %v21243_v14 = vld [vmem:[%s27952_s3 + $0xb78] ss:$28 sps:$4 sm:$0xff]  }
 0x7ab   :  { %18132 = vmatpush3.bf16.msra.mxu0 %v21193_v7 }
 0x7ac   :  { %18133 = vmatprep.subr.bf16.mxu0 %v21194_v8  ;;  %v21244_v8 = vld [vmem:[%s27952_s3 + $0xd70] ss:$28 sps:$4 sm:$0xff]  }
 0x7ad   :  { %15388 = vmatpush1.bf16.msra.mxu1 %v21190_v11 }
 0x7ae   :  { %15389 = vmatprep.subr.bf16.mxu1 %v21197_v9 }
 0x7af   :  { %18134 = vmatpush3.bf16.msra.mxu0 %v21198_v20  ;;  %v21240_v20 = vld [vmem:[%s27952_s3 + $0xbe0] ss:$28 sps:$4 sm:$0xff]  }
 0x7b0   :  { %18135 = vmatprep.subr.bf16.mxu0 %v21199_v17 }
 0x7b1   :  { %15390 = vmatpush1.bf16.msra.mxu1 %v21195_v16 }
 0x7b2   :  { %15391 = vmatprep.subr.bf16.mxu1 %v21202_v18  ;;  %v21247_v18 = vld [vmem:[%s27952_s3 + $0xc1c] ss:$28 sps:$4 sm:$0xff]  }
 0x7b3   :  { %18136 = vmatpush3.bf16.msra.mxu0 %v21203_v24 }
 0x7b4   :  { %18137 = vmatprep.subr.bf16.mxu0 %v21204_v25  ;;  %v21248_v25 = vld [vmem:[%s27952_s3 + $0xbb0] ss:$28 sps:$4 sm:$0xff]  }
 0x7b5   :  { %15392 = vmatpush1.bf16.msra.mxu1 %v21200_v12 }
 0x7b6   :  { %15393 = vmatprep.subr.bf16.mxu1 %v21207_v26  ;;  %v21249_v26 = vld [vmem:[%s27952_s3 + $0xda8] ss:$28 sps:$4 sm:$0xff]  }
 0x7b7   :  { %18138 = vmatpush3.bf16.msra.mxu0 %v21208_v30 }
 0x7b8   :  { %18139 = vmatprep.subr.bf16.mxu0 %v21209_v28  ;;  %v21245_v28 = vld [vmem:[%s27952_s3 + $0xc18] ss:$28 sps:$4 sm:$0xff]  }
 0x7b9   :  { %15394 = vmatpush1.bf16.msra.mxu1 %v21205_v63 }
 0x7ba   :  { %15404 = vmatprep.subr.bf16.mxu1 %v21212_v19  ;;  %v21252_v19 = vld [vmem:[%s27952_s3 + $0xc54] ss:$28 sps:$4 sm:$0xff]  }
 0x7bb   :  { %18140 = vmatpush3.bf16.msra.mxu0 %v21213_v62  ;;  %v21253_v62 = vld [vmem:[%s27952_s3 + $0xbe8] ss:$28 sps:$4 sm:$0xff]  }
 0x7bc   :  { %15396 = vmatmul.mubr.bf16.vlgmr.msra.gmra.mrb[44].mxu1 %v26154_v55  ;;  %18141 = vmatprep.subr.bf16.mxu0 %v21214_v39  ;;  %v21254_v39 = vld [vmem:[%s27952_s3 + $0xde0] ss:$28 sps:$4 sm:$0xff]  }
 0x7bd   :  { %15405 = vmatpush1.bf16.msra.mxu1 %v21210_v45  ;;  %15436 = vmatprep.mubr.bf16.mxu1 %v26162_v33  ;;  %v21250_v45 = vld [vmem:[%s27952_s3 + $0xc50] ss:$28 sps:$4 sm:$0xff]  }
 0x7be   :  { %15406 = vmatprep.subr.bf16.mxu1 %v21217_v29  ;;  %v21257_v29 = vld [vmem:[%s27952_s3 + $0xc8c] ss:$28 sps:$4 sm:$0xff]  }
 0x7bf   :  { %18142 = vmatpush3.bf16.msra.mxu0 %v21218_v2  ;;  %v21258_v2 = vld [vmem:[%s27952_s3 + $0xc20] ss:$28 sps:$4 sm:$0xff]  }
 0x7c0   :  { %18149 = vmatprep.subr.bf16.mxu0 %v21219_v31  ;;  %v21255_v31 = vld [vmem:[%s27952_s3 + $0xc88] ss:$28 sps:$4 sm:$0xff]  }
 0x7c1   :  { %15407 = vmatpush1.bf16.msra.mxu1 %v21215_v35  ;;  %v21261_v35 = vld [vmem:[%s27952_s3 + $0xcc4] ss:$28 sps:$4 sm:$0xff]  }
 0x7c2   :  { %15640 = vmatmul.mubr.bf16.vlgmr.msra.gmra.mrb[24].mxu0 %v26154_v55  ;;  %15408 = vmatprep.subr.bf16.mxu1 %v21222_v36  ;;  %v21229_v55 = vld [vmem:[%s27952_s3 + $0xcc8] ss:$28 sps:$4 sm:$0xff]   ;;  %v21262_v36 = vld [vmem:[%s27952_s3 + $0x1198] ss:$28 sps:$4 sm:$0xff]  }
 0x7c3   :  { %18150 = vmatpush3.bf16.msra.mxu0 %v21223_v51  ;;  %15679 = vmatprep.mubr.bf16.mxu0 %v26162_v33  ;;  %v21232_v33 = vld [vmem:[%s27952_s3 + $0xb74] ss:$28 sps:$4 sm:$0xff]   ;;  %v21403_v51 = vmov 0.0  }
 0x7c4   :  { %18151 = vmatprep.subr.bf16.mxu0 %v21224_v27  ;;  %v21259_v27 = vld [vmem:[%s27952_s3 + $0xcc0] ss:$28 sps:$4 sm:$0xff]  }
 0x7c5   :  { %15409 = vmatpush1.bf16.msra.mxu1 %v21220_v44  ;;  %v21265_v44 = vld [vmem:[%s27952_s3 + $0xcfc] ss:$28 sps:$4 sm:$0xff]  }
 0x7c6   :  { %15410 = vmatprep.subr.bf16.mxu1 %v21227_v46  ;;  %v21266_v46 = vld [vmem:[%s27952_s3 + $0x11d0] ss:$28 sps:$4 sm:$0xff]  }
 0x7c7   :  { %18152 = vmatpush3.bf16.msra.mxu0 %v21228_v47  ;;  %v21263_v47 = vld [vmem:[%s27952_s3 + $0xcf8] ss:$28 sps:$4 sm:$0xff]  }
 0x7c8   :  { %18153 = vmatprep.subr.bf16.mxu0 %v21229_v55  ;;  %v21269_v55 = vld [vmem:[%s27952_s3 + $0xd34] ss:$28 sps:$4 sm:$0xff]  }
 0x7c9   :  { %15411 = vmatpush1.bf16.msra.mxu1 %v21225_v50  ;;  %v21270_v50 = vld [vmem:[%s27952_s3 + $0x1208] ss:$28 sps:$4 sm:$0xff]  }
 0x7ca   :  { %15412 = vmatprep.subr.bf16.mxu1 %v21232_v33  ;;  %v21267_v33 = vld [vmem:[%s27952_s3 + $0xd30] ss:$28 sps:$4 sm:$0xff]  }
 0x7cb   :  { %18154 = vmatpush3.bf16.msra.mxu0 %v21233_v22  ;;  %v21273_v22 = vld [vmem:[%s27952_s3 + $0xd6c] ss:$28 sps:$4 sm:$0xff]  }
 0x7cc   :  { %18155 = vmatprep.subr.bf16.mxu0 %v21234_v13  ;;  %v21274_v13 = vld [vmem:[%s27952_s3 + $0x1240] ss:$28 sps:$4 sm:$0xff]  }
 0x7cd   :  { %15413 = vmatpush1.bf16.msra.mxu1 %v21230_v56  ;;  %v21271_v56 = vld [vmem:[%s27952_s3 + $0xd68] ss:$28 sps:$4 sm:$0xff]  }
 0x7ce   :  { %15414 = vmatprep.subr.bf16.mxu1 %v21237_v58  ;;  %v21278_v58 = vld [vmem:[%s27952_s3 + $0x1278] ss:$28 sps:$4 sm:$0xff]  }
 0x7cf   :  { %v15028_v6 = vpop.f32.mrb[40].mxu1  ;;  %18156 = vmatpush3.bf16.msra.mxu0 %v21238_v40  ;;  %v21281_v40 = vld [vmem:[%s27952_s3 + $0xddc] ss:$28 sps:$4 sm:$0xff]  }
 0x7d0   :  { %v18232_v1 = vadd.f32 %v15028_v6, %v11589_v15  ;;  %v15030_v7 = vpop.f32.mrb[41].mxu1  ;;  %18157 = vmatprep.subr.bf16.mxu0 %v21239_v61  ;;  %v21282_v15 = vld [vmem:[%s27952_s3 + $0x12b0] ss:$28 sps:$4 sm:$0xff]   ;;  %v21279_v61 = vld [vmem:[%s27952_s3 + $0xdd8] ss:$28 sps:$4 sm:$0xff]  }
 0x7d1   :  { %v18233_v11 = vadd.f32 %v15030_v7, %v11593_v0  ;;  %v15032_v9 = vpop.f32.mrb[42].mxu1  ;;  %15415 = vmatpush1.bf16.msra.mxu1 %v21235_v10  ;;  %v21285_v0 = vld [vmem:[%s27952_s3 + $0xe14] ss:$28 sps:$4 sm:$0xff]   ;;  %v21286_v10 = vld [vmem:[%s27952_s3 + $0x12e8] ss:$28 sps:$4 sm:$0xff]  }
 0x7d2   :  { %v15835_v17 = vmul.f32 %v18232_v1, %v15810_v4  ;;  %v15033_v16 = vpop.f32.mrb[43].mxu1  ;;  %15416 = vmatprep.subr.bf16.mxu1 %v21242_v38  ;;  %v21283_v4 = vld [vmem:[%s27952_s3 + $0xe10] ss:$28 sps:$4 sm:$0xff]   ;;  %v21290_v6 = vld [vmem:[%s27952_s3 + $0x1320] ss:$28 sps:$4 sm:$0xff]  }
 0x7d3   :  { %v15836_v24 = vmul.f32 %v18233_v11, %v15814_v5  ;;  %18158 = vmatpush3.bf16.msra.mxu0 %v21243_v14  ;;  %v21289_v38 = vld [vmem:[%s27952_s3 + $0xe4c] ss:$28 sps:$4 sm:$0xff]   ;;  %v21293_v14 = vld [vmem:[%s27952_s3 + $0xe84] ss:$28 sps:$4 sm:$0xff]   ;;  %v21294_v7 = vld [vmem:[%s27952_s3 + $0xeb8] ss:$28 sps:$4 sm:$0xff]  }
 0x7d4   :  { %v15843_v12 = vsel %vm15842_vm0, %v15835_v17, 0.0  ;;  %18159 = vmatprep.subr.bf16.mxu0 %v21244_v8  ;;  %v21287_v5 = vld [vmem:[%s27952_s3 + $0xe48] ss:$28 sps:$4 sm:$0xff]   ;;  %v21291_v1 = vld [vmem:[%s27952_s3 + $0xe80] ss:$28 sps:$4 sm:$0xff]  }
 0x7d5   :  { %v15844_v30 = vsel %vm15842_vm0, %v15836_v24, 0.0  ;;  %15417 = vmatpush1.bf16.msra.mxu1 %v21240_v20  ;;  %v21299_v8 = vld [vmem:[%s27952_s3 + $0xef4] ss:$28 sps:$4 sm:$0xff]   ;;  %v21302_v9 = vld [vmem:[%s27952_s3 + $0xf2c] ss:$28 sps:$4 sm:$0xff]  }
 0x7d6   :  { %v27616_v63 = vadd.f32 %v15844_v30, %v15843_v12  ;;  %15418 = vmatprep.subr.bf16.mxu1 %v21247_v18  ;;  %v21297_v11 = vld [vmem:[%s27952_s3 + $0xef0] ss:$28 sps:$4 sm:$0xff]   ;;  %v21300_v20 = vld [vmem:[%s27952_s3 + $0xf28] ss:$28 sps:$4 sm:$0xff]   ;;  %v21303_v16 = vld [vmem:[%s27952_s3 + $0xf60] ss:$28 sps:$4 sm:$0xff]  }
 0x7d7   :  { %18160 = vmatpush3.bf16.msra.mxu0 %v21248_v25  ;;  %v21305_v17 = vld [vmem:[%s27952_s3 + $0xf64] ss:$28 sps:$4 sm:$0xff]   ;;  %v21308_v18 = vld [vmem:[%s27952_s3 + $0xf9c] ss:$28 sps:$4 sm:$0xff]   ;;  %v21311_v25 = vld [vmem:[%s27952_s3 + $0xfd4] ss:$28 sps:$4 sm:$0xff]  }
 0x7d8   :  { %18161 = vmatprep.subr.bf16.mxu0 %v21249_v26  ;;  %v21306_v24 = vld [vmem:[%s27952_s3 + $0xf98] ss:$28 sps:$4 sm:$0xff]   ;;  %v21309_v12 = vld [vmem:[%s27952_s3 + $0xfd0] ss:$28 sps:$4 sm:$0xff]   ;;  %v21312_v30 = vld [vmem:[%s27952_s3 + $0x1008] ss:$28 sps:$4 sm:$0xff]  }
 0x7d9   :  { %15419 = vmatpush1.bf16.msra.mxu1 %v21245_v28  ;;  %v21314_v26 = vld [vmem:[%s27952_s3 + $0x100c] ss:$28 sps:$4 sm:$0xff]   ;;  %v21317_v28 = vld [vmem:[%s27952_s3 + $0x1044] ss:$28 sps:$4 sm:$0xff]  }
 0x7da   :  { %15420 = vmatprep.subr.bf16.mxu1 %v21252_v19  ;;  %v21315_v19 = vld [vmem:[%s27952_s3 + $0x1040] ss:$28 sps:$4 sm:$0xff]  }
 0x7db   :  { %18162 = vmatpush3.bf16.msra.mxu0 %v21253_v62  ;;  %v21320_v62 = vld [vmem:[%s27952_s3 + $0x107c] ss:$28 sps:$4 sm:$0xff]  }
 0x7dc   :  { %18163 = vmatprep.subr.bf16.mxu0 %v21254_v39  ;;  %v21318_v39 = vld [vmem:[%s27952_s3 + $0x1078] ss:$28 sps:$4 sm:$0xff]  }
 0x7dd   :  { %15421 = vmatpush1.bf16.msra.mxu1 %v21250_v45  ;;  %v21323_v45 = vld [vmem:[%s27952_s3 + $0x10b4] ss:$28 sps:$4 sm:$0xff]  }
 0x7de   :  { %15422 = vmatprep.subr.bf16.mxu1 %v21257_v29  ;;  %v21321_v29 = vld [vmem:[%s27952_s3 + $0x10b0] ss:$28 sps:$4 sm:$0xff]  }
 0x7df   :  { %18164 = vmatpush3.bf16.msra.mxu0 %v21258_v2  ;;  %v21326_v2 = vld [vmem:[%s27952_s3 + $0x10ec] ss:$28 sps:$4 sm:$0xff]  }
 0x7e0   :  { %18202 = vmatprep.subr.bf16.mxu0 %v21403_v51 }
 0x7e1   :  { %15423 = vmatpush1.bf16.msra.mxu1 %v21255_v31  ;;  %v21324_v31 = vld [vmem:[%s27952_s3 + $0x10e8] ss:$28 sps:$4 sm:$0xff]  }
 0x7e2   :  { %15680 = vmatmul.mubr.bf16.vlgmr.msra.gmra.mrb[28].mxu0 %v26359_v21  ;;  %15424 = vmatprep.subr.bf16.mxu1 %v21261_v35  ;;  %v21329_v35 = vld [vmem:[%s27952_s3 + $0x1124] ss:$28 sps:$4 sm:$0xff]  }
 0x7e3   :  { %18203 = vmatpush3.bf16.msra.mxu0 %v21262_v36  ;;  %18218 = vmatprep.mubr.msk.bf16.mxu0 %vm21404_vm1, %v21403_v51  ;;  %v15783_v36 = vrot.slane %v27552_v54, %v26107_v41 }
 0x7e4   :  { %18204 = vmatprep.subr.bf16.mxu0 %v21403_v51 }
 0x7e5   :  { %15425 = vmatpush1.bf16.msra.mxu1 %v21259_v27  ;;  %v15787_v27 = vrot.slane %v27552_v54, %v26322_v3  ;;  %v21330_v54 = vld [vmem:[%s27952_s3 + $0x1158] ss:$28 sps:$4 sm:$0xff]  }
 0x7e6   :  { %15426 = vmatprep.subr.bf16.mxu1 %v21265_v44  ;;  %v11597_v44 = vrot.slane %v27566_v52, %v25556_v48 }
 0x7e7   :  { %18205 = vmatpush3.bf16.msra.mxu0 %v21266_v46  ;;  %v21332_v46 = vld [vmem:[%s27952_s3 + $0x115c] ss:$28 sps:$4 sm:$0xff]  }
 0x7e8   :  { %18206 = vmatprep.subr.bf16.mxu0 %v21403_v51 }
 0x7e9   :  { %15427 = vmatpush1.bf16.msra.mxu1 %v21263_v47  ;;  %v11601_v47 = vrot.slane %v27566_v52, %v1584_v60 }
 0x7ea   :  { %15428 = vmatprep.subr.bf16.mxu1 %v21269_v55  ;;  %v15818_v55 = vrot.slane %v15783_v36, %v25676_v53  ;;  %v21370_v36 = vld [vmem:[%s27952_s3 + $0xf68] ss:$28 sps:$4 sm:$0xff]  }
 0x7eb   :  { %18207 = vmatpush3.bf16.msra.mxu0 %v21270_v50 }
 0x7ec   :  { %18208 = vmatprep.subr.bf16.mxu0 %v21403_v51 }
 0x7ed   :  { %15429 = vmatpush1.bf16.msra.mxu1 %v21267_v33  ;;  %v15822_v33 = vrot.slane %v15787_v27, %v25676_v53  ;;  %v11613_v27 = vrot.slane %v27566_v52, %v26322_v3 }
 0x7ee   :  { %15430 = vmatprep.subr.bf16.mxu1 %v21273_v22 }
 0x7ef   :  { %18209 = vmatpush3.bf16.msra.mxu0 %v21274_v13 }
 0x7f0   :  { %18210 = vmatprep.subr.bf16.mxu0 %v21403_v51 }
 0x7f1   :  { %15431 = vmatpush1.bf16.msra.mxu1 %v21271_v56  ;;  %v21335_v56 = vld [vmem:[%s27952_s3 + $0x1194] ss:$28 sps:$4 sm:$0xff]  }
 0x7f2   :  { %15432 = vmatprep.subr.bf16.mxu1 %v21277_v57 }
 0x7f3   :  { %18211 = vmatpush3.bf16.msra.mxu0 %v21278_v58 }
 0x7f4   :  { %18212 = vmatprep.subr.bf16.mxu0 %v21403_v51 }
 0x7f5   :  { %15433 = vmatpush1.bf16.msra.mxu1 %v21275_v59 }
 0x7f6   :  { %15434 = vmatprep.subr.bf16.mxu1 %v21281_v40 }
 0x7f7   :  { %18213 = vmatpush3.bf16.msra.mxu0 %v21282_v15  ;;  %v21333_v15 = vld [vmem:[%s27952_s3 + $0x1190] ss:$28 sps:$4 sm:$0xff]  }
 0x7f8   :  { %18214 = vmatprep.subr.bf16.mxu0 %v21403_v51 }
 0x7f9   :  { %15435 = vmatpush1.bf16.msra.mxu1 %v21279_v61 }
 0x7fa   :  { %15445 = vmatprep.subr.bf16.mxu1 %v21285_v0  ;;  %v21338_v0 = vld [vmem:[%s27952_s3 + $0x11cc] ss:$28 sps:$4 sm:$0xff]  }
 0x7fb   :  { %18215 = vmatpush3.bf16.msra.mxu0 %v21286_v10 }
 0x7fc   :  { %15437 = vmatmul.mubr.bf16.vlgmr.msra.gmra.mrb[44].mxu1 %v26359_v21  ;;  %18216 = vmatprep.subr.bf16.mxu0 %v21403_v51  ;;  %v21296_v21 = vld [vmem:[%s27952_s3 + $0xebc] ss:$28 sps:$4 sm:$0xff]  }
 0x7fd   :  { %15446 = vmatpush1.bf16.msra.mxu1 %v21283_v4  ;;  %15477 = vmatprep.mubr.bf16.mxu1 %v26801_v32  ;;  %v21327_v51 = vld [vmem:[%s27952_s3 + $0x1120] ss:$28 sps:$4 sm:$0xff]  }
 0x7fe   :  { %15447 = vmatprep.subr.bf16.mxu1 %v21289_v38 }
 0x7ff   :  { %18217 = vmatpush3.bf16.msra.mxu0 %v21290_v6  ;;  %v21336_v6 = vld [vmem:[%s27952_s3 + $0x11c8] ss:$28 sps:$4 sm:$0xff]  }
 0x801   :  { %15448 = vmatpush1.bf16.msra.mxu1 %v21287_v5  ;;  %v21341_v5 = vld [vmem:[%s27952_s3 + $0x1204] ss:$28 sps:$4 sm:$0xff]  }
 0x802   :  { %18219 = vmatmul.mubr.bf16.vlgmr.msra.gmra.mrb[32].mxu0 %v26909_v37  ;;  %15449 = vmatprep.subr.bf16.mxu1 %v21293_v14  ;;  %v21344_v14 = vld [vmem:[%s27952_s3 + $0x123c] ss:$28 sps:$4 sm:$0xff]  }
 0x805   :  { %15450 = vmatpush1.bf16.msra.mxu1 %v21291_v1  ;;  %v21347_v1 = vld [vmem:[%s27952_s3 + $0x1274] ss:$28 sps:$4 sm:$0xff]  }
 0x806   :  { %15451 = vmatprep.subr.bf16.mxu1 %v21296_v21  ;;  %v21345_v21 = vld [vmem:[%s27952_s3 + $0x1270] ss:$28 sps:$4 sm:$0xff]  }
 0x809   :  { %15452 = vmatpush1.bf16.msra.mxu1 %v21294_v7  ;;  %v21350_v7 = vld [vmem:[%s27952_s3 + $0x12ac] ss:$28 sps:$4 sm:$0xff]  }
 0x80a   :  { %15453 = vmatprep.subr.bf16.mxu1 %v21299_v8  ;;  %v21348_v8 = vld [vmem:[%s27952_s3 + $0x12a8] ss:$28 sps:$4 sm:$0xff]  }
 0x80d   :  { %15454 = vmatpush1.bf16.msra.mxu1 %v21297_v11  ;;  %v21353_v11 = vld [vmem:[%s27952_s3 + $0x12e4] ss:$28 sps:$4 sm:$0xff]  }
 0x80e   :  { %15455 = vmatprep.subr.bf16.mxu1 %v21302_v9  ;;  %v21351_v9 = vld [vmem:[%s27952_s3 + $0x12e0] ss:$28 sps:$4 sm:$0xff]  }
 0x811   :  { %15456 = vmatpush1.bf16.msra.mxu1 %v21300_v20  ;;  %v21356_v20 = vld [vmem:[%s27952_s3 + $0x131c] ss:$28 sps:$4 sm:$0xff]  }
 0x812   :  { %15457 = vmatprep.subr.bf16.mxu1 %v21305_v17 }
 0x815   :  { %15458 = vmatpush1.bf16.msra.mxu1 %v21303_v16  ;;  %v21354_v16 = vld [vmem:[%s27952_s3 + $0x1318] ss:$28 sps:$4 sm:$0xff]  }
 0x816   :  { %15459 = vmatprep.subr.bf16.mxu1 %v21308_v18 }
 0x819   :  { %15460 = vmatpush1.bf16.msra.mxu1 %v21306_v24  ;;  %v21357_v24 = vld [vmem:[%s27952_s3 + $0xfd8] ss:$28 sps:$4 sm:$0xff]  }
 0x81a   :  { %15461 = vmatprep.subr.bf16.mxu1 %v21311_v25 }
 0x81d   :  { %15462 = vmatpush1.bf16.msra.mxu1 %v21309_v12 }
 0x81e   :  { %15463 = vmatprep.subr.bf16.mxu1 %v21314_v26 }
 0x821   :  { %15464 = vmatpush1.bf16.msra.mxu1 %v21312_v30  ;;  %v21358_v30 = vld [vmem:[%s27952_s3 + $0xe18] ss:$28 sps:$4 sm:$0xff]  }
 0x822   :  { %15465 = vmatprep.subr.bf16.mxu1 %v21317_v28  ;;  %v21359_v28 = vld [vmem:[%s27952_s3 + $0x1010] ss:$28 sps:$4 sm:$0xff]  }
 0x825   :  { %15466 = vmatpush1.bf16.msra.mxu1 %v21315_v19  ;;  %v21360_v19 = vld [vmem:[%s27952_s3 + $0xe50] ss:$28 sps:$4 sm:$0xff]  }
 0x826   :  { %15467 = vmatprep.subr.bf16.mxu1 %v21320_v62  ;;  %v21361_v62 = vld [vmem:[%s27952_s3 + $0x1048] ss:$28 sps:$4 sm:$0xff]  }
 0x829   :  { %15468 = vmatpush1.bf16.msra.mxu1 %v21318_v39  ;;  %v21362_v39 = vld [vmem:[%s27952_s3 + $0xe88] ss:$28 sps:$4 sm:$0xff]  }
 0x82a   :  { %15469 = vmatprep.subr.bf16.mxu1 %v21323_v45  ;;  %v21365_v45 = vld [vmem:[%s27952_s3 + $0x10b8] ss:$28 sps:$4 sm:$0xff]  }
 0x82d   :  { %15470 = vmatpush1.bf16.msra.mxu1 %v21321_v29  ;;  %v21366_v29 = vld [vmem:[%s27952_s3 + $0xef8] ss:$28 sps:$4 sm:$0xff]  }
 0x82e   :  { %15471 = vmatprep.subr.bf16.mxu1 %v21326_v2  ;;  %v21367_v2 = vld [vmem:[%s27952_s3 + $0x10f0] ss:$28 sps:$4 sm:$0xff]  }
 0x831   :  { %15472 = vmatpush1.bf16.msra.mxu1 %v21324_v31  ;;  %v21368_v31 = vld [vmem:[%s27952_s3 + $0xf30] ss:$28 sps:$4 sm:$0xff]  }
 0x832   :  { %15473 = vmatprep.subr.bf16.mxu1 %v21329_v35  ;;  %v21369_v35 = vld [vmem:[%s27952_s3 + $0x1128] ss:$28 sps:$4 sm:$0xff]  }
 0x835   :  { %15474 = vmatpush1.bf16.msra.mxu1 %v21327_v51  ;;  %v15274_v50 = vpop.f32.mrb[12].mxu0  ;;  %v21371_v51 = vld [vmem:[%s27952_s3 + $0x1160] ss:$28 sps:$4 sm:$0xff]  }
 0x836   :  { %v18234_v22 = vadd.f32 %v15274_v50, %v11597_v44  ;;  %v15276_v13 = vpop.f32.mrb[13].mxu0  ;;  %15475 = vmatprep.subr.bf16.mxu1 %v21332_v46  ;;  %v21372_v46 = vld [vmem:[%s27952_s3 + $0xfa0] ss:$28 sps:$4 sm:$0xff]  }
 0x837   :  { %v18235_v57 = vadd.f32 %v15276_v13, %v11601_v47  ;;  %v15278_v58 = vpop.f32.mrb[14].mxu0 }
 0x838   :  { %v15837_v60 = vmul.f32 %v18234_v22, %v15818_v55  ;;  %v15279_v59 = vpop.f32.mrb[15].mxu0 }
 0x839   :  { %v15838_v40 = vmul.f32 %v18235_v57, %v15822_v33  ;;  %15476 = vmatpush1.bf16.msra.mxu1 %v21330_v54 }
 0x83a   :  { %v15846_v61 = vsel %vm15842_vm0, %v15837_v60, 0.0  ;;  %15486 = vmatprep.subr.bf16.mxu1 %v21335_v56 }
 0x83b   :  { %v15847_v10 = vadd.f32 %v15846_v61, %v27616_v63  ;;  %v15848_v4 = vsel %vm15842_vm0, %v15838_v40, 0.0  ;;  %v21339_v63 = vld [vmem:[%s27952_s3 + $0x1200] ss:$28 sps:$4 sm:$0xff]  }
 0x83c   :  { %15478 = vmatmul.mubr.bf16.vlgmr.msra.gmra.mrb[44].mxu1 %v26806_v23 }
 0x83d   :  { %v27823_v38 = vadd.f32 %v15848_v4, %v15847_v10  ;;  %15487 = vmatpush1.bf16.msra.mxu1 %v21333_v15  ;;  %15518 = vmatprep.mubr.bf16.mxu1 %v21402_v49  ;;  %v21342_v49 = vld [vmem:[%s27952_s3 + $0x1238] ss:$28 sps:$4 sm:$0xff]  }
 0x83e   :  { %15488 = vmatprep.subr.bf16.mxu1 %v21338_v0 }
 0x841   :  { %15489 = vmatpush1.bf16.msra.mxu1 %v21336_v6 }
 0x842   :  { %15490 = vmatprep.subr.bf16.mxu1 %v21341_v5 }
 0x845   :  { %15491 = vmatpush1.bf16.msra.mxu1 %v21339_v63 }
 0x846   :  { %15492 = vmatprep.subr.bf16.mxu1 %v21344_v14  ;;  %v15769_v14 = vunpack.c.h.bf16 %v27540_v34 }
 0x849   :  { %15493 = vmatpush1.bf16.msra.mxu1 %v21342_v49  ;;  %v15795_v49 = vrot.slane %v15769_v14, %v25556_v48 }
 0x84a   :  { %15494 = vmatprep.subr.bf16.mxu1 %v21347_v1  ;;  %v11605_v1 = vrot.slane %v27566_v52, %v26107_v41 }
 0x84d   :  { %15495 = vmatpush1.bf16.msra.mxu1 %v21345_v21  ;;  %v11609_v21 = vrot.slane %v27566_v52, %v1592_v43  ;;  %v15799_v52 = vrot.slane %v15769_v14, %v26107_v41 }
 0x84e   :  { %15496 = vmatprep.subr.bf16.mxu1 %v21350_v7 }
 0x851   :  { %15497 = vmatpush1.bf16.msra.mxu1 %v21348_v8 }
 0x852   :  { %15498 = vmatprep.subr.bf16.mxu1 %v21353_v11  ;;  %v15830_v11 = vrot.slane %v15795_v49, %v25676_v53 }
 0x855   :  { %15499 = vmatpush1.bf16.msra.mxu1 %v21351_v9  ;;  %v18099_v17 = vpop.f32.mrb[16].mxu0 }
 0x856   :  { %v18100_v18 = vpop.f32.mrb[17].mxu0  ;;  %15500 = vmatprep.subr.bf16.mxu1 %v21356_v20 }
 0x857   :  { %v18101_v25 = vadd.f32 %v18100_v18, %v18099_v17  ;;  %v18102_v12 = vpop.f32.mrb[18].mxu0 }
 0x858   :  { %v18103_v26 = vpop.f32.mrb[19].mxu0 }
 0x859   :  { %15501 = vmatpush1.bf16.msra.mxu1 %v21354_v16  ;;  %v15562_v55 = vadd.f32 %v18101_v25, %v11613_v27 }
 0x85a   :  { %18171 = vmatprep.subr.bf16.mxu1 %v21357_v24 }
 0x85c   :  { %15519 = vmatmul.mubr.bf16.vlgmr.msra.gmra.mrb[44].mxu1 %v26909_v37  ;;  %v21363_v37 = vld [vmem:[%s27952_s3 + $0x1080] ss:$28 sps:$4 sm:$0xff]  }
 0x85d   :  { %18172 = vmatpush3.bf16.msra.mxu1 %v21358_v30  ;;  %15719 = vmatprep.mubr.bf16.mxu1 %v26801_v32  ;;  %v21364_v32 = vld [vmem:[%s27952_s3 + $0xec0] ss:$28 sps:$4 sm:$0xff]  }
 0x85e   :  { %18173 = vmatprep.subr.bf16.mxu1 %v21359_v28 }
 0x861   :  { %18174 = vmatpush3.bf16.msra.mxu1 %v21360_v19 }
 0x862   :  { %18175 = vmatprep.subr.bf16.mxu1 %v21361_v62 }
 0x865   :  { %18176 = vmatpush3.bf16.msra.mxu1 %v21362_v39  ;;  %v15834_v39 = vrot.slane %v15799_v52, %v25676_v53 }
 0x866   :  { %18177 = vmatprep.subr.bf16.mxu1 %v21363_v37 }
 0x869   :  { %18178 = vmatpush3.bf16.msra.mxu1 %v21364_v32 }
 0x86a   :  { %18179 = vmatprep.subr.bf16.mxu1 %v21365_v45 }
 0x86d   :  { %18180 = vmatpush3.bf16.msra.mxu1 %v21366_v29 }
 0x86e   :  { %18181 = vmatprep.subr.bf16.mxu1 %v21367_v2 }
 0x871   :  { %18182 = vmatpush3.bf16.msra.mxu1 %v21368_v31 }
 0x872   :  { %18183 = vmatprep.subr.bf16.mxu1 %v21369_v35 }
 0x875   :  { %18184 = vmatpush3.bf16.msra.mxu1 %v21370_v36  ;;  %v18121_v44 = vpop.f32.mrb[20].mxu0 }
 0x876   :  { %v18122_v47 = vpop.f32.mrb[21].mxu0  ;;  %18185 = vmatprep.subr.bf16.mxu1 %v21371_v51 }
 0x877   :  { %v18123_v50 = vadd.f32 %v18122_v47, %v18121_v44  ;;  %v18124_v33 = vpop.f32.mrb[22].mxu0 }
 0x878   :  { %v18125_v54 = vpop.f32.mrb[23].mxu0 }
 0x879   :  { %v15602_v22 = vadd.f32 %v18123_v50, %v15562_v55  ;;  %18186 = vmatpush3.bf16.msra.mxu1 %v21372_v46 }
 0x87c   :  { %15720 = vmatmul.mubr.bf16.vlgmr.msra.gmra.mrb[48].mxu1 %v26806_v23  ;;  %v15791_v23 = vrot.slane %v15769_v14, %v25676_v53 }
 0x87e   :  { %v15826_v7 = vrot.slane %v15791_v23, %v25676_v53 }
 0x895   :  { %v18143_v13 = vpop.f32.mrb[24].mxu0 }
 0x896   :  { %v18144_v56 = vpop.f32.mrb[25].mxu0 }
 0x897   :  { %v18145_v57 = vadd.f32 %v18144_v56, %v18143_v13  ;;  %v18146_v3 = vpop.f32.mrb[26].mxu0 }
 0x898   :  { %v18147_v58 = vpop.f32.mrb[27].mxu0 }
 0x899   :  { %v15642_v60 = vadd.f32 %v18145_v57, %v15602_v22 }
 0x8b5   :  { %v18165_v59 = vpop.f32.mrb[28].mxu0 }
 0x8b6   :  { %v18166_v40 = vpop.f32.mrb[29].mxu0 }
 0x8b7   :  { %v18167_v15 = vadd.f32 %v18166_v40, %v18165_v59  ;;  %v18168_v61 = vpop.f32.mrb[30].mxu0 }
 0x8b8   :  { %v18169_v0 = vpop.f32.mrb[31].mxu0 }
 0x8b9   :  { %v15682_v10 = vadd.f32 %v18167_v15, %v15642_v60 }
 0x8d5   :  { %v15761_v4 = vpop.f32.mrb[32].mxu0 }
 0x8d6   :  { %v18220_v6 = vpop.f32.mrb[33].mxu0 }
 0x8d7   :  { %v15764_v5 = vpop.f32.mrb[34].mxu0 }
 0x8d8   :  { %v18221_v63 = vpop.f32.mrb[35].mxu0 }
 0x92f   :  { %v15520_v8 = vpop.f32.mrb[44].mxu1 }
 0x930   :  { %v18236_v9 = vadd.f32 %v15520_v8, %v11605_v1  ;;  %v15522_v20 = vpop.f32.mrb[45].mxu1 }
 0x931   :  { %v18237_v17 = vadd.f32 %v15522_v20, %v11609_v21  ;;  %v15524_v34 = vpop.f32.mrb[46].mxu1 }
 0x932   :  { %v15839_v16 = vmul.f32 %v18236_v9, %v15826_v7  ;;  %v15525_v18 = vpop.f32.mrb[47].mxu1 }
 0x933   :  { %v15840_v24 = vmul.f32 %v18237_v17, %v15830_v11 }
 0x934   :  { %v15850_v48 = vsel %vm15842_vm0, %v15839_v16, 0.0 }
 0x935   :  { %v15851_v25 = vadd.f32 %v15850_v48, %v27823_v38  ;;  %v15852_v42 = vsel %vm15842_vm0, %v15840_v24, 0.0  ;;  %v17906_v38 = vld [vmem:[%s27955_s6] ss:$0 sm:$0xff] }
 0x937   :  { %v15853_v12 = vadd.f32 %v15852_v42, %v15851_v25 }
 0x94f   :  { %v18187_v43 = vpop.f32.mrb[48].mxu1 }
 0x950   :  { %v18188_v26 = vpop.f32.mrb[49].mxu1 }
 0x951   :  { %v18189_v30 = vadd.f32 %v18188_v26, %v18187_v43  ;;  %v18190_v28 = vpop.f32.mrb[50].mxu1 }
 0x952   :  { %v18191_v19 = vpop.f32.mrb[51].mxu1 }
 0x953   :  { %v15722_v62 = vadd.f32 %v18189_v30, %v15682_v10 }
 0x955   :  { %v15762_v37 = vadd.f32 %v15761_v4, %v15722_v62 }
 0x957   :  { %v15841_v32 = vmul.f32 %v15834_v39, %v15762_v37 }
 0x959   :  { %v15854_v45 = vsel %vm15842_vm0, %v15841_v32, 0.0 }
 0x95a   :  { %v15855_v29 = vadd.f32 %v15854_v45, %v15853_v12 }
 0x95c   :  { %15856 = vadd.xlane.f32.xlu0 %v15855_v29 }
 0x9e9   :  { %v15857_v41 = vpop.xlane.xlu0 %15856 }
 0x9ea   :  { %v15865_v2 = vadd.f32 %v17906_v38, %v15857_v41 }
 0x9ec   :  { %15867 = vst.msk [vmem:[#allocation2] sm:$0x3] %vm15866_vm2, %v15865_v2 }
 0x9ed   :  { %21388 = shalt.err (!%p21385_p4)
}
 0x9ee   :  { %s21389_s16 = scalar_lea.hbm %s27956_s7, 32 }
 0x9ef   :  { %p21390_p5 = scmp.ne.s32.totalorder %s27956_s7, %s21389_s16  ;;  %p21393_p6 = scmp.lt.u32.totalorder %s21389_s16, %s27956_s7 }
 0x9f1   :  { %p21395_p7 = pnand %p21393_p6, %p21390_p5 }
 0x9f3   :  { %21398 = shalt.err (!%p21395_p7)
}
 0x9f4   :  { %15877 = dma.vmem_to_hbm [thread:$0]  %s15875_s12, 32, %s27956_s7, [#allocation3]  }
 0x9f5   :  { %21399 = dma.done.wait [#allocation3], 32  }
 0x9f6   :  { %21400 = vsyncadd [#allocation3], 4294967264 }
 0x9f7   :  { %15881 = vsyncpa [#allocation3], 1 }

</bundles_post_ra>
